<compile_context>
chip_gen: v6e
topology: v6e:2x2x1
jax: 0.10.0
libtpu: 0.0.40
codegen_flags: <defaults>
</compile_context>

<pallas_src>
import functools

import numpy as np
import jax
import jax.numpy as jnp
from jax.experimental import pallas as pl
from jax.experimental.pallas import tpu as pltpu


_EPS = 1e-5


def _round_up(x, m):
    return ((x + m - 1) // m) * m


# ----------------------------------------------------------------------------
# Host-side glue: im2col (reshape/slicing only) and 0/1 gather matrices
# ----------------------------------------------------------------------------
def _im2col(x_nhwc, k, stride, pad):
    """Extract conv patches; rows ordered (n, ho, wo), cols ordered (kh, kw, c)."""
    n, h, w, c = x_nhwc.shape
    xp = jnp.pad(x_nhwc, ((0, 0), (pad, pad), (pad, pad), (0, 0)))
    hp, wp = h + 2 * pad, w + 2 * pad
    ho = (hp - k) // stride + 1
    wo = (wp - k) // stride + 1
    pieces = []
    for kh in range(k):
        for kw in range(k):
            pieces.append(
                xp[:, kh:kh + stride * ho:stride, kw:kw + stride * wo:stride, :])
    patches = jnp.stack(pieces, axis=3).reshape(n * ho * wo, k * k * c)
    return patches, (n, ho, wo)


def _gather_mats(n, h_in, w_in, k, stride, pad):
    """0/1 matrices S[t] (t = kh*k + kw) such that patches_t = S[t] @ act_flat.

    act_flat rows are ordered (n, h, w); output rows are ordered (n, ho, wo).
    Padding taps simply produce all-zero rows.  Built at trace time (shapes are
    static under jit), so these become small bf16 constants.
    """
    ho = (h_in + 2 * pad - k) // stride + 1
    wo = (w_in + 2 * pad - k) // stride + 1
    S = np.zeros((k * k, n * ho * wo, n * h_in * w_in), np.float32)
    for nn in range(n):
        for oh in range(ho):
            for ow in range(wo):
                m = (nn * ho + oh) * wo + ow
                for kh in range(k):
                    h = oh * stride - pad + kh
                    if not 0 <= h < h_in:
                        continue
                    for kw in range(k):
                        w = ow * stride - pad + kw
                        if 0 <= w < w_in:
                            S[kh * k + kw, m, (nn * h_in + h) * w_in + w] = 1.0
    return jnp.asarray(S, jnp.bfloat16), ho, wo


# ----------------------------------------------------------------------------
# Pallas kernels
# ----------------------------------------------------------------------------
def _leaky(y):
    return jnp.where(y > 0, y, 0.2 * y)


def _matmul_act_kernel(x_ref, w_ref, s_ref, t_ref, o_ref, *, act):
    # x: (tm, K) bf16   w: (K, Cout) bf16   s/t: (1, Cout) f32   o: (tm, Cout)
    y = jnp.dot(x_ref[...], w_ref[...], preferred_element_type=jnp.float32)
    y = y * s_ref[...] + t_ref[...]          # folded bias + BatchNorm affine
    if act == "leaky":
        y = _leaky(y)
    elif act == "sigmoid":
        y = jax.nn.sigmoid(y)
    o_ref[...] = y.astype(o_ref.dtype)


def fused_matmul_act(patches, wmat, scale, shift, *, act, tm, out_dtype):
    """One conv layer as patches @ W -> scale/shift -> activation."""
    m, kk = patches.shape
    c_out = wmat.shape[1]
    tm = min(tm, _round_up(m, 256))          # fixed tile, never whole-M fallback
    m_pad = _round_up(m, tm)
    if m_pad != m:
        patches = jnp.pad(patches, ((0, m_pad - m), (0, 0)))
    out = pl.pallas_call(
        functools.partial(_matmul_act_kernel, act=act),
        out_shape=jax.ShapeDtypeStruct((m_pad, c_out), out_dtype),
        grid=(m_pad // tm,),
        in_specs=[
            pl.BlockSpec((tm, kk), lambda i: (i, 0)),
            pl.BlockSpec((kk, c_out), lambda i: (0, 0)),
            pl.BlockSpec((1, c_out), lambda i: (0, 0)),
            pl.BlockSpec((1, c_out), lambda i: (0, 0)),
        ],
        out_specs=pl.BlockSpec((tm, c_out), lambda i: (i, 0)),
        compiler_params=pltpu.CompilerParams(dimension_semantics=("parallel",)),
    )(patches.astype(jnp.bfloat16), wmat, scale, shift)
    return out[:m]


def _tail_kernel(p3_ref, w3_ref, s3_ref, t3_ref,
                 g4_ref, w4_ref, s4_ref, t4_ref,
                 g5_ref, w5_ref, b5_ref, o_ref):
    """conv3+BN3+LeakyReLU -> conv4+BN4+LeakyReLU -> conv5+Sigmoid, all in VMEM."""
    # ---- conv3 (+ Dropout2d eval = identity) + BN3 + LeakyReLU ----
    y3 = jnp.dot(p3_ref[...], w3_ref[...], preferred_element_type=jnp.float32)
    a3 = _leaky(y3 * s3_ref[...] + t3_ref[...]).astype(jnp.bfloat16)   # (M3, 64)

    # ---- conv4 + BN4 + LeakyReLU (patch gather via 0/1 matmuls on the MXU) ----
    acc4 = jnp.zeros((g4_ref.shape[1], w4_ref.shape[2]), jnp.float32)  # (M4, 32)
    for t in range(g4_ref.shape[0]):
        p = jnp.dot(g4_ref[t], a3, preferred_element_type=jnp.float32)
        acc4 = acc4 + jnp.dot(p.astype(jnp.bfloat16), w4_ref[t],
                              preferred_element_type=jnp.float32)
    a4 = _leaky(acc4 * s4_ref[...] + t4_ref[...]).astype(jnp.bfloat16)  # (M4, 32)

    # ---- conv5 + Sigmoid ----
    acc5 = jnp.zeros((g5_ref.shape[1], w5_ref.shape[2]), jnp.float32)  # (M5, 1)
    for t in range(g5_ref.shape[0]):
        p = jnp.dot(g5_ref[t], a4, preferred_element_type=jnp.float32)
        acc5 = acc5 + jnp.dot(p.astype(jnp.bfloat16), w5_ref[t],
                              preferred_element_type=jnp.float32)
    o_ref[...] = jax.nn.sigmoid(acc5 + b5_ref[...])


# ----------------------------------------------------------------------------
# Parameter construction (deterministic, synthetic) + folding
# ----------------------------------------------------------------------------
def init_params(key):
    raw = {}
    conv_shapes = [
        (4, 4, 3, 64),     # Conv2d(3, 64, 4, 2, 1)
        (4, 4, 64, 128),   # Conv2d(64, 128, 4, 2, 1)
        (4, 4, 128, 64),   # Conv2d(128, 64, 4, 2, 1)
        (4, 4, 64, 32),    # Conv2d(64, 32, 4, 2, 1)
        (4, 4, 32, 1),     # Conv2d(32, 1, 4, 1, 0)
    ]
    keys = jax.random.split(key, 2 * len(conv_shapes) + 4)
    for i, shp in enumerate(conv_shapes):
        raw[f"w{i+1}"] = 0.05 * jax.random.normal(keys[2 * i], shp, jnp.float32)
        raw[f"b{i+1}"] = 0.01 * jax.random.normal(keys[2 * i + 1], (shp[-1],), jnp.float32)
    for tag, c, kg, kb in (("bn3", 64, keys[-4], keys[-3]),
                           ("bn4", 32, keys[-2], keys[-1])):
        raw[f"{tag}_gamma"] = 1.0 + 0.1 * jax.random.normal(kg, (c,), jnp.float32)
        raw[f"{tag}_beta"] = 0.1 * jax.random.normal(kb, (c,), jnp.float32)
        raw[f"{tag}_mean"] = jnp.zeros((c,), jnp.float32)   # PyTorch defaults
        raw[f"{tag}_var"] = jnp.ones((c,), jnp.float32)
    return raw


def prepare_params(raw):
    """Fold BN + conv bias into per-channel scale/shift; bf16 matmul weights."""
    def bn_fold(gamma, beta, mean, var, bias):
        scale = gamma / jnp.sqrt(var + _EPS)
        shift = beta - mean * scale + scale * bias     # bias folded into shift
        return scale, shift

    p = {}
    # conv1 / conv2 : no BN -> scale = 1, shift = bias
    p["w1m"] = raw["w1"].reshape(-1, 64).astype(jnp.bfloat16)
    p["s1"] = jnp.ones((1, 64), jnp.float32)
    p["t1"] = raw["b1"].reshape(1, 64).astype(jnp.float32)
    p["w2m"] = raw["w2"].reshape(-1, 128).astype(jnp.bfloat16)
    p["s2"] = jnp.ones((1, 128), jnp.float32)
    p["t2"] = raw["b2"].reshape(1, 128).astype(jnp.float32)
    # conv3 + BN3
    s3, t3 = bn_fold(raw["bn3_gamma"], raw["bn3_beta"], raw["bn3_mean"],
                     raw["bn3_var"], raw["b3"])
    p["w3m"] = raw["w3"].reshape(-1, 64).astype(jnp.bfloat16)
    p["s3"], p["t3"] = s3.reshape(1, 64), t3.reshape(1, 64)
    # conv4 + BN4
    s4, t4 = bn_fold(raw["bn4_gamma"], raw["bn4_beta"], raw["bn4_mean"],
                     raw["bn4_var"], raw["b4"])
    p["w4t"] = raw["w4"].reshape(16, 64, 32).astype(jnp.bfloat16)  # per-tap (Cin, Cout)
    p["s4"], p["t4"] = s4.reshape(1, 32), t4.reshape(1, 32)
    # conv5 : bias only
    p["w5t"] = raw["w5"].reshape(16, 32, 1).astype(jnp.bfloat16)
    p["b5r"] = raw["b5"].reshape(1, 1).astype(jnp.float32)
    return p


# ----------------------------------------------------------------------------
# Forward pass (matches Discriminator.forward, eval mode)
# ----------------------------------------------------------------------------
def discriminator_forward(x_nchw, params):
    x = jnp.transpose(x_nchw, (0, 2, 3, 1)).astype(jnp.bfloat16)  # NCHW -> NHWC

    # Conv(3->64, s2, p1) + LeakyReLU
    p1, (n, ho1, wo1) = _im2col(x, 4, 2, 1)
    a1 = fused_matmul_act(p1, params["w1m"], params["s1"], params["t1"],
                          act="leaky", tm=1024, out_dtype=jnp.bfloat16)
    a1 = a1.reshape(n, ho1, wo1, 64)

    # Conv(64->128, s2, p1) + LeakyReLU
    p2, (_, ho2, wo2) = _im2col(a1, 4, 2, 1)
    a2 = fused_matmul_act(p2, params["w2m"], params["s2"], params["t2"],
                          act="leaky", tm=256, out_dtype=jnp.bfloat16)
    a2 = a2.reshape(n, ho2, wo2, 128)

    # Fused tail: Conv(128->64)+Dropout(eval)+BN+LReLU -> Conv(64->32)+BN+LReLU
    #             -> Conv(32->1, s1, p0)+Sigmoid, one pallas_call.
    p3, (_, ho3, wo3) = _im2col(a2, 4, 2, 1)
    g4, ho4, wo4 = _gather_mats(n, ho3, wo3, 4, 2, 1)
    g5, ho5, wo5 = _gather_mats(n, ho4, wo4, 4, 1, 0)
    m5 = n * ho5 * wo5
    out = pl.pallas_call(
        _tail_kernel,
        out_shape=jax.ShapeDtypeStruct((m5, 1), jnp.float32),
    )(p3, params["w3m"], params["s3"], params["t3"],
      g4, params["w4t"], params["s4"], params["t4"],
      g5, params["w5t"], params["b5r"])

    # out.view(-1, 1).squeeze(1)
    return out.reshape(-1, 1).squeeze(1)


if __name__ == "__main__":
    key = jax.random.PRNGKey(0)
    k_param, k_x = jax.random.split(key)

    params = prepare_params(init_params(k_param))
    # Smallest input for which the final 4x4/stride-1/pad-0 conv is valid:
    # 64 -> 32 -> 16 -> 8 -> 4 -> 1.
    x = jax.random.normal(k_x, (2, 3, 64, 64), jnp.float32)  # NCHW, like PyTorch

    out = jax.jit(discriminator_forward)(x, params)
    out = jax.block_until_ready(out)

    assert out.shape == (2,), out.shape
    assert bool(jnp.all((out >= 0.0) & (out <= 1.0)))  # sigmoid output
    print("KERNEL_OK")
</pallas_src>

<mosaic_0001>
module attributes {stable_mosaic.version = 11 : i64} {
  func.func @_matmul_act_kernel(%arg0: i32, %arg1: memref<1024x48xbf16, #tpu.memory_space<vmem>>, %arg2: memref<48x64xbf16, #tpu.memory_space<vmem>>, %arg3: memref<1x64xf32, #tpu.memory_space<vmem>>, %arg4: memref<1x64xf32, #tpu.memory_space<vmem>>, %arg5: memref<1024x64xbf16, #tpu.memory_space<vmem>>) attributes {dimension_semantics = [#tpu.dimension_semantics<parallel>], iteration_bounds = array<i64: 2>, scalar_prefetch = 0 : i64, scratch_operands = 0 : i64, tpu.core_type = #tpu.core_type<tc>, window_params = [{transform_indices = @transform_0, window_bounds = array<i64: 1024, 48>}, {pipeline_mode = #tpu.pipeline_mode<synchronous>, transform_indices = @transform_1, window_bounds = array<i64: 48, 64>}, {pipeline_mode = #tpu.pipeline_mode<synchronous>, transform_indices = @transform_2, window_bounds = array<i64: 1, 64>}, {pipeline_mode = #tpu.pipeline_mode<synchronous>, transform_indices = @transform_3, window_bounds = array<i64: 1, 64>}, {transform_indices = @transform_4, window_bounds = array<i64: 1024, 64>}]} {
    %c0 = arith.constant 0 : index
    %c0_0 = arith.constant 0 : index
    %0 = vector.load %arg1[%c0, %c0_0] : memref<1024x48xbf16, #tpu.memory_space<vmem>>, vector<1024x48xbf16>
    %c0_1 = arith.constant 0 : index
    %c0_2 = arith.constant 0 : index
    %1 = vector.load %arg2[%c0_1, %c0_2] : memref<48x64xbf16, #tpu.memory_space<vmem>>, vector<48x64xbf16>
    %cst = arith.constant dense<0.000000e+00> : vector<1024x64xf32>
    %2 = tpu.matmul %0, %1, %cst {dimension_numbers = #tpu.dot_dimension_numbers<[1], [0], [0], [1], [0, 0, 1, 1], [], []>} : vector<1024x48xbf16>, vector<48x64xbf16>, vector<1024x64xf32> -> vector<1024x64xf32>
    %c0_3 = arith.constant 0 : index
    %c0_4 = arith.constant 0 : index
    %3 = vector.load %arg3[%c0_3, %c0_4] : memref<1x64xf32, #tpu.memory_space<vmem>>, vector<1x64xf32>
    %4 = vector.broadcast %3 : vector<1x64xf32> to vector<1024x64xf32>
    %5 = arith.mulf %2, %4 : vector<1024x64xf32>
    %c0_5 = arith.constant 0 : index
    %c0_6 = arith.constant 0 : index
    %6 = vector.load %arg4[%c0_5, %c0_6] : memref<1x64xf32, #tpu.memory_space<vmem>>, vector<1x64xf32>
    %7 = vector.broadcast %6 : vector<1x64xf32> to vector<1024x64xf32>
    %8 = arith.addf %5, %7 : vector<1024x64xf32>
    %cst_7 = arith.constant 0.000000e+00 : f32
    %9 = vector.broadcast %cst_7 : f32 to vector<1024x64xf32>
    %10 = arith.cmpf ogt, %8, %9 : vector<1024x64xf32>
    %cst_8 = arith.constant 2.000000e-01 : f32
    %11 = vector.broadcast %cst_8 : f32 to vector<1024x64xf32>
    %12 = arith.mulf %11, %8 : vector<1024x64xf32>
    %13 = arith.select %10, %8, %12 : vector<1024x64xi1>, vector<1024x64xf32>
    %14 = arith.truncf %13 : vector<1024x64xf32> to vector<1024x64xbf16>
    %c0_9 = arith.constant 0 : index
    %c0_10 = arith.constant 0 : index
    %15 = vector.load %arg5[%c0_9, %c0_10] : memref<1024x64xbf16, #tpu.memory_space<vmem>>, vector<1024x64xbf16>
    tpu.vector_store %arg5[%c0_9, %c0_10], %14 {strides = array<i32>} : memref<1024x64xbf16, #tpu.memory_space<vmem>>, vector<1024x64xbf16>,
    return
  }
  func.func @transform_0(%arg0: i32) -> (i32, i32) {
    %c0_i32 = arith.constant 0 : i32
    %c0_i32_0 = arith.constant 0 : i32
    return %arg0, %c0_i32 : i32, i32
  }
  func.func @transform_1(%arg0: i32) -> (i32, i32) {
    %c0_i32 = arith.constant 0 : i32
    %c0_i32_0 = arith.constant 0 : i32
    %c0_i32_1 = arith.constant 0 : i32
    return %c0_i32, %c0_i32_0 : i32, i32
  }
  func.func @transform_2(%arg0: i32) -> (i32, i32) {
    %c0_i32 = arith.constant 0 : i32
    %c0_i32_0 = arith.constant 0 : i32
    %c0_i32_1 = arith.constant 0 : i32
    return %c0_i32, %c0_i32_0 : i32, i32
  }
  func.func @transform_3(%arg0: i32) -> (i32, i32) {
    %c0_i32 = arith.constant 0 : i32
    %c0_i32_0 = arith.constant 0 : i32
    %c0_i32_1 = arith.constant 0 : i32
    return %c0_i32, %c0_i32_0 : i32, i32
  }
  func.func @transform_4(%arg0: i32) -> (i32, i32) {
    %c0_i32 = arith.constant 0 : i32
    %c0_i32_0 = arith.constant 0 : i32
    return %arg0, %c0_i32 : i32, i32
  }
}

module attributes {stable_mosaic.version = 11 : i64} {
  func.func @_matmul_act_kernel(%arg0: i32, %arg1: memref<256x1024xbf16, #tpu.memory_space<vmem>>, %arg2: memref<1024x128xbf16, #tpu.memory_space<vmem>>, %arg3: memref<1x128xf32, #tpu.memory_space<vmem>>, %arg4: memref<1x128xf32, #tpu.memory_space<vmem>>, %arg5: memref<256x128xbf16, #tpu.memory_space<vmem>>) attributes {dimension_semantics = [#tpu.dimension_semantics<parallel>], iteration_bounds = array<i64: 2>, scalar_prefetch = 0 : i64, scratch_operands = 0 : i64, tpu.core_type = #tpu.core_type<tc>, window_params = [{transform_indices = @transform_0, window_bounds = array<i64: 256, 1024>}, {pipeline_mode = #tpu.pipeline_mode<synchronous>, transform_indices = @transform_1, window_bounds = array<i64: 1024, 128>}, {pipeline_mode = #tpu.pipeline_mode<synchronous>, transform_indices = @transform_2, window_bounds = array<i64: 1, 128>}, {pipeline_mode = #tpu.pipeline_mode<synchronous>, transform_indices = @transform_3, window_bounds = array<i64: 1, 128>}, {transform_indices = @transform_4, window_bounds = array<i64: 256, 128>}]} {
    %c0 = arith.constant 0 : index
    %c0_0 = arith.constant 0 : index
    %0 = vector.load %arg1[%c0, %c0_0] : memref<256x1024xbf16, #tpu.memory_space<vmem>>, vector<256x1024xbf16>
    %c0_1 = arith.constant 0 : index
    %c0_2 = arith.constant 0 : index
    %1 = vector.load %arg2[%c0_1, %c0_2] : memref<1024x128xbf16, #tpu.memory_space<vmem>>, vector<1024x128xbf16>
    %cst = arith.constant dense<0.000000e+00> : vector<256x128xf32>
    %2 = tpu.matmul %0, %1, %cst {dimension_numbers = #tpu.dot_dimension_numbers<[1], [0], [0], [1], [0, 0, 1, 1], [], []>} : vector<256x1024xbf16>, vector<1024x128xbf16>, vector<256x128xf32> -> vector<256x128xf32>
    %c0_3 = arith.constant 0 : index
    %c0_4 = arith.constant 0 : index
    %3 = vector.load %arg3[%c0_3, %c0_4] : memref<1x128xf32, #tpu.memory_space<vmem>>, vector<1x128xf32>
    %4 = vector.broadcast %3 : vector<1x128xf32> to vector<256x128xf32>
    %5 = arith.mulf %2, %4 : vector<256x128xf32>
    %c0_5 = arith.constant 0 : index
    %c0_6 = arith.constant 0 : index
    %6 = vector.load %arg4[%c0_5, %c0_6] : memref<1x128xf32, #tpu.memory_space<vmem>>, vector<1x128xf32>
    %7 = vector.broadcast %6 : vector<1x128xf32> to vector<256x128xf32>
    %8 = arith.addf %5, %7 : vector<256x128xf32>
    %cst_7 = arith.constant 0.000000e+00 : f32
    %9 = vector.broadcast %cst_7 : f32 to vector<256x128xf32>
    %10 = arith.cmpf ogt, %8, %9 : vector<256x128xf32>
    %cst_8 = arith.constant 2.000000e-01 : f32
    %11 = vector.broadcast %cst_8 : f32 to vector<256x128xf32>
    %12 = arith.mulf %11, %8 : vector<256x128xf32>
    %13 = arith.select %10, %8, %12 : vector<256x128xi1>, vector<256x128xf32>
    %14 = arith.truncf %13 : vector<256x128xf32> to vector<256x128xbf16>
    %c0_9 = arith.constant 0 : index
    %c0_10 = arith.constant 0 : index
    %15 = vector.load %arg5[%c0_9, %c0_10] : memref<256x128xbf16, #tpu.memory_space<vmem>>, vector<256x128xbf16>
    tpu.vector_store %arg5[%c0_9, %c0_10], %14 {strides = array<i32>} : memref<256x128xbf16, #tpu.memory_space<vmem>>, vector<256x128xbf16>,
    return
  }
  func.func @transform_0(%arg0: i32) -> (i32, i32) {
    %c0_i32 = arith.constant 0 : i32
    %c0_i32_0 = arith.constant 0 : i32
    return %arg0, %c0_i32 : i32, i32
  }
  func.func @transform_1(%arg0: i32) -> (i32, i32) {
    %c0_i32 = arith.constant 0 : i32
    %c0_i32_0 = arith.constant 0 : i32
    %c0_i32_1 = arith.constant 0 : i32
    return %c0_i32, %c0_i32_0 : i32, i32
  }
  func.func @transform_2(%arg0: i32) -> (i32, i32) {
    %c0_i32 = arith.constant 0 : i32
    %c0_i32_0 = arith.constant 0 : i32
    %c0_i32_1 = arith.constant 0 : i32
    return %c0_i32, %c0_i32_0 : i32, i32
  }
  func.func @transform_3(%arg0: i32) -> (i32, i32) {
    %c0_i32 = arith.constant 0 : i32
    %c0_i32_0 = arith.constant 0 : i32
    %c0_i32_1 = arith.constant 0 : i32
    return %c0_i32, %c0_i32_0 : i32, i32
  }
  func.func @transform_4(%arg0: i32) -> (i32, i32) {
    %c0_i32 = arith.constant 0 : i32
    %c0_i32_0 = arith.constant 0 : i32
    return %arg0, %c0_i32 : i32, i32
  }
}

module attributes {stable_mosaic.version = 11 : i64} {
  func.func @_tail_kernel(%arg0: memref<128x2048xbf16, #tpu.memory_space<vmem>>, %arg1: memref<2048x64xbf16, #tpu.memory_space<vmem>>, %arg2: memref<1x64xf32, #tpu.memory_space<vmem>>, %arg3: memref<1x64xf32, #tpu.memory_space<vmem>>, %arg4: memref<16x32x128xbf16, #tpu.memory_space<vmem>>, %arg5: memref<16x64x32xbf16, #tpu.memory_space<vmem>>, %arg6: memref<1x32xf32, #tpu.memory_space<vmem>>, %arg7: memref<1x32xf32, #tpu.memory_space<vmem>>, %arg8: memref<16x2x32xbf16, #tpu.memory_space<vmem>>, %arg9: memref<16x32x1xbf16, #tpu.memory_space<vmem>>, %arg10: memref<1x1xf32, #tpu.memory_space<vmem>>, %arg11: memref<2x1xf32, #tpu.memory_space<vmem>>) attributes {dimension_semantics = [], scalar_prefetch = 0 : i64, scratch_operands = 0 : i64, tpu.core_type = #tpu.core_type<tc>} {
    %c0 = arith.constant 0 : index
    %c0_0 = arith.constant 0 : index
    %0 = vector.load %arg0[%c0, %c0_0] : memref<128x2048xbf16, #tpu.memory_space<vmem>>, vector<128x2048xbf16>
    %c0_1 = arith.constant 0 : index
    %c0_2 = arith.constant 0 : index
    %1 = vector.load %arg1[%c0_1, %c0_2] : memref<2048x64xbf16, #tpu.memory_space<vmem>>, vector<2048x64xbf16>
    %cst = arith.constant dense<0.000000e+00> : vector<128x64xf32>
    %2 = tpu.matmul %0, %1, %cst {dimension_numbers = #tpu.dot_dimension_numbers<[1], [0], [0], [1], [0, 0, 1, 1], [], []>} : vector<128x2048xbf16>, vector<2048x64xbf16>, vector<128x64xf32> -> vector<128x64xf32>
    %c0_3 = arith.constant 0 : index
    %c0_4 = arith.constant 0 : index
    %3 = vector.load %arg2[%c0_3, %c0_4] : memref<1x64xf32, #tpu.memory_space<vmem>>, vector<1x64xf32>
    %4 = vector.broadcast %3 : vector<1x64xf32> to vector<128x64xf32>
    %5 = arith.mulf %2, %4 : vector<128x64xf32>
    %c0_5 = arith.constant 0 : index
    %c0_6 = arith.constant 0 : index
    %6 = vector.load %arg3[%c0_5, %c0_6] : memref<1x64xf32, #tpu.memory_space<vmem>>, vector<1x64xf32>
    %7 = vector.broadcast %6 : vector<1x64xf32> to vector<128x64xf32>
    %8 = arith.addf %5, %7 : vector<128x64xf32>
    %cst_7 = arith.constant 0.000000e+00 : f32
    %9 = vector.broadcast %cst_7 : f32 to vector<128x64xf32>
    %10 = arith.cmpf ogt, %8, %9 : vector<128x64xf32>
    %cst_8 = arith.constant 2.000000e-01 : f32
    %11 = vector.broadcast %cst_8 : f32 to vector<128x64xf32>
    %12 = arith.mulf %11, %8 : vector<128x64xf32>
    %13 = arith.select %10, %8, %12 : vector<128x64xi1>, vector<128x64xf32>
    %14 = arith.truncf %13 : vector<128x64xf32> to vector<128x64xbf16>
    %cst_9 = arith.constant 0.000000e+00 : f32
    %15 = vector.broadcast %cst_9 : f32 to vector<32x32xf32>
    %c0_10 = arith.constant 0 : index
    %c0_11 = arith.constant 0 : index
    %c0_12 = arith.constant 0 : index
    %16 = vector.load %arg4[%c0_10, %c0_11, %c0_12] : memref<16x32x128xbf16, #tpu.memory_space<vmem>>, vector<1x32x128xbf16>
    %17 = vector.shape_cast %16 : vector<1x32x128xbf16> to vector<32x128xbf16>
    %cst_13 = arith.constant dense<0.000000e+00> : vector<32x64xf32>
    %18 = tpu.matmul %17, %14, %cst_13 {dimension_numbers = #tpu.dot_dimension_numbers<[1], [0], [0], [1], [0, 0, 1, 1], [], []>} : vector<32x128xbf16>, vector<128x64xbf16>, vector<32x64xf32> -> vector<32x64xf32>
    %19 = arith.truncf %18 : vector<32x64xf32> to vector<32x64xbf16>
    %c0_14 = arith.constant 0 : index
    %c0_15 = arith.constant 0 : index
    %c0_16 = arith.constant 0 : index
    %20 = vector.load %arg5[%c0_14, %c0_15, %c0_16] : memref<16x64x32xbf16, #tpu.memory_space<vmem>>, vector<1x64x32xbf16>
    %21 = vector.shape_cast %20 : vector<1x64x32xbf16> to vector<64x32xbf16>
    %cst_17 = arith.constant dense<0.000000e+00> : vector<32x32xf32>
    %22 = tpu.matmul %19, %21, %cst_17 {dimension_numbers = #tpu.dot_dimension_numbers<[1], [0], [0], [1], [0, 0, 1, 1], [], []>} : vector<32x64xbf16>, vector<64x32xbf16>, vector<32x32xf32> -> vector<32x32xf32>
    %23 = arith.addf %15, %22 : vector<32x32xf32>
    %c1 = arith.constant 1 : index
    %c0_18 = arith.constant 0 : index
    %c0_19 = arith.constant 0 : index
    %24 = vector.load %arg4[%c1, %c0_18, %c0_19] : memref<16x32x128xbf16, #tpu.memory_space<vmem>>, vector<1x32x128xbf16>
    %25 = vector.shape_cast %24 : vector<1x32x128xbf16> to vector<32x128xbf16>
    %cst_20 = arith.constant dense<0.000000e+00> : vector<32x64xf32>
    %26 = tpu.matmul %25, %14, %cst_20 {dimension_numbers = #tpu.dot_dimension_numbers<[1], [0], [0], [1], [0, 0, 1, 1], [], []>} : vector<32x128xbf16>, vector<128x64xbf16>, vector<32x64xf32> -> vector<32x64xf32>
    %27 = arith.truncf %26 : vector<32x64xf32> to vector<32x64xbf16>
    %c1_21 = arith.constant 1 : index
    %c0_22 = arith.constant 0 : index
    %c0_23 = arith.constant 0 : index
    %28 = vector.load %arg5[%c1_21, %c0_22, %c0_23] : memref<16x64x32xbf16, #tpu.memory_space<vmem>>, vector<1x64x32xbf16>
    %29 = vector.shape_cast %28 : vector<1x64x32xbf16> to vector<64x32xbf16>
    %cst_24 = arith.constant dense<0.000000e+00> : vector<32x32xf32>
    %30 = tpu.matmul %27, %29, %cst_24 {dimension_numbers = #tpu.dot_dimension_numbers<[1], [0], [0], [1], [0, 0, 1, 1], [], []>} : vector<32x64xbf16>, vector<64x32xbf16>, vector<32x32xf32> -> vector<32x32xf32>
    %31 = arith.addf %23, %30 : vector<32x32xf32>
    %c2 = arith.constant 2 : index
    %c0_25 = arith.constant 0 : index
    %c0_26 = arith.constant 0 : index
    %32 = vector.load %arg4[%c2, %c0_25, %c0_26] : memref<16x32x128xbf16, #tpu.memory_space<vmem>>, vector<1x32x128xbf16>
    %33 = vector.shape_cast %32 : vector<1x32x128xbf16> to vector<32x128xbf16>
    %cst_27 = arith.constant dense<0.000000e+00> : vector<32x64xf32>
    %34 = tpu.matmul %33, %14, %cst_27 {dimension_numbers = #tpu.dot_dimension_numbers<[1], [0], [0], [1], [0, 0, 1, 1], [], []>} : vector<32x128xbf16>, vector<128x64xbf16>, vector<32x64xf32> -> vector<32x64xf32>
    %35 = arith.truncf %34 : vector<32x64xf32> to vector<32x64xbf16>
    %c2_28 = arith.constant 2 : index
    %c0_29 = arith.constant 0 : index
    %c0_30 = arith.constant 0 : index
    %36 = vector.load %arg5[%c2_28, %c0_29, %c0_30] : memref<16x64x32xbf16, #tpu.memory_space<vmem>>, vector<1x64x32xbf16>
    %37 = vector.shape_cast %36 : vector<1x64x32xbf16> to vector<64x32xbf16>
    %cst_31 = arith.constant dense<0.000000e+00> : vector<32x32xf32>
    %38 = tpu.matmul %35, %37, %cst_31 {dimension_numbers = #tpu.dot_dimension_numbers<[1], [0], [0], [1], [0, 0, 1, 1], [], []>} : vector<32x64xbf16>, vector<64x32xbf16>, vector<32x32xf32> -> vector<32x32xf32>
    %39 = arith.addf %31, %38 : vector<32x32xf32>
    %c3 = arith.constant 3 : index
    %c0_32 = arith.constant 0 : index
    %c0_33 = arith.constant 0 : index
    %40 = vector.load %arg4[%c3, %c0_32, %c0_33] : memref<16x32x128xbf16, #tpu.memory_space<vmem>>, vector<1x32x128xbf16>
    %41 = vector.shape_cast %40 : vector<1x32x128xbf16> to vector<32x128xbf16>
    %cst_34 = arith.constant dense<0.000000e+00> : vector<32x64xf32>
    %42 = tpu.matmul %41, %14, %cst_34 {dimension_numbers = #tpu.dot_dimension_numbers<[1], [0], [0], [1], [0, 0, 1, 1], [], []>} : vector<32x128xbf16>, vector<128x64xbf16>, vector<32x64xf32> -> vector<32x64xf32>
    %43 = arith.truncf %42 : vector<32x64xf32> to vector<32x64xbf16>
    %c3_35 = arith.constant 3 : index
    %c0_36 = arith.constant 0 : index
    %c0_37 = arith.constant 0 : index
    %44 = vector.load %arg5[%c3_35, %c0_36, %c0_37] : memref<16x64x32xbf16, #tpu.memory_space<vmem>>, vector<1x64x32xbf16>
    %45 = vector.shape_cast %44 : vector<1x64x32xbf16> to vector<64x32xbf16>
    %cst_38 = arith.constant dense<0.000000e+00> : vector<32x32xf32>
    %46 = tpu.matmul %43, %45, %cst_38 {dimension_numbers = #tpu.dot_dimension_numbers<[1], [0], [0], [1], [0, 0, 1, 1], [], []>} : vector<32x64xbf16>, vector<64x32xbf16>, vector<32x32xf32> -> vector<32x32xf32>
    %47 = arith.addf %39, %46 : vector<32x32xf32>
    %c4 = arith.constant 4 : index
    %c0_39 = arith.constant 0 : index
    %c0_40 = arith.constant 0 : index
    %48 = vector.load %arg4[%c4, %c0_39, %c0_40] : memref<16x32x128xbf16, #tpu.memory_space<vmem>>, vector<1x32x128xbf16>
    %49 = vector.shape_cast %48 : vector<1x32x128xbf16> to vector<32x128xbf16>
    %cst_41 = arith.constant dense<0.000000e+00> : vector<32x64xf32>
    %50 = tpu.matmul %49, %14, %cst_41 {dimension_numbers = #tpu.dot_dimension_numbers<[1], [0], [0], [1], [0, 0, 1, 1], [], []>} : vector<32x128xbf16>, vector<128x64xbf16>, vector<32x64xf32> -> vector<32x64xf32>
    %51 = arith.truncf %50 : vector<32x64xf32> to vector<32x64xbf16>
    %c4_42 = arith.constant 4 : index
    %c0_43 = arith.constant 0 : index
    %c0_44 = arith.constant 0 : index
    %52 = vector.load %arg5[%c4_42, %c0_43, %c0_44] : memref<16x64x32xbf16, #tpu.memory_space<vmem>>, vector<1x64x32xbf16>
    %53 = vector.shape_cast %52 : vector<1x64x32xbf16> to vector<64x32xbf16>
    %cst_45 = arith.constant dense<0.000000e+00> : vector<32x32xf32>
    %54 = tpu.matmul %51, %53, %cst_45 {dimension_numbers = #tpu.dot_dimension_numbers<[1], [0], [0], [1], [0, 0, 1, 1], [], []>} : vector<32x64xbf16>, vector<64x32xbf16>, vector<32x32xf32> -> vector<32x32xf32>
    %55 = arith.addf %47, %54 : vector<32x32xf32>
    %c5 = arith.constant 5 : index
    %c0_46 = arith.constant 0 : index
    %c0_47 = arith.constant 0 : index
    %56 = vector.load %arg4[%c5, %c0_46, %c0_47] : memref<16x32x128xbf16, #tpu.memory_space<vmem>>, vector<1x32x128xbf16>
    %57 = vector.shape_cast %56 : vector<1x32x128xbf16> to vector<32x128xbf16>
    %cst_48 = arith.constant dense<0.000000e+00> : vector<32x64xf32>
    %58 = tpu.matmul %57, %14, %cst_48 {dimension_numbers = #tpu.dot_dimension_numbers<[1], [0], [0], [1], [0, 0, 1, 1], [], []>} : vector<32x128xbf16>, vector<128x64xbf16>, vector<32x64xf32> -> vector<32x64xf32>
    %59 = arith.truncf %58 : vector<32x64xf32> to vector<32x64xbf16>
    %c5_49 = arith.constant 5 : index
    %c0_50 = arith.constant 0 : index
    %c0_51 = arith.constant 0 : index
    %60 = vector.load %arg5[%c5_49, %c0_50, %c0_51] : memref<16x64x32xbf16, #tpu.memory_space<vmem>>, vector<1x64x32xbf16>
    %61 = vector.shape_cast %60 : vector<1x64x32xbf16> to vector<64x32xbf16>
    %cst_52 = arith.constant dense<0.000000e+00> : vector<32x32xf32>
    %62 = tpu.matmul %59, %61, %cst_52 {dimension_numbers = #tpu.dot_dimension_numbers<[1], [0], [0], [1], [0, 0, 1, 1], [], []>} : vector<32x64xbf16>, vector<64x32xbf16>, vector<32x32xf32> -> vector<32x32xf32>
    %63 = arith.addf %55, %62 : vector<32x32xf32>
    %c6 = arith.constant 6 : index
    %c0_53 = arith.constant 0 : index
    %c0_54 = arith.constant 0 : index
    %64 = vector.load %arg4[%c6, %c0_53, %c0_54] : memref<16x32x128xbf16, #tpu.memory_space<vmem>>, vector<1x32x128xbf16>
    %65 = vector.shape_cast %64 : vector<1x32x128xbf16> to vector<32x128xbf16>
    %cst_55 = arith.constant dense<0.000000e+00> : vector<32x64xf32>
    %66 = tpu.matmul %65, %14, %cst_55 {dimension_numbers = #tpu.dot_dimension_numbers<[1], [0], [0], [1], [0, 0, 1, 1], [], []>} : vector<32x128xbf16>, vector<128x64xbf16>, vector<32x64xf32> -> vector<32x64xf32>
    %67 = arith.truncf %66 : vector<32x64xf32> to vector<32x64xbf16>
    %c6_56 = arith.constant 6 : index
    %c0_57 = arith.constant 0 : index
    %c0_58 = arith.constant 0 : index
    %68 = vector.load %arg5[%c6_56, %c0_57, %c0_58] : memref<16x64x32xbf16, #tpu.memory_space<vmem>>, vector<1x64x32xbf16>
    %69 = vector.shape_cast %68 : vector<1x64x32xbf16> to vector<64x32xbf16>
    %cst_59 = arith.constant dense<0.000000e+00> : vector<32x32xf32>
    %70 = tpu.matmul %67, %69, %cst_59 {dimension_numbers = #tpu.dot_dimension_numbers<[1], [0], [0], [1], [0, 0, 1, 1], [], []>} : vector<32x64xbf16>, vector<64x32xbf16>, vector<32x32xf32> -> vector<32x32xf32>
    %71 = arith.addf %63, %70 : vector<32x32xf32>
    %c7 = arith.constant 7 : index
    %c0_60 = arith.constant 0 : index
    %c0_61 = arith.constant 0 : index
    %72 = vector.load %arg4[%c7, %c0_60, %c0_61] : memref<16x32x128xbf16, #tpu.memory_space<vmem>>, vector<1x32x128xbf16>
    %73 = vector.shape_cast %72 : vector<1x32x128xbf16> to vector<32x128xbf16>
    %cst_62 = arith.constant dense<0.000000e+00> : vector<32x64xf32>
    %74 = tpu.matmul %73, %14, %cst_62 {dimension_numbers = #tpu.dot_dimension_numbers<[1], [0], [0], [1], [0, 0, 1, 1], [], []>} : vector<32x128xbf16>, vector<128x64xbf16>, vector<32x64xf32> -> vector<32x64xf32>
    %75 = arith.truncf %74 : vector<32x64xf32> to vector<32x64xbf16>
    %c7_63 = arith.constant 7 : index
    %c0_64 = arith.constant 0 : index
    %c0_65 = arith.constant 0 : index
    %76 = vector.load %arg5[%c7_63, %c0_64, %c0_65] : memref<16x64x32xbf16, #tpu.memory_space<vmem>>, vector<1x64x32xbf16>
    %77 = vector.shape_cast %76 : vector<1x64x32xbf16> to vector<64x32xbf16>
    %cst_66 = arith.constant dense<0.000000e+00> : vector<32x32xf32>
    %78 = tpu.matmul %75, %77, %cst_66 {dimension_numbers = #tpu.dot_dimension_numbers<[1], [0], [0], [1], [0, 0, 1, 1], [], []>} : vector<32x64xbf16>, vector<64x32xbf16>, vector<32x32xf32> -> vector<32x32xf32>
    %79 = arith.addf %71, %78 : vector<32x32xf32>
    %c8 = arith.constant 8 : index
    %c0_67 = arith.constant 0 : index
    %c0_68 = arith.constant 0 : index
    %80 = vector.load %arg4[%c8, %c0_67, %c0_68] : memref<16x32x128xbf16, #tpu.memory_space<vmem>>, vector<1x32x128xbf16>
    %81 = vector.shape_cast %80 : vector<1x32x128xbf16> to vector<32x128xbf16>
    %cst_69 = arith.constant dense<0.000000e+00> : vector<32x64xf32>
    %82 = tpu.matmul %81, %14, %cst_69 {dimension_numbers = #tpu.dot_dimension_numbers<[1], [0], [0], [1], [0, 0, 1, 1], [], []>} : vector<32x128xbf16>, vector<128x64xbf16>, vector<32x64xf32> -> vector<32x64xf32>
    %83 = arith.truncf %82 : vector<32x64xf32> to vector<32x64xbf16>
    %c8_70 = arith.constant 8 : index
    %c0_71 = arith.constant 0 : index
    %c0_72 = arith.constant 0 : index
    %84 = vector.load %arg5[%c8_70, %c0_71, %c0_72] : memref<16x64x32xbf16, #tpu.memory_space<vmem>>, vector<1x64x32xbf16>
    %85 = vector.shape_cast %84 : vector<1x64x32xbf16> to vector<64x32xbf16>
    %cst_73 = arith.constant dense<0.000000e+00> : vector<32x32xf32>
    %86 = tpu.matmul %83, %85, %cst_73 {dimension_numbers = #tpu.dot_dimension_numbers<[1], [0], [0], [1], [0, 0, 1, 1], [], []>} : vector<32x64xbf16>, vector<64x32xbf16>, vector<32x32xf32> -> vector<32x32xf32>
    %87 = arith.addf %79, %86 : vector<32x32xf32>
    %c9 = arith.constant 9 : index
    %c0_74 = arith.constant 0 : index
    %c0_75 = arith.constant 0 : index
    %88 = vector.load %arg4[%c9, %c0_74, %c0_75] : memref<16x32x128xbf16, #tpu.memory_space<vmem>>, vector<1x32x128xbf16>
    %89 = vector.shape_cast %88 : vector<1x32x128xbf16> to vector<32x128xbf16>
    %cst_76 = arith.constant dense<0.000000e+00> : vector<32x64xf32>
    %90 = tpu.matmul %89, %14, %cst_76 {dimension_numbers = #tpu.dot_dimension_numbers<[1], [0], [0], [1], [0, 0, 1, 1], [], []>} : vector<32x128xbf16>, vector<128x64xbf16>, vector<32x64xf32> -> vector<32x64xf32>
    %91 = arith.truncf %90 : vector<32x64xf32> to vector<32x64xbf16>
    %c9_77 = arith.constant 9 : index
    %c0_78 = arith.constant 0 : index
    %c0_79 = arith.constant 0 : index
    %92 = vector.load %arg5[%c9_77, %c0_78, %c0_79] : memref<16x64x32xbf16, #tpu.memory_space<vmem>>, vector<1x64x32xbf16>
    %93 = vector.shape_cast %92 : vector<1x64x32xbf16> to vector<64x32xbf16>
    %cst_80 = arith.constant dense<0.000000e+00> : vector<32x32xf32>
    %94 = tpu.matmul %91, %93, %cst_80 {dimension_numbers = #tpu.dot_dimension_numbers<[1], [0], [0], [1], [0, 0, 1, 1], [], []>} : vector<32x64xbf16>, vector<64x32xbf16>, vector<32x32xf32> -> vector<32x32xf32>
    %95 = arith.addf %87, %94 : vector<32x32xf32>
    %c10 = arith.constant 10 : index
    %c0_81 = arith.constant 0 : index
    %c0_82 = arith.constant 0 : index
    %96 = vector.load %arg4[%c10, %c0_81, %c0_82] : memref<16x32x128xbf16, #tpu.memory_space<vmem>>, vector<1x32x128xbf16>
    %97 = vector.shape_cast %96 : vector<1x32x128xbf16> to vector<32x128xbf16>
    %cst_83 = arith.constant dense<0.000000e+00> : vector<32x64xf32>
    %98 = tpu.matmul %97, %14, %cst_83 {dimension_numbers = #tpu.dot_dimension_numbers<[1], [0], [0], [1], [0, 0, 1, 1], [], []>} : vector<32x128xbf16>, vector<128x64xbf16>, vector<32x64xf32> -> vector<32x64xf32>
    %99 = arith.truncf %98 : vector<32x64xf32> to vector<32x64xbf16>
    %c10_84 = arith.constant 10 : index
    %c0_85 = arith.constant 0 : index
    %c0_86 = arith.constant 0 : index
    %100 = vector.load %arg5[%c10_84, %c0_85, %c0_86] : memref<16x64x32xbf16, #tpu.memory_space<vmem>>, vector<1x64x32xbf16>
    %101 = vector.shape_cast %100 : vector<1x64x32xbf16> to vector<64x32xbf16>
    %cst_87 = arith.constant dense<0.000000e+00> : vector<32x32xf32>
    %102 = tpu.matmul %99, %101, %cst_87 {dimension_numbers = #tpu.dot_dimension_numbers<[1], [0], [0], [1], [0, 0, 1, 1], [], []>} : vector<32x64xbf16>, vector<64x32xbf16>, vector<32x32xf32> -> vector<32x32xf32>
    %103 = arith.addf %95, %102 : vector<32x32xf32>
    %c11 = arith.constant 11 : index
    %c0_88 = arith.constant 0 : index
    %c0_89 = arith.constant 0 : index
    %104 = vector.load %arg4[%c11, %c0_88, %c0_89] : memref<16x32x128xbf16, #tpu.memory_space<vmem>>, vector<1x32x128xbf16>
    %105 = vector.shape_cast %104 : vector<1x32x128xbf16> to vector<32x128xbf16>
    %cst_90 = arith.constant dense<0.000000e+00> : vector<32x64xf32>
    %106 = tpu.matmul %105, %14, %cst_90 {dimension_numbers = #tpu.dot_dimension_numbers<[1], [0], [0], [1], [0, 0, 1, 1], [], []>} : vector<32x128xbf16>, vector<128x64xbf16>, vector<32x64xf32> -> vector<32x64xf32>
    %107 = arith.truncf %106 : vector<32x64xf32> to vector<32x64xbf16>
    %c11_91 = arith.constant 11 : index
    %c0_92 = arith.constant 0 : index
    %c0_93 = arith.constant 0 : index
    %108 = vector.load %arg5[%c11_91, %c0_92, %c0_93] : memref<16x64x32xbf16, #tpu.memory_space<vmem>>, vector<1x64x32xbf16>
    %109 = vector.shape_cast %108 : vector<1x64x32xbf16> to vector<64x32xbf16>
    %cst_94 = arith.constant dense<0.000000e+00> : vector<32x32xf32>
    %110 = tpu.matmul %107, %109, %cst_94 {dimension_numbers = #tpu.dot_dimension_numbers<[1], [0], [0], [1], [0, 0, 1, 1], [], []>} : vector<32x64xbf16>, vector<64x32xbf16>, vector<32x32xf32> -> vector<32x32xf32>
    %111 = arith.addf %103, %110 : vector<32x32xf32>
    %c12 = arith.constant 12 : index
    %c0_95 = arith.constant 0 : index
    %c0_96 = arith.constant 0 : index
    %112 = vector.load %arg4[%c12, %c0_95, %c0_96] : memref<16x32x128xbf16, #tpu.memory_space<vmem>>, vector<1x32x128xbf16>
    %113 = vector.shape_cast %112 : vector<1x32x128xbf16> to vector<32x128xbf16>
    %cst_97 = arith.constant dense<0.000000e+00> : vector<32x64xf32>
    %114 = tpu.matmul %113, %14, %cst_97 {dimension_numbers = #tpu.dot_dimension_numbers<[1], [0], [0], [1], [0, 0, 1, 1], [], []>} : vector<32x128xbf16>, vector<128x64xbf16>, vector<32x64xf32> -> vector<32x64xf32>
    %115 = arith.truncf %114 : vector<32x64xf32> to vector<32x64xbf16>
    %c12_98 = arith.constant 12 : index
    %c0_99 = arith.constant 0 : index
    %c0_100 = arith.constant 0 : index
    %116 = vector.load %arg5[%c12_98, %c0_99, %c0_100] : memref<16x64x32xbf16, #tpu.memory_space<vmem>>, vector<1x64x32xbf16>
    %117 = vector.shape_cast %116 : vector<1x64x32xbf16> to vector<64x32xbf16>
    %cst_101 = arith.constant dense<0.000000e+00> : vector<32x32xf32>
    %118 = tpu.matmul %115, %117, %cst_101 {dimension_numbers = #tpu.dot_dimension_numbers<[1], [0], [0], [1], [0, 0, 1, 1], [], []>} : vector<32x64xbf16>, vector<64x32xbf16>, vector<32x32xf32> -> vector<32x32xf32>
    %119 = arith.addf %111, %118 : vector<32x32xf32>
    %c13 = arith.constant 13 : index
    %c0_102 = arith.constant 0 : index
    %c0_103 = arith.constant 0 : index
    %120 = vector.load %arg4[%c13, %c0_102, %c0_103] : memref<16x32x128xbf16, #tpu.memory_space<vmem>>, vector<1x32x128xbf16>
    %121 = vector.shape_cast %120 : vector<1x32x128xbf16> to vector<32x128xbf16>
    %cst_104 = arith.constant dense<0.000000e+00> : vector<32x64xf32>
    %122 = tpu.matmul %121, %14, %cst_104 {dimension_numbers = #tpu.dot_dimension_numbers<[1], [0], [0], [1], [0, 0, 1, 1], [], []>} : vector<32x128xbf16>, vector<128x64xbf16>, vector<32x64xf32> -> vector<32x64xf32>
    %123 = arith.truncf %122 : vector<32x64xf32> to vector<32x64xbf16>
    %c13_105 = arith.constant 13 : index
    %c0_106 = arith.constant 0 : index
    %c0_107 = arith.constant 0 : index
    %124 = vector.load %arg5[%c13_105, %c0_106, %c0_107] : memref<16x64x32xbf16, #tpu.memory_space<vmem>>, vector<1x64x32xbf16>
    %125 = vector.shape_cast %124 : vector<1x64x32xbf16> to vector<64x32xbf16>
    %cst_108 = arith.constant dense<0.000000e+00> : vector<32x32xf32>
    %126 = tpu.matmul %123, %125, %cst_108 {dimension_numbers = #tpu.dot_dimension_numbers<[1], [0], [0], [1], [0, 0, 1, 1], [], []>} : vector<32x64xbf16>, vector<64x32xbf16>, vector<32x32xf32> -> vector<32x32xf32>
    %127 = arith.addf %119, %126 : vector<32x32xf32>
    %c14 = arith.constant 14 : index
    %c0_109 = arith.constant 0 : index
    %c0_110 = arith.constant 0 : index
    %128 = vector.load %arg4[%c14, %c0_109, %c0_110] : memref<16x32x128xbf16, #tpu.memory_space<vmem>>, vector<1x32x128xbf16>
    %129 = vector.shape_cast %128 : vector<1x32x128xbf16> to vector<32x128xbf16>
    %cst_111 = arith.constant dense<0.000000e+00> : vector<32x64xf32>
    %130 = tpu.matmul %129, %14, %cst_111 {dimension_numbers = #tpu.dot_dimension_numbers<[1], [0], [0], [1], [0, 0, 1, 1], [], []>} : vector<32x128xbf16>, vector<128x64xbf16>, vector<32x64xf32> -> vector<32x64xf32>
    %131 = arith.truncf %130 : vector<32x64xf32> to vector<32x64xbf16>
    %c14_112 = arith.constant 14 : index
    %c0_113 = arith.constant 0 : index
    %c0_114 = arith.constant 0 : index
    %132 = vector.load %arg5[%c14_112, %c0_113, %c0_114] : memref<16x64x32xbf16, #tpu.memory_space<vmem>>, vector<1x64x32xbf16>
    %133 = vector.shape_cast %132 : vector<1x64x32xbf16> to vector<64x32xbf16>
    %cst_115 = arith.constant dense<0.000000e+00> : vector<32x32xf32>
    %134 = tpu.matmul %131, %133, %cst_115 {dimension_numbers = #tpu.dot_dimension_numbers<[1], [0], [0], [1], [0, 0, 1, 1], [], []>} : vector<32x64xbf16>, vector<64x32xbf16>, vector<32x32xf32> -> vector<32x32xf32>
    %135 = arith.addf %127, %134 : vector<32x32xf32>
    %c15 = arith.constant 15 : index
    %c0_116 = arith.constant 0 : index
    %c0_117 = arith.constant 0 : index
    %136 = vector.load %arg4[%c15, %c0_116, %c0_117] : memref<16x32x128xbf16, #tpu.memory_space<vmem>>, vector<1x32x128xbf16>
    %137 = vector.shape_cast %136 : vector<1x32x128xbf16> to vector<32x128xbf16>
    %cst_118 = arith.constant dense<0.000000e+00> : vector<32x64xf32>
    %138 = tpu.matmul %137, %14, %cst_118 {dimension_numbers = #tpu.dot_dimension_numbers<[1], [0], [0], [1], [0, 0, 1, 1], [], []>} : vector<32x128xbf16>, vector<128x64xbf16>, vector<32x64xf32> -> vector<32x64xf32>
    %139 = arith.truncf %138 : vector<32x64xf32> to vector<32x64xbf16>
    %c15_119 = arith.constant 15 : index
    %c0_120 = arith.constant 0 : index
    %c0_121 = arith.constant 0 : index
    %140 = vector.load %arg5[%c15_119, %c0_120, %c0_121] : memref<16x64x32xbf16, #tpu.memory_space<vmem>>, vector<1x64x32xbf16>
    %141 = vector.shape_cast %140 : vector<1x64x32xbf16> to vector<64x32xbf16>
    %cst_122 = arith.constant dense<0.000000e+00> : vector<32x32xf32>
    %142 = tpu.matmul %139, %141, %cst_122 {dimension_numbers = #tpu.dot_dimension_numbers<[1], [0], [0], [1], [0, 0, 1, 1], [], []>} : vector<32x64xbf16>, vector<64x32xbf16>, vector<32x32xf32> -> vector<32x32xf32>
    %143 = arith.addf %135, %142 : vector<32x32xf32>
    %c0_123 = arith.constant 0 : index
    %c0_124 = arith.constant 0 : index
    %144 = vector.load %arg6[%c0_123, %c0_124] : memref<1x32xf32, #tpu.memory_space<vmem>>, vector<1x32xf32>
    %145 = vector.broadcast %144 : vector<1x32xf32> to vector<32x32xf32>
    %146 = arith.mulf %143, %145 : vector<32x32xf32>
    %c0_125 = arith.constant 0 : index
    %c0_126 = arith.constant 0 : index
    %147 = vector.load %arg7[%c0_125, %c0_126] : memref<1x32xf32, #tpu.memory_space<vmem>>, vector<1x32xf32>
    %148 = vector.broadcast %147 : vector<1x32xf32> to vector<32x32xf32>
    %149 = arith.addf %146, %148 : vector<32x32xf32>
    %cst_127 = arith.constant 0.000000e+00 : f32
    %150 = vector.broadcast %cst_127 : f32 to vector<32x32xf32>
    %151 = arith.cmpf ogt, %149, %150 : vector<32x32xf32>
    %cst_128 = arith.constant 2.000000e-01 : f32
    %152 = vector.broadcast %cst_128 : f32 to vector<32x32xf32>
    %153 = arith.mulf %152, %149 : vector<32x32xf32>
    %154 = arith.select %151, %149, %153 : vector<32x32xi1>, vector<32x32xf32>
    %155 = arith.truncf %154 : vector<32x32xf32> to vector<32x32xbf16>
    %cst_129 = arith.constant 0.000000e+00 : f32
    %156 = vector.broadcast %cst_129 : f32 to vector<2x1xf32>
    %c0_130 = arith.constant 0 : index
    %c0_131 = arith.constant 0 : index
    %c0_132 = arith.constant 0 : index
    %157 = vector.load %arg8[%c0_130, %c0_131, %c0_132] : memref<16x2x32xbf16, #tpu.memory_space<vmem>>, vector<1x2x32xbf16>
    %158 = vector.shape_cast %157 : vector<1x2x32xbf16> to vector<2x32xbf16>
    %cst_133 = arith.constant dense<0.000000e+00> : vector<2x32xf32>
    %159 = tpu.matmul %158, %155, %cst_133 {dimension_numbers = #tpu.dot_dimension_numbers<[1], [0], [0], [1], [0, 0, 1, 1], [], []>} : vector<2x32xbf16>, vector<32x32xbf16>, vector<2x32xf32> -> vector<2x32xf32>
    %160 = arith.truncf %159 : vector<2x32xf32> to vector<2x32xbf16>
    %c0_134 = arith.constant 0 : index
    %c0_135 = arith.constant 0 : index
    %c0_136 = arith.constant 0 : index
    %161 = vector.load %arg9[%c0_134, %c0_135, %c0_136] : memref<16x32x1xbf16, #tpu.memory_space<vmem>>, vector<1x32x1xbf16>
    %162 = vector.shape_cast %161 : vector<1x32x1xbf16> to vector<32x1xbf16>
    %cst_137 = arith.constant dense<0.000000e+00> : vector<2x1xf32>
    %163 = tpu.matmul %160, %162, %cst_137 {dimension_numbers = #tpu.dot_dimension_numbers<[1], [0], [0], [1], [0, 0, 1, 1], [], []>} : vector<2x32xbf16>, vector<32x1xbf16>, vector<2x1xf32> -> vector<2x1xf32>
    %164 = arith.addf %156, %163 : vector<2x1xf32>
    %c1_138 = arith.constant 1 : index
    %c0_139 = arith.constant 0 : index
    %c0_140 = arith.constant 0 : index
    %165 = vector.load %arg8[%c1_138, %c0_139, %c0_140] : memref<16x2x32xbf16, #tpu.memory_space<vmem>>, vector<1x2x32xbf16>
    %166 = vector.shape_cast %165 : vector<1x2x32xbf16> to vector<2x32xbf16>
    %cst_141 = arith.constant dense<0.000000e+00> : vector<2x32xf32>
    %167 = tpu.matmul %166, %155, %cst_141 {dimension_numbers = #tpu.dot_dimension_numbers<[1], [0], [0], [1], [0, 0, 1, 1], [], []>} : vector<2x32xbf16>, vector<32x32xbf16>, vector<2x32xf32> -> vector<2x32xf32>
    %168 = arith.truncf %167 : vector<2x32xf32> to vector<2x32xbf16>
    %c1_142 = arith.constant 1 : index
    %c0_143 = arith.constant 0 : index
    %c0_144 = arith.constant 0 : index
    %169 = vector.load %arg9[%c1_142, %c0_143, %c0_144] : memref<16x32x1xbf16, #tpu.memory_space<vmem>>, vector<1x32x1xbf16>
    %170 = vector.shape_cast %169 : vector<1x32x1xbf16> to vector<32x1xbf16>
    %cst_145 = arith.constant dense<0.000000e+00> : vector<2x1xf32>
    %171 = tpu.matmul %168, %170, %cst_145 {dimension_numbers = #tpu.dot_dimension_numbers<[1], [0], [0], [1], [0, 0, 1, 1], [], []>} : vector<2x32xbf16>, vector<32x1xbf16>, vector<2x1xf32> -> vector<2x1xf32>
    %172 = arith.addf %164, %171 : vector<2x1xf32>
    %c2_146 = arith.constant 2 : index
    %c0_147 = arith.constant 0 : index
    %c0_148 = arith.constant 0 : index
    %173 = vector.load %arg8[%c2_146, %c0_147, %c0_148] : memref<16x2x32xbf16, #tpu.memory_space<vmem>>, vector<1x2x32xbf16>
    %174 = vector.shape_cast %173 : vector<1x2x32xbf16> to vector<2x32xbf16>
    %cst_149 = arith.constant dense<0.000000e+00> : vector<2x32xf32>
    %175 = tpu.matmul %174, %155, %cst_149 {dimension_numbers = #tpu.dot_dimension_numbers<[1], [0], [0], [1], [0, 0, 1, 1], [], []>} : vector<2x32xbf16>, vector<32x32xbf16>, vector<2x32xf32> -> vector<2x32xf32>
    %176 = arith.truncf %175 : vector<2x32xf32> to vector<2x32xbf16>
    %c2_150 = arith.constant 2 : index
    %c0_151 = arith.constant 0 : index
    %c0_152 = arith.constant 0 : index
    %177 = vector.load %arg9[%c2_150, %c0_151, %c0_152] : memref<16x32x1xbf16, #tpu.memory_space<vmem>>, vector<1x32x1xbf16>
    %178 = vector.shape_cast %177 : vector<1x32x1xbf16> to vector<32x1xbf16>
    %cst_153 = arith.constant dense<0.000000e+00> : vector<2x1xf32>
    %179 = tpu.matmul %176, %178, %cst_153 {dimension_numbers = #tpu.dot_dimension_numbers<[1], [0], [0], [1], [0, 0, 1, 1], [], []>} : vector<2x32xbf16>, vector<32x1xbf16>, vector<2x1xf32> -> vector<2x1xf32>
    %180 = arith.addf %172, %179 : vector<2x1xf32>
    %c3_154 = arith.constant 3 : index
    %c0_155 = arith.constant 0 : index
    %c0_156 = arith.constant 0 : index
    %181 = vector.load %arg8[%c3_154, %c0_155, %c0_156] : memref<16x2x32xbf16, #tpu.memory_space<vmem>>, vector<1x2x32xbf16>
    %182 = vector.shape_cast %181 : vector<1x2x32xbf16> to vector<2x32xbf16>
    %cst_157 = arith.constant dense<0.000000e+00> : vector<2x32xf32>
    %183 = tpu.matmul %182, %155, %cst_157 {dimension_numbers = #tpu.dot_dimension_numbers<[1], [0], [0], [1], [0, 0, 1, 1], [], []>} : vector<2x32xbf16>, vector<32x32xbf16>, vector<2x32xf32> -> vector<2x32xf32>
    %184 = arith.truncf %183 : vector<2x32xf32> to vector<2x32xbf16>
    %c3_158 = arith.constant 3 : index
    %c0_159 = arith.constant 0 : index
    %c0_160 = arith.constant 0 : index
    %185 = vector.load %arg9[%c3_158, %c0_159, %c0_160] : memref<16x32x1xbf16, #tpu.memory_space<vmem>>, vector<1x32x1xbf16>
    %186 = vector.shape_cast %185 : vector<1x32x1xbf16> to vector<32x1xbf16>
    %cst_161 = arith.constant dense<0.000000e+00> : vector<2x1xf32>
    %187 = tpu.matmul %184, %186, %cst_161 {dimension_numbers = #tpu.dot_dimension_numbers<[1], [0], [0], [1], [0, 0, 1, 1], [], []>} : vector<2x32xbf16>, vector<32x1xbf16>, vector<2x1xf32> -> vector<2x1xf32>
    %188 = arith.addf %180, %187 : vector<2x1xf32>
    %c4_162 = arith.constant 4 : index
    %c0_163 = arith.constant 0 : index
    %c0_164 = arith.constant 0 : index
    %189 = vector.load %arg8[%c4_162, %c0_163, %c0_164] : memref<16x2x32xbf16, #tpu.memory_space<vmem>>, vector<1x2x32xbf16>
    %190 = vector.shape_cast %189 : vector<1x2x32xbf16> to vector<2x32xbf16>
    %cst_165 = arith.constant dense<0.000000e+00> : vector<2x32xf32>
    %191 = tpu.matmul %190, %155, %cst_165 {dimension_numbers = #tpu.dot_dimension_numbers<[1], [0], [0], [1], [0, 0, 1, 1], [], []>} : vector<2x32xbf16>, vector<32x32xbf16>, vector<2x32xf32> -> vector<2x32xf32>
    %192 = arith.truncf %191 : vector<2x32xf32> to vector<2x32xbf16>
    %c4_166 = arith.constant 4 : index
    %c0_167 = arith.constant 0 : index
    %c0_168 = arith.constant 0 : index
    %193 = vector.load %arg9[%c4_166, %c0_167, %c0_168] : memref<16x32x1xbf16, #tpu.memory_space<vmem>>, vector<1x32x1xbf16>
    %194 = vector.shape_cast %193 : vector<1x32x1xbf16> to vector<32x1xbf16>
    %cst_169 = arith.constant dense<0.000000e+00> : vector<2x1xf32>
    %195 = tpu.matmul %192, %194, %cst_169 {dimension_numbers = #tpu.dot_dimension_numbers<[1], [0], [0], [1], [0, 0, 1, 1], [], []>} : vector<2x32xbf16>, vector<32x1xbf16>, vector<2x1xf32> -> vector<2x1xf32>
    %196 = arith.addf %188, %195 : vector<2x1xf32>
    %c5_170 = arith.constant 5 : index
    %c0_171 = arith.constant 0 : index
    %c0_172 = arith.constant 0 : index
    %197 = vector.load %arg8[%c5_170, %c0_171, %c0_172] : memref<16x2x32xbf16, #tpu.memory_space<vmem>>, vector<1x2x32xbf16>
    %198 = vector.shape_cast %197 : vector<1x2x32xbf16> to vector<2x32xbf16>
    %cst_173 = arith.constant dense<0.000000e+00> : vector<2x32xf32>
    %199 = tpu.matmul %198, %155, %cst_173 {dimension_numbers = #tpu.dot_dimension_numbers<[1], [0], [0], [1], [0, 0, 1, 1], [], []>} : vector<2x32xbf16>, vector<32x32xbf16>, vector<2x32xf32> -> vector<2x32xf32>
    %200 = arith.truncf %199 : vector<2x32xf32> to vector<2x32xbf16>
    %c5_174 = arith.constant 5 : index
    %c0_175 = arith.constant 0 : index
    %c0_176 = arith.constant 0 : index
    %201 = vector.load %arg9[%c5_174, %c0_175, %c0_176] : memref<16x32x1xbf16, #tpu.memory_space<vmem>>, vector<1x32x1xbf16>
    %202 = vector.shape_cast %201 : vector<1x32x1xbf16> to vector<32x1xbf16>
    %cst_177 = arith.constant dense<0.000000e+00> : vector<2x1xf32>
    %203 = tpu.matmul %200, %202, %cst_177 {dimension_numbers = #tpu.dot_dimension_numbers<[1], [0], [0], [1], [0, 0, 1, 1], [], []>} : vector<2x32xbf16>, vector<32x1xbf16>, vector<2x1xf32> -> vector<2x1xf32>
    %204 = arith.addf %196, %203 : vector<2x1xf32>
    %c6_178 = arith.constant 6 : index
    %c0_179 = arith.constant 0 : index
    %c0_180 = arith.constant 0 : index
    %205 = vector.load %arg8[%c6_178, %c0_179, %c0_180] : memref<16x2x32xbf16, #tpu.memory_space<vmem>>, vector<1x2x32xbf16>
    %206 = vector.shape_cast %205 : vector<1x2x32xbf16> to vector<2x32xbf16>
    %cst_181 = arith.constant dense<0.000000e+00> : vector<2x32xf32>
    %207 = tpu.matmul %206, %155, %cst_181 {dimension_numbers = #tpu.dot_dimension_numbers<[1], [0], [0], [1], [0, 0, 1, 1], [], []>} : vector<2x32xbf16>, vector<32x32xbf16>, vector<2x32xf32> -> vector<2x32xf32>
    %208 = arith.truncf %207 : vector<2x32xf32> to vector<2x32xbf16>
    %c6_182 = arith.constant 6 : index
    %c0_183 = arith.constant 0 : index
    %c0_184 = arith.constant 0 : index
    %209 = vector.load %arg9[%c6_182, %c0_183, %c0_184] : memref<16x32x1xbf16, #tpu.memory_space<vmem>>, vector<1x32x1xbf16>
    %210 = vector.shape_cast %209 : vector<1x32x1xbf16> to vector<32x1xbf16>
    %cst_185 = arith.constant dense<0.000000e+00> : vector<2x1xf32>
    %211 = tpu.matmul %208, %210, %cst_185 {dimension_numbers = #tpu.dot_dimension_numbers<[1], [0], [0], [1], [0, 0, 1, 1], [], []>} : vector<2x32xbf16>, vector<32x1xbf16>, vector<2x1xf32> -> vector<2x1xf32>
    %212 = arith.addf %204, %211 : vector<2x1xf32>
    %c7_186 = arith.constant 7 : index
    %c0_187 = arith.constant 0 : index
    %c0_188 = arith.constant 0 : index
    %213 = vector.load %arg8[%c7_186, %c0_187, %c0_188] : memref<16x2x32xbf16, #tpu.memory_space<vmem>>, vector<1x2x32xbf16>
    %214 = vector.shape_cast %213 : vector<1x2x32xbf16> to vector<2x32xbf16>
    %cst_189 = arith.constant dense<0.000000e+00> : vector<2x32xf32>
    %215 = tpu.matmul %214, %155, %cst_189 {dimension_numbers = #tpu.dot_dimension_numbers<[1], [0], [0], [1], [0, 0, 1, 1], [], []>} : vector<2x32xbf16>, vector<32x32xbf16>, vector<2x32xf32> -> vector<2x32xf32>
    %216 = arith.truncf %215 : vector<2x32xf32> to vector<2x32xbf16>
    %c7_190 = arith.constant 7 : index
    %c0_191 = arith.constant 0 : index
    %c0_192 = arith.constant 0 : index
    %217 = vector.load %arg9[%c7_190, %c0_191, %c0_192] : memref<16x32x1xbf16, #tpu.memory_space<vmem>>, vector<1x32x1xbf16>
    %218 = vector.shape_cast %217 : vector<1x32x1xbf16> to vector<32x1xbf16>
    %cst_193 = arith.constant dense<0.000000e+00> : vector<2x1xf32>
    %219 = tpu.matmul %216, %218, %cst_193 {dimension_numbers = #tpu.dot_dimension_numbers<[1], [0], [0], [1], [0, 0, 1, 1], [], []>} : vector<2x32xbf16>, vector<32x1xbf16>, vector<2x1xf32> -> vector<2x1xf32>
    %220 = arith.addf %212, %219 : vector<2x1xf32>
    %c8_194 = arith.constant 8 : index
    %c0_195 = arith.constant 0 : index
    %c0_196 = arith.constant 0 : index
    %221 = vector.load %arg8[%c8_194, %c0_195, %c0_196] : memref<16x2x32xbf16, #tpu.memory_space<vmem>>, vector<1x2x32xbf16>
    %222 = vector.shape_cast %221 : vector<1x2x32xbf16> to vector<2x32xbf16>
    %cst_197 = arith.constant dense<0.000000e+00> : vector<2x32xf32>
    %223 = tpu.matmul %222, %155, %cst_197 {dimension_numbers = #tpu.dot_dimension_numbers<[1], [0], [0], [1], [0, 0, 1, 1], [], []>} : vector<2x32xbf16>, vector<32x32xbf16>, vector<2x32xf32> -> vector<2x32xf32>
    %224 = arith.truncf %223 : vector<2x32xf32> to vector<2x32xbf16>
    %c8_198 = arith.constant 8 : index
    %c0_199 = arith.constant 0 : index
    %c0_200 = arith.constant 0 : index
    %225 = vector.load %arg9[%c8_198, %c0_199, %c0_200] : memref<16x32x1xbf16, #tpu.memory_space<vmem>>, vector<1x32x1xbf16>
    %226 = vector.shape_cast %225 : vector<1x32x1xbf16> to vector<32x1xbf16>
    %cst_201 = arith.constant dense<0.000000e+00> : vector<2x1xf32>
    %227 = tpu.matmul %224, %226, %cst_201 {dimension_numbers = #tpu.dot_dimension_numbers<[1], [0], [0], [1], [0, 0, 1, 1], [], []>} : vector<2x32xbf16>, vector<32x1xbf16>, vector<2x1xf32> -> vector<2x1xf32>
    %228 = arith.addf %220, %227 : vector<2x1xf32>
    %c9_202 = arith.constant 9 : index
    %c0_203 = arith.constant 0 : index
    %c0_204 = arith.constant 0 : index
    %229 = vector.load %arg8[%c9_202, %c0_203, %c0_204] : memref<16x2x32xbf16, #tpu.memory_space<vmem>>, vector<1x2x32xbf16>
    %230 = vector.shape_cast %229 : vector<1x2x32xbf16> to vector<2x32xbf16>
    %cst_205 = arith.constant dense<0.000000e+00> : vector<2x32xf32>
    %231 = tpu.matmul %230, %155, %cst_205 {dimension_numbers = #tpu.dot_dimension_numbers<[1], [0], [0], [1], [0, 0, 1, 1], [], []>} : vector<2x32xbf16>, vector<32x32xbf16>, vector<2x32xf32> -> vector<2x32xf32>
    %232 = arith.truncf %231 : vector<2x32xf32> to vector<2x32xbf16>
    %c9_206 = arith.constant 9 : index
    %c0_207 = arith.constant 0 : index
    %c0_208 = arith.constant 0 : index
    %233 = vector.load %arg9[%c9_206, %c0_207, %c0_208] : memref<16x32x1xbf16, #tpu.memory_space<vmem>>, vector<1x32x1xbf16>
    %234 = vector.shape_cast %233 : vector<1x32x1xbf16> to vector<32x1xbf16>
    %cst_209 = arith.constant dense<0.000000e+00> : vector<2x1xf32>
    %235 = tpu.matmul %232, %234, %cst_209 {dimension_numbers = #tpu.dot_dimension_numbers<[1], [0], [0], [1], [0, 0, 1, 1], [], []>} : vector<2x32xbf16>, vector<32x1xbf16>, vector<2x1xf32> -> vector<2x1xf32>
    %236 = arith.addf %228, %235 : vector<2x1xf32>
    %c10_210 = arith.constant 10 : index
    %c0_211 = arith.constant 0 : index
    %c0_212 = arith.constant 0 : index
    %237 = vector.load %arg8[%c10_210, %c0_211, %c0_212] : memref<16x2x32xbf16, #tpu.memory_space<vmem>>, vector<1x2x32xbf16>
    %238 = vector.shape_cast %237 : vector<1x2x32xbf16> to vector<2x32xbf16>
    %cst_213 = arith.constant dense<0.000000e+00> : vector<2x32xf32>
    %239 = tpu.matmul %238, %155, %cst_213 {dimension_numbers = #tpu.dot_dimension_numbers<[1], [0], [0], [1], [0, 0, 1, 1], [], []>} : vector<2x32xbf16>, vector<32x32xbf16>, vector<2x32xf32> -> vector<2x32xf32>
    %240 = arith.truncf %239 : vector<2x32xf32> to vector<2x32xbf16>
    %c10_214 = arith.constant 10 : index
    %c0_215 = arith.constant 0 : index
    %c0_216 = arith.constant 0 : index
    %241 = vector.load %arg9[%c10_214, %c0_215, %c0_216] : memref<16x32x1xbf16, #tpu.memory_space<vmem>>, vector<1x32x1xbf16>
    %242 = vector.shape_cast %241 : vector<1x32x1xbf16> to vector<32x1xbf16>
    %cst_217 = arith.constant dense<0.000000e+00> : vector<2x1xf32>
    %243 = tpu.matmul %240, %242, %cst_217 {dimension_numbers = #tpu.dot_dimension_numbers<[1], [0], [0], [1], [0, 0, 1, 1], [], []>} : vector<2x32xbf16>, vector<32x1xbf16>, vector<2x1xf32> -> vector<2x1xf32>
    %244 = arith.addf %236, %243 : vector<2x1xf32>
    %c11_218 = arith.constant 11 : index
    %c0_219 = arith.constant 0 : index
    %c0_220 = arith.constant 0 : index
    %245 = vector.load %arg8[%c11_218, %c0_219, %c0_220] : memref<16x2x32xbf16, #tpu.memory_space<vmem>>, vector<1x2x32xbf16>
    %246 = vector.shape_cast %245 : vector<1x2x32xbf16> to vector<2x32xbf16>
    %cst_221 = arith.constant dense<0.000000e+00> : vector<2x32xf32>
    %247 = tpu.matmul %246, %155, %cst_221 {dimension_numbers = #tpu.dot_dimension_numbers<[1], [0], [0], [1], [0, 0, 1, 1], [], []>} : vector<2x32xbf16>, vector<32x32xbf16>, vector<2x32xf32> -> vector<2x32xf32>
    %248 = arith.truncf %247 : vector<2x32xf32> to vector<2x32xbf16>
    %c11_222 = arith.constant 11 : index
    %c0_223 = arith.constant 0 : index
    %c0_224 = arith.constant 0 : index
    %249 = vector.load %arg9[%c11_222, %c0_223, %c0_224] : memref<16x32x1xbf16, #tpu.memory_space<vmem>>, vector<1x32x1xbf16>
    %250 = vector.shape_cast %249 : vector<1x32x1xbf16> to vector<32x1xbf16>
    %cst_225 = arith.constant dense<0.000000e+00> : vector<2x1xf32>
    %251 = tpu.matmul %248, %250, %cst_225 {dimension_numbers = #tpu.dot_dimension_numbers<[1], [0], [0], [1], [0, 0, 1, 1], [], []>} : vector<2x32xbf16>, vector<32x1xbf16>, vector<2x1xf32> -> vector<2x1xf32>
    %252 = arith.addf %244, %251 : vector<2x1xf32>
    %c12_226 = arith.constant 12 : index
    %c0_227 = arith.constant 0 : index
    %c0_228 = arith.constant 0 : index
    %253 = vector.load %arg8[%c12_226, %c0_227, %c0_228] : memref<16x2x32xbf16, #tpu.memory_space<vmem>>, vector<1x2x32xbf16>
    %254 = vector.shape_cast %253 : vector<1x2x32xbf16> to vector<2x32xbf16>
    %cst_229 = arith.constant dense<0.000000e+00> : vector<2x32xf32>
    %255 = tpu.matmul %254, %155, %cst_229 {dimension_numbers = #tpu.dot_dimension_numbers<[1], [0], [0], [1], [0, 0, 1, 1], [], []>} : vector<2x32xbf16>, vector<32x32xbf16>, vector<2x32xf32> -> vector<2x32xf32>
    %256 = arith.truncf %255 : vector<2x32xf32> to vector<2x32xbf16>
    %c12_230 = arith.constant 12 : index
    %c0_231 = arith.constant 0 : index
    %c0_232 = arith.constant 0 : index
    %257 = vector.load %arg9[%c12_230, %c0_231, %c0_232] : memref<16x32x1xbf16, #tpu.memory_space<vmem>>, vector<1x32x1xbf16>
    %258 = vector.shape_cast %257 : vector<1x32x1xbf16> to vector<32x1xbf16>
    %cst_233 = arith.constant dense<0.000000e+00> : vector<2x1xf32>
    %259 = tpu.matmul %256, %258, %cst_233 {dimension_numbers = #tpu.dot_dimension_numbers<[1], [0], [0], [1], [0, 0, 1, 1], [], []>} : vector<2x32xbf16>, vector<32x1xbf16>, vector<2x1xf32> -> vector<2x1xf32>
    %260 = arith.addf %252, %259 : vector<2x1xf32>
    %c13_234 = arith.constant 13 : index
    %c0_235 = arith.constant 0 : index
    %c0_236 = arith.constant 0 : index
    %261 = vector.load %arg8[%c13_234, %c0_235, %c0_236] : memref<16x2x32xbf16, #tpu.memory_space<vmem>>, vector<1x2x32xbf16>
    %262 = vector.shape_cast %261 : vector<1x2x32xbf16> to vector<2x32xbf16>
    %cst_237 = arith.constant dense<0.000000e+00> : vector<2x32xf32>
    %263 = tpu.matmul %262, %155, %cst_237 {dimension_numbers = #tpu.dot_dimension_numbers<[1], [0], [0], [1], [0, 0, 1, 1], [], []>} : vector<2x32xbf16>, vector<32x32xbf16>, vector<2x32xf32> -> vector<2x32xf32>
    %264 = arith.truncf %263 : vector<2x32xf32> to vector<2x32xbf16>
    %c13_238 = arith.constant 13 : index
    %c0_239 = arith.constant 0 : index
    %c0_240 = arith.constant 0 : index
    %265 = vector.load %arg9[%c13_238, %c0_239, %c0_240] : memref<16x32x1xbf16, #tpu.memory_space<vmem>>, vector<1x32x1xbf16>
    %266 = vector.shape_cast %265 : vector<1x32x1xbf16> to vector<32x1xbf16>
    %cst_241 = arith.constant dense<0.000000e+00> : vector<2x1xf32>
    %267 = tpu.matmul %264, %266, %cst_241 {dimension_numbers = #tpu.dot_dimension_numbers<[1], [0], [0], [1], [0, 0, 1, 1], [], []>} : vector<2x32xbf16>, vector<32x1xbf16>, vector<2x1xf32> -> vector<2x1xf32>
    %268 = arith.addf %260, %267 : vector<2x1xf32>
    %c14_242 = arith.constant 14 : index
    %c0_243 = arith.constant 0 : index
    %c0_244 = arith.constant 0 : index
    %269 = vector.load %arg8[%c14_242, %c0_243, %c0_244] : memref<16x2x32xbf16, #tpu.memory_space<vmem>>, vector<1x2x32xbf16>
    %270 = vector.shape_cast %269 : vector<1x2x32xbf16> to vector<2x32xbf16>
    %cst_245 = arith.constant dense<0.000000e+00> : vector<2x32xf32>
    %271 = tpu.matmul %270, %155, %cst_245 {dimension_numbers = #tpu.dot_dimension_numbers<[1], [0], [0], [1], [0, 0, 1, 1], [], []>} : vector<2x32xbf16>, vector<32x32xbf16>, vector<2x32xf32> -> vector<2x32xf32>
    %272 = arith.truncf %271 : vector<2x32xf32> to vector<2x32xbf16>
    %c14_246 = arith.constant 14 : index
    %c0_247 = arith.constant 0 : index
    %c0_248 = arith.constant 0 : index
    %273 = vector.load %arg9[%c14_246, %c0_247, %c0_248] : memref<16x32x1xbf16, #tpu.memory_space<vmem>>, vector<1x32x1xbf16>
    %274 = vector.shape_cast %273 : vector<1x32x1xbf16> to vector<32x1xbf16>
    %cst_249 = arith.constant dense<0.000000e+00> : vector<2x1xf32>
    %275 = tpu.matmul %272, %274, %cst_249 {dimension_numbers = #tpu.dot_dimension_numbers<[1], [0], [0], [1], [0, 0, 1, 1], [], []>} : vector<2x32xbf16>, vector<32x1xbf16>, vector<2x1xf32> -> vector<2x1xf32>
    %276 = arith.addf %268, %275 : vector<2x1xf32>
    %c15_250 = arith.constant 15 : index
    %c0_251 = arith.constant 0 : index
    %c0_252 = arith.constant 0 : index
    %277 = vector.load %arg8[%c15_250, %c0_251, %c0_252] : memref<16x2x32xbf16, #tpu.memory_space<vmem>>, vector<1x2x32xbf16>
    %278 = vector.shape_cast %277 : vector<1x2x32xbf16> to vector<2x32xbf16>
    %cst_253 = arith.constant dense<0.000000e+00> : vector<2x32xf32>
    %279 = tpu.matmul %278, %155, %cst_253 {dimension_numbers = #tpu.dot_dimension_numbers<[1], [0], [0], [1], [0, 0, 1, 1], [], []>} : vector<2x32xbf16>, vector<32x32xbf16>, vector<2x32xf32> -> vector<2x32xf32>
    %280 = arith.truncf %279 : vector<2x32xf32> to vector<2x32xbf16>
    %c15_254 = arith.constant 15 : index
    %c0_255 = arith.constant 0 : index
    %c0_256 = arith.constant 0 : index
    %281 = vector.load %arg9[%c15_254, %c0_255, %c0_256] : memref<16x32x1xbf16, #tpu.memory_space<vmem>>, vector<1x32x1xbf16>
    %282 = vector.shape_cast %281 : vector<1x32x1xbf16> to vector<32x1xbf16>
    %cst_257 = arith.constant dense<0.000000e+00> : vector<2x1xf32>
    %283 = tpu.matmul %280, %282, %cst_257 {dimension_numbers = #tpu.dot_dimension_numbers<[1], [0], [0], [1], [0, 0, 1, 1], [], []>} : vector<2x32xbf16>, vector<32x1xbf16>, vector<2x1xf32> -> vector<2x1xf32>
    %284 = arith.addf %276, %283 : vector<2x1xf32>
    %c0_258 = arith.constant 0 : index
    %c0_259 = arith.constant 0 : index
    %285 = vector.load %arg10[%c0_258, %c0_259] : memref<1x1xf32, #tpu.memory_space<vmem>>, vector<1x1xf32>
    %286 = vector.broadcast %285 : vector<1x1xf32> to vector<2x1xf32>
    %287 = arith.addf %284, %286 : vector<2x1xf32>
    %288 = arith.negf %287 : vector<2x1xf32>
    %289 = math.exp %288 : vector<2x1xf32>
    %cst_260 = arith.constant 1.000000e+00 : f32
    %290 = vector.broadcast %cst_260 : f32 to vector<2x1xf32>
    %291 = arith.addf %290, %289 : vector<2x1xf32>
    %292 = arith.divf %290, %291 : vector<2x1xf32>
    %c0_261 = arith.constant 0 : index
    %c0_262 = arith.constant 0 : index
    %293 = vector.load %arg11[%c0_261, %c0_262] : memref<2x1xf32, #tpu.memory_space<vmem>>, vector<2x1xf32>
    tpu.vector_store %arg11[%c0_261, %c0_262], %292 {strides = array<i32>} : memref<2x1xf32, #tpu.memory_space<vmem>>, vector<2x1xf32>,
    return
  }
}

</mosaic_0001>

<bundles_post_ra>
// kernel: discriminator_forward.3
= control target key start
LH: loop header
LB: loop body
LE: loop exit
PB: predicated region body
PF: predicated region fallthrough
CT: control target
= control target key end

     0   :  { %s3480_s15 = smov 0   ;;  %s4438_s0 = inlined_call_operand.vmem [shape: bf16[2048,48], index: 0, kind: input, shape index: {}]   ;;  %s4439_s1 = inlined_call_operand.vmem [shape: bf16[48,64], index: 1, kind: input, shape index: {}]   ;;  %s4440_s2 = inlined_call_operand.vmem [shape: f32[1,64], index: 2, kind: input, shape index: {}]   ;;  %s4441_s3 = inlined_call_operand.vmem [shape: f32[1,64], index: 3, kind: input, shape index: {}]   ;;  %s4442_s4 = inlined_call_operand.vmem [shape: bf16[2048,64], index: 4, kind: output, shape index: {}]  }
   0x1 LB: > { %s2763_s16 = sadd.s32 4294967295, %s3453_s15   ;;  %p2767_p0 = scmp.ge.s32.totalorder %s3453_s15, 1  ;;  %s3453_s15 = sphi %s3480_s15, %s14_s15  }
   0x2   : > { %p163_p1 = scmp.lt.s32.totalorder %s3453_s15, 3 }
   0x4   : > { %p164_p2 = pnand %p2767_p0, %p163_p1 }
   0x5   : > { %s2768_s19 = sshll.u32 (!%p164_p2), %s2763_s16, 7 }
   0x6   : > { %167 = sbr.rel (%p164_p2) target bundleno = 416 (0x1a0), region = 36  ;;  %p190_p3 = scmp.lt.s32.totalorder (!%p164_p2), %s2768_s19, 255 }
   0xb   : > { %v3378_v0 = vld [vmem:[%s4439_s1 + $0x10] sm:$0xff]   ;;  %v3379_v1 = vld [vmem:[%s4439_s1 + $0x8] sm:$0xff]   ;;  %s4444_s19 = smov (!%p190_p3, %s2768_s19), 255  ;;  %v3380_v2 = vld [vmem:[%s4439_s1] sm:$0xff]   ;;  %vm674_vm0 = vcmask 392192   ;;  %vm2578_vm1 = vcmask 519168  }
   0xc   : > { %3230 = vmatprep.subr.bf16.mxu0 %v3378_v0  ;;  %3364 = vmatprep.subr.bf16.mxu1 %v3378_v0  ;;  %s2769_s24 = sshll.u32 %s4444_s19, 2 }
   0xd   : > { %3231 = vmatpush3.bf16.msra.mxu0 %v3378_v0  ;;  %3367 = vmatpush3.bf16.msra.mxu1 %v3378_v0  ;;  %s3505_s27 = scalar_lea.vmem %s4438_s0, %s2769_s24  ;;  %s3660_s8 = scalar_lea.vmem %s4442_s4, %s2769_s24 }
   0xe   : > { %3232 = vmatprep.subr.bf16.mxu0 %v3379_v1  ;;  %3365 = vmatprep.subr.bf16.mxu1 %v3379_v1  ;;  %v3381_v3 = vld [vmem:[%s3505_s27] sm:$0xff]   ;;  %v3383_v5 = vld [vmem:[%s3505_s27 + $0x8] sm:$0xff]   ;;  %v3385_v7 = vld [vmem:[%s3505_s27 + $0x10] sm:$0xff]  }
   0xf   : > { %v3382_v4 = vld [vmem:[%s3505_s27 + $0x100] sm:$0xff]   ;;  %3236 = vmatprep.mubr.msk.bf16.mxu0 %vm674_vm0, %v3381_v3  ;;  %v3384_v6 = vld [vmem:[%s3505_s27 + $0x108] sm:$0xff]   ;;  %v3386_v8 = vld [vmem:[%s3505_s27 + $0x110] sm:$0xff]  }
  0x10   : > { %3300 = vmatprep.mubr.msk.bf16.mxu1 %vm674_vm0, %v3382_v4  ;;  %v3387_v9 = vld [vmem:[%s3505_s27 + $0x18] sm:$0xff]   ;;  %v3389_v11 = vld [vmem:[%s3505_s27 + $0x20] sm:$0xff]   ;;  %v3391_v13 = vld [vmem:[%s3505_s27 + $0x28] sm:$0xff]  }
  0x11   : > { %3233 = vmatpush3.bf16.msra.mxu0 %v3379_v1  ;;  %3368 = vmatpush3.bf16.msra.mxu1 %v3379_v1  ;;  %v3388_v10 = vld [vmem:[%s3505_s27 + $0x118] sm:$0xff]   ;;  %v3390_v12 = vld [vmem:[%s3505_s27 + $0x120] sm:$0xff]   ;;  %v3392_v14 = vld [vmem:[%s3505_s27 + $0x128] sm:$0xff]  }
  0x12   : > { %3234 = vmatprep.subr.bf16.mxu0 %v3380_v2  ;;  %3366 = vmatprep.subr.bf16.mxu1 %v3380_v2  ;;  %v3393_v15 = vld [vmem:[%s3505_s27 + $0x30] sm:$0xff]   ;;  %v3395_v17 = vld [vmem:[%s3505_s27 + $0x38] sm:$0xff]   ;;  %v3397_v19 = vld [vmem:[%s3505_s27 + $0x40] sm:$0xff]  }
  0x13   : > { %v3394_v16 = vld [vmem:[%s3505_s27 + $0x130] sm:$0xff]   ;;  %v3396_v18 = vld [vmem:[%s3505_s27 + $0x138] sm:$0xff]   ;;  %v3398_v20 = vld [vmem:[%s3505_s27 + $0x140] sm:$0xff]  }
  0x14   : > { %v3399_v21 = vld [vmem:[%s3505_s27 + $0x48] sm:$0xff]   ;;  %v3401_v23 = vld [vmem:[%s3505_s27 + $0x50] sm:$0xff]   ;;  %v3403_v25 = vld [vmem:[%s3505_s27 + $0x58] sm:$0xff]  }
  0x15   : > { %3235 = vmatpush3.bf16.msra.mxu0 %v3380_v2  ;;  %3369 = vmatpush3.bf16.msra.mxu1 %v3380_v2  ;;  %v3400_v22 = vld [vmem:[%s3505_s27 + $0x148] sm:$0xff]   ;;  %v3402_v24 = vld [vmem:[%s3505_s27 + $0x150] sm:$0xff]   ;;  %v3404_v26 = vld [vmem:[%s3505_s27 + $0x158] sm:$0xff]  }
  0x16   : > { %v3405_v27 = vld [vmem:[%s3505_s27 + $0x60] sm:$0xff]   ;;  %v3407_v29 = vld [vmem:[%s3505_s27 + $0x68] sm:$0xff]   ;;  %v3409_v31 = vld [vmem:[%s3505_s27 + $0x70] sm:$0xff]  }
  0x17   : > { %v3406_v28 = vld [vmem:[%s3505_s27 + $0x160] sm:$0xff]   ;;  %v3408_v30 = vld [vmem:[%s3505_s27 + $0x168] sm:$0xff]   ;;  %v3410_v32 = vld [vmem:[%s3505_s27 + $0x170] sm:$0xff]  }
  0x18   : > { %3237 = vmatmul.mubr.msk.bf16.vlgmr.msra.gmra.mxu0 %vm674_vm0, %v3383_v5  ;;  %3301 = vmatmul.mubr.msk.bf16.vlgmr.msra.gmra.mxu1 %vm674_vm0, %v3384_v6  ;;  %v3411_v33 = vld [vmem:[%s3505_s27 + $0x78] sm:$0xff]   ;;  %v3413_v35 = vld [vmem:[%s3505_s27 + $0x80] sm:$0xff]   ;;  %v3415_v37 = vld [vmem:[%s3505_s27 + $0x88] sm:$0xff]  }
  0x19   : > { %3240 = vmatprep.mubr.msk.bf16.mxu0 %vm674_vm0, %v3385_v7  ;;  %3304 = vmatprep.mubr.msk.bf16.mxu1 %vm674_vm0, %v3386_v8  ;;  %v3412_v34 = vld [vmem:[%s3505_s27 + $0x178] sm:$0xff]   ;;  %v3414_v36 = vld [vmem:[%s3505_s27 + $0x180] sm:$0xff]   ;;  %v3416_v38 = vld [vmem:[%s3505_s27 + $0x188] sm:$0xff]  }
  0x1a   : > { %v3417_v39 = vld [vmem:[%s3505_s27 + $0x90] sm:$0xff]   ;;  %v3419_v41 = vld [vmem:[%s3505_s27 + $0x98] sm:$0xff]   ;;  %v3421_v43 = vld [vmem:[%s3505_s27 + $0xa0] sm:$0xff]  }
  0x1b   : > { %v3418_v40 = vld [vmem:[%s3505_s27 + $0x190] sm:$0xff]   ;;  %v3420_v42 = vld [vmem:[%s3505_s27 + $0x198] sm:$0xff]   ;;  %v3422_v44 = vld [vmem:[%s3505_s27 + $0x1a0] sm:$0xff]  }
  0x1c   : > { %v3423_v45 = vld [vmem:[%s3505_s27 + $0xa8] sm:$0xff]   ;;  %v3425_v47 = vld [vmem:[%s3505_s27 + $0xb0] sm:$0xff]   ;;  %v3427_v49 = vld [vmem:[%s3505_s27 + $0xb8] sm:$0xff]  }
  0x1d   : > { %v3424_v46 = vld [vmem:[%s3505_s27 + $0x1a8] sm:$0xff]   ;;  %v3426_v48 = vld [vmem:[%s3505_s27 + $0x1b0] sm:$0xff]   ;;  %v3428_v50 = vld [vmem:[%s3505_s27 + $0x1b8] sm:$0xff]  }
  0x1e   : > { %v3429_v51 = vld [vmem:[%s3505_s27 + $0xc0] sm:$0xff]   ;;  %v3431_v53 = vld [vmem:[%s3505_s27 + $0xc8] sm:$0xff]   ;;  %v3433_v55 = vld [vmem:[%s3505_s27 + $0xd0] sm:$0xff]  }
  0x1f   : > { %v3430_v52 = vld [vmem:[%s3505_s27 + $0x1c0] sm:$0xff]   ;;  %v3432_v54 = vld [vmem:[%s3505_s27 + $0x1c8] sm:$0xff]   ;;  %v3434_v56 = vld [vmem:[%s3505_s27 + $0x1d0] sm:$0xff]  }
  0x20   : > { %3241 = vmatmul.mubr.msk.bf16.gmra.mxu0 %vm674_vm0, %v3387_v9  ;;  %3305 = vmatmul.mubr.msk.bf16.gmra.mxu1 %vm674_vm0, %v3388_v10  ;;  %v3435_v57 = vld [vmem:[%s3505_s27 + $0xd8] sm:$0xff]   ;;  %v3437_v59 = vld [vmem:[%s3505_s27 + $0xe0] sm:$0xff]   ;;  %v3439_v61 = vld [vmem:[%s3505_s27 + $0xe8] sm:$0xff]  }
  0x21   : > { %3244 = vmatprep.mubr.msk.bf16.mxu0 %vm674_vm0, %v3389_v11  ;;  %3308 = vmatprep.mubr.msk.bf16.mxu1 %vm674_vm0, %v3390_v12  ;;  %v3436_v58 = vld [vmem:[%s3505_s27 + $0x1d8] sm:$0xff]   ;;  %v3438_v60 = vld [vmem:[%s3505_s27 + $0x1e0] sm:$0xff]   ;;  %v3440_v62 = vld [vmem:[%s3505_s27 + $0x1e8] sm:$0xff]  }
  0x22   : > { %v3441_v63 = vld [vmem:[%s3505_s27 + $0xf0] sm:$0xff]   ;;  %v3443_v1 = vld [vmem:[%s3505_s27 + $0xf8] sm:$0xff]   ;;  %v3638_v3 = vld [vmem:[%s4440_s2] ss:$0 sm:$0xff] }
  0x23   : > { %v3442_v0 = vld [vmem:[%s3505_s27 + $0x1f0] sm:$0xff]   ;;  %v3444_v2 = vld [vmem:[%s3505_s27 + $0x1f8] sm:$0xff]   ;;  %v3643_v5 = vld [vmem:[%s4441_s3] ss:$0 sm:$0xff] }
  0x28   : > { %3245 = vmatmul.mubr.msk.bf16.gmra.mxu0 %vm674_vm0, %v3391_v13  ;;  %3309 = vmatmul.mubr.msk.bf16.gmra.mxu1 %vm674_vm0, %v3392_v14 }
  0x29   : > { %3248 = vmatprep.mubr.msk.bf16.mxu0 %vm674_vm0, %v3393_v15  ;;  %3312 = vmatprep.mubr.msk.bf16.mxu1 %vm674_vm0, %v3394_v16 }
  0x30   : > { %3249 = vmatmul.mubr.msk.bf16.gmra.mxu0 %vm674_vm0, %v3395_v17  ;;  %3313 = vmatmul.mubr.msk.bf16.gmra.mxu1 %vm674_vm0, %v3396_v18 }
  0x31   : > { %3252 = vmatprep.mubr.msk.bf16.mxu0 %vm674_vm0, %v3397_v19  ;;  %3316 = vmatprep.mubr.msk.bf16.mxu1 %vm674_vm0, %v3398_v20 }
  0x38   : > { %3253 = vmatmul.mubr.msk.bf16.gmra.mxu0 %vm674_vm0, %v3399_v21  ;;  %3317 = vmatmul.mubr.msk.bf16.gmra.mxu1 %vm674_vm0, %v3400_v22 }
  0x39   : > { %3256 = vmatprep.mubr.msk.bf16.mxu0 %vm674_vm0, %v3401_v23  ;;  %3320 = vmatprep.mubr.msk.bf16.mxu1 %vm674_vm0, %v3402_v24 }
  0x40   : > { %3257 = vmatmul.mubr.msk.bf16.gmra.mxu0 %vm674_vm0, %v3403_v25  ;;  %3321 = vmatmul.mubr.msk.bf16.gmra.mxu1 %vm674_vm0, %v3404_v26 }
  0x41   : > { %3260 = vmatprep.mubr.msk.bf16.mxu0 %vm674_vm0, %v3405_v27  ;;  %3324 = vmatprep.mubr.msk.bf16.mxu1 %vm674_vm0, %v3406_v28 }
  0x48   : > { %3261 = vmatmul.mubr.msk.bf16.gmra.mxu0 %vm674_vm0, %v3407_v29  ;;  %3325 = vmatmul.mubr.msk.bf16.gmra.mxu1 %vm674_vm0, %v3408_v30 }
  0x49   : > { %3264 = vmatprep.mubr.msk.bf16.mxu0 %vm674_vm0, %v3409_v31  ;;  %3328 = vmatprep.mubr.msk.bf16.mxu1 %vm674_vm0, %v3410_v32 }
  0x50   : > { %3265 = vmatmul.mubr.msk.bf16.gmra.mxu0 %vm674_vm0, %v3411_v33  ;;  %3329 = vmatmul.mubr.msk.bf16.gmra.mxu1 %vm674_vm0, %v3412_v34 }
  0x51   : > { %3268 = vmatprep.mubr.msk.bf16.mxu0 %vm674_vm0, %v3413_v35  ;;  %3332 = vmatprep.mubr.msk.bf16.mxu1 %vm674_vm0, %v3414_v36 }
  0x58   : > { %3269 = vmatmul.mubr.msk.bf16.gmra.mxu0 %vm674_vm0, %v3415_v37  ;;  %3333 = vmatmul.mubr.msk.bf16.gmra.mxu1 %vm674_vm0, %v3416_v38 }
  0x59   : > { %3272 = vmatprep.mubr.msk.bf16.mxu0 %vm674_vm0, %v3417_v39  ;;  %3336 = vmatprep.mubr.msk.bf16.mxu1 %vm674_vm0, %v3418_v40 }
  0x60   : > { %3273 = vmatmul.mubr.msk.bf16.gmra.mxu0 %vm674_vm0, %v3419_v41  ;;  %3337 = vmatmul.mubr.msk.bf16.gmra.mxu1 %vm674_vm0, %v3420_v42 }
  0x61   : > { %3276 = vmatprep.mubr.msk.bf16.mxu0 %vm674_vm0, %v3421_v43  ;;  %3340 = vmatprep.mubr.msk.bf16.mxu1 %vm674_vm0, %v3422_v44 }
  0x68   : > { %3277 = vmatmul.mubr.msk.bf16.gmra.mxu0 %vm674_vm0, %v3423_v45  ;;  %3341 = vmatmul.mubr.msk.bf16.gmra.mxu1 %vm674_vm0, %v3424_v46 }
  0x69   : > { %3280 = vmatprep.mubr.msk.bf16.mxu0 %vm674_vm0, %v3425_v47  ;;  %3344 = vmatprep.mubr.msk.bf16.mxu1 %vm674_vm0, %v3426_v48 }
  0x70   : > { %3281 = vmatmul.mubr.msk.bf16.gmra.mxu0 %vm674_vm0, %v3427_v49  ;;  %3345 = vmatmul.mubr.msk.bf16.gmra.mxu1 %vm674_vm0, %v3428_v50 }
  0x71   : > { %3284 = vmatprep.mubr.msk.bf16.mxu0 %vm674_vm0, %v3429_v51  ;;  %3348 = vmatprep.mubr.msk.bf16.mxu1 %vm674_vm0, %v3430_v52 }
  0x78   : > { %3285 = vmatmul.mubr.msk.bf16.gmra.mxu0 %vm674_vm0, %v3431_v53  ;;  %3349 = vmatmul.mubr.msk.bf16.gmra.mxu1 %vm674_vm0, %v3432_v54 }
  0x79   : > { %3288 = vmatprep.mubr.msk.bf16.mxu0 %vm674_vm0, %v3433_v55  ;;  %3352 = vmatprep.mubr.msk.bf16.mxu1 %vm674_vm0, %v3434_v56 }
  0x80   : > { %3289 = vmatmul.mubr.msk.bf16.gmra.mxu0 %vm674_vm0, %v3435_v57  ;;  %3353 = vmatmul.mubr.msk.bf16.gmra.mxu1 %vm674_vm0, %v3436_v58 }
  0x81   : > { %3292 = vmatprep.mubr.msk.bf16.mxu0 %vm674_vm0, %v3437_v59  ;;  %3356 = vmatprep.mubr.msk.bf16.mxu1 %vm674_vm0, %v3438_v60 }
  0x88   : > { %3293 = vmatmul.mubr.msk.bf16.gmra.mxu0 %vm674_vm0, %v3439_v61  ;;  %3357 = vmatmul.mubr.msk.bf16.gmra.mxu1 %vm674_vm0, %v3440_v62 }
  0x89   : > { %3296 = vmatprep.mubr.msk.bf16.mxu0 %vm674_vm0, %v3441_v63  ;;  %3360 = vmatprep.mubr.msk.bf16.mxu1 %vm674_vm0, %v3442_v0 }
  0x90   : > { %3297 = vmatmul.mubr.msk.bf16.gmra.mxu0 %vm674_vm0, %v3443_v1  ;;  %3361 = vmatmul.mubr.msk.bf16.gmra.mxu1 %vm674_vm0, %v3444_v2 }
  0xd8   : > { %v3238_v4 = vpop.f32.mrf.mxu0  ;;  %v3302_v6 = vpop.f32.mrf.mxu1 }
  0xd9   : > { %v1421_v7 = vmul.f32 %v3238_v4, %v3638_v3  ;;  %v1485_v8 = vmul.f32 %v3302_v6, %v3638_v3 }
  0xda   : > { %v901_v9 = vpop.f32.mrf.mxu0  ;;  %v1157_v10 = vpop.f32.mrf.mxu1 }
  0xdb   : > { %v1556_v11 = vadd.f32 %v3643_v5, %v1421_v7  ;;  %v1620_v12 = vadd.f32 %v3643_v5, %v1485_v8  ;;  %v1419_v13 = vmul.f32 %v3638_v3, %v901_v9  ;;  %v1483_v14 = vmul.f32 %v3638_v3, %v1157_v10 }
  0xdc   : > { %v3239_v15 = vpop.f32.mrf.mxu0  ;;  %v3303_v16 = vpop.f32.mrf.mxu1 }
  0xdd   : > { %vm1684_vm2 = vcmp.gt.f32.partialorder %v1556_v11, 0.0  ;;  %v1812_v17 = vmul.f32 0.2, %v1556_v11  ;;  %vm1748_vm3 = vcmp.gt.f32.partialorder %v1620_v12, 0.0  ;;  %v1876_v18 = vmul.f32 0.2, %v1620_v12 }
  0xde   : > { %v1554_v19 = vadd.f32 %v3643_v5, %v1419_v13  ;;  %v1618_v20 = vadd.f32 %v3643_v5, %v1483_v14  ;;  %v1422_v21 = vmul.f32 %v3239_v15, %v3638_v3  ;;  %v1486_v22 = vmul.f32 %v3303_v16, %v3638_v3  ;;  %v904_v23 = vpop.f32.mrf.mxu0  ;;  %v1160_v24 = vpop.f32.mrf.mxu1 }
  0xdf   : > { %v1940_v25 = vsel %vm1684_vm2, %v1556_v11, %v1812_v17  ;;  %v2004_v26 = vsel %vm1748_vm3, %v1620_v12, %v1876_v18  ;;  %v1420_v27 = vmul.f32 %v3638_v3, %v904_v23  ;;  %v1484_v28 = vmul.f32 %v3638_v3, %v1160_v24 }
  0xe0   : > { %v3037_v29 = vpack.c.bf16 %v1940_v25, %v1940_v25  ;;  %v3101_v30 = vpack.c.bf16 %v2004_v26, %v2004_v26  ;;  %vm1682_vm4 = vcmp.gt.f32.partialorder %v1554_v19, 0.0  ;;  %v1810_v31 = vmul.f32 0.2, %v1554_v19  ;;  %v3242_v32 = vpop.f32.mrf.mxu0  ;;  %v3306_v33 = vpop.f32.mrf.mxu1 }
  0xe1   : > { %vm1746_vm5 = vcmp.gt.f32.partialorder %v1618_v20, 0.0  ;;  %v1874_v34 = vmul.f32 0.2, %v1618_v20  ;;  %v1557_v35 = vadd.f32 %v3643_v5, %v1422_v21  ;;  %v1621_v36 = vadd.f32 %v3643_v5, %v1486_v22 }
  0xe2   : > { %2581 = vst.msk [vmem:[%s3660_s8 + $0x8] sm:$0xf] %vm2578_vm1, %v3037_v29  ;;  %2645 = vst.msk [vmem:[%s3660_s8 + $0x108] sm:$0xf] %vm2578_vm1, %v3101_v30  ;;  %v1938_v37 = vsel %vm1682_vm4, %v1554_v19, %v1810_v31  ;;  %v1555_v38 = vadd.f32 %v3643_v5, %v1420_v27  ;;  %v1619_v39 = vadd.f32 %v3643_v5, %v1484_v28  ;;  %v917_v41 = vpop.f32.mrf.mxu0  ;;  %v1173_v42 = vpop.f32.mrf.mxu1 }
  0xe3   : > { %v1425_v40 = vmul.f32 %v3242_v32, %v3638_v3  ;;  %v3035_v43 = vpack.c.bf16 %v1938_v37, %v1938_v37  ;;  %v2002_v44 = vsel %vm1746_vm5, %v1618_v20, %v1874_v34  ;;  %vm1685_vm6 = vcmp.gt.f32.partialorder %v1557_v35, 0.0 }
  0xe4   : > { %v1813_v45 = vmul.f32 0.2, %v1557_v35  ;;  %v3099_v46 = vpack.c.bf16 %v2002_v44, %v2002_v44  ;;  %vm1749_vm7 = vcmp.gt.f32.partialorder %v1621_v36, 0.0  ;;  %v1877_v47 = vmul.f32 0.2, %v1621_v36  ;;  %v3243_v48 = vpop.f32.mrf.mxu0  ;;  %v3307_v49 = vpop.f32.mrf.mxu1 }
  0xe5   : > { %vm1683_vm8 = vcmp.gt.f32.partialorder %v1555_v38, 0.0  ;;  %2579 = vst.msk [vmem:[%s3660_s8] sm:$0xf] %vm2578_vm1, %v3035_v43  ;;  %v1811_v51 = vmul.f32 0.2, %v1555_v38  ;;  %vm1747_vm9 = vcmp.gt.f32.partialorder %v1619_v39, 0.0  ;;  %v1560_v55 = vadd.f32 %v3643_v5, %v1425_v40 }
  0xe6   : > { %v1941_v50 = vsel %vm1685_vm6, %v1557_v35, %v1813_v45  ;;  %v1875_v52 = vmul.f32 0.2, %v1619_v39  ;;  %2643 = vst.msk [vmem:[%s3660_s8 + $0x100] sm:$0xf] %vm2578_vm1, %v3099_v46  ;;  %v2005_v54 = vsel %vm1749_vm7, %v1621_v36, %v1877_v47  ;;  %v1489_v56 = vmul.f32 %v3306_v33, %v3638_v3  ;;  %v920_v57 = vpop.f32.mrf.mxu0  ;;  %v1176_v58 = vpop.f32.mrf.mxu1 }
  0xe7   : > { %v3038_v53 = vpack.c.bf16 %v1941_v50, %v1941_v50  ;;  %v3102_v59 = vpack.c.bf16 %v2005_v54, %v2005_v54  ;;  %v1939_v60 = vsel %vm1683_vm8, %v1555_v38, %v1811_v51  ;;  %v1423_v62 = vmul.f32 %v3638_v3, %v917_v41 }
  0xe8   : > { %v2003_v61 = vsel %vm1747_vm9, %v1619_v39, %v1875_v52  ;;  %v3036_v63 = vpack.c.bf16 %v1939_v60, %v1939_v60  ;;  %vm1688_vm10 = vcmp.gt.f32.partialorder %v1560_v55, 0.0  ;;  %v1816_v1 = vmul.f32 0.2, %v1560_v55  ;;  %v3246_v2 = vpop.f32.mrf.mxu0  ;;  %v3310_v4 = vpop.f32.mrf.mxu1 }
  0xe9   : > { %2582 = vst.msk [vmem:[%s3660_s8 + $0xc] sm:$0xf] %vm2578_vm1, %v3038_v53  ;;  %v3100_v0 = vpack.c.bf16 %v2003_v61, %v2003_v61  ;;  %2646 = vst.msk [vmem:[%s3660_s8 + $0x10c] sm:$0xf] %vm2578_vm1, %v3102_v59  ;;  %v1624_v6 = vadd.f32 %v3643_v5, %v1489_v56  ;;  %v1558_v7 = vadd.f32 %v3643_v5, %v1423_v62 }
  0xea   : > { %v1487_v8 = vmul.f32 %v3638_v3, %v1173_v42  ;;  %v1426_v9 = vmul.f32 %v3243_v48, %v3638_v3  ;;  %2580 = vst.msk [vmem:[%s3660_s8 + $0x4] sm:$0xf] %vm2578_vm1, %v3036_v63  ;;  %v1944_v10 = vsel %vm1688_vm10, %v1560_v55, %v1816_v1  ;;  %v1490_v11 = vmul.f32 %v3307_v49, %v3638_v3  ;;  %v933_v14 = vpop.f32.mrf.mxu0  ;;  %v1189_v15 = vpop.f32.mrf.mxu1 }
  0xeb   : > { %2644 = vst.msk [vmem:[%s3660_s8 + $0x104] sm:$0xf] %vm2578_vm1, %v3100_v0  ;;  %v1424_v12 = vmul.f32 %v3638_v3, %v920_v57  ;;  %v1488_v13 = vmul.f32 %v3638_v3, %v1176_v58  ;;  %v3041_v16 = vpack.c.bf16 %v1944_v10, %v1944_v10  ;;  %vm1752_vm11 = vcmp.gt.f32.partialorder %v1624_v6, 0.0 }
  0xec   : > { %v1880_v17 = vmul.f32 0.2, %v1624_v6  ;;  %vm1686_vm12 = vcmp.gt.f32.partialorder %v1558_v7, 0.0  ;;  %v1814_v18 = vmul.f32 0.2, %v1558_v7  ;;  %v1622_v19 = vadd.f32 %v3643_v5, %v1487_v8  ;;  %v3247_v22 = vpop.f32.mrf.mxu0  ;;  %v3311_v23 = vpop.f32.mrf.mxu1 }
  0xed   : > { %v1561_v20 = vadd.f32 %v3643_v5, %v1426_v9  ;;  %v1625_v21 = vadd.f32 %v3643_v5, %v1490_v11  ;;  %2585 = vst.msk [vmem:[%s3660_s8 + $0x18] sm:$0xf] %vm2578_vm1, %v3041_v16  ;;  %v1559_v25 = vadd.f32 %v3643_v5, %v1424_v12  ;;  %v1623_v26 = vadd.f32 %v3643_v5, %v1488_v13 }
  0xee   : > { %v2008_v24 = vsel %vm1752_vm11, %v1624_v6, %v1880_v17  ;;  %v1429_v27 = vmul.f32 %v3246_v2, %v3638_v3  ;;  %v1942_v29 = vsel %vm1686_vm12, %v1558_v7, %v1814_v18  ;;  %vm1750_vm13 = vcmp.gt.f32.partialorder %v1622_v19, 0.0  ;;  %v936_v31 = vpop.f32.mrf.mxu0  ;;  %v1192_v32 = vpop.f32.mrf.mxu1 }
  0xef   : > { %v3105_v28 = vpack.c.bf16 %v2008_v24, %v2008_v24  ;;  %v1878_v30 = vmul.f32 0.2, %v1622_v19  ;;  %v3039_v33 = vpack.c.bf16 %v1942_v29, %v1942_v29  ;;  %vm1689_vm14 = vcmp.gt.f32.partialorder %v1561_v20, 0.0 }
  0xf0   : > { %v1817_v34 = vmul.f32 0.2, %v1561_v20  ;;  %vm1753_vm15 = vcmp.gt.f32.partialorder %v1625_v21, 0.0  ;;  %v1881_v36 = vmul.f32 0.2, %v1625_v21  ;;  %vm1687_vm0 = vcmp.gt.f32.partialorder %v1559_v25, 0.0  ;;  %v3706_v38 = vpop.f32.mrf.mxu0  ;;  %v3708_v39 = vpop.f32.mrf.mxu1 }
  0xf1   : > { %2649 = vst.msk [vmem:[%s3660_s8 + $0x118] sm:$0xf] %vm2578_vm1, %v3105_v28  ;;  %v2006_v35 = vsel %vm1750_vm13, %v1622_v19, %v1878_v30  ;;  %v1815_v37 = vmul.f32 0.2, %v1559_v25  ;;  %2583 = vst.msk [vmem:[%s3660_s8 + $0x10] sm:$0xf] %vm2578_vm1, %v3039_v33  ;;  %v1564_v46 = vadd.f32 %v3643_v5, %v1429_v27  ;;  %v1493_v52 = vmul.f32 %v3310_v4, %v3638_v3 }
  0xf2   : > { %v3103_v40 = vpack.c.bf16 %v2006_v35, %v2006_v35  ;;  %v1945_v41 = vsel %vm1689_vm14, %v1561_v20, %v1817_v34  ;;  %vm1751_vm2 = vcmp.gt.f32.partialorder %v1623_v26, 0.0  ;;  %v1879_v42 = vmul.f32 0.2, %v1623_v26  ;;  %v3713_v47 = vpop.f32.mrf.mxu0  ;;  %v3715_v48 = vpop.f32.mrf.mxu1 }
  0xf3   : > { %v3042_v43 = vpack.c.bf16 %v1945_v41, %v1945_v41  ;;  %v2009_v44 = vsel %vm1753_vm15, %v1625_v21, %v1881_v36  ;;  %v1943_v45 = vsel %vm1687_vm0, %v1559_v25, %v1815_v37  ;;  %vm1692_vm3 = vcmp.gt.f32.partialorder %v1564_v46, 0.0 }
  0xf4   : > { %2647 = vst.msk [vmem:[%s3660_s8 + $0x110] sm:$0xf] %vm2578_vm1, %v3103_v40  ;;  %v3106_v49 = vpack.c.bf16 %v2009_v44, %v2009_v44  ;;  %v3040_v50 = vpack.c.bf16 %v1943_v45, %v1943_v45  ;;  %v2007_v51 = vsel %vm1751_vm2, %v1623_v26, %v1879_v42  ;;  %v1820_v54 = vmul.f32 0.2, %v1564_v46  ;;  %v3723_v56 = vpop.f32.mrf.mxu0  ;;  %v3725_v57 = vpop.f32.mrf.mxu1 }
  0xf5   : > { %2586 = vst.msk [vmem:[%s3660_s8 + $0x1c] sm:$0xf] %vm2578_vm1, %v3042_v43  ;;  %v3104_v53 = vpack.c.bf16 %v2007_v51, %v2007_v51  ;;  %v1427_v55 = vmul.f32 %v3638_v3, %v933_v14  ;;  %v1628_v58 = vadd.f32 %v3643_v5, %v1493_v52  ;;  %v1491_v59 = vmul.f32 %v3638_v3, %v1189_v15 }
  0xf6   : > { %2650 = vst.msk [vmem:[%s3660_s8 + $0x11c] sm:$0xf] %vm2578_vm1, %v3106_v49  ;;  %2584 = vst.msk [vmem:[%s3660_s8 + $0x14] sm:$0xf] %vm2578_vm1, %v3040_v50  ;;  %v1430_v60 = vmul.f32 %v3247_v22, %v3638_v3  ;;  %v1494_v61 = vmul.f32 %v3311_v23, %v3638_v3  ;;  %v1948_v62 = vsel %vm1692_vm3, %v1564_v46, %v1820_v54  ;;  %v3740_v2 = vpop.f32.mrf.mxu0  ;;  %v3742_v4 = vpop.f32.mrf.mxu1 }
  0xf7   : > { %2648 = vst.msk [vmem:[%s3660_s8 + $0x114] sm:$0xf] %vm2578_vm1, %v3104_v53  ;;  %v1562_v63 = vadd.f32 %v3643_v5, %v1427_v55  ;;  %v1428_v0 = vmul.f32 %v3638_v3, %v936_v31  ;;  %v1492_v1 = vmul.f32 %v3638_v3, %v1192_v32  ;;  %v3045_v6 = vpack.c.bf16 %v1948_v62, %v1948_v62 }
  0xf8   : > { %vm1756_vm4 = vcmp.gt.f32.partialorder %v1628_v58, 0.0  ;;  %v1884_v7 = vmul.f32 0.2, %v1628_v58  ;;  %v1626_v8 = vadd.f32 %v3643_v5, %v1491_v59  ;;  %v1565_v10 = vadd.f32 %v3643_v5, %v1430_v60  ;;  %v3747_v12 = vpop.f32.mrf.mxu0  ;;  %v3749_v13 = vpop.f32.mrf.mxu1 }
  0xf9   : > { %vm1690_vm5 = vcmp.gt.f32.partialorder %v1562_v63, 0.0  ;;  %v1818_v9 = vmul.f32 0.2, %v1562_v63  ;;  %v1629_v11 = vadd.f32 %v3643_v5, %v1494_v61  ;;  %2589 = vst.msk [vmem:[%s3660_s8 + $0x28] sm:$0xf] %vm2578_vm1, %v3045_v6  ;;  %v1563_v16 = vadd.f32 %v3643_v5, %v1428_v0 }
  0xfa   : > { %v2012_v14 = vsel %vm1756_vm4, %v1628_v58, %v1884_v7  ;;  %vm1754_vm6 = vcmp.gt.f32.partialorder %v1626_v8, 0.0  ;;  %v1882_v15 = vmul.f32 0.2, %v1626_v8  ;;  %vm1693_vm7 = vcmp.gt.f32.partialorder %v1565_v10, 0.0  ;;  %v3754_v20 = vpop.f32.mrf.mxu0  ;;  %v3756_v21 = vpop.f32.mrf.mxu1 }
  0xfb   : > { %v3109_v17 = vpack.c.bf16 %v2012_v14, %v2012_v14  ;;  %v1946_v18 = vsel %vm1690_vm5, %v1562_v63, %v1818_v9  ;;  %v1821_v19 = vmul.f32 0.2, %v1565_v10  ;;  %vm1757_vm8 = vcmp.gt.f32.partialorder %v1629_v11, 0.0 }
  0xfc   : > { %v3043_v22 = vpack.c.bf16 %v1946_v18, %v1946_v18  ;;  %v2010_v23 = vsel %vm1754_vm6, %v1626_v8, %v1882_v15  ;;  %v1885_v24 = vmul.f32 0.2, %v1629_v11  ;;  %vm1691_vm9 = vcmp.gt.f32.partialorder %v1563_v16, 0.0  ;;  %v3760_v28 = vpop.f32.mrf.mxu0  ;;  %v3762_v29 = vpop.f32.mrf.mxu1 }
  0xfd   : > { %2653 = vst.msk [vmem:[%s3660_s8 + $0x128] sm:$0xf] %vm2578_vm1, %v3109_v17  ;;  %v3107_v25 = vpack.c.bf16 %v2010_v23, %v2010_v23  ;;  %v1949_v26 = vsel %vm1693_vm7, %v1565_v10, %v1821_v19  ;;  %v1819_v27 = vmul.f32 0.2, %v1563_v16  ;;  %v1627_v32 = vadd.f32 %v3643_v5, %v1492_v1 }
  0xfe   : > { %2587 = vst.msk [vmem:[%s3660_s8 + $0x20] sm:$0xf] %vm2578_vm1, %v3043_v22  ;;  %v3046_v30 = vpack.c.bf16 %v1949_v26, %v1949_v26  ;;  %v2013_v31 = vsel %vm1757_vm8, %v1629_v11, %v1885_v24  ;;  %v1433_v33 = vmul.f32 %v3706_v38, %v3638_v3  ;;  %v1497_v36 = vmul.f32 %v3708_v39, %v3638_v3  ;;  %v3775_v40 = vpop.f32.mrf.mxu0  ;;  %v3777_v41 = vpop.f32.mrf.mxu1 }
  0xff   : > { %2651 = vst.msk [vmem:[%s3660_s8 + $0x120] sm:$0xf] %vm2578_vm1, %v3107_v25  ;;  %v3110_v34 = vpack.c.bf16 %v2013_v31, %v2013_v31  ;;  %v1947_v35 = vsel %vm1691_vm9, %v1563_v16, %v1819_v27  ;;  %v1431_v37 = vmul.f32 %v3638_v3, %v3713_v47  ;;  %vm1755_vm10 = vcmp.gt.f32.partialorder %v1627_v32, 0.0 }
 0x100   : > { %2590 = vst.msk [vmem:[%s3660_s8 + $0x2c] sm:$0xf] %vm2578_vm1, %v3046_v30  ;;  %v3044_v42 = vpack.c.bf16 %v1947_v35, %v1947_v35  ;;  %v1883_v38 = vmul.f32 0.2, %v1627_v32  ;;  %v1568_v43 = vadd.f32 %v3643_v5, %v1433_v33  ;;  %v1632_v44 = vadd.f32 %v3643_v5, %v1497_v36  ;;  %v3790_v47 = vpop.f32.mrf.mxu0  ;;  %v3792_v49 = vpop.f32.mrf.mxu1 }
 0x101   : > { %2654 = vst.msk [vmem:[%s3660_s8 + $0x12c] sm:$0xf] %vm2578_vm1, %v3110_v34  ;;  %v1566_v39 = vadd.f32 %v3643_v5, %v1431_v37  ;;  %v1495_v45 = vmul.f32 %v3638_v3, %v3715_v48  ;;  %v1434_v46 = vmul.f32 %v3723_v56, %v3638_v3  ;;  %v1498_v52 = vmul.f32 %v3725_v57, %v3638_v3 }
 0x102   : > { %2588 = vst.msk [vmem:[%s3660_s8 + $0x24] sm:$0xf] %vm2578_vm1, %v3044_v42  ;;  %v2011_v50 = vsel %vm1755_vm10, %v1627_v32, %v1883_v38  ;;  %vm1696_vm11 = vcmp.gt.f32.partialorder %v1568_v43, 0.0  ;;  %v1824_v51 = vmul.f32 0.2, %v1568_v43  ;;  %vm1760_vm12 = vcmp.gt.f32.partialorder %v1632_v44, 0.0  ;;  %v3798_v48 = vpop.f32.mrf.mxu0  ;;  %v3800_v55 = vpop.f32.mrf.mxu1 }
 0x103   : > { %v3108_v53 = vpack.c.bf16 %v2011_v50, %v2011_v50  ;;  %v1888_v54 = vmul.f32 0.2, %v1632_v44  ;;  %vm1694_vm13 = vcmp.gt.f32.partialorder %v1566_v39, 0.0  ;;  %v1822_v58 = vmul.f32 0.2, %v1566_v39 }
 0x104   : > { %v1952_v56 = vsel %vm1696_vm11, %v1568_v43, %v1824_v51  ;;  %v1630_v59 = vadd.f32 %v3643_v5, %v1495_v45  ;;  %v1569_v60 = vadd.f32 %v3643_v5, %v1434_v46  ;;  %v1633_v57 = vadd.f32 %v3643_v5, %v1498_v52  ;;  %v3809_v0 = vpop.f32.mrf.mxu0  ;;  %v3811_v1 = vpop.f32.mrf.mxu1 }
 0x105   : > { %2652 = vst.msk [vmem:[%s3660_s8 + $0x124] sm:$0xf] %vm2578_vm1, %v3108_v53  ;;  %v3049_v61 = vpack.c.bf16 %v1952_v56, %v1952_v56  ;;  %v2016_v62 = vsel %vm1760_vm12, %v1632_v44, %v1888_v54  ;;  %v1432_v63 = vmul.f32 %v3638_v3, %v3740_v2  ;;  %v1950_v7 = vsel %vm1694_vm13, %v1566_v39, %v1822_v58 }
 0x106   : > { %v3113_v6 = vpack.c.bf16 %v2016_v62, %v2016_v62  ;;  %vm1758_vm14 = vcmp.gt.f32.partialorder %v1630_v59, 0.0  ;;  %v1886_v8 = vmul.f32 0.2, %v1630_v59  ;;  %v3047_v9 = vpack.c.bf16 %v1950_v7, %v1950_v7  ;;  %v3815_v11 = vpop.f32.mrf.mxu0  ;;  %v3817_v14 = vpop.f32.mrf.mxu1 }
 0x107   : > { %2593 = vst.msk [vmem:[%s3660_s8 + $0x38] sm:$0xf] %vm2578_vm1, %v3049_v61  ;;  %vm1697_vm15 = vcmp.gt.f32.partialorder %v1569_v60, 0.0  ;;  %v1825_v10 = vmul.f32 0.2, %v1569_v60  ;;  %vm1761_vm0 = vcmp.gt.f32.partialorder %v1633_v57, 0.0  ;;  %v1567_v16 = vadd.f32 %v3643_v5, %v1432_v63 }
 0x108   : > { %2657 = vst.msk [vmem:[%s3660_s8 + $0x138] sm:$0xf] %vm2578_vm1, %v3113_v6  ;;  %v2014_v2 = vsel %vm1758_vm14, %v1630_v59, %v1886_v8  ;;  %v1889_v15 = vmul.f32 0.2, %v1633_v57  ;;  %v1496_v17 = vmul.f32 %v3638_v3, %v3742_v4  ;;  %2591 = vst.msk [vmem:[%s3660_s8 + $0x30] sm:$0xf] %vm2578_vm1, %v3047_v9  ;;  %v1437_v22 = vmul.f32 %v3747_v12, %v3638_v3  ;;  %v3830_v24 = vpop.f32.mrf.mxu0  ;;  %v3832_v25 = vpop.f32.mrf.mxu1 }
 0x109   : > { %v3111_v18 = vpack.c.bf16 %v2014_v2, %v2014_v2  ;;  %v1953_v19 = vsel %vm1697_vm15, %v1569_v60, %v1825_v10  ;;  %v1501_v23 = vmul.f32 %v3749_v13, %v3638_v3  ;;  %vm1695_vm2 = vcmp.gt.f32.partialorder %v1567_v16, 0.0 }
 0x10a   : > { %v3050_v26 = vpack.c.bf16 %v1953_v19, %v1953_v19  ;;  %v2017_v27 = vsel %vm1761_vm0, %v1633_v57, %v1889_v15  ;;  %v1823_v4 = vmul.f32 0.2, %v1567_v16  ;;  %v1631_v31 = vadd.f32 %v3643_v5, %v1496_v17  ;;  %v3840_v13 = vpop.f32.mrf.mxu0  ;;  %v3842_v33 = vpop.f32.mrf.mxu1 }
 0x10b   : > { %2655 = vst.msk [vmem:[%s3660_s8 + $0x130] sm:$0xf] %vm2578_vm1, %v3111_v18  ;;  %v3114_v30 = vpack.c.bf16 %v2017_v27, %v2017_v27  ;;  %v1572_v12 = vadd.f32 %v3643_v5, %v1437_v22  ;;  %v1636_v32 = vadd.f32 %v3643_v5, %v1501_v23  ;;  %v1435_v35 = vmul.f32 %v3638_v3, %v3754_v20 }
 0x10c   : > { %2594 = vst.msk [vmem:[%s3660_s8 + $0x3c] sm:$0xf] %vm2578_vm1, %v3050_v26  ;;  %v1951_v34 = vsel %vm1695_vm2, %v1567_v16, %v1823_v4  ;;  %v1499_v36 = vmul.f32 %v3638_v3, %v3756_v21  ;;  %v1438_v37 = vmul.f32 %v3760_v28, %v3638_v3  ;;  %vm1759_vm3 = vcmp.gt.f32.partialorder %v1631_v31, 0.0  ;;  %v3854_v43 = vpop.f32.mrf.mxu0  ;;  %v3856_v44 = vpop.f32.mrf.mxu1 }
 0x10d   : > { %2658 = vst.msk [vmem:[%s3660_s8 + $0x13c] sm:$0xf] %vm2578_vm1, %v3114_v30  ;;  %v3048_v42 = vpack.c.bf16 %v1951_v34, %v1951_v34  ;;  %v1887_v38 = vmul.f32 0.2, %v1631_v31  ;;  %vm1700_vm4 = vcmp.gt.f32.partialorder %v1572_v12, 0.0  ;;  %vm1764_vm5 = vcmp.gt.f32.partialorder %v1636_v32, 0.0 }
 0x10e   : > { %v1828_v39 = vmul.f32 0.2, %v1572_v12  ;;  %v1892_v45 = vmul.f32 0.2, %v1636_v32  ;;  %v1570_v20 = vadd.f32 %v3643_v5, %v1435_v35  ;;  %v1634_v28 = vadd.f32 %v3643_v5, %v1499_v36  ;;  %v3865_v51 = vpop.f32.mrf.mxu0  ;;  %v3867_v52 = vpop.f32.mrf.mxu1 }
 0x10f   : > { %2592 = vst.msk [vmem:[%s3660_s8 + $0x34] sm:$0xf] %vm2578_vm1, %v3048_v42  ;;  %v2015_v21 = vsel %vm1759_vm3, %v1631_v31, %v1887_v38  ;;  %v1573_v46 = vadd.f32 %v3643_v5, %v1438_v37  ;;  %v1502_v50 = vmul.f32 %v3762_v29, %v3638_v3  ;;  %v1436_v7 = vmul.f32 %v3638_v3, %v3775_v40 }
 0x110   : > { %v3112_v53 = vpack.c.bf16 %v2015_v21, %v2015_v21  ;;  %v1956_v54 = vsel %vm1700_vm4, %v1572_v12, %v1828_v39  ;;  %v2020_v56 = vsel %vm1764_vm5, %v1636_v32, %v1892_v45  ;;  %vm1698_vm6 = vcmp.gt.f32.partialorder %v1570_v20, 0.0  ;;  %v3869_v61 = vpop.f32.mrf.mxu0  ;;  %v3871_v62 = vpop.f32.mrf.mxu1 }
 0x111   : > { %v3053_v58 = vpack.c.bf16 %v1956_v54, %v1956_v54  ;;  %v3117_v59 = vpack.c.bf16 %v2020_v56, %v2020_v56  ;;  %v1826_v60 = vmul.f32 0.2, %v1570_v20  ;;  %vm1762_vm7 = vcmp.gt.f32.partialorder %v1634_v28, 0.0 }
 0x112   : > { %2656 = vst.msk [vmem:[%s3660_s8 + $0x134] sm:$0xf] %vm2578_vm1, %v3112_v53  ;;  %v1890_v29 = vmul.f32 0.2, %v1634_v28  ;;  %vm1701_vm8 = vcmp.gt.f32.partialorder %v1573_v46, 0.0  ;;  %v1637_v63 = vadd.f32 %v3643_v5, %v1502_v50  ;;  %v1500_v8 = vmul.f32 %v3638_v3, %v3777_v41  ;;  %v3886_v10 = vpop.f32.mrf.mxu0  ;;  %v3888_v2 = vpop.f32.mrf.mxu1 }
 0x113   : > { %v1829_v57 = vmul.f32 0.2, %v1573_v46  ;;  %2597 = vst.msk [vmem:[%s3660_s8 + $0x48] sm:$0xf] %vm2578_vm1, %v3053_v58  ;;  %2661 = vst.msk [vmem:[%s3660_s8 + $0x148] sm:$0xf] %vm2578_vm1, %v3117_v59  ;;  %v1954_v6 = vsel %vm1698_vm6, %v1570_v20, %v1826_v60  ;;  %v1441_v9 = vmul.f32 %v3790_v47, %v3638_v3  ;;  %v1571_v22 = vadd.f32 %v3643_v5, %v1436_v7 }
 0x114   : > { %v3051_v15 = vpack.c.bf16 %v1954_v6, %v1954_v6  ;;  %v2018_v16 = vsel %vm1762_vm7, %v1634_v28, %v1890_v29  ;;  %vm1765_vm9 = vcmp.gt.f32.partialorder %v1637_v63, 0.0  ;;  %v1893_v40 = vmul.f32 0.2, %v1637_v63  ;;  %v3892_v41 = vpop.f32.mrf.mxu0  ;;  %v3894_v23 = vpop.f32.mrf.mxu1 }
 0x115   : > { %v1957_v17 = vsel %vm1701_vm8, %v1573_v46, %v1829_v57  ;;  %v3115_v18 = vpack.c.bf16 %v2018_v16, %v2018_v16  ;;  %v1635_v47 = vadd.f32 %v3643_v5, %v1500_v8  ;;  %v1576_v26 = vadd.f32 %v3643_v5, %v1441_v9 }
 0x116   : > { %v3054_v19 = vpack.c.bf16 %v1957_v17, %v1957_v17  ;;  %2595 = vst.msk [vmem:[%s3660_s8 + $0x40] sm:$0xf] %vm2578_vm1, %v3051_v15  ;;  %v1505_v27 = vmul.f32 %v3792_v49, %v3638_v3  ;;  %v1439_v4 = vmul.f32 %v3638_v3, %v3798_v48  ;;  %v2021_v30 = vsel %vm1765_vm9, %v1637_v63, %v1893_v40  ;;  %v3910_v32 = vpop.f32.mrf.mxu0  ;;  %v3912_v34 = vpop.f32.mrf.mxu1 }
 0x117   : > { %2659 = vst.msk [vmem:[%s3660_s8 + $0x140] sm:$0xf] %vm2578_vm1, %v3115_v18  ;;  %vm1699_vm10 = vcmp.gt.f32.partialorder %v1571_v22, 0.0  ;;  %v1827_v31 = vmul.f32 0.2, %v1571_v22  ;;  %v1503_v12 = vmul.f32 %v3638_v3, %v3800_v55  ;;  %v3118_v35 = vpack.c.bf16 %v2021_v30, %v2021_v30 }
 0x118   : > { %2598 = vst.msk [vmem:[%s3660_s8 + $0x4c] sm:$0xf] %vm2578_vm1, %v3054_v19  ;;  %vm1763_vm11 = vcmp.gt.f32.partialorder %v1635_v47, 0.0  ;;  %v1891_v49 = vmul.f32 0.2, %v1635_v47  ;;  %vm1704_vm12 = vcmp.gt.f32.partialorder %v1576_v26, 0.0  ;;  %v1640_v37 = vadd.f32 %v3643_v5, %v1505_v27  ;;  %v3916_v38 = vpop.f32.mrf.mxu0  ;;  %v3918_v39 = vpop.f32.mrf.mxu1 }
 0x119   : > { %v1955_v48 = vsel %vm1699_vm10, %v1571_v22, %v1827_v31  ;;  %v1832_v36 = vmul.f32 0.2, %v1576_v26  ;;  %v1574_v42 = vadd.f32 %v3643_v5, %v1439_v4  ;;  %2662 = vst.msk [vmem:[%s3660_s8 + $0x14c] sm:$0xf] %vm2578_vm1, %v3118_v35  ;;  %v1638_v20 = vadd.f32 %v3643_v5, %v1503_v12 }
 0x11a   : > { %v3052_v55 = vpack.c.bf16 %v1955_v48, %v1955_v48  ;;  %v2019_v45 = vsel %vm1763_vm11, %v1635_v47, %v1891_v49  ;;  %v1442_v21 = vmul.f32 %v3809_v0, %v3638_v3  ;;  %vm1768_vm13 = vcmp.gt.f32.partialorder %v1640_v37, 0.0  ;;  %v3925_v53 = vpop.f32.mrf.mxu0  ;;  %v3927_v54 = vpop.f32.mrf.mxu1 }
 0x11b   : > { %v3116_v28 = vpack.c.bf16 %v2019_v45, %v2019_v45  ;;  %v1960_v46 = vsel %vm1704_vm12, %v1576_v26, %v1832_v36  ;;  %v1896_v50 = vmul.f32 0.2, %v1640_v37  ;;  %vm1702_vm14 = vcmp.gt.f32.partialorder %v1574_v42, 0.0 }
 0x11c   : > { %2596 = vst.msk [vmem:[%s3660_s8 + $0x44] sm:$0xf] %vm2578_vm1, %v3052_v55  ;;  %v3057_v56 = vpack.c.bf16 %v1960_v46, %v1960_v46  ;;  %v1830_v58 = vmul.f32 0.2, %v1574_v42  ;;  %vm1766_vm15 = vcmp.gt.f32.partialorder %v1638_v20, 0.0  ;;  %v1577_v60 = vadd.f32 %v3643_v5, %v1442_v21  ;;  %v3936_v57 = vpop.f32.mrf.mxu0  ;;  %v3944_v9 = vpop.f32.mrf.mxu1 }
 0x11d   : > { %2660 = vst.msk [vmem:[%s3660_s8 + $0x144] sm:$0xf] %vm2578_vm1, %v3116_v28  ;;  %v2024_v59 = vsel %vm1768_vm13, %v1640_v37, %v1896_v50  ;;  %v1894_v0 = vmul.f32 0.2, %v1638_v20  ;;  %v1506_v29 = vmul.f32 %v3811_v1, %v3638_v3  ;;  %v1440_v7 = vmul.f32 %v3638_v3, %v3815_v11 }
 0x11e   : > { %2601 = vst.msk [vmem:[%s3660_s8 + $0x58] sm:$0xf] %vm2578_vm1, %v3057_v56  ;;  %v3121_v63 = vpack.c.bf16 %v2024_v59, %v2024_v59  ;;  %v1958_v6 = vsel %vm1702_vm14, %v1574_v42, %v1830_v58  ;;  %v1504_v8 = vmul.f32 %v3638_v3, %v3817_v14  ;;  %vm1705_vm0 = vcmp.gt.f32.partialorder %v1577_v60, 0.0  ;;  %v3959_v26 = vpop.f32.mrf.mxu0  ;;  %v3963_v30 = vpop.f32.mrf.mxu1 }
 0x11f   : > { %v3055_v15 = vpack.c.bf16 %v1958_v6, %v1958_v6  ;;  %v2022_v16 = vsel %vm1766_vm15, %v1638_v20, %v1894_v0  ;;  %v1833_v1 = vmul.f32 0.2, %v1577_v60  ;;  %v1641_v18 = vadd.f32 %v3643_v5, %v1506_v29 }
 0x120   : > { %2665 = vst.msk [vmem:[%s3660_s8 + $0x158] sm:$0xf] %vm2578_vm1, %v3121_v63  ;;  %v3119_v17 = vpack.c.bf16 %v2022_v16, %v2022_v16  ;;  %v1575_v19 = vadd.f32 %v3643_v5, %v1440_v7  ;;  %v1639_v40 = vadd.f32 %v3643_v5, %v1504_v8  ;;  %v1445_v14 = vmul.f32 %v3830_v24, %v3638_v3  ;;  %v3972_v42 = vpop.f32.mrf.mxu0  ;;  %v3974_v21 = vpop.f32.mrf.mxu1 }
 0x121   : > { %2599 = vst.msk [vmem:[%s3660_s8 + $0x50] sm:$0xf] %vm2578_vm1, %v3055_v15  ;;  %v1961_v11 = vsel %vm1705_vm0, %v1577_v60, %v1833_v1  ;;  %v1509_v22 = vmul.f32 %v3832_v25, %v3638_v3  ;;  %v1443_v47 = vmul.f32 %v3638_v3, %v3840_v13  ;;  %vm1769_vm2 = vcmp.gt.f32.partialorder %v1641_v18, 0.0 }
 0x122   : > { %2663 = vst.msk [vmem:[%s3660_s8 + $0x150] sm:$0xf] %vm2578_vm1, %v3119_v17  ;;  %v3058_v27 = vpack.c.bf16 %v1961_v11, %v1961_v11  ;;  %v1897_v4 = vmul.f32 0.2, %v1641_v18  ;;  %vm1703_vm3 = vcmp.gt.f32.partialorder %v1575_v19, 0.0  ;;  %vm1767_vm4 = vcmp.gt.f32.partialorder %v1639_v40, 0.0  ;;  %v3989_v63 = vpop.f32.mrf.mxu0 }
 0x123   : > { %v1831_v31 = vmul.f32 0.2, %v1575_v19  ;;  %v1895_v12 = vmul.f32 0.2, %v1639_v40  ;;  %v1580_v24 = vadd.f32 %v3643_v5, %v1445_v14  ;;  %v1644_v13 = vadd.f32 %v3643_v5, %v1509_v22 }
 0x124   : > { %2602 = vst.msk [vmem:[%s3660_s8 + $0x5c] sm:$0xf] %vm2578_vm1, %v3058_v27  ;;  %v2025_v25 = vsel %vm1769_vm2, %v1641_v18, %v1897_v4  ;;  %v1578_v35 = vadd.f32 %v3643_v5, %v1443_v47  ;;  %v1507_v49 = vmul.f32 %v3638_v3, %v3842_v33  ;;  %v1446_v56 = vmul.f32 %v3854_v43, %v3638_v3  ;;  %v3992_v43 = vpop.f32.mrf.mxu1 }
 0x125   : > { %v3122_v48 = vpack.c.bf16 %v2025_v25, %v2025_v25  ;;  %v1959_v36 = vsel %vm1703_vm3, %v1575_v19, %v1831_v31  ;;  %v2023_v37 = vsel %vm1767_vm4, %v1639_v40, %v1895_v12  ;;  %vm1708_vm5 = vcmp.gt.f32.partialorder %v1580_v24, 0.0 }
 0x126   : > { %v3056_v55 = vpack.c.bf16 %v1959_v36, %v1959_v36  ;;  %v3120_v45 = vpack.c.bf16 %v2023_v37, %v2023_v37  ;;  %v1836_v20 = vmul.f32 0.2, %v1580_v24  ;;  %vm1772_vm6 = vcmp.gt.f32.partialorder %v1644_v13, 0.0  ;;  %v4012_v27 = vpop.f32.mrf.mxu1 }
 0x127   : > { %2666 = vst.msk [vmem:[%s3660_s8 + $0x15c] sm:$0xf] %vm2578_vm1, %v3122_v48  ;;  %v1900_v28 = vmul.f32 0.2, %v1644_v13  ;;  %vm1706_vm7 = vcmp.gt.f32.partialorder %v1578_v35, 0.0  ;;  %v1642_v33 = vadd.f32 %v3643_v5, %v1507_v49  ;;  %v1510_v58 = vmul.f32 %v3856_v44, %v3638_v3 }
 0x128   : > { %v1834_v46 = vmul.f32 0.2, %v1578_v35  ;;  %2600 = vst.msk [vmem:[%s3660_s8 + $0x54] sm:$0xf] %vm2578_vm1, %v3056_v55  ;;  %2664 = vst.msk [vmem:[%s3660_s8 + $0x154] sm:$0xf] %vm2578_vm1, %v3120_v45  ;;  %v1964_v50 = vsel %vm1708_vm5, %v1580_v24, %v1836_v20  ;;  %v1444_v59 = vmul.f32 %v3638_v3, %v3865_v51  ;;  %v1581_v15 = vadd.f32 %v3643_v5, %v1446_v56  ;;  %v4028_v45 = vpop.f32.mrf.mxu1 }
 0x129   : > { %v3061_v0 = vpack.c.bf16 %v1964_v50, %v1964_v50  ;;  %v2028_v60 = vsel %vm1772_vm6, %v1644_v13, %v1900_v28  ;;  %vm1770_vm8 = vcmp.gt.f32.partialorder %v1642_v33, 0.0  ;;  %v1898_v8 = vmul.f32 0.2, %v1642_v33 }
 0x12a   : > { %v1962_v29 = vsel %vm1706_vm7, %v1578_v35, %v1834_v46  ;;  %v3125_v6 = vpack.c.bf16 %v2028_v60, %v2028_v60  ;;  %v1645_v44 = vadd.f32 %v3643_v5, %v1510_v58  ;;  %v1579_v51 = vadd.f32 %v3643_v5, %v1444_v59 }
 0x12b   : > { %v3059_v7 = vpack.c.bf16 %v1962_v29, %v1962_v29  ;;  %2605 = vst.msk [vmem:[%s3660_s8 + $0x68] sm:$0xf] %vm2578_vm1, %v3061_v0  ;;  %v1508_v16 = vmul.f32 %v3638_v3, %v3867_v52  ;;  %v1449_v1 = vmul.f32 %v3869_v61, %v3638_v3  ;;  %v2026_v17 = vsel %vm1770_vm8, %v1642_v33, %v1898_v8  ;;  %v4008_v52 = vpop.f32.mrf.mxu0  ;;  %v4051_v8 = vpop.f32.mrf.mxu1 }
 0x12c   : > { %2669 = vst.msk [vmem:[%s3660_s8 + $0x168] sm:$0xf] %vm2578_vm1, %v3125_v6  ;;  %vm1709_vm9 = vcmp.gt.f32.partialorder %v1581_v15, 0.0  ;;  %v1837_v18 = vmul.f32 0.2, %v1581_v15  ;;  %v1513_v19 = vmul.f32 %v3871_v62, %v3638_v3  ;;  %v3123_v40 = vpack.c.bf16 %v2026_v17, %v2026_v17 }
 0x12d   : > { %2603 = vst.msk [vmem:[%s3660_s8 + $0x60] sm:$0xf] %vm2578_vm1, %v3059_v7  ;;  %vm1773_vm10 = vcmp.gt.f32.partialorder %v1645_v44, 0.0  ;;  %v1901_v11 = vmul.f32 0.2, %v1645_v44  ;;  %vm1707_vm11 = vcmp.gt.f32.partialorder %v1579_v51, 0.0  ;;  %v1643_v22 = vadd.f32 %v3643_v5, %v1508_v16  ;;  %v4021_v48 = vpop.f32.mrf.mxu0 }
 0x12e   : > { %v1965_v14 = vsel %vm1709_vm9, %v1581_v15, %v1837_v18  ;;  %v1835_v61 = vmul.f32 0.2, %v1579_v51  ;;  %v1584_v47 = vadd.f32 %v3643_v5, %v1449_v1  ;;  %2667 = vst.msk [vmem:[%s3660_s8 + $0x160] sm:$0xf] %vm2578_vm1, %v3123_v40  ;;  %v1648_v31 = vadd.f32 %v3643_v5, %v1513_v19  ;;  %v4068_v17 = vld [vmem:[%s4440_s2] ss:$0 sm:$0xff] }
 0x12f   : > { %v3062_v4 = vpack.c.bf16 %v1965_v14, %v1965_v14  ;;  %v2029_v62 = vsel %vm1773_vm10, %v1645_v44, %v1901_v11  ;;  %v1447_v12 = vmul.f32 %v3638_v3, %v3886_v10  ;;  %vm1771_vm12 = vcmp.gt.f32.partialorder %v1643_v22, 0.0  ;;  %v4041_v29 = vpop.f32.mrf.mxu0  ;;  %v4074_v14 = vpop.f32.mrf.mxu1 }
 0x130   : > { %v3126_v24 = vpack.c.bf16 %v2029_v62, %v2029_v62  ;;  %v1963_v25 = vsel %vm1707_vm11, %v1579_v51, %v1835_v61  ;;  %v1899_v13 = vmul.f32 0.2, %v1643_v22  ;;  %vm1712_vm13 = vcmp.gt.f32.partialorder %v1584_v47, 0.0 }
 0x131   : > { %2606 = vst.msk [vmem:[%s3660_s8 + $0x6c] sm:$0xf] %vm2578_vm1, %v3062_v4  ;;  %v3060_v35 = vpack.c.bf16 %v1963_v25, %v1963_v25  ;;  %v1840_v49 = vmul.f32 0.2, %v1584_v47  ;;  %vm1776_vm14 = vcmp.gt.f32.partialorder %v1648_v31, 0.0  ;;  %v1582_v10 = vadd.f32 %v3643_v5, %v1447_v12  ;;  %v4072_v18 = vpop.f32.mrf.mxu0 }
 0x132   : > { %2670 = vst.msk [vmem:[%s3660_s8 + $0x16c] sm:$0xf] %vm2578_vm1, %v3126_v24  ;;  %v2027_v36 = vsel %vm1771_vm12, %v1643_v22, %v1899_v13  ;;  %v1904_v37 = vmul.f32 0.2, %v1648_v31  ;;  %v1511_v55 = vmul.f32 %v3638_v3, %v3888_v2  ;;  %v1450_v46 = vmul.f32 %v3892_v41, %v3638_v3 }
 0x133   : > { %2604 = vst.msk [vmem:[%s3660_s8 + $0x64] sm:$0xf] %vm2578_vm1, %v3060_v35  ;;  %v3124_v20 = vpack.c.bf16 %v2027_v36, %v2027_v36  ;;  %v1968_v28 = vsel %vm1712_vm13, %v1584_v47, %v1840_v49  ;;  %v1514_v33 = vmul.f32 %v3894_v23, %v3638_v3  ;;  %vm1710_vm15 = vcmp.gt.f32.partialorder %v1582_v10, 0.0  ;;  %v4089_v13 = vpop.f32.mrf.mxu0 }
 0x134   : > { %v3065_v50 = vpack.c.bf16 %v1968_v28, %v1968_v28  ;;  %v2032_v56 = vsel %vm1776_vm14, %v1648_v31, %v1904_v37  ;;  %v1838_v58 = vmul.f32 0.2, %v1582_v10  ;;  %v1646_v59 = vadd.f32 %v3643_v5, %v1511_v55  ;;  %v4091_v37 = vpop.f32.mrf.mxu1 }
 0x135   : > { %2668 = vst.msk [vmem:[%s3660_s8 + $0x164] sm:$0xf] %vm2578_vm1, %v3124_v20  ;;  %v3129_v2 = vpack.c.bf16 %v2032_v56, %v2032_v56  ;;  %v1585_v0 = vadd.f32 %v3643_v5, %v1450_v46  ;;  %v1649_v60 = vadd.f32 %v3643_v5, %v1514_v33  ;;  %v1448_v23 = vmul.f32 %v3638_v3, %v3910_v32 }
 0x136   : > { %2609 = vst.msk [vmem:[%s3660_s8 + $0x78] sm:$0xf] %vm2578_vm1, %v3065_v50  ;;  %v1966_v41 = vsel %vm1710_vm15, %v1582_v10, %v1838_v58  ;;  %v1512_v6 = vmul.f32 %v3638_v3, %v3912_v34  ;;  %v1453_v7 = vmul.f32 %v3916_v38, %v3638_v3  ;;  %vm1774_vm0 = vcmp.gt.f32.partialorder %v1646_v59, 0.0  ;;  %v4061_v3 = vld [vmem:[%s4441_s3] ss:$0 sm:$0xff]  ;;  %v4108_v58 = vpop.f32.mrf.mxu0 }
 0x137   : > { %2673 = vst.msk [vmem:[%s3660_s8 + $0x178] sm:$0xf] %vm2578_vm1, %v3129_v2  ;;  %v3063_v15 = vpack.c.bf16 %v1966_v41, %v1966_v41  ;;  %v1902_v44 = vmul.f32 0.2, %v1646_v59  ;;  %vm1713_vm2 = vcmp.gt.f32.partialorder %v1585_v0, 0.0  ;;  %vm1777_vm3 = vcmp.gt.f32.partialorder %v1649_v60, 0.0 }
 0x138   : > { %v1841_v51 = vmul.f32 0.2, %v1585_v0  ;;  %v1905_v16 = vmul.f32 0.2, %v1649_v60  ;;  %v1583_v1 = vadd.f32 %v3643_v5, %v1448_v23  ;;  %v1647_v34 = vadd.f32 %v4061_v3, %v1512_v6 }
 0x139   : > { %2607 = vst.msk [vmem:[%s3660_s8 + $0x70] sm:$0xf] %vm2578_vm1, %v3063_v15  ;;  %v2030_v32 = vsel %vm1774_vm0, %v1646_v59, %v1902_v44  ;;  %v1588_v38 = vadd.f32 %v4061_v3, %v1453_v7  ;;  %v1517_v5 = vmul.f32 %v4068_v17, %v3918_v39  ;;  %v1451_v12 = vmul.f32 %v4068_v17, %v3925_v53 }
 0x13a   : > { %v3127_v19 = vpack.c.bf16 %v2030_v32, %v2030_v32  ;;  %v1969_v40 = vsel %vm1713_vm2, %v1585_v0, %v1841_v51  ;;  %v2033_v11 = vsel %vm1777_vm3, %v1649_v60, %v1905_v16  ;;  %vm1711_vm4 = vcmp.gt.f32.partialorder %v1583_v1, 0.0  ;;  %v4119_v16 = vpop.f32.mrf.mxu0 }
 0x13b   : > { %v3066_v61 = vpack.c.bf16 %v1969_v40, %v1969_v40  ;;  %v3130_v22 = vpack.c.bf16 %v2033_v11, %v2033_v11  ;;  %v1839_v47 = vmul.f32 0.2, %v1583_v1  ;;  %vm1775_vm5 = vcmp.gt.f32.partialorder %v1647_v34, 0.0 }
 0x13c   : > { %2671 = vst.msk [vmem:[%s3660_s8 + $0x170] sm:$0xf] %vm2578_vm1, %v3127_v19  ;;  %v1903_v4 = vmul.f32 0.2, %v1647_v34  ;;  %vm1716_vm6 = vcmp.gt.f32.partialorder %v1588_v38, 0.0  ;;  %v1652_v39 = vadd.f32 %v4061_v3, %v1517_v5  ;;  %v1515_v24 = vmul.f32 %v4068_v17, %v3927_v54 }
 0x13d   : > { %v1844_v62 = vmul.f32 0.2, %v1588_v38  ;;  %2610 = vst.msk [vmem:[%s3660_s8 + $0x7c] sm:$0xf] %vm2578_vm1, %v3066_v61  ;;  %2674 = vst.msk [vmem:[%s3660_s8 + $0x17c] sm:$0xf] %vm2578_vm1, %v3130_v22  ;;  %v1967_v31 = vsel %vm1711_vm4, %v1583_v1, %v1839_v47  ;;  %v1454_v25 = vmul.f32 %v4068_v17, %v3936_v57  ;;  %v1586_v53 = vadd.f32 %v4061_v3, %v1451_v12 }
 0x13e   : > { %v3064_v35 = vpack.c.bf16 %v1967_v31, %v1967_v31  ;;  %v2031_v49 = vsel %vm1775_vm5, %v1647_v34, %v1903_v4  ;;  %vm1780_vm7 = vcmp.gt.f32.partialorder %v1652_v39, 0.0  ;;  %v1908_v20 = vmul.f32 0.2, %v1652_v39 }
 0x13f   : > { %v1972_v36 = vsel %vm1716_vm6, %v1588_v38, %v1844_v62  ;;  %v3128_v10 = vpack.c.bf16 %v2031_v49, %v2031_v49  ;;  %v1650_v54 = vadd.f32 %v4061_v3, %v1515_v24  ;;  %v1589_v57 = vadd.f32 %v4061_v3, %v1454_v25 }
 0x140   : > { %v3069_v55 = vpack.c.bf16 %v1972_v36, %v1972_v36  ;;  %2608 = vst.msk [vmem:[%s3660_s8 + $0x74] sm:$0xf] %vm2578_vm1, %v3064_v35  ;;  %v1518_v28 = vmul.f32 %v4068_v17, %v3944_v9  ;;  %v1452_v46 = vmul.f32 %v4068_v17, %v3959_v26  ;;  %v2036_v33 = vsel %vm1780_vm7, %v1652_v39, %v1908_v20  ;;  %v4110_v9 = vpop.f32.mrf.mxu1  ;;  %v4136_v39 = vpop.f32.mrf.mxu0 }
 0x141   : > { %2672 = vst.msk [vmem:[%s3660_s8 + $0x174] sm:$0xf] %vm2578_vm1, %v3128_v10  ;;  %vm1714_vm8 = vcmp.gt.f32.partialorder %v1586_v53, 0.0  ;;  %v1842_v50 = vmul.f32 0.2, %v1586_v53  ;;  %v1516_v56 = vmul.f32 %v4068_v17, %v3963_v30  ;;  %v3133_v2 = vpack.c.bf16 %v2036_v33, %v2036_v33 }
 0x142   : > { %2613 = vst.msk [vmem:[%s3660_s8 + $0x88] sm:$0xf] %vm2578_vm1, %v3069_v55  ;;  %vm1778_vm9 = vcmp.gt.f32.partialorder %v1650_v54, 0.0  ;;  %v1906_v59 = vmul.f32 0.2, %v1650_v54  ;;  %vm1717_vm10 = vcmp.gt.f32.partialorder %v1589_v57, 0.0  ;;  %v1653_v60 = vadd.f32 %v4061_v3, %v1518_v28  ;;  %v4123_v34 = vpop.f32.mrf.mxu1 }
 0x143   : > { %v1970_v26 = vsel %vm1714_vm8, %v1586_v53, %v1842_v50  ;;  %v1845_v0 = vmul.f32 0.2, %v1589_v57  ;;  %v1587_v41 = vadd.f32 %v4061_v3, %v1452_v46  ;;  %2677 = vst.msk [vmem:[%s3660_s8 + $0x188] sm:$0xf] %vm2578_vm1, %v3133_v2  ;;  %v1651_v6 = vadd.f32 %v4061_v3, %v1516_v56 }
 0x144   : > { %v3067_v23 = vpack.c.bf16 %v1970_v26, %v1970_v26  ;;  %v2034_v30 = vsel %vm1778_vm9, %v1650_v54, %v1906_v59  ;;  %v1457_v7 = vmul.f32 %v4068_v17, %v3972_v42  ;;  %vm1781_vm11 = vcmp.gt.f32.partialorder %v1653_v60, 0.0  ;;  %v4156_v54 = vpop.f32.mrf.mxu0 }
 0x145   : > { %v3131_v15 = vpack.c.bf16 %v2034_v30, %v2034_v30  ;;  %v1973_v44 = vsel %vm1717_vm10, %v1589_v57, %v1845_v0  ;;  %v1909_v51 = vmul.f32 0.2, %v1653_v60  ;;  %vm1715_vm12 = vcmp.gt.f32.partialorder %v1587_v41, 0.0 }
 0x146   : > { %2611 = vst.msk [vmem:[%s3660_s8 + $0x80] sm:$0xf] %vm2578_vm1, %v3067_v23  ;;  %v3070_v1 = vpack.c.bf16 %v1973_v44, %v1973_v44  ;;  %v1843_v32 = vmul.f32 0.2, %v1587_v41  ;;  %vm1779_vm13 = vcmp.gt.f32.partialorder %v1651_v6, 0.0  ;;  %v1592_v5 = vadd.f32 %v4061_v3, %v1457_v7 }
 0x147   : > { %2675 = vst.msk [vmem:[%s3660_s8 + $0x180] sm:$0xf] %vm2578_vm1, %v3131_v15  ;;  %v2037_v38 = vsel %vm1781_vm11, %v1653_v60, %v1909_v51  ;;  %v1907_v42 = vmul.f32 0.2, %v1651_v6  ;;  %v1521_v19 = vmul.f32 %v4068_v17, %v3974_v21  ;;  %v1455_v61 = vmul.f32 %v4068_v17, %v3989_v63  ;;  %v4143_v63 = vpop.f32.mrf.mxu1 }
 0x148   : > { %2614 = vst.msk [vmem:[%s3660_s8 + $0x8c] sm:$0xf] %vm2578_vm1, %v3070_v1  ;;  %v3134_v40 = vpack.c.bf16 %v2037_v38, %v2037_v38  ;;  %v1971_v11 = vsel %vm1715_vm12, %v1587_v41, %v1843_v32  ;;  %v1519_v22 = vmul.f32 %v4068_v17, %v3992_v43  ;;  %vm1720_vm14 = vcmp.gt.f32.partialorder %v1592_v5, 0.0 }
 0x149   : > { %v3068_v47 = vpack.c.bf16 %v1971_v11, %v1971_v11  ;;  %v2035_v4 = vsel %vm1779_vm13, %v1651_v6, %v1907_v42  ;;  %v1848_v62 = vmul.f32 0.2, %v1592_v5  ;;  %v1656_v31 = vadd.f32 %v4061_v3, %v1521_v19  ;;  %v4164_v28 = vpop.f32.mrf.mxu1 }
 0x14a   : > { %2678 = vst.msk [vmem:[%s3660_s8 + $0x18c] sm:$0xf] %vm2578_vm1, %v3134_v40  ;;  %v3132_v21 = vpack.c.bf16 %v2035_v4, %v2035_v4  ;;  %v1590_v12 = vadd.f32 %v4061_v3, %v1455_v61  ;;  %v1654_v24 = vadd.f32 %v4061_v3, %v1519_v22  ;;  %v1458_v25 = vmul.f32 %v4068_v17, %v4008_v52 }
 0x14b   : > { %2612 = vst.msk [vmem:[%s3660_s8 + $0x84] sm:$0xf] %vm2578_vm1, %v3068_v47  ;;  %v1976_v43 = vsel %vm1720_vm14, %v1592_v5, %v1848_v62  ;;  %v1522_v35 = vmul.f32 %v4068_v17, %v4012_v27  ;;  %v1456_v49 = vmul.f32 %v4068_v17, %v4021_v48  ;;  %vm1784_vm15 = vcmp.gt.f32.partialorder %v1656_v31, 0.0  ;;  %v4181_v7 = vpop.f32.mrf.mxu1 }
 0x14c   : > { %2676 = vst.msk [vmem:[%s3660_s8 + $0x184] sm:$0xf] %vm2578_vm1, %v3132_v21  ;;  %v3073_v36 = vpack.c.bf16 %v1976_v43, %v1976_v43  ;;  %v1912_v10 = vmul.f32 0.2, %v1656_v31  ;;  %vm1718_vm0 = vcmp.gt.f32.partialorder %v1590_v12, 0.0  ;;  %vm1782_vm2 = vcmp.gt.f32.partialorder %v1654_v24, 0.0 }
 0x14d   : > { %v1846_v55 = vmul.f32 0.2, %v1590_v12  ;;  %v1910_v20 = vmul.f32 0.2, %v1654_v24  ;;  %v1593_v53 = vadd.f32 %v4061_v3, %v1458_v25  ;;  %v1657_v27 = vadd.f32 %v4061_v3, %v1522_v35  ;;  %v4200_v22 = vpop.f32.mrf.mxu1 }
 0x14e   : > { %2617 = vst.msk [vmem:[%s3660_s8 + $0x98] sm:$0xf] %vm2578_vm1, %v3073_v36  ;;  %v2040_v52 = vsel %vm1784_vm15, %v1656_v31, %v1912_v10  ;;  %v1591_v48 = vadd.f32 %v4061_v3, %v1456_v49  ;;  %v1520_v57 = vmul.f32 %v4068_v17, %v4028_v45  ;;  %v4169_v45 = vpop.f32.mrf.mxu0  ;;  %v1461_v23 = vmul.f32 %v4068_v17, %v4041_v29 }
 0x14f   : > { %v3137_v46 = vpack.c.bf16 %v2040_v52, %v2040_v52  ;;  %v1974_v33 = vsel %vm1718_vm0, %v1590_v12, %v1846_v55  ;;  %v2038_v50 = vsel %vm1782_vm2, %v1654_v24, %v1910_v20  ;;  %vm1721_vm3 = vcmp.gt.f32.partialorder %v1593_v53, 0.0  ;;  %v4211_v36 = vpop.f32.mrf.mxu1 }
 0x150   : > { %v3071_v56 = vpack.c.bf16 %v1974_v33, %v1974_v33  ;;  %v3135_v2 = vpack.c.bf16 %v2038_v50, %v2038_v50  ;;  %v1849_v59 = vmul.f32 0.2, %v1593_v53  ;;  %vm1785_vm4 = vcmp.gt.f32.partialorder %v1657_v27, 0.0  ;;  %v4192_v19 = vpop.f32.mrf.mxu0 }
 0x151   : > { %2681 = vst.msk [vmem:[%s3660_s8 + $0x198] sm:$0xf] %vm2578_vm1, %v3137_v46  ;;  %v1913_v26 = vmul.f32 0.2, %v1657_v27  ;;  %vm1719_vm5 = vcmp.gt.f32.partialorder %v1591_v48, 0.0  ;;  %v1655_v60 = vadd.f32 %v4061_v3, %v1520_v57  ;;  %v1525_v30 = vmul.f32 %v4068_v17, %v4051_v8 }
 0x152   : > { %v1847_v0 = vmul.f32 0.2, %v1591_v48  ;;  %2615 = vst.msk [vmem:[%s3660_s8 + $0x90] sm:$0xf] %vm2578_vm1, %v3071_v56  ;;  %2679 = vst.msk [vmem:[%s3660_s8 + $0x190] sm:$0xf] %vm2578_vm1, %v3135_v2  ;;  %v1977_v41 = vsel %vm1721_vm3, %v1593_v53, %v1849_v59  ;;  %v1459_v6 = vmul.f32 %v4068_v17, %v4072_v18  ;;  %v1596_v42 = vadd.f32 %v4061_v3, %v1461_v23  ;;  %v4209_v43 = vpop.f32.mrf.mxu0  ;;  %v4228_v59 = vpop.f32.mrf.mxu1 }
 0x153   : > { %v3074_v15 = vpack.c.bf16 %v1977_v41, %v1977_v41  ;;  %v2041_v44 = vsel %vm1785_vm4, %v1657_v27, %v1913_v26  ;;  %vm1783_vm6 = vcmp.gt.f32.partialorder %v1655_v60, 0.0  ;;  %v1911_v38 = vmul.f32 0.2, %v1655_v60 }
 0x154   : > { %v1975_v51 = vsel %vm1719_vm5, %v1591_v48, %v1847_v0  ;;  %v3138_v1 = vpack.c.bf16 %v2041_v44, %v2041_v44  ;;  %v1660_v29 = vadd.f32 %v4061_v3, %v1525_v30  ;;  %v1594_v8 = vadd.f32 %v4061_v3, %v1459_v6  ;;  %v4226_v33 = vpop.f32.mrf.mxu0 }
 0x155   : > { %v3072_v32 = vpack.c.bf16 %v1975_v51, %v1975_v51  ;;  %2618 = vst.msk [vmem:[%s3660_s8 + $0x9c] sm:$0xf] %vm2578_vm1, %v3074_v15  ;;  %v1523_v18 = vmul.f32 %v4068_v17, %v4074_v14  ;;  %v1462_v5 = vmul.f32 %v4068_v17, %v4089_v13  ;;  %v2039_v40 = vsel %vm1783_vm6, %v1655_v60, %v1911_v38 }
 0x156   : > { %2682 = vst.msk [vmem:[%s3660_s8 + $0x19c] sm:$0xf] %vm2578_vm1, %v3138_v1  ;;  %vm1724_vm7 = vcmp.gt.f32.partialorder %v1596_v42, 0.0  ;;  %v1852_v11 = vmul.f32 0.2, %v1596_v42  ;;  %v1526_v61 = vmul.f32 %v4068_v17, %v4091_v37  ;;  %v3136_v47 = vpack.c.bf16 %v2039_v40, %v2039_v40  ;;  %v4245_v15 = vpop.f32.mrf.mxu0 }
 0x157   : > { %2616 = vst.msk [vmem:[%s3660_s8 + $0x94] sm:$0xf] %vm2578_vm1, %v3072_v32  ;;  %vm1788_vm8 = vcmp.gt.f32.partialorder %v1660_v29, 0.0  ;;  %v1916_v14 = vmul.f32 0.2, %v1660_v29  ;;  %vm1722_vm9 = vcmp.gt.f32.partialorder %v1594_v8, 0.0  ;;  %v1658_v62 = vadd.f32 %v4061_v3, %v1523_v18 }
 0x158   : > { %v1980_v13 = vsel %vm1724_vm7, %v1596_v42, %v1852_v11  ;;  %v1850_v4 = vmul.f32 0.2, %v1594_v8  ;;  %v1597_v21 = vadd.f32 %v4061_v3, %v1462_v5  ;;  %2680 = vst.msk [vmem:[%s3660_s8 + $0x194] sm:$0xf] %vm2578_vm1, %v3136_v47  ;;  %v1661_v37 = vadd.f32 %v4061_v3, %v1526_v61  ;;  %v4256_v11 = vpop.f32.mrf.mxu0 }
 0x159   : > { %v3077_v31 = vpack.c.bf16 %v1980_v13, %v1980_v13  ;;  %v2044_v12 = vsel %vm1788_vm8, %v1660_v29, %v1916_v14  ;;  %v1460_v24 = vmul.f32 %v4068_v17, %v4108_v58  ;;  %vm1786_vm10 = vcmp.gt.f32.partialorder %v1658_v62, 0.0 }
 0x15a   : > { %v3141_v25 = vpack.c.bf16 %v2044_v12, %v2044_v12  ;;  %v1978_v35 = vsel %vm1722_vm9, %v1594_v8, %v1850_v4  ;;  %v1914_v49 = vmul.f32 0.2, %v1658_v62  ;;  %vm1725_vm11 = vcmp.gt.f32.partialorder %v1597_v21, 0.0 }
 0x15b   : > { %2621 = vst.msk [vmem:[%s3660_s8 + $0xa8] sm:$0xf] %vm2578_vm1, %v3077_v31  ;;  %v3075_v10 = vpack.c.bf16 %v1978_v35, %v1978_v35  ;;  %v1853_v55 = vmul.f32 0.2, %v1597_v21  ;;  %vm1789_vm12 = vcmp.gt.f32.partialorder %v1661_v37, 0.0  ;;  %v1595_v53 = vadd.f32 %v4061_v3, %v1460_v24 }
 0x15c   : > { %2685 = vst.msk [vmem:[%s3660_s8 + $0x1a8] sm:$0xf] %vm2578_vm1, %v3141_v25  ;;  %v2042_v20 = vsel %vm1786_vm10, %v1658_v62, %v1914_v49  ;;  %v1917_v58 = vmul.f32 0.2, %v1661_v37  ;;  %v1524_v52 = vmul.f32 %v4068_v17, %v4110_v9  ;;  %v1465_v57 = vmul.f32 %v4068_v17, %v4119_v16 }
 0x15d   : > { %2619 = vst.msk [vmem:[%s3660_s8 + $0xa0] sm:$0xf] %vm2578_vm1, %v3075_v10  ;;  %v3139_v27 = vpack.c.bf16 %v2042_v20, %v2042_v20  ;;  %v1981_v48 = vsel %vm1725_vm11, %v1597_v21, %v1853_v55  ;;  %v1529_v46 = vmul.f32 %v4068_v17, %v4123_v34  ;;  %vm1723_vm13 = vcmp.gt.f32.partialorder %v1595_v53, 0.0  ;;  %v1109_v10 = vpop.f32.mrf.mxu0 }
 0x15e   : > { %v3078_v50 = vpack.c.bf16 %v1981_v48, %v1981_v48  ;;  %v2045_v56 = vsel %vm1789_vm12, %v1661_v37, %v1917_v58  ;;  %v1851_v2 = vmul.f32 0.2, %v1595_v53  ;;  %v1659_v26 = vadd.f32 %v4061_v3, %v1524_v52 }
 0x15f   : > { %2683 = vst.msk [vmem:[%s3660_s8 + $0x1a0] sm:$0xf] %vm2578_vm1, %v3139_v27  ;;  %v3142_v9 = vpack.c.bf16 %v2045_v56, %v2045_v56  ;;  %v1600_v0 = vadd.f32 %v4061_v3, %v1465_v57  ;;  %v1664_v16 = vadd.f32 %v4061_v3, %v1529_v46  ;;  %v1463_v60 = vmul.f32 %v4068_v17, %v4136_v39  ;;  %v4248_v39 = vpop.f32.mrf.mxu1 }
 0x160   : > { %2622 = vst.msk [vmem:[%s3660_s8 + $0xac] sm:$0xf] %vm2578_vm1, %v3078_v50  ;;  %v1979_v34 = vsel %vm1723_vm13, %v1595_v53, %v1851_v2  ;;  %v1527_v41 = vmul.f32 %v4068_v17, %v4143_v63  ;;  %v1466_v23 = vmul.f32 %v4068_v17, %v4156_v54  ;;  %vm1787_vm14 = vcmp.gt.f32.partialorder %v1659_v26, 0.0  ;;  %v4292_v50 = vpop.f32.mrf.mxu0 }
 0x161   : > { %2686 = vst.msk [vmem:[%s3660_s8 + $0x1ac] sm:$0xf] %vm2578_vm1, %v3142_v9  ;;  %v3076_v30 = vpack.c.bf16 %v1979_v34, %v1979_v34  ;;  %v1915_v6 = vmul.f32 0.2, %v1659_v26  ;;  %vm1728_vm15 = vcmp.gt.f32.partialorder %v1600_v0, 0.0  ;;  %vm1792_vm0 = vcmp.gt.f32.partialorder %v1664_v16, 0.0 }
 0x162   : > { %v1856_v44 = vmul.f32 0.2, %v1600_v0  ;;  %v1920_v51 = vmul.f32 0.2, %v1664_v16  ;;  %v1598_v1 = vadd.f32 %v4061_v3, %v1463_v60  ;;  %v1662_v54 = vadd.f32 %v4061_v3, %v1527_v41 }
 0x163   : > { %2620 = vst.msk [vmem:[%s3660_s8 + $0xa4] sm:$0xf] %vm2578_vm1, %v3076_v30  ;;  %v2043_v63 = vsel %vm1787_vm14, %v1659_v26, %v1915_v6  ;;  %v1601_v32 = vadd.f32 %v4061_v3, %v1466_v23  ;;  %v1530_v38 = vmul.f32 %v4068_v17, %v4164_v28  ;;  %v4261_v28 = vpop.f32.mrf.mxu1  ;;  %v1464_v4 = vmul.f32 %v4068_v17, %v4169_v45 }
 0x164   : > { %v3140_v42 = vpack.c.bf16 %v2043_v63, %v2043_v63  ;;  %v1984_v29 = vsel %vm1728_vm15, %v1600_v0, %v1856_v44  ;;  %v2048_v8 = vsel %vm1792_vm0, %v1664_v16, %v1920_v51  ;;  %vm1726_vm2 = vcmp.gt.f32.partialorder %v1598_v1, 0.0  ;;  %v1112_v44 = vpop.f32.mrf.mxu0 }
 0x165   : > { %v3081_v18 = vpack.c.bf16 %v1984_v29, %v1984_v29  ;;  %v3145_v5 = vpack.c.bf16 %v2048_v8, %v2048_v8  ;;  %v1854_v40 = vmul.f32 0.2, %v1598_v1  ;;  %vm1790_vm3 = vcmp.gt.f32.partialorder %v1662_v54, 0.0  ;;  %v4282_v20 = vpop.f32.mrf.mxu1 }
 0x166   : > { %2684 = vst.msk [vmem:[%s3660_s8 + $0x1a4] sm:$0xf] %vm2578_vm1, %v3140_v42  ;;  %v1918_v61 = vmul.f32 0.2, %v1662_v54  ;;  %vm1729_vm4 = vcmp.gt.f32.partialorder %v1601_v32, 0.0  ;;  %v1665_v14 = vadd.f32 %v4061_v3, %v1530_v38  ;;  %v1528_v62 = vmul.f32 %v4068_v17, %v4181_v7 }
 0x167   : > { %v1857_v47 = vmul.f32 0.2, %v1601_v32  ;;  %2625 = vst.msk [vmem:[%s3660_s8 + $0xb8] sm:$0xf] %vm2578_vm1, %v3081_v18  ;;  %2689 = vst.msk [vmem:[%s3660_s8 + $0x1b8] sm:$0xf] %vm2578_vm1, %v3145_v5  ;;  %v1982_v13 = vsel %vm1726_vm2, %v1598_v1, %v1854_v40  ;;  %v1469_v21 = vmul.f32 %v4068_v17, %v4192_v19  ;;  %v1599_v49 = vadd.f32 %v4061_v3, %v1464_v4  ;;  %v4299_v26 = vpop.f32.mrf.mxu1 }
 0x168   : > { %v3079_v31 = vpack.c.bf16 %v1982_v13, %v1982_v13  ;;  %v2046_v12 = vsel %vm1790_vm3, %v1662_v54, %v1918_v61  ;;  %vm1793_vm5 = vcmp.gt.f32.partialorder %v1665_v14, 0.0  ;;  %v1921_v35 = vmul.f32 0.2, %v1665_v14 }
 0x169   : > { %v1985_v37 = vsel %vm1729_vm4, %v1601_v32, %v1857_v47  ;;  %v3143_v24 = vpack.c.bf16 %v2046_v12, %v2046_v12  ;;  %v1663_v45 = vadd.f32 %v4061_v3, %v1528_v62  ;;  %v1604_v7 = vadd.f32 %v4061_v3, %v1469_v21  ;;  %v4314_v32 = vpop.f32.mrf.mxu1  ;;  %v3294_v47 = vpop.f32.mrf.mxu0 }
 0x16a   : > { %v3082_v25 = vpack.c.bf16 %v1985_v37, %v1985_v37  ;;  %2623 = vst.msk [vmem:[%s3660_s8 + $0xb0] sm:$0xf] %vm2578_vm1, %v3079_v31  ;;  %v1533_v19 = vmul.f32 %v4068_v17, %v4200_v22  ;;  %v1467_v55 = vmul.f32 %v4068_v17, %v4209_v43  ;;  %v2049_v58 = vsel %vm1793_vm5, %v1665_v14, %v1921_v35 }
 0x16b   : > { %2687 = vst.msk [vmem:[%s3660_s8 + $0x1b0] sm:$0xf] %vm2578_vm1, %v3143_v24  ;;  %vm1727_vm6 = vcmp.gt.f32.partialorder %v1599_v49, 0.0  ;;  %v1855_v53 = vmul.f32 0.2, %v1599_v49  ;;  %v1531_v52 = vmul.f32 %v4068_v17, %v4211_v36  ;;  %v3146_v27 = vpack.c.bf16 %v2049_v58, %v2049_v58  ;;  %v3358_v4 = vpop.f32.mrf.mxu1 }
 0x16c   : > { %2626 = vst.msk [vmem:[%s3660_s8 + $0xbc] sm:$0xf] %vm2578_vm1, %v3082_v25  ;;  %vm1791_vm7 = vcmp.gt.f32.partialorder %v1663_v45, 0.0  ;;  %v1919_v48 = vmul.f32 0.2, %v1663_v45  ;;  %vm1732_vm8 = vcmp.gt.f32.partialorder %v1604_v7, 0.0  ;;  %v1668_v57 = vadd.f32 %v4061_v3, %v1533_v19 }
 0x16d   : > { %v1983_v22 = vsel %vm1727_vm6, %v1599_v49, %v1855_v53  ;;  %v1860_v43 = vmul.f32 0.2, %v1604_v7  ;;  %v1602_v46 = vadd.f32 %v4061_v3, %v1467_v55  ;;  %2690 = vst.msk [vmem:[%s3660_s8 + $0x1bc] sm:$0xf] %vm2578_vm1, %v3146_v27  ;;  %v1666_v36 = vadd.f32 %v4061_v3, %v1531_v52  ;;  %v1125_v49 = vpop.f32.mrf.mxu0  ;;  %v1381_v19 = vpop.f32.mrf.mxu1 }
 0x16e   : > { %v3080_v56 = vpack.c.bf16 %v1983_v22, %v1983_v22  ;;  %v2047_v2 = vsel %vm1791_vm7, %v1663_v45, %v1919_v48  ;;  %v1470_v9 = vmul.f32 %v4068_v17, %v4226_v33  ;;  %vm1796_vm9 = vcmp.gt.f32.partialorder %v1668_v57, 0.0 }
 0x16f   : > { %v3144_v0 = vpack.c.bf16 %v2047_v2, %v2047_v2  ;;  %v1988_v16 = vsel %vm1732_vm8, %v1604_v7, %v1860_v43  ;;  %v1924_v34 = vmul.f32 0.2, %v1668_v57  ;;  %vm1730_vm10 = vcmp.gt.f32.partialorder %v1602_v46, 0.0 }
 0x170   : > { %2624 = vst.msk [vmem:[%s3660_s8 + $0xb4] sm:$0xf] %vm2578_vm1, %v3080_v56  ;;  %v3085_v60 = vpack.c.bf16 %v1988_v16, %v1988_v16  ;;  %v1858_v41 = vmul.f32 0.2, %v1602_v46  ;;  %vm1794_vm11 = vcmp.gt.f32.partialorder %v1666_v36, 0.0  ;;  %v1605_v33 = vadd.f32 %v4061_v3, %v1470_v9 }
 0x171   : > { %2688 = vst.msk [vmem:[%s3660_s8 + $0x1b4] sm:$0xf] %vm2578_vm1, %v3144_v0  ;;  %v2052_v23 = vsel %vm1796_vm9, %v1668_v57, %v1924_v34  ;;  %v1922_v30 = vmul.f32 0.2, %v1666_v36  ;;  %v1534_v6 = vmul.f32 %v4068_v17, %v4228_v59  ;;  %v1468_v63 = vmul.f32 %v4068_v17, %v4245_v15  ;;  %v3359_v0 = vpop.f32.mrf.mxu1 }
 0x172   : > { %2629 = vst.msk [vmem:[%s3660_s8 + $0xc8] sm:$0xf] %vm2578_vm1, %v3085_v60  ;;  %v3149_v51 = vpack.c.bf16 %v2052_v23, %v2052_v23  ;;  %v1986_v1 = vsel %vm1730_vm10, %v1602_v46, %v1858_v41  ;;  %v1532_v54 = vmul.f32 %v4068_v17, %v4248_v39  ;;  %vm1733_vm12 = vcmp.gt.f32.partialorder %v1605_v33, 0.0  ;;  %v3295_v46 = vpop.f32.mrf.mxu0 }
 0x173   : > { %v3083_v38 = vpack.c.bf16 %v1986_v1, %v1986_v1  ;;  %v2050_v42 = vsel %vm1794_vm11, %v1666_v36, %v1922_v30  ;;  %v1861_v29 = vmul.f32 0.2, %v1605_v33  ;;  %v1669_v8 = vadd.f32 %v4061_v3, %v1534_v6 }
 0x174   : > { %2693 = vst.msk [vmem:[%s3660_s8 + $0x1c8] sm:$0xf] %vm2578_vm1, %v3149_v51  ;;  %v3147_v59 = vpack.c.bf16 %v2050_v42, %v2050_v42  ;;  %v1603_v18 = vadd.f32 %v4061_v3, %v1468_v63  ;;  %v1667_v5 = vadd.f32 %v4061_v3, %v1532_v54  ;;  %v1473_v39 = vmul.f32 %v4068_v17, %v4256_v11  ;;  %v1128_v6 = vpop.f32.mrf.mxu0  ;;  %v1384_v54 = vpop.f32.mrf.mxu1 }
 0x175   : > { %2627 = vst.msk [vmem:[%s3660_s8 + $0xc0] sm:$0xf] %vm2578_vm1, %v3083_v38  ;;  %v1989_v15 = vsel %vm1733_vm12, %v1605_v33, %v1861_v29  ;;  %v1537_v40 = vmul.f32 %v4068_v17, %v4261_v28  ;;  %v1471_v61 = vmul.f32 %v4068_v17, %v1109_v10  ;;  %vm1797_vm13 = vcmp.gt.f32.partialorder %v1669_v8, 0.0 }
 0x176   : > { %2691 = vst.msk [vmem:[%s3660_s8 + $0x1c0] sm:$0xf] %vm2578_vm1, %v3147_v59  ;;  %v3086_v14 = vpack.c.bf16 %v1989_v15, %v1989_v15  ;;  %v1925_v13 = vmul.f32 0.2, %v1669_v8  ;;  %vm1731_vm14 = vcmp.gt.f32.partialorder %v1603_v18, 0.0  ;;  %vm1795_vm15 = vcmp.gt.f32.partialorder %v1667_v5, 0.0 }
 0x177   : > { %v1859_v62 = vmul.f32 0.2, %v1603_v18  ;;  %v1923_v21 = vmul.f32 0.2, %v1667_v5  ;;  %v1608_v31 = vadd.f32 %v4061_v3, %v1473_v39  ;;  %v1672_v28 = vadd.f32 %v4061_v3, %v1537_v40  ;;  %v3298_v39 = vpop.f32.mrf.mxu0 }
 0x178   : > { %2630 = vst.msk [vmem:[%s3660_s8 + $0xcc] sm:$0xf] %vm2578_vm1, %v3086_v14  ;;  %v2053_v11 = vsel %vm1797_vm13, %v1669_v8, %v1925_v13  ;;  %v1606_v12 = vadd.f32 %v4061_v3, %v1471_v61  ;;  %v1535_v37 = vmul.f32 %v4068_v17, %v4282_v20  ;;  %v1474_v52 = vmul.f32 %v4068_v17, %v4292_v50  ;;  %v3362_v13 = vpop.f32.mrf.mxu1 }
 0x179   : > { %v3150_v24 = vpack.c.bf16 %v2053_v11, %v2053_v11  ;;  %v1987_v25 = vsel %vm1731_vm14, %v1603_v18, %v1859_v62  ;;  %v2051_v35 = vsel %vm1795_vm15, %v1667_v5, %v1923_v21  ;;  %vm1736_vm0 = vcmp.gt.f32.partialorder %v1608_v31, 0.0 }
 0x17a   : > { %v3084_v10 = vpack.c.bf16 %v1987_v25, %v1987_v25  ;;  %v3148_v45 = vpack.c.bf16 %v2051_v35, %v2051_v35  ;;  %v1864_v7 = vmul.f32 0.2, %v1608_v31  ;;  %vm1800_vm2 = vcmp.gt.f32.partialorder %v1672_v28, 0.0 }
 0x17b   : > { %2694 = vst.msk [vmem:[%s3660_s8 + $0x1cc] sm:$0xf] %vm2578_vm1, %v3150_v24  ;;  %v1928_v55 = vmul.f32 0.2, %v1672_v28  ;;  %vm1734_vm3 = vcmp.gt.f32.partialorder %v1606_v12, 0.0  ;;  %v1670_v53 = vadd.f32 %v4061_v3, %v1535_v37  ;;  %v1538_v27 = vmul.f32 %v4068_v17, %v4299_v26 }
 0x17c   : > { %v1862_v58 = vmul.f32 0.2, %v1606_v12  ;;  %2628 = vst.msk [vmem:[%s3660_s8 + $0xc4] sm:$0xf] %vm2578_vm1, %v3084_v10  ;;  %2692 = vst.msk [vmem:[%s3660_s8 + $0x1c4] sm:$0xf] %vm2578_vm1, %v3148_v45  ;;  %v1992_v20 = vsel %vm1736_vm0, %v1608_v31, %v1864_v7  ;;  %v1472_v48 = vmul.f32 %v4068_v17, %v1112_v44  ;;  %v1609_v9 = vadd.f32 %v4061_v3, %v1474_v52 }
 0x17d   : > { %v3089_v22 = vpack.c.bf16 %v1992_v20, %v1992_v20  ;;  %v2056_v43 = vsel %vm1800_vm2, %v1672_v28, %v1928_v55  ;;  %vm1798_vm4 = vcmp.gt.f32.partialorder %v1670_v53, 0.0  ;;  %v1926_v36 = vmul.f32 0.2, %v1670_v53  ;;  %v1397_v55 = vpop.f32.mrf.mxu1 }
 0x17e   : > { %v1990_v57 = vsel %vm1734_vm3, %v1606_v12, %v1862_v58  ;;  %v3153_v56 = vpack.c.bf16 %v2056_v43, %v2056_v43  ;;  %v1673_v50 = vadd.f32 %v4061_v3, %v1538_v27  ;;  %v1607_v26 = vadd.f32 %v4061_v3, %v1472_v48 }
 0x17f   : > { %v3087_v2 = vpack.c.bf16 %v1990_v57, %v1990_v57  ;;  %2633 = vst.msk [vmem:[%s3660_s8 + $0xd8] sm:$0xf] %vm2578_vm1, %v3089_v22  ;;  %v1536_v16 = vmul.f32 %v4068_v17, %v4314_v32  ;;  %v1477_v34 = vmul.f32 %v4068_v17, %v3294_v47  ;;  %v2054_v60 = vsel %vm1798_vm4, %v1670_v53, %v1926_v36 }
 0x180   : > { %2697 = vst.msk [vmem:[%s3660_s8 + $0x1d8] sm:$0xf] %vm2578_vm1, %v3153_v56  ;;  %vm1737_vm5 = vcmp.gt.f32.partialorder %v1609_v9, 0.0  ;;  %v1865_v41 = vmul.f32 0.2, %v1609_v9  ;;  %v1541_v23 = vmul.f32 %v4068_v17, %v3358_v4  ;;  %v3151_v30 = vpack.c.bf16 %v2054_v60, %v2054_v60 }
 0x181   : > { %2631 = vst.msk [vmem:[%s3660_s8 + $0xd0] sm:$0xf] %vm2578_vm1, %v3087_v2  ;;  %vm1801_vm6 = vcmp.gt.f32.partialorder %v1673_v50, 0.0  ;;  %v1929_v33 = vmul.f32 0.2, %v1673_v50  ;;  %vm1735_vm7 = vcmp.gt.f32.partialorder %v1607_v26, 0.0  ;;  %v1671_v1 = vadd.f32 %v4061_v3, %v1536_v16 }
 0x182   : > { %v1993_v44 = vsel %vm1737_vm5, %v1609_v9, %v1865_v41  ;;  %v1863_v51 = vmul.f32 0.2, %v1607_v26  ;;  %v1612_v63 = vadd.f32 %v4061_v3, %v1477_v34  ;;  %2695 = vst.msk [vmem:[%s3660_s8 + $0x1d0] sm:$0xf] %vm2578_vm1, %v3151_v30  ;;  %v1676_v42 = vadd.f32 %v4061_v3, %v1541_v23  ;;  %v3363_v9 = vpop.f32.mrf.mxu1 }
 0x183   : > { %v3090_v32 = vpack.c.bf16 %v1993_v44, %v1993_v44  ;;  %v2057_v38 = vsel %vm1801_vm6, %v1673_v50, %v1929_v33  ;;  %v1475_v29 = vmul.f32 %v4068_v17, %v1125_v49  ;;  %vm1799_vm8 = vcmp.gt.f32.partialorder %v1671_v1, 0.0  ;;  %v1141_v49 = vpop.f32.mrf.mxu0 }
 0x184   : > { %v3154_v59 = vpack.c.bf16 %v2057_v38, %v2057_v38  ;;  %v1991_v8 = vsel %vm1735_vm7, %v1607_v26, %v1863_v51  ;;  %v1927_v18 = vmul.f32 0.2, %v1671_v1  ;;  %vm1740_vm9 = vcmp.gt.f32.partialorder %v1612_v63, 0.0 }
 0x185   : > { %2634 = vst.msk [vmem:[%s3660_s8 + $0xdc] sm:$0xf] %vm2578_vm1, %v3090_v32  ;;  %v3088_v5 = vpack.c.bf16 %v1991_v8, %v1991_v8  ;;  %v1868_v15 = vmul.f32 0.2, %v1612_v63  ;;  %vm1804_vm10 = vcmp.gt.f32.partialorder %v1676_v42, 0.0  ;;  %v1610_v47 = vadd.f32 %v4061_v3, %v1475_v29 }
 0x186   : > { %2698 = vst.msk [vmem:[%s3660_s8 + $0x1dc] sm:$0xf] %vm2578_vm1, %v3154_v59  ;;  %v2055_v40 = vsel %vm1799_vm8, %v1671_v1, %v1927_v18  ;;  %v1932_v61 = vmul.f32 0.2, %v1676_v42  ;;  %v1539_v14 = vmul.f32 %v4068_v17, %v1381_v19  ;;  %v1478_v21 = vmul.f32 %v4068_v17, %v3295_v46  ;;  %v3299_v46 = vpop.f32.mrf.mxu0 }
 0x187   : > { %2632 = vst.msk [vmem:[%s3660_s8 + $0xd4] sm:$0xf] %vm2578_vm1, %v3088_v5  ;;  %v3152_v4 = vpack.c.bf16 %v2055_v40, %v2055_v40  ;;  %v1996_v62 = vsel %vm1740_vm9, %v1612_v63, %v1868_v15  ;;  %v1542_v31 = vmul.f32 %v4068_v17, %v3359_v0  ;;  %vm1738_vm11 = vcmp.gt.f32.partialorder %v1610_v47, 0.0  ;;  %v1400_v63 = vpop.f32.mrf.mxu1 }
 0x188   : > { %v3093_v11 = vpack.c.bf16 %v1996_v62, %v1996_v62  ;;  %v2060_v28 = vsel %vm1804_vm10, %v1676_v42, %v1932_v61  ;;  %v1866_v12 = vmul.f32 0.2, %v1610_v47  ;;  %v1674_v24 = vadd.f32 %v4061_v3, %v1539_v14 }
 0x189   : > { %2696 = vst.msk [vmem:[%s3660_s8 + $0x1d4] sm:$0xf] %vm2578_vm1, %v3152_v4  ;;  %v3157_v37 = vpack.c.bf16 %v2060_v28, %v2060_v28  ;;  %v1613_v25 = vadd.f32 %v4061_v3, %v1478_v21  ;;  %v1677_v35 = vadd.f32 %v4061_v3, %v1542_v31  ;;  %v1476_v45 = vmul.f32 %v4068_v17, %v1128_v6  ;;  %v1144_v6 = vpop.f32.mrf.mxu0 }
 0x18a   : > { %2637 = vst.msk [vmem:[%s3660_s8 + $0xe8] sm:$0xf] %vm2578_vm1, %v3093_v11  ;;  %v1994_v10 = vsel %vm1738_vm11, %v1610_v47, %v1866_v12  ;;  %v1540_v7 = vmul.f32 %v4068_v17, %v1384_v54  ;;  %v1481_v19 = vmul.f32 %v4068_v17, %v3298_v39  ;;  %vm1802_vm12 = vcmp.gt.f32.partialorder %v1674_v24, 0.0 }
 0x18b   : > { %2701 = vst.msk [vmem:[%s3660_s8 + $0x1e8] sm:$0xf] %vm2578_vm1, %v3157_v37  ;;  %v3091_v58 = vpack.c.bf16 %v1994_v10, %v1994_v10  ;;  %v1930_v53 = vmul.f32 0.2, %v1674_v24  ;;  %vm1741_vm13 = vcmp.gt.f32.partialorder %v1613_v25, 0.0  ;;  %vm1805_vm14 = vcmp.gt.f32.partialorder %v1677_v35, 0.0 }
 0x18c   : > { %v1869_v20 = vmul.f32 0.2, %v1613_v25  ;;  %v1933_v52 = vmul.f32 0.2, %v1677_v35  ;;  %v1611_v27 = vadd.f32 %v4061_v3, %v1476_v45  ;;  %v1675_v22 = vadd.f32 %v4061_v3, %v1540_v7 }
 0x18d   : > { %2635 = vst.msk [vmem:[%s3660_s8 + $0xe0] sm:$0xf] %vm2578_vm1, %v3091_v58  ;;  %v2058_v48 = vsel %vm1802_vm12, %v1674_v24, %v1930_v53  ;;  %v1616_v43 = vadd.f32 %v4061_v3, %v1481_v19  ;;  %v1545_v57 = vmul.f32 %v4068_v17, %v3362_v13  ;;  %v1479_v23 = vmul.f32 %v4068_v17, %v1141_v49 }
 0x18e   : > { %v3155_v56 = vpack.c.bf16 %v2058_v48, %v2058_v48  ;;  %v1997_v2 = vsel %vm1741_vm13, %v1613_v25, %v1869_v20  ;;  %v2061_v36 = vsel %vm1805_vm14, %v1677_v35, %v1933_v52  ;;  %vm1739_vm15 = vcmp.gt.f32.partialorder %v1611_v27, 0.0 }
 0x18f   : > { %v3094_v0 = vpack.c.bf16 %v1997_v2, %v1997_v2  ;;  %v3158_v50 = vpack.c.bf16 %v2061_v36, %v2061_v36  ;;  %v1867_v26 = vmul.f32 0.2, %v1611_v27  ;;  %vm1803_vm0 = vcmp.gt.f32.partialorder %v1675_v22, 0.0 }
 0x190   : > { %2699 = vst.msk [vmem:[%s3660_s8 + $0x1e0] sm:$0xf] %vm2578_vm1, %v3155_v56  ;;  %v1931_v16 = vmul.f32 0.2, %v1675_v22  ;;  %vm1744_vm2 = vcmp.gt.f32.partialorder %v1616_v43, 0.0  ;;  %v1680_v60 = vadd.f32 %v4061_v3, %v1545_v57  ;;  %v1543_v30 = vmul.f32 %v4068_v17, %v1397_v55 }
 0x191   : > { %v1872_v34 = vmul.f32 0.2, %v1616_v43  ;;  %2638 = vst.msk [vmem:[%s3660_s8 + $0xec] sm:$0xf] %vm2578_vm1, %v3094_v0  ;;  %2702 = vst.msk [vmem:[%s3660_s8 + $0x1ec] sm:$0xf] %vm2578_vm1, %v3158_v50  ;;  %v1995_v41 = vsel %vm1739_vm15, %v1611_v27, %v1867_v26  ;;  %v1482_v33 = vmul.f32 %v4068_v17, %v3299_v46  ;;  %v1614_v42 = vadd.f32 %v4061_v3, %v1479_v23 }
 0x192   : > { %v3092_v44 = vpack.c.bf16 %v1995_v41, %v1995_v41  ;;  %v2059_v51 = vsel %vm1803_vm0, %v1675_v22, %v1931_v16  ;;  %vm1808_vm3 = vcmp.gt.f32.partialorder %v1680_v60, 0.0  ;;  %v1936_v38 = vmul.f32 0.2, %v1680_v60 }
 0x193   : > { %v2000_v1 = vsel %vm1744_vm2, %v1616_v43, %v1872_v34  ;;  %v3156_v54 = vpack.c.bf16 %v2059_v51, %v2059_v51  ;;  %v1678_v29 = vadd.f32 %v4061_v3, %v1543_v30  ;;  %v1617_v59 = vadd.f32 %v4061_v3, %v1482_v33 }
 0x194   : > { %v3097_v32 = vpack.c.bf16 %v2000_v1, %v2000_v1  ;;  %2636 = vst.msk [vmem:[%s3660_s8 + $0xe4] sm:$0xf] %vm2578_vm1, %v3092_v44  ;;  %v1546_v8 = vmul.f32 %v4068_v17, %v3363_v9  ;;  %v1480_v18 = vmul.f32 %v4068_v17, %v1144_v6  ;;  %v2064_v5 = vsel %vm1808_vm3, %v1680_v60, %v1936_v38 }
 0x195   : > { %2700 = vst.msk [vmem:[%s3660_s8 + $0x1e4] sm:$0xf] %vm2578_vm1, %v3156_v54  ;;  %vm1742_vm4 = vcmp.gt.f32.partialorder %v1614_v42, 0.0  ;;  %v1870_v15 = vmul.f32 0.2, %v1614_v42  ;;  %v1544_v39 = vmul.f32 %v4068_v17, %v1400_v63  ;;  %v3161_v40 = vpack.c.bf16 %v2064_v5, %v2064_v5 }
 0x196   : > { %2641 = vst.msk [vmem:[%s3660_s8 + $0xf8] sm:$0xf] %vm2578_vm1, %v3097_v32  ;;  %vm1806_vm5 = vcmp.gt.f32.partialorder %v1678_v29, 0.0  ;;  %v1934_v61 = vmul.f32 0.2, %v1678_v29  ;;  %vm1745_vm6 = vcmp.gt.f32.partialorder %v1617_v59, 0.0  ;;  %v1681_v13 = vadd.f32 %v4061_v3, %v1546_v8 }
 0x197   : > { %v1998_v47 = vsel %vm1742_vm4, %v1614_v42, %v1870_v15  ;;  %v1873_v14 = vmul.f32 0.2, %v1617_v59  ;;  %v1615_v4 = vadd.f32 %v4061_v3, %v1480_v18  ;;  %2705 = vst.msk [vmem:[%s3660_s8 + $0x1f8] sm:$0xf] %vm2578_vm1, %v3161_v40  ;;  %v1679_v31 = vadd.f32 %v4061_v3, %v1544_v39 }
 0x198   : > { %v3095_v62 = vpack.c.bf16 %v1998_v47, %v1998_v47  ;;  %v2062_v21 = vsel %vm1806_vm5, %v1678_v29, %v1934_v61  ;;  %vm1809_vm7 = vcmp.gt.f32.partialorder %v1681_v13, 0.0  ;;  %v1937_v28 = vmul.f32 0.2, %v1681_v13 }
 0x199   : > { %v3159_v17 = vpack.c.bf16 %v2062_v21, %v2062_v21  ;;  %v2001_v11 = vsel %vm1745_vm6, %v1617_v59, %v1873_v14  ;;  %vm1743_vm8 = vcmp.gt.f32.partialorder %v1615_v4, 0.0  ;;  %v1871_v37 = vmul.f32 0.2, %v1615_v4 }
 0x19a   : > { %2639 = vst.msk [vmem:[%s3660_s8 + $0xf0] sm:$0xf] %vm2578_vm1, %v3095_v62  ;;  %v3098_v12 = vpack.c.bf16 %v2001_v11, %v2001_v11  ;;  %vm1807_vm9 = vcmp.gt.f32.partialorder %v1679_v31, 0.0  ;;  %v2065_v24 = vsel %vm1809_vm7, %v1681_v13, %v1937_v28  ;;  %v1935_v25 = vmul.f32 0.2, %v1679_v31 }
 0x19b   : > { %2703 = vst.msk [vmem:[%s3660_s8 + $0x1f0] sm:$0xf] %vm2578_vm1, %v3159_v17  ;;  %v3162_v3 = vpack.c.bf16 %v2065_v24, %v2065_v24  ;;  %v1999_v35 = vsel %vm1743_vm8, %v1615_v4, %v1871_v37 }
 0x19c   : > { %2642 = vst.msk [vmem:[%s3660_s8 + $0xfc] sm:$0xf] %vm2578_vm1, %v3098_v12  ;;  %v3096_v49 = vpack.c.bf16 %v1999_v35, %v1999_v35  ;;  %v2063_v10 = vsel %vm1807_vm9, %v1679_v31, %v1935_v25 }
 0x19d   : > { %2706 = vst.msk [vmem:[%s3660_s8 + $0x1fc] sm:$0xf] %vm2578_vm1, %v3162_v3  ;;  %v3160_v45 = vpack.c.bf16 %v2063_v10, %v2063_v10 }
 0x19e   : > { %2640 = vst.msk [vmem:[%s3660_s8 + $0xf4] sm:$0xf] %vm2578_vm1, %v3096_v49 }
 0x19f   : > { %2704 = vst.msk [vmem:[%s3660_s8 + $0x1f4] sm:$0xf] %vm2578_vm1, %v3160_v45 }
 0x1a0 PF: > { %s14_s15 = sadd.s32 1, %s3453_s15  }
 0x1a1   : > { %p11_p4 = scmp.ge.s32.totalorder %s14_s15, 4  }
 0x1a3   :  { %13 = sbr.rel (!%p11_p4) target bundleno = 1 (0x1), region = 66 }

// kernel: discriminator_forward.4
= control target key start
LH: loop header
LB: loop body
LE: loop exit
PB: predicated region body
PF: predicated region fallthrough
CT: control target
= control target key end

     0   :  { %s3438_s15 = smov 0   ;;  %s3971_s0 = inlined_call_operand.vmem [shape: bf16[512,1024], index: 0, kind: input, shape index: {}]   ;;  %s3972_s1 = inlined_call_operand.vmem [shape: bf16[1024,128], index: 1, kind: input, shape index: {}]   ;;  %s3973_s2 = inlined_call_operand.vmem [shape: f32[1,128], index: 2, kind: input, shape index: {}]   ;;  %s3974_s3 = inlined_call_operand.vmem [shape: f32[1,128], index: 3, kind: input, shape index: {}]   ;;  %s3975_s4 = inlined_call_operand.vmem [shape: bf16[512,128], index: 4, kind: output, shape index: {}]  }
   0x1 LB: > { %s2519_s16 = sadd.s32 4294967295, %s3411_s15   ;;  %p2523_p0 = scmp.ge.s32.totalorder %s3411_s15, 1  ;;  %s3411_s15 = sphi %s3438_s15, %s14_s15  }
   0x2   : > { %p164_p1 = scmp.lt.s32.totalorder %s3411_s15, 3 }
   0x4   : > { %p165_p2 = pnand %p2523_p0, %p164_p1 }
   0x5   : > { %s2524_s25 = sshll.u32 (!%p165_p2), %s2519_s16, 5 }
   0x6   : > { %168 = sbr.rel (%p165_p2) target bundleno = 508 (0x1fc), region = 36  ;;  %p192_p3 = scmp.lt.s32.totalorder (!%p165_p2), %s2524_s25, 63 }
   0xb   : > { %v3341_v0 = vld [vmem:[%s3972_s1 + $0x78] sm:$0xff]   ;;  %v3345_v4 = vld [vmem:[%s3972_s1 + $0x70] sm:$0xff]   ;;  %v3349_v8 = vld [vmem:[%s3972_s1 + $0x68] sm:$0xff]   ;;  %s3977_s25 = smov (!%p192_p3, %s2524_s25), 63 }
   0xc   : > { %v3342_v1 = vld [vmem:[%s3972_s1 + $0xf8] sm:$0xff]   ;;  %2885 = vmatprep.subr.bf16.mxu0 %v3341_v0  ;;  %v3346_v5 = vld [vmem:[%s3972_s1 + $0xf0] sm:$0xff]   ;;  %v3350_v9 = vld [vmem:[%s3972_s1 + $0xe8] sm:$0xff]   ;;  %s2757_s23 = sshll.u32 %s3977_s25, 5  ;;  %s2528_s9 = sshll.u32 %s3977_s25, 2 }
   0xd   : > { %v3343_v2 = vld [vmem:[%s3972_s1 + $0x38] sm:$0xff]   ;;  %2997 = vmatprep.subr.bf16.mxu1 %v3342_v1  ;;  %v3347_v6 = vld [vmem:[%s3972_s1 + $0x30] sm:$0xff]   ;;  %v3351_v10 = vld [vmem:[%s3972_s1 + $0x28] sm:$0xff]   ;;  %s3544_s7 = scalar_lea.vmem %s3971_s0, %s2757_s23  ;;  %s3863_s12 = scalar_lea.vmem %s3975_s4, %s2528_s9 }
   0xe   : > { %v3344_v3 = vld [vmem:[%s3972_s1 + $0xb8] sm:$0xff]   ;;  %2886 = vmatpush3.bf16.msra.mxu0 %v3343_v2  ;;  %v3348_v7 = vld [vmem:[%s3972_s1 + $0xb0] sm:$0xff]   ;;  %v3352_v11 = vld [vmem:[%s3972_s1 + $0xa8] sm:$0xff]  }
   0xf   : > { %2998 = vmatpush3.bf16.msra.mxu1 %v3344_v3  ;;  %2887 = vmatprep.subr.bf16.mxu0 %v3345_v4  ;;  %v3353_v12 = vld [vmem:[%s3972_s1 + $0x60] sm:$0xff]   ;;  %v3357_v16 = vld [vmem:[%s3972_s1 + $0x58] sm:$0xff]   ;;  %v3361_v20 = vld [vmem:[%s3972_s1 + $0x50] sm:$0xff]  }
  0x10   : > { %2999 = vmatprep.subr.bf16.mxu1 %v3346_v5  ;;  %v3354_v13 = vld [vmem:[%s3972_s1 + $0xe0] sm:$0xff]   ;;  %v3358_v17 = vld [vmem:[%s3972_s1 + $0xd8] sm:$0xff]   ;;  %v3362_v21 = vld [vmem:[%s3972_s1 + $0xd0] sm:$0xff]  }
  0x11   : > { %v3355_v14 = vld [vmem:[%s3972_s1 + $0x20] sm:$0xff]   ;;  %v3359_v18 = vld [vmem:[%s3972_s1 + $0x18] sm:$0xff]   ;;  %v3363_v22 = vld [vmem:[%s3972_s1 + $0x10] sm:$0xff]  }
  0x12   : > { %2888 = vmatpush3.bf16.msra.mxu0 %v3347_v6  ;;  %v3356_v15 = vld [vmem:[%s3972_s1 + $0xa0] sm:$0xff]   ;;  %v3360_v19 = vld [vmem:[%s3972_s1 + $0x98] sm:$0xff]   ;;  %v3364_v23 = vld [vmem:[%s3972_s1 + $0x90] sm:$0xff]  }
  0x13   : > { %3000 = vmatpush3.bf16.msra.mxu1 %v3348_v7  ;;  %2889 = vmatprep.subr.bf16.mxu0 %v3349_v8  ;;  %v3365_v24 = vld [vmem:[%s3972_s1 + $0x48] sm:$0xff]   ;;  %v3369_v28 = vld [vmem:[%s3972_s1 + $0x40] sm:$0xff]   ;;  %v3373_v40 = vld [vmem:[%s3972_s1 + $0x178] sm:$0xff]  }
  0x14   : > { %3001 = vmatprep.subr.bf16.mxu1 %v3350_v9  ;;  %v3366_v25 = vld [vmem:[%s3972_s1 + $0xc8] sm:$0xff]   ;;  %v3370_v29 = vld [vmem:[%s3972_s1 + $0xc0] sm:$0xff]   ;;  %v3374_v41 = vld [vmem:[%s3972_s1 + $0x138] sm:$0xff]  }
  0x15   : > { %v3367_v26 = vld [vmem:[%s3972_s1 + $0x8] sm:$0xff]   ;;  %v3371_v30 = vld [vmem:[%s3972_s1] sm:$0xff]   ;;  %v3375_v42 = vld [vmem:[%s3972_s1 + $0x1f8] sm:$0xff]  }
  0x16   : > { %2890 = vmatpush3.bf16.msra.mxu0 %v3351_v10  ;;  %v3368_v27 = vld [vmem:[%s3972_s1 + $0x88] sm:$0xff]   ;;  %v3372_v31 = vld [vmem:[%s3972_s1 + $0x80] sm:$0xff]   ;;  %v3376_v43 = vld [vmem:[%s3972_s1 + $0x1b8] sm:$0xff]  }
  0x17   : > { %3002 = vmatpush3.bf16.msra.mxu1 %v3352_v11  ;;  %2891 = vmatprep.subr.bf16.mxu0 %v3353_v12  ;;  %v205_v32 = vld [vmem:[%s3544_s7] sm:$0xff]  ;;  %v206_v34 = vld [vmem:[%s3544_s7 + $0x8] sm:$0xff]  ;;  %v3377_v55 = vld [vmem:[%s3972_s1 + $0x170] sm:$0xff]  }
  0x18   : > { %3003 = vmatprep.subr.bf16.mxu1 %v3354_v13  ;;  %v209_v33 = vld [vmem:[%s3544_s7 + $0x20] sm:$0xff]  ;;  %v210_v37 = vld [vmem:[%s3544_s7 + $0x28] sm:$0xff]  ;;  %v3378_v58 = vld [vmem:[%s3972_s1 + $0x130] sm:$0xff]  }
  0x19   : > { %v2529_v35 = vcombine.low %v205_v32, %v209_v33  ;;  %v2530_v36 = vcombine.high %v205_v32, %v209_v33  ;;  %v2531_v38 = vcombine.low %v206_v34, %v210_v37  ;;  %v2532_v39 = vcombine.high %v206_v34, %v210_v37  ;;  %v213_v44 = vld [vmem:[%s3544_s7 + $0x40] sm:$0xff]  ;;  %v214_v47 = vld [vmem:[%s3544_s7 + $0x48] sm:$0xff]  ;;  %v3379_v60 = vld [vmem:[%s3972_s1 + $0x1f0] sm:$0xff]  }
  0x1a   : > { %2892 = vmatpush3.bf16.msra.mxu0 %v3355_v14  ;;  %v217_v45 = vld [vmem:[%s3544_s7 + $0x60] sm:$0xff]  ;;  %v218_v48 = vld [vmem:[%s3544_s7 + $0x68] sm:$0xff]  ;;  %v3380_v61 = vld [vmem:[%s3972_s1 + $0x1b0] sm:$0xff]  }
  0x1b   : > { %3004 = vmatpush3.bf16.msra.mxu1 %v3356_v15  ;;  %2893 = vmatprep.subr.bf16.mxu0 %v3357_v16  ;;  %v2538_v46 = vcombine.high %v213_v44, %v217_v45  ;;  %v221_v49 = vld [vmem:[%s3544_s7 + $0x80] sm:$0xff]  ;;  %v2540_v50 = vcombine.high %v214_v47, %v218_v48  ;;  %v222_v52 = vld [vmem:[%s3544_s7 + $0x88] sm:$0xff]  ;;  %v2537_v54 = vcombine.low %v213_v44, %v217_v45  ;;  %v3393_v34 = vld [vmem:[%s3972_s1 + $0x150] sm:$0xff]  }
  0x1c   : > { %3005 = vmatprep.subr.bf16.mxu1 %v3358_v17  ;;  %1517 = vmatprep.mubr.bf16.mxu0 %v2530_v36  ;;  %v225_v51 = vld [vmem:[%s3544_s7 + $0xa0] sm:$0xff]  ;;  %v226_v53 = vld [vmem:[%s3544_s7 + $0xa8] sm:$0xff]  ;;  %v2539_v56 = vcombine.low %v214_v47, %v218_v48  ;;  %v3394_v36 = vld [vmem:[%s3972_s1 + $0x110] sm:$0xff]  }
  0x1d   : > { %1678 = vmatprep.mubr.bf16.mxu1 %v2532_v39  ;;  %v2546_v57 = vcombine.high %v221_v49, %v225_v51  ;;  %v2548_v59 = vcombine.high %v222_v52, %v226_v53  ;;  %v229_v62 = vld [vmem:[%s3544_s7 + $0xc0] sm:$0xff]  ;;  %v230_v0 = vld [vmem:[%s3544_s7 + $0xc8] sm:$0xff]  ;;  %v2545_v3 = vcombine.low %v221_v49, %v225_v51  ;;  %v2547_v5 = vcombine.low %v222_v52, %v226_v53  ;;  %v3395_v37 = vld [vmem:[%s3972_s1 + $0x1d0] sm:$0xff]  }
  0x1e   : > { %2894 = vmatpush3.bf16.msra.mxu0 %v3359_v18  ;;  %v233_v63 = vld [vmem:[%s3544_s7 + $0xe0] sm:$0xff]  ;;  %v234_v1 = vld [vmem:[%s3544_s7 + $0xe8] sm:$0xff]  ;;  %v3396_v39 = vld [vmem:[%s3972_s1 + $0x190] sm:$0xff]  }
  0x1f   : > { %3006 = vmatpush3.bf16.msra.mxu1 %v3360_v19  ;;  %2895 = vmatprep.subr.bf16.mxu0 %v3361_v20  ;;  %v3381_v2 = vld [vmem:[%s3972_s1 + $0x168] sm:$0xff]   ;;  %v2554_v6 = vcombine.high %v229_v62, %v233_v63  ;;  %v2556_v8 = vcombine.high %v230_v0, %v234_v1  ;;  %v237_v10 = vld [vmem:[%s3544_s7 + $0x100] sm:$0xff]  ;;  %v2553_v16 = vcombine.low %v229_v62, %v233_v63 }
  0x20   : > { %3007 = vmatprep.subr.bf16.mxu1 %v3362_v21  ;;  %v3382_v4 = vld [vmem:[%s3972_s1 + $0x128] sm:$0xff]   ;;  %v241_v11 = vld [vmem:[%s3544_s7 + $0x120] sm:$0xff]  ;;  %v2555_v18 = vcombine.low %v230_v0, %v234_v1 }
  0x21   : > { %v3383_v7 = vld [vmem:[%s3972_s1 + $0x1e8] sm:$0xff]   ;;  %v3385_v14 = vld [vmem:[%s3972_s1 + $0x160] sm:$0xff]   ;;  %v2562_v19 = vcombine.high %v237_v10, %v241_v11 }
  0x22   : > { %2896 = vmatpush3.bf16.msra.mxu0 %v3363_v22  ;;  %v3384_v9 = vld [vmem:[%s3972_s1 + $0x1a8] sm:$0xff]   ;;  %v3386_v15 = vld [vmem:[%s3972_s1 + $0x120] sm:$0xff]  }
  0x23   : > { %3008 = vmatpush3.bf16.msra.mxu1 %v3364_v23  ;;  %2897 = vmatprep.subr.bf16.mxu0 %v3365_v24  ;;  %v238_v12 = vld [vmem:[%s3544_s7 + $0x108] sm:$0xff]  ;;  %v3387_v17 = vld [vmem:[%s3972_s1 + $0x1e0] sm:$0xff]   ;;  %v3389_v24 = vld [vmem:[%s3972_s1 + $0x158] sm:$0xff]  }
  0x24   : > { %3009 = vmatprep.subr.bf16.mxu1 %v3366_v25  ;;  %v242_v13 = vld [vmem:[%s3544_s7 + $0x128] sm:$0xff]  ;;  %v3388_v20 = vld [vmem:[%s3972_s1 + $0x1a0] sm:$0xff]  }
  0x25   : > { %v2564_v21 = vcombine.high %v238_v12, %v242_v13  ;;  %v245_v22 = vld [vmem:[%s3544_s7 + $0x140] sm:$0xff]  ;;  %v246_v25 = vld [vmem:[%s3544_s7 + $0x148] sm:$0xff] }
  0x26   : > { %2898 = vmatpush3.bf16.msra.mxu0 %v3367_v26  ;;  %v249_v23 = vld [vmem:[%s3544_s7 + $0x160] sm:$0xff]  ;;  %v250_v26 = vld [vmem:[%s3544_s7 + $0x168] sm:$0xff] }
  0x27   : > { %3010 = vmatpush3.bf16.msra.mxu1 %v3368_v27  ;;  %2899 = vmatprep.subr.bf16.mxu0 %v3369_v28  ;;  %v3390_v27 = vld [vmem:[%s3972_s1 + $0x118] sm:$0xff]   ;;  %v2570_v32 = vcombine.high %v245_v22, %v249_v23  ;;  %v2572_v33 = vcombine.high %v246_v25, %v250_v26  ;;  %v3398_v47 = vld [vmem:[%s3972_s1 + $0x108] sm:$0xff]   ;;  %v265_v51 = vld [vmem:[%s3544_s7 + $0x1e0] sm:$0xff] }
  0x28   : > { %3011 = vmatprep.subr.bf16.mxu1 %v3370_v29  ;;  %v3391_v28 = vld [vmem:[%s3972_s1 + $0x1d8] sm:$0xff]   ;;  %v3399_v48 = vld [vmem:[%s3972_s1 + $0x1c8] sm:$0xff]   ;;  %v269_v62 = vld [vmem:[%s3544_s7 + $0x200] sm:$0xff] }
  0x29   : > { %v3392_v29 = vld [vmem:[%s3972_s1 + $0x198] sm:$0xff]   ;;  %v3400_v49 = vld [vmem:[%s3972_s1 + $0x188] sm:$0xff]   ;;  %v273_v63 = vld [vmem:[%s3544_s7 + $0x220] sm:$0xff] }
  0x2a   : > { %2900 = vmatpush3.bf16.msra.mxu0 %v3371_v30  ;;  %v2561_v30 = vcombine.low %v237_v10, %v241_v11  ;;  %v262_v52 = vld [vmem:[%s3544_s7 + $0x1c8] sm:$0xff]  ;;  %v2593_v10 = vcombine.low %v269_v62, %v273_v63 }
  0x2b   : > { %3012 = vmatpush3.bf16.msra.mxu1 %v3372_v31  ;;  %3109 = vmatprep.subr.bf16.mxu0 %v3373_v40  ;;  %v2563_v31 = vcombine.low %v238_v12, %v242_v13  ;;  %v254_v40 = vld [vmem:[%s3544_s7 + $0x188] sm:$0xff] }
  0x2c   : > { %3221 = vmatprep.subr.bf16.mxu1 %v3375_v42  ;;  %v2569_v42 = vcombine.low %v245_v22, %v249_v23  ;;  %v266_v53 = vld [vmem:[%s3544_s7 + $0x1e8] sm:$0xff]  ;;  %v293_v22 = vld [vmem:[%s3544_s7 + $0x2c0] sm:$0xff] }
  0x2d   : > { %1518 = vmatmul.mubr.bf16.vlgmr.msra.gmra.mxu0 %v2529_v35  ;;  %v253_v35 = vld [vmem:[%s3544_s7 + $0x180] sm:$0xff]  ;;  %v270_v0 = vld [vmem:[%s3544_s7 + $0x208] sm:$0xff] }
  0x2e   : > { %1679 = vmatmul.mubr.bf16.vlgmr.msra.gmra.mxu1 %v2531_v38  ;;  %3110 = vmatpush3.bf16.msra.mxu0 %v3374_v41  ;;  %v257_v38 = vld [vmem:[%s3544_s7 + $0x1a0] sm:$0xff]  ;;  %v258_v41 = vld [vmem:[%s3544_s7 + $0x1a8] sm:$0xff] }
  0x2f   : > { %3222 = vmatpush3.bf16.msra.mxu1 %v3376_v43  ;;  %1525 = vmatprep.mubr.bf16.mxu0 %v2538_v46  ;;  %v2571_v43 = vcombine.low %v246_v25, %v250_v26  ;;  %v2578_v44 = vcombine.high %v253_v35, %v257_v38  ;;  %v2580_v45 = vcombine.high %v254_v40, %v258_v41  ;;  %v3397_v46 = vld [vmem:[%s3972_s1 + $0x148] sm:$0xff]   ;;  %v297_v23 = vld [vmem:[%s3544_s7 + $0x2e0] sm:$0xff] }
  0x30   : > { %1686 = vmatprep.mubr.bf16.mxu1 %v2540_v50  ;;  %3111 = vmatprep.subr.bf16.mxu0 %v3377_v55  ;;  %v261_v50 = vld [vmem:[%s3544_s7 + $0x1c0] sm:$0xff]  ;;  %v274_v1 = vld [vmem:[%s3544_s7 + $0x228] sm:$0xff] }
  0x31   : > { %3223 = vmatprep.subr.bf16.mxu1 %v3379_v60  ;;  %v3401_v55 = vld [vmem:[%s3972_s1 + $0x140] sm:$0xff]   ;;  %v2595_v11 = vcombine.low %v270_v0, %v274_v1  ;;  %v298_v25 = vld [vmem:[%s3544_s7 + $0x2e8] sm:$0xff] }
  0x32   : > { %3112 = vmatpush3.bf16.msra.mxu0 %v3378_v58  ;;  %v3402_v58 = vld [vmem:[%s3972_s1 + $0x100] sm:$0xff]  }
  0x33   : > { %3224 = vmatpush3.bf16.msra.mxu1 %v3380_v61  ;;  %3113 = vmatprep.subr.bf16.mxu0 %v3381_v2  ;;  %v3403_v60 = vld [vmem:[%s3972_s1 + $0x1c0] sm:$0xff]   ;;  %v2585_v2 = vcombine.low %v261_v50, %v265_v51 }
  0x34   : > { %3225 = vmatprep.subr.bf16.mxu1 %v3383_v7  ;;  %v3404_v61 = vld [vmem:[%s3972_s1 + $0x180] sm:$0xff]  }
  0x35   : > { %1526 = vmatmul.mubr.bf16.gmra.mxu0 %v2537_v54  ;;  %v2577_v54 = vcombine.low %v253_v35, %v257_v38  ;;  %v281_v7 = vld [vmem:[%s3544_s7 + $0x260] sm:$0xff] }
  0x36   : > { %1687 = vmatmul.mubr.bf16.gmra.mxu1 %v2539_v56  ;;  %1533 = vmatprep.mubr.bf16.mxu0 %v2546_v57  ;;  %v2579_v56 = vcombine.low %v254_v40, %v258_v41  ;;  %v2586_v57 = vcombine.high %v261_v50, %v265_v51  ;;  %v309_v38 = vld [vmem:[%s3544_s7 + $0x340] sm:$0xff]  ;;  %v310_v40 = vld [vmem:[%s3544_s7 + $0x348] sm:$0xff] }
  0x37   : > { %1694 = vmatprep.mubr.bf16.mxu1 %v2548_v59  ;;  %3114 = vmatpush3.bf16.msra.mxu0 %v3382_v4  ;;  %v2588_v59 = vcombine.high %v262_v52, %v266_v53  ;;  %v2594_v4 = vcombine.high %v269_v62, %v273_v63  ;;  %v314_v41 = vld [vmem:[%s3544_s7 + $0x368] sm:$0xff]  ;;  %v207_v62 = vld [vmem:[%s3544_s7 + $0x10] sm:$0xff] }
  0x38   : > { %3226 = vmatpush3.bf16.msra.mxu1 %v3384_v9  ;;  %3115 = vmatprep.subr.bf16.mxu0 %v3385_v14  ;;  %v282_v9 = vld [vmem:[%s3544_s7 + $0x268] sm:$0xff]  ;;  %v285_v14 = vld [vmem:[%s3544_s7 + $0x280] sm:$0xff]  ;;  %v2635_v51 = vcombine.low %v310_v40, %v314_v41  ;;  %v211_v63 = vld [vmem:[%s3544_s7 + $0x30] sm:$0xff] }
  0x39   : > { %3227 = vmatprep.subr.bf16.mxu1 %v3387_v17  ;;  %v290_v17 = vld [vmem:[%s3544_s7 + $0x2a8] sm:$0xff] }
  0x3b   : > { %3116 = vmatpush3.bf16.msra.mxu0 %v3386_v15  ;;  %v289_v15 = vld [vmem:[%s3544_s7 + $0x2a0] sm:$0xff] }
  0x3c   : > { %3228 = vmatpush3.bf16.msra.mxu1 %v3388_v20  ;;  %3117 = vmatprep.subr.bf16.mxu0 %v3389_v24  ;;  %v2610_v20 = vcombine.high %v285_v14, %v289_v15  ;;  %v294_v24 = vld [vmem:[%s3544_s7 + $0x2c8] sm:$0xff]  ;;  %v2609_v26 = vcombine.low %v285_v14, %v289_v15  ;;  %v223_v14 = vld [vmem:[%s3544_s7 + $0x90] sm:$0xff] }
  0x3d   : > { %1534 = vmatmul.mubr.bf16.gmra.mxu0 %v2545_v3  ;;  %3229 = vmatprep.subr.bf16.mxu1 %v3391_v28  ;;  %v2587_v3 = vcombine.low %v262_v52, %v266_v53  ;;  %v2618_v28 = vcombine.high %v293_v22, %v297_v23  ;;  %v2619_v35 = vcombine.low %v294_v24, %v298_v25  ;;  %v227_v15 = vld [vmem:[%s3544_s7 + $0xb0] sm:$0xff] }
  0x3e   : > { %1695 = vmatmul.mubr.bf16.gmra.mxu1 %v2547_v5  ;;  %1541 = vmatprep.mubr.bf16.mxu0 %v2554_v6  ;;  %v2596_v5 = vcombine.high %v270_v0, %v274_v1  ;;  %v277_v6 = vld [vmem:[%s3544_s7 + $0x240] sm:$0xff]  ;;  %v208_v0 = vld [vmem:[%s3544_s7 + $0x18] sm:$0xff] }
  0x3f   : > { %1702 = vmatprep.mubr.bf16.mxu1 %v2556_v8  ;;  %3118 = vmatpush3.bf16.msra.mxu0 %v3390_v27  ;;  %v278_v8 = vld [vmem:[%s3544_s7 + $0x248] sm:$0xff]  ;;  %v2602_v12 = vcombine.high %v277_v6, %v281_v7  ;;  %v212_v1 = vld [vmem:[%s3544_s7 + $0x38] sm:$0xff] }
  0x40   : > { %3230 = vmatpush3.bf16.msra.mxu1 %v3392_v29  ;;  %3119 = vmatprep.subr.bf16.mxu0 %v3393_v34  ;;  %v2604_v13 = vcombine.high %v278_v8, %v282_v9  ;;  %v2620_v29 = vcombine.high %v294_v24, %v298_v25  ;;  %v2617_v34 = vcombine.low %v293_v22, %v297_v23  ;;  %v231_v22 = vld [vmem:[%s3544_s7 + $0xd0] sm:$0xff]  ;;  %v232_v24 = vld [vmem:[%s3544_s7 + $0xd8] sm:$0xff] }
  0x41   : > { %3231 = vmatprep.subr.bf16.mxu1 %v3395_v37  ;;  %v235_v23 = vld [vmem:[%s3544_s7 + $0xf0] sm:$0xff]  ;;  %v236_v25 = vld [vmem:[%s3544_s7 + $0xf8] sm:$0xff] }
  0x43   : > { %3120 = vmatpush3.bf16.msra.mxu0 %v3394_v36 }
  0x44   : > { %3232 = vmatpush3.bf16.msra.mxu1 %v3396_v39  ;;  %3121 = vmatprep.subr.bf16.mxu0 %v3397_v46  ;;  %v313_v39 = vld [vmem:[%s3544_s7 + $0x360] sm:$0xff] }
  0x45   : > { %1542 = vmatmul.mubr.bf16.gmra.mxu0 %v2553_v16  ;;  %3233 = vmatprep.subr.bf16.mxu1 %v3399_v48  ;;  %v286_v16 = vld [vmem:[%s3544_s7 + $0x288] sm:$0xff]  ;;  %v317_v46 = vld [vmem:[%s3544_s7 + $0x380] sm:$0xff]  ;;  %v2633_v50 = vcombine.low %v309_v38, %v313_v39 }
  0x46   : > { %1703 = vmatmul.mubr.bf16.gmra.mxu1 %v2555_v18  ;;  %1549 = vmatprep.mubr.bf16.mxu0 %v2562_v19  ;;  %v2601_v18 = vcombine.low %v277_v6, %v281_v7  ;;  %v2603_v19 = vcombine.low %v278_v8, %v282_v9  ;;  %v2611_v27 = vcombine.low %v286_v16, %v290_v17  ;;  %v318_v48 = vld [vmem:[%s3544_s7 + $0x388] sm:$0xff]  ;;  %v215_v6 = vld [vmem:[%s3544_s7 + $0x50] sm:$0xff]  ;;  %v216_v8 = vld [vmem:[%s3544_s7 + $0x58] sm:$0xff] }
  0x47   : > { %1710 = vmatprep.mubr.bf16.mxu1 %v2564_v21  ;;  %3122 = vmatpush3.bf16.msra.mxu0 %v3398_v47  ;;  %v2612_v21 = vcombine.high %v286_v16, %v290_v17  ;;  %v321_v47 = vld [vmem:[%s3544_s7 + $0x3a0] sm:$0xff]  ;;  %v219_v7 = vld [vmem:[%s3544_s7 + $0x70] sm:$0xff]  ;;  %v220_v9 = vld [vmem:[%s3544_s7 + $0x78] sm:$0xff] }
  0x48   : > { %3234 = vmatpush3.bf16.msra.mxu1 %v3400_v49  ;;  %3123 = vmatprep.subr.bf16.mxu0 %v3401_v55  ;;  %v322_v49 = vld [vmem:[%s3544_s7 + $0x3a8] sm:$0xff]  ;;  %v2642_v52 = vcombine.high %v317_v46, %v321_v47  ;;  %v329_v55 = vld [vmem:[%s3544_s7 + $0x3e0] sm:$0xff]  ;;  %v224_v16 = vld [vmem:[%s3544_s7 + $0x98] sm:$0xff] }
  0x49   : > { %3235 = vmatprep.subr.bf16.mxu1 %v3403_v60  ;;  %v2644_v53 = vcombine.high %v318_v48, %v322_v49  ;;  %v228_v17 = vld [vmem:[%s3544_s7 + $0xb8] sm:$0xff] }
  0x4b   : > { %3124 = vmatpush3.bf16.msra.mxu0 %v3402_v58  ;;  %v2641_v58 = vcombine.low %v317_v46, %v321_v47  ;;  %v255_v46 = vld [vmem:[%s3544_s7 + $0x190] sm:$0xff] }
  0x4c   : > { %3236 = vmatpush3.bf16.msra.mxu1 %v3404_v61  ;;  %v259_v47 = vld [vmem:[%s3544_s7 + $0x1b0] sm:$0xff] }
  0x4d   : > { %1550 = vmatmul.mubr.bf16.gmra.mxu0 %v2561_v30  ;;  %v301_v30 = vld [vmem:[%s3544_s7 + $0x300] sm:$0xff] }
  0x4e   : > { %1711 = vmatmul.mubr.bf16.gmra.mxu1 %v2563_v31  ;;  %1557 = vmatprep.mubr.bf16.mxu0 %v2570_v32  ;;  %v305_v31 = vld [vmem:[%s3544_s7 + $0x320] sm:$0xff]  ;;  %v302_v32 = vld [vmem:[%s3544_s7 + $0x308] sm:$0xff] }
  0x4f   : > { %1718 = vmatprep.mubr.bf16.mxu1 %v2572_v33  ;;  %v306_v33 = vld [vmem:[%s3544_s7 + $0x328] sm:$0xff]  ;;  %v2626_v36 = vcombine.high %v301_v30, %v305_v31 }
  0x50   : > { %v2628_v37 = vcombine.high %v302_v32, %v306_v33 }
  0x55   : > { %1558 = vmatmul.mubr.bf16.gmra.mxu0 %v2569_v42  ;;  %v2625_v42 = vcombine.low %v301_v30, %v305_v31  ;;  %v239_v30 = vld [vmem:[%s3544_s7 + $0x110] sm:$0xff] }
  0x56   : > { %1719 = vmatmul.mubr.bf16.gmra.mxu1 %v2571_v43  ;;  %1565 = vmatprep.mubr.bf16.mxu0 %v2578_v44  ;;  %v2627_v43 = vcombine.low %v302_v32, %v306_v33  ;;  %v2634_v44 = vcombine.high %v309_v38, %v313_v39  ;;  %v243_v31 = vld [vmem:[%s3544_s7 + $0x130] sm:$0xff]  ;;  %v240_v32 = vld [vmem:[%s3544_s7 + $0x118] sm:$0xff] }
  0x57   : > { %1726 = vmatprep.mubr.bf16.mxu1 %v2580_v45  ;;  %v2636_v45 = vcombine.high %v310_v40, %v314_v41  ;;  %v244_v33 = vld [vmem:[%s3544_s7 + $0x138] sm:$0xff]  ;;  %v247_v38 = vld [vmem:[%s3544_s7 + $0x150] sm:$0xff] }
  0x58   : > { %v251_v39 = vld [vmem:[%s3544_s7 + $0x170] sm:$0xff]  ;;  %v248_v40 = vld [vmem:[%s3544_s7 + $0x158] sm:$0xff] }
  0x59   : > { %v252_v41 = vld [vmem:[%s3544_s7 + $0x178] sm:$0xff] }
  0x5d   : > { %1566 = vmatmul.mubr.bf16.gmra.mxu0 %v2577_v54  ;;  %v325_v54 = vld [vmem:[%s3544_s7 + $0x3c0] sm:$0xff] }
  0x5e   : > { %1727 = vmatmul.mubr.bf16.gmra.mxu1 %v2579_v56  ;;  %1573 = vmatprep.mubr.bf16.mxu0 %v2586_v57  ;;  %v326_v56 = vld [vmem:[%s3544_s7 + $0x3c8] sm:$0xff]  ;;  %v2650_v60 = vcombine.high %v325_v54, %v329_v55 }
  0x5f   : > { %1734 = vmatprep.mubr.bf16.mxu1 %v2588_v59  ;;  %v330_v57 = vld [vmem:[%s3544_s7 + $0x3e8] sm:$0xff]  ;;  %v2643_v59 = vcombine.low %v318_v48, %v322_v49  ;;  %v256_v48 = vld [vmem:[%s3544_s7 + $0x198] sm:$0xff] }
  0x60   : > { %v2652_v61 = vcombine.high %v326_v56, %v330_v57  ;;  %v260_v49 = vld [vmem:[%s3544_s7 + $0x1b8] sm:$0xff] }
  0x65   : > { %1574 = vmatmul.mubr.bf16.gmra.mxu0 %v2585_v2  ;;  %v2649_v2 = vcombine.low %v325_v54, %v329_v55  ;;  %v263_v54 = vld [vmem:[%s3544_s7 + $0x1d0] sm:$0xff] }
  0x66   : > { %1735 = vmatmul.mubr.bf16.gmra.mxu1 %v2587_v3  ;;  %1581 = vmatprep.mubr.bf16.mxu0 %v2594_v4  ;;  %v2651_v3 = vcombine.low %v326_v56, %v330_v57  ;;  %v2534_v4 = vcombine.high %v207_v62, %v211_v63  ;;  %v267_v55 = vld [vmem:[%s3544_s7 + $0x1f0] sm:$0xff]  ;;  %v264_v56 = vld [vmem:[%s3544_s7 + $0x1d8] sm:$0xff] }
  0x67   : > { %1742 = vmatprep.mubr.bf16.mxu1 %v2596_v5  ;;  %v2536_v5 = vcombine.high %v208_v0, %v212_v1  ;;  %v268_v57 = vld [vmem:[%s3544_s7 + $0x1f8] sm:$0xff] }
  0x6d   : > { %1582 = vmatmul.mubr.bf16.gmra.mxu0 %v2593_v10  ;;  %v2533_v10 = vcombine.low %v207_v62, %v211_v63  ;;  %v271_v62 = vld [vmem:[%s3544_s7 + $0x210] sm:$0xff] }
  0x6e   : > { %1743 = vmatmul.mubr.bf16.gmra.mxu1 %v2595_v11  ;;  %1589 = vmatprep.mubr.bf16.mxu0 %v2602_v12  ;;  %v2535_v11 = vcombine.low %v208_v0, %v212_v1  ;;  %v2542_v12 = vcombine.high %v215_v6, %v219_v7  ;;  %v275_v63 = vld [vmem:[%s3544_s7 + $0x230] sm:$0xff]  ;;  %v272_v0 = vld [vmem:[%s3544_s7 + $0x218] sm:$0xff] }
  0x6f   : > { %1750 = vmatprep.mubr.bf16.mxu1 %v2604_v13  ;;  %v2544_v13 = vcombine.high %v216_v8, %v220_v9  ;;  %v276_v1 = vld [vmem:[%s3544_s7 + $0x238] sm:$0xff] }
  0x75   : > { %1590 = vmatmul.mubr.bf16.gmra.mxu0 %v2601_v18  ;;  %v2541_v18 = vcombine.low %v215_v6, %v219_v7  ;;  %v279_v6 = vld [vmem:[%s3544_s7 + $0x250] sm:$0xff] }
  0x76   : > { %1751 = vmatmul.mubr.bf16.gmra.mxu1 %v2603_v19  ;;  %1597 = vmatprep.mubr.bf16.mxu0 %v2610_v20  ;;  %v2543_v19 = vcombine.low %v216_v8, %v220_v9  ;;  %v2550_v20 = vcombine.high %v223_v14, %v227_v15  ;;  %v283_v7 = vld [vmem:[%s3544_s7 + $0x270] sm:$0xff]  ;;  %v280_v8 = vld [vmem:[%s3544_s7 + $0x258] sm:$0xff] }
  0x77   : > { %1758 = vmatprep.mubr.bf16.mxu1 %v2612_v21  ;;  %v2552_v21 = vcombine.high %v224_v16, %v228_v17  ;;  %v284_v9 = vld [vmem:[%s3544_s7 + $0x278] sm:$0xff] }
  0x7d   : > { %1598 = vmatmul.mubr.bf16.gmra.mxu0 %v2609_v26  ;;  %v2549_v26 = vcombine.low %v223_v14, %v227_v15 }
  0x7e   : > { %1759 = vmatmul.mubr.bf16.gmra.mxu1 %v2611_v27  ;;  %1605 = vmatprep.mubr.bf16.mxu0 %v2618_v28  ;;  %v2551_v27 = vcombine.low %v224_v16, %v228_v17  ;;  %v2558_v28 = vcombine.high %v231_v22, %v235_v23  ;;  %v287_v17 = vld [vmem:[%s3544_s7 + $0x290] sm:$0xff] }
  0x7f   : > { %1766 = vmatprep.mubr.bf16.mxu1 %v2620_v29  ;;  %v2560_v29 = vcombine.high %v232_v24, %v236_v25 }
  0x85   : > { %1606 = vmatmul.mubr.bf16.gmra.mxu0 %v2617_v34  ;;  %v2557_v34 = vcombine.low %v231_v22, %v235_v23  ;;  %v292_v22 = vld [vmem:[%s3544_s7 + $0x2b8] sm:$0xff] }
  0x86   : > { %1767 = vmatmul.mubr.bf16.gmra.mxu1 %v2619_v35  ;;  %1613 = vmatprep.mubr.bf16.mxu0 %v2626_v36  ;;  %v2559_v35 = vcombine.low %v232_v24, %v236_v25  ;;  %v2566_v36 = vcombine.high %v239_v30, %v243_v31  ;;  %v2605_v25 = vcombine.low %v279_v6, %v283_v7 }
  0x87   : > { %1774 = vmatprep.mubr.bf16.mxu1 %v2628_v37  ;;  %v2568_v37 = vcombine.high %v240_v32, %v244_v33 }
  0x8d   : > { %1614 = vmatmul.mubr.bf16.gmra.mxu0 %v2625_v42  ;;  %v2565_v42 = vcombine.low %v239_v30, %v243_v31 }
  0x8e   : > { %1775 = vmatmul.mubr.bf16.gmra.mxu1 %v2627_v43  ;;  %1621 = vmatprep.mubr.bf16.mxu0 %v2634_v44  ;;  %v2567_v43 = vcombine.low %v240_v32, %v244_v33  ;;  %v2574_v44 = vcombine.high %v247_v38, %v251_v39 }
  0x8f   : > { %1782 = vmatprep.mubr.bf16.mxu1 %v2636_v45  ;;  %v2576_v45 = vcombine.high %v248_v40, %v252_v41 }
  0x95   : > { %1622 = vmatmul.mubr.bf16.gmra.mxu0 %v2633_v50  ;;  %v2573_v50 = vcombine.low %v247_v38, %v251_v39  ;;  %v295_v39 = vld [vmem:[%s3544_s7 + $0x2d0] sm:$0xff] }
  0x96   : > { %1783 = vmatmul.mubr.bf16.gmra.mxu1 %v2635_v51  ;;  %1629 = vmatprep.mubr.bf16.mxu0 %v2642_v52  ;;  %v2575_v51 = vcombine.low %v248_v40, %v252_v41  ;;  %v2582_v52 = vcombine.high %v255_v46, %v259_v47  ;;  %v299_v40 = vld [vmem:[%s3544_s7 + $0x2f0] sm:$0xff] }
  0x97   : > { %1790 = vmatprep.mubr.bf16.mxu1 %v2644_v53  ;;  %v2584_v53 = vcombine.high %v256_v48, %v260_v49 }
  0x9d   : > { %1630 = vmatmul.mubr.bf16.gmra.mxu0 %v2641_v58  ;;  %v2581_v58 = vcombine.low %v255_v46, %v259_v47 }
  0x9e   : > { %1791 = vmatmul.mubr.bf16.gmra.mxu1 %v2643_v59  ;;  %1637 = vmatprep.mubr.bf16.mxu0 %v2650_v60  ;;  %v2583_v59 = vcombine.low %v256_v48, %v260_v49  ;;  %v2590_v60 = vcombine.high %v263_v54, %v267_v55 }
  0x9f   : > { %1798 = vmatprep.mubr.bf16.mxu1 %v2652_v61  ;;  %v2592_v61 = vcombine.high %v264_v56, %v268_v57 }
  0xa5   : > { %1638 = vmatmul.mubr.bf16.gmra.mxu0 %v2649_v2  ;;  %v2589_v2 = vcombine.low %v263_v54, %v267_v55 }
  0xa6   : > { %1799 = vmatmul.mubr.bf16.gmra.mxu1 %v2651_v3  ;;  %1839 = vmatprep.mubr.bf16.mxu0 %v2534_v4  ;;  %v2591_v3 = vcombine.low %v264_v56, %v268_v57  ;;  %v2598_v4 = vcombine.high %v271_v62, %v275_v63 }
  0xa7   : > { %2000 = vmatprep.mubr.bf16.mxu1 %v2536_v5  ;;  %v2600_v5 = vcombine.high %v272_v0, %v276_v1 }
  0xad   : > { %1840 = vmatmul.mubr.bf16.vlgmr.msra.gmra.mxu0 %v2533_v10  ;;  %v2597_v10 = vcombine.low %v271_v62, %v275_v63  ;;  %v307_v62 = vld [vmem:[%s3544_s7 + $0x330] sm:$0xff] }
  0xae   : > { %2001 = vmatmul.mubr.bf16.vlgmr.msra.gmra.mxu1 %v2535_v11  ;;  %1847 = vmatprep.mubr.bf16.mxu0 %v2542_v12  ;;  %v2599_v11 = vcombine.low %v272_v0, %v276_v1  ;;  %v2606_v12 = vcombine.high %v279_v6, %v283_v7  ;;  %v304_v1 = vld [vmem:[%s3544_s7 + $0x318] sm:$0xff] }
  0xaf   : > { %2008 = vmatprep.mubr.bf16.mxu1 %v2544_v13  ;;  %v2608_v13 = vcombine.high %v280_v8, %v284_v9 }
  0xb5   : > { %1848 = vmatmul.mubr.bf16.gmra.mxu0 %v2541_v18  ;;  %v291_v18 = vld [vmem:[%s3544_s7 + $0x2b0] sm:$0xff] }
  0xb6   : > { %2009 = vmatmul.mubr.bf16.gmra.mxu1 %v2543_v19  ;;  %1855 = vmatprep.mubr.bf16.mxu0 %v2550_v20  ;;  %v2613_v47 = vcombine.low %v287_v17, %v291_v18 }
  0xb7   : > { %2016 = vmatprep.mubr.bf16.mxu1 %v2552_v21  ;;  %v288_v21 = vld [vmem:[%s3544_s7 + $0x298] sm:$0xff] }
  0xb8   : > { %v2616_v31 = vcombine.high %v288_v21, %v292_v22  ;;  %v2615_v49 = vcombine.low %v288_v21, %v292_v22 }
  0xbd   : > { %1856 = vmatmul.mubr.bf16.gmra.mxu0 %v2549_v26 }
  0xbe   : > { %2017 = vmatmul.mubr.bf16.gmra.mxu1 %v2551_v27  ;;  %1863 = vmatprep.mubr.bf16.mxu0 %v2558_v28  ;;  %v2607_v27 = vcombine.low %v280_v8, %v284_v9  ;;  %v2614_v28 = vcombine.high %v287_v17, %v291_v18 }
  0xbf   : > { %2024 = vmatprep.mubr.bf16.mxu1 %v2560_v29 }
  0xc5   : > { %1864 = vmatmul.mubr.bf16.gmra.mxu0 %v2557_v34 }
  0xc6   : > { %2025 = vmatmul.mubr.bf16.gmra.mxu1 %v2559_v35  ;;  %1871 = vmatprep.mubr.bf16.mxu0 %v2566_v36 }
  0xc7   : > { %2032 = vmatprep.mubr.bf16.mxu1 %v2568_v37 }
  0xcd   : > { %1872 = vmatmul.mubr.bf16.gmra.mxu0 %v2565_v42 }
  0xce   : > { %2033 = vmatmul.mubr.bf16.gmra.mxu1 %v2567_v43  ;;  %1879 = vmatprep.mubr.bf16.mxu0 %v2574_v44  ;;  %v296_v43 = vld [vmem:[%s3544_s7 + $0x2d8] sm:$0xff] }
  0xcf   : > { %2040 = vmatprep.mubr.bf16.mxu1 %v2576_v45  ;;  %v300_v44 = vld [vmem:[%s3544_s7 + $0x2f8] sm:$0xff] }
  0xd0   : > { %v2623_v7 = vcombine.low %v296_v43, %v300_v44 }
  0xd5   : > { %1880 = vmatmul.mubr.bf16.gmra.mxu0 %v2573_v50  ;;  %v2622_v50 = vcombine.high %v295_v39, %v299_v40 }
  0xd6   : > { %2041 = vmatmul.mubr.bf16.gmra.mxu1 %v2575_v51  ;;  %1887 = vmatprep.mubr.bf16.mxu0 %v2582_v52 }
  0xd7   : > { %2048 = vmatprep.mubr.bf16.mxu1 %v2584_v53  ;;  %v2624_v53 = vcombine.high %v296_v43, %v300_v44  ;;  %v319_v43 = vld [vmem:[%s3544_s7 + $0x390] sm:$0xff] }
  0xd8   : > { %v323_v44 = vld [vmem:[%s3544_s7 + $0x3b0] sm:$0xff] }
  0xdd   : > { %1888 = vmatmul.mubr.bf16.gmra.mxu0 %v2581_v58 }
  0xde   : > { %2049 = vmatmul.mubr.bf16.gmra.mxu1 %v2583_v59  ;;  %1895 = vmatprep.mubr.bf16.mxu0 %v2590_v60 }
  0xdf   : > { %2056 = vmatprep.mubr.bf16.mxu1 %v2592_v61  ;;  %v303_v61 = vld [vmem:[%s3544_s7 + $0x310] sm:$0xff] }
  0xe0   : > { %v2630_v8 = vcombine.high %v303_v61, %v307_v62 }
  0xe5   : > { %1896 = vmatmul.mubr.bf16.gmra.mxu0 %v2589_v2  ;;  %v308_v2 = vld [vmem:[%s3544_s7 + $0x338] sm:$0xff] }
  0xe6   : > { %2057 = vmatmul.mubr.bf16.gmra.mxu1 %v2591_v3  ;;  %1903 = vmatprep.mubr.bf16.mxu0 %v2598_v4 }
  0xe7   : > { %2064 = vmatprep.mubr.bf16.mxu1 %v2600_v5  ;;  %v2621_v5 = vcombine.low %v295_v39, %v299_v40 }
  0xed   : > { %v2901_v14 = vpop.f32.mrf.mxu0  ;;  %1904 = vmatmul.mubr.bf16.gmra.mxu0 %v2597_v10 }
  0xee   : > { %v3013_v15 = vpop.f32.mrf.mxu1  ;;  %2065 = vmatmul.mubr.bf16.gmra.mxu1 %v2599_v11  ;;  %1911 = vmatprep.mubr.bf16.mxu0 %v2606_v12  ;;  %v2632_v11 = vcombine.high %v304_v1, %v308_v2 }
  0xef   : > { %v2902_v16 = vpop.f32.mrf.mxu0  ;;  %2072 = vmatprep.mubr.bf16.mxu1 %v2608_v13 }
  0xf0   : > { %v2903_v19 = vadd.f32 %v2902_v16, %v2901_v14  ;;  %v3014_v20 = vpop.f32.mrf.mxu1 }
  0xf1   : > { %v3015_v23 = vadd.f32 %v3014_v20, %v3013_v15  ;;  %v2904_v24 = vpop.f32.mrf.mxu0  ;;  %v315_v20 = vld [vmem:[%s3544_s7 + $0x370] sm:$0xff] }
  0xf2   : > { %v3016_v26 = vpop.f32.mrf.mxu1 }
  0xf3   : > { %v3756_v29 = vadd.f32 %v3015_v23, %v2903_v19  ;;  %v2905_v30 = vpop.f32.mrf.mxu0  ;;  %v311_v19 = vld [vmem:[%s3544_s7 + $0x350] sm:$0xff]  ;;  %v312_v23 = vld [vmem:[%s3544_s7 + $0x358] sm:$0xff] }
  0xf4   : > { %v2906_v32 = vadd.f32 %v2905_v30, %v2904_v24  ;;  %v3017_v33 = vpop.f32.mrf.mxu1  ;;  %v316_v24 = vld [vmem:[%s3544_s7 + $0x378] sm:$0xff]  ;;  %v2631_v30 = vcombine.low %v304_v1, %v308_v2 }
  0xf5   : > { %v3018_v34 = vadd.f32 %v3017_v33, %v3016_v26  ;;  %v2907_v35 = vpop.f32.mrf.mxu0  ;;  %1912 = vmatmul.mubr.bf16.gmra.mxu0 %v2605_v25 }
  0xf6   : > { %v3019_v36 = vpop.f32.mrf.mxu1  ;;  %2073 = vmatmul.mubr.bf16.gmra.mxu1 %v2607_v27  ;;  %1919 = vmatprep.mubr.bf16.mxu0 %v2614_v28  ;;  %v2629_v27 = vcombine.low %v303_v61, %v307_v62 }
  0xf7   : > { %v3758_v37 = vadd.f32 %v3018_v34, %v2906_v32  ;;  %v2908_v38 = vpop.f32.mrf.mxu0  ;;  %2080 = vmatprep.mubr.bf16.mxu1 %v2616_v31  ;;  %v2638_v31 = vcombine.high %v311_v19, %v315_v20  ;;  %v2640_v34 = vcombine.high %v312_v23, %v316_v24 }
  0xf8   : > { %v2909_v41 = vadd.f32 %v2908_v38, %v2907_v35  ;;  %v3020_v42 = vpop.f32.mrf.mxu1 }
  0xf9   : > { %v3021_v45 = vadd.f32 %v3020_v42, %v3019_v36  ;;  %v2910_v46 = vpop.f32.mrf.mxu0 }
  0xfa   : > { %v3022_v48 = vpop.f32.mrf.mxu1 }
  0xfb   : > { %v3764_v51 = vadd.f32 %v3021_v45, %v2909_v41  ;;  %v2911_v52 = vpop.f32.mrf.mxu0 }
  0xfc   : > { %v2912_v54 = vadd.f32 %v2911_v52, %v2910_v46  ;;  %v3023_v55 = vpop.f32.mrf.mxu1  ;;  %v2637_v52 = vcombine.low %v311_v19, %v315_v20 }
  0xfd   : > { %v3024_v56 = vadd.f32 %v3023_v55, %v3022_v48  ;;  %v2913_v57 = vpop.f32.mrf.mxu0  ;;  %1920 = vmatmul.mubr.bf16.gmra.mxu0 %v2613_v47  ;;  %v320_v47 = vld [vmem:[%s3544_s7 + $0x398] sm:$0xff]  ;;  %v2646_v55 = vcombine.high %v319_v43, %v323_v44 }
  0xfe   : > { %v3025_v58 = vpop.f32.mrf.mxu1  ;;  %2081 = vmatmul.mubr.bf16.gmra.mxu1 %v2615_v49  ;;  %1927 = vmatprep.mubr.bf16.mxu0 %v2622_v50  ;;  %v324_v48 = vld [vmem:[%s3544_s7 + $0x3b8] sm:$0xff] }
  0xff   : > { %v3766_v59 = vadd.f32 %v3024_v56, %v2912_v54  ;;  %v2914_v60 = vpop.f32.mrf.mxu0  ;;  %2088 = vmatprep.mubr.bf16.mxu1 %v2624_v53  ;;  %v2639_v54 = vcombine.low %v312_v23, %v316_v24 }
 0x100   : > { %v2915_v63 = vadd.f32 %v2914_v60, %v2913_v57  ;;  %v3026_v0 = vpop.f32.mrf.mxu1 }
 0x101   : > { %v3027_v3 = vadd.f32 %v3026_v0, %v3025_v58  ;;  %v2916_v4 = vpop.f32.mrf.mxu0  ;;  %v2648_v58 = vcombine.high %v320_v47, %v324_v48 }
 0x102   : > { %v3028_v6 = vpop.f32.mrf.mxu1 }
 0x103   : > { %v3772_v9 = vadd.f32 %v3027_v3, %v2915_v63  ;;  %v2917_v10 = vpop.f32.mrf.mxu0  ;;  %v327_v3 = vld [vmem:[%s3544_s7 + $0x3d0] sm:$0xff] }
 0x104   : > { %v2918_v12 = vadd.f32 %v2917_v10, %v2916_v4  ;;  %v3029_v13 = vpop.f32.mrf.mxu1  ;;  %v331_v4 = vld [vmem:[%s3544_s7 + $0x3f0] sm:$0xff] }
 0x105   : > { %v3030_v14 = vadd.f32 %v3029_v13, %v3028_v6  ;;  %v2919_v15 = vpop.f32.mrf.mxu0  ;;  %1928 = vmatmul.mubr.bf16.gmra.mxu0 %v2621_v5 }
 0x106   : > { %v3031_v16 = vpop.f32.mrf.mxu1  ;;  %2089 = vmatmul.mubr.bf16.gmra.mxu1 %v2623_v7  ;;  %1935 = vmatprep.mubr.bf16.mxu0 %v2630_v8  ;;  %v328_v7 = vld [vmem:[%s3544_s7 + $0x3d8] sm:$0xff] }
 0x107   : > { %v3774_v17 = vadd.f32 %v3030_v14, %v2918_v12  ;;  %v2920_v18 = vpop.f32.mrf.mxu0  ;;  %2096 = vmatprep.mubr.bf16.mxu1 %v2632_v11  ;;  %v332_v8 = vld [vmem:[%s3544_s7 + $0x3f8] sm:$0xff]  ;;  %v2645_v12 = vcombine.low %v319_v43, %v323_v44  ;;  %v2647_v14 = vcombine.low %v320_v47, %v324_v48 }
 0x108   : > { %v2921_v21 = vadd.f32 %v2920_v18, %v2919_v15  ;;  %v3032_v22 = vpop.f32.mrf.mxu1  ;;  %v2654_v15 = vcombine.high %v327_v3, %v331_v4  ;;  %v2656_v19 = vcombine.high %v328_v7, %v332_v8 }
 0x109   : > { %v3033_v25 = vadd.f32 %v3032_v22, %v3031_v16  ;;  %v2922_v26 = vpop.f32.mrf.mxu0 }
 0x10a   : > { %v3034_v28 = vpop.f32.mrf.mxu1 }
 0x10b   : > { %v3780_v32 = vadd.f32 %v3033_v25, %v2921_v21  ;;  %v2923_v33 = vpop.f32.mrf.mxu0 }
 0x10c   : > { %v2924_v35 = vadd.f32 %v2923_v33, %v2922_v26  ;;  %v3035_v36 = vpop.f32.mrf.mxu1  ;;  %v2653_v33 = vcombine.low %v327_v3, %v331_v4 }
 0x10d   : > { %v3036_v38 = vadd.f32 %v3035_v36, %v3034_v28  ;;  %v2925_v39 = vpop.f32.mrf.mxu0  ;;  %1936 = vmatmul.mubr.bf16.gmra.mxu0 %v2629_v27 }
 0x10e   : > { %v3037_v40 = vpop.f32.mrf.mxu1  ;;  %2097 = vmatmul.mubr.bf16.gmra.mxu1 %v2631_v30  ;;  %1943 = vmatprep.mubr.bf16.mxu0 %v2638_v31 }
 0x10f   : > { %v3782_v41 = vadd.f32 %v3036_v38, %v2924_v35  ;;  %v2926_v42 = vpop.f32.mrf.mxu0  ;;  %2104 = vmatprep.mubr.bf16.mxu1 %v2640_v34  ;;  %v2655_v35 = vcombine.low %v328_v7, %v332_v8 }
 0x110   : > { %v2927_v45 = vadd.f32 %v2926_v42, %v2925_v39  ;;  %v3038_v46 = vpop.f32.mrf.mxu1 }
 0x111   : > { %v3039_v49 = vadd.f32 %v3038_v46, %v3037_v40  ;;  %v2928_v50 = vpop.f32.mrf.mxu0 }
 0x112   : > { %v3040_v53 = vpop.f32.mrf.mxu1 }
 0x113   : > { %v3788_v56 = vadd.f32 %v3039_v49, %v2927_v45  ;;  %v2929_v57 = vpop.f32.mrf.mxu0 }
 0x114   : > { %v2930_v60 = vadd.f32 %v2929_v57, %v2928_v50  ;;  %v3041_v61 = vpop.f32.mrf.mxu1 }
 0x115   : > { %v3042_v62 = vadd.f32 %v3041_v61, %v3040_v53  ;;  %v2931_v63 = vpop.f32.mrf.mxu0  ;;  %1944 = vmatmul.mubr.bf16.gmra.mxu0 %v2637_v52 }
 0x116   : > { %v3043_v0 = vpop.f32.mrf.mxu1  ;;  %2105 = vmatmul.mubr.bf16.gmra.mxu1 %v2639_v54  ;;  %1951 = vmatprep.mubr.bf16.mxu0 %v2646_v55 }
 0x117   : > { %v3790_v1 = vadd.f32 %v3042_v62, %v2930_v60  ;;  %v2932_v2 = vpop.f32.mrf.mxu0  ;;  %2112 = vmatprep.mubr.bf16.mxu1 %v2648_v58 }
 0x118   : > { %v2933_v5 = vadd.f32 %v2932_v2, %v2931_v63  ;;  %v3044_v6 = vpop.f32.mrf.mxu1 }
 0x119   : > { %v3045_v10 = vadd.f32 %v3044_v6, %v3043_v0  ;;  %v2934_v11 = vpop.f32.mrf.mxu0 }
 0x11a   : > { %v3046_v13 = vpop.f32.mrf.mxu1 }
 0x11b   : > { %v3796_v16 = vadd.f32 %v3045_v10, %v2933_v5  ;;  %v2935_v18 = vpop.f32.mrf.mxu0 }
 0x11c   : > { %v2936_v20 = vadd.f32 %v2935_v18, %v2934_v11  ;;  %v3047_v21 = vpop.f32.mrf.mxu1 }
 0x11d   : > { %v3048_v22 = vadd.f32 %v3047_v21, %v3046_v13  ;;  %v2937_v23 = vpop.f32.mrf.mxu0  ;;  %1952 = vmatmul.mubr.bf16.gmra.mxu0 %v2645_v12 }
 0x11e   : > { %v3049_v24 = vpop.f32.mrf.mxu1  ;;  %2113 = vmatmul.mubr.bf16.gmra.mxu1 %v2647_v14  ;;  %1959 = vmatprep.mubr.bf16.mxu0 %v2654_v15 }
 0x11f   : > { %v3798_v25 = vadd.f32 %v3048_v22, %v2936_v20  ;;  %v2938_v26 = vpop.f32.mrf.mxu0  ;;  %2120 = vmatprep.mubr.bf16.mxu1 %v2656_v19 }
 0x120   : > { %v2939_v27 = vadd.f32 %v2938_v26, %v2937_v23  ;;  %v3050_v28 = vpop.f32.mrf.mxu1 }
 0x121   : > { %v3051_v30 = vadd.f32 %v3050_v28, %v3049_v24  ;;  %v2940_v31 = vpop.f32.mrf.mxu0 }
 0x122   : > { %v3052_v34 = vpop.f32.mrf.mxu1 }
 0x123   : > { %v3800_v36 = vadd.f32 %v3051_v30, %v2939_v27  ;;  %v2941_v38 = vpop.f32.mrf.mxu0 }
 0x124   : > { %v2942_v39 = vadd.f32 %v2941_v38, %v2940_v31  ;;  %v3053_v40 = vpop.f32.mrf.mxu1 }
 0x125   : > { %v3054_v42 = vadd.f32 %v3053_v40, %v3052_v34  ;;  %v2943_v43 = vpop.f32.mrf.mxu0  ;;  %1960 = vmatmul.mubr.bf16.gmra.mxu0 %v2653_v33 }
 0x126   : > { %v3055_v44 = vpop.f32.mrf.mxu1  ;;  %2121 = vmatmul.mubr.bf16.gmra.mxu1 %v2655_v35 }
 0x127   : > { %v3802_v45 = vadd.f32 %v3054_v42, %v2942_v39  ;;  %v2944_v46 = vpop.f32.mrf.mxu0 }
 0x128   : > { %v2945_v47 = vadd.f32 %v2944_v46, %v2943_v43  ;;  %v3056_v48 = vpop.f32.mrf.mxu1 }
 0x129   : > { %v3057_v49 = vadd.f32 %v3056_v48, %v3055_v44  ;;  %v2946_v50 = vpop.f32.mrf.mxu0 }
 0x12a   : > { %v3058_v52 = vpop.f32.mrf.mxu1 }
 0x12b   : > { %v3804_v53 = vadd.f32 %v3057_v49, %v2945_v47  ;;  %v2947_v54 = vpop.f32.mrf.mxu0 }
 0x12c   : > { %v2948_v55 = vadd.f32 %v2947_v54, %v2946_v50  ;;  %v3059_v57 = vpop.f32.mrf.mxu1 }
 0x12d   : > { %v3060_v58 = vadd.f32 %v3059_v57, %v3058_v52  ;;  %v2949_v60 = vpop.f32.mrf.mxu0 }
 0x12e   : > { %v3061_v61 = vpop.f32.mrf.mxu1 }
 0x12f   : > { %v3806_v62 = vadd.f32 %v3060_v58, %v2948_v55  ;;  %v2950_v63 = vpop.f32.mrf.mxu0 }
 0x130   : > { %v2951_v0 = vadd.f32 %v2950_v63, %v2949_v60  ;;  %v3062_v2 = vpop.f32.mrf.mxu1 }
 0x131   : > { %v3063_v3 = vadd.f32 %v3062_v2, %v3061_v61  ;;  %v2952_v4 = vpop.f32.mrf.mxu0 }
 0x132   : > { %v3064_v5 = vpop.f32.mrf.mxu1 }
 0x133   : > { %v3808_v6 = vadd.f32 %v3063_v3, %v2951_v0  ;;  %v2953_v7 = vpop.f32.mrf.mxu0 }
 0x134   : > { %v2954_v8 = vadd.f32 %v2953_v7, %v2952_v4  ;;  %v3065_v10 = vpop.f32.mrf.mxu1 }
 0x135   : > { %v3066_v11 = vadd.f32 %v3065_v10, %v3064_v5  ;;  %v2955_v12 = vpop.f32.mrf.mxu0 }
 0x136   : > { %v3067_v13 = vpop.f32.mrf.mxu1 }
 0x137   : > { %v3810_v14 = vadd.f32 %v3066_v11, %v2954_v8  ;;  %v2956_v15 = vpop.f32.mrf.mxu0 }
 0x138   : > { %v2957_v18 = vadd.f32 %v2956_v15, %v2955_v12  ;;  %v3068_v19 = vpop.f32.mrf.mxu1 }
 0x139   : > { %v3069_v20 = vadd.f32 %v3068_v19, %v3067_v13  ;;  %v2958_v21 = vpop.f32.mrf.mxu0 }
 0x13a   : > { %v3070_v22 = vpop.f32.mrf.mxu1 }
 0x13b   : > { %v3812_v23 = vadd.f32 %v3069_v20, %v2957_v18  ;;  %v2959_v24 = vpop.f32.mrf.mxu0 }
 0x13c   : > { %v2960_v26 = vadd.f32 %v2959_v24, %v2958_v21  ;;  %v3071_v27 = vpop.f32.mrf.mxu1 }
 0x13d   : > { %v3072_v28 = vadd.f32 %v3071_v27, %v3070_v22  ;;  %v2961_v30 = vpop.f32.mrf.mxu0 }
 0x13e   : > { %v3073_v31 = vpop.f32.mrf.mxu1 }
 0x13f   : > { %v3814_v33 = vadd.f32 %v3072_v28, %v2960_v26  ;;  %v2962_v34 = vpop.f32.mrf.mxu0 }
 0x140   : > { %v2963_v35 = vadd.f32 %v2962_v34, %v2961_v30  ;;  %v3074_v38 = vpop.f32.mrf.mxu1 }
 0x141   : > { %v3075_v39 = vadd.f32 %v3074_v38, %v3073_v31  ;;  %v2964_v40 = vpop.f32.mrf.mxu0 }
 0x142   : > { %v3076_v42 = vpop.f32.mrf.mxu1 }
 0x143   : > { %v3816_v43 = vadd.f32 %v3075_v39, %v2963_v35  ;;  %v2965_v44 = vpop.f32.mrf.mxu0 }
 0x144   : > { %v2966_v46 = vadd.f32 %v2965_v44, %v2964_v40  ;;  %v3077_v47 = vpop.f32.mrf.mxu1 }
 0x145   : > { %v3078_v48 = vadd.f32 %v3077_v47, %v3076_v42  ;;  %v2967_v49 = vpop.f32.mrf.mxu0 }
 0x146   : > { %v3079_v50 = vpop.f32.mrf.mxu1 }
 0x147   : > { %v3818_v52 = vadd.f32 %v3078_v48, %v2966_v46  ;;  %v2968_v54 = vpop.f32.mrf.mxu0 }
 0x148   : > { %v2969_v55 = vadd.f32 %v2968_v54, %v2967_v49  ;;  %v3080_v57 = vpop.f32.mrf.mxu1 }
 0x149   : > { %v3081_v58 = vadd.f32 %v3080_v57, %v3079_v50  ;;  %v2970_v60 = vpop.f32.mrf.mxu0 }
 0x14a   : > { %v3082_v61 = vpop.f32.mrf.mxu1 }
 0x14b   : > { %v3820_v63 = vadd.f32 %v3081_v58, %v2969_v55  ;;  %v2971_v0 = vpop.f32.mrf.mxu0 }
 0x14c   : > { %v2972_v2 = vadd.f32 %v2971_v0, %v2970_v60  ;;  %v3083_v3 = vpop.f32.mrf.mxu1 }
 0x14d   : > { %v3084_v4 = vadd.f32 %v3083_v3, %v3082_v61  ;;  %v2973_v5 = vpop.f32.mrf.mxu0 }
 0x14e   : > { %v3085_v7 = vpop.f32.mrf.mxu1 }
 0x14f   : > { %v3822_v8 = vadd.f32 %v3084_v4, %v2972_v2  ;;  %v2974_v10 = vpop.f32.mrf.mxu0 }
 0x150   : > { %v2975_v11 = vadd.f32 %v2974_v10, %v2973_v5  ;;  %v3086_v12 = vpop.f32.mrf.mxu1 }
 0x151   : > { %v3087_v13 = vadd.f32 %v3086_v12, %v3085_v7  ;;  %v2976_v15 = vpop.f32.mrf.mxu0 }
 0x152   : > { %v3088_v18 = vpop.f32.mrf.mxu1 }
 0x153   : > { %v3824_v19 = vadd.f32 %v3087_v13, %v2975_v11  ;;  %v2977_v20 = vpop.f32.mrf.mxu0 }
 0x154   : > { %v2978_v21 = vadd.f32 %v2977_v20, %v2976_v15  ;;  %v3089_v22 = vpop.f32.mrf.mxu1 }
 0x155   : > { %v3090_v24 = vadd.f32 %v3089_v22, %v3088_v18  ;;  %v2979_v26 = vpop.f32.mrf.mxu0 }
 0x156   : > { %v3091_v27 = vpop.f32.mrf.mxu1 }
 0x157   : > { %v3826_v28 = vadd.f32 %v3090_v24, %v2978_v21  ;;  %v2980_v30 = vpop.f32.mrf.mxu0 }
 0x158   : > { %v2981_v31 = vadd.f32 %v2980_v30, %v2979_v26  ;;  %v3092_v34 = vpop.f32.mrf.mxu1 }
 0x159   : > { %v3093_v35 = vadd.f32 %v3092_v34, %v3091_v27  ;;  %v2982_v38 = vpop.f32.mrf.mxu0 }
 0x15a   : > { %v3094_v39 = vpop.f32.mrf.mxu1 }
 0x15b   : > { %v3828_v40 = vadd.f32 %v3093_v35, %v2981_v31  ;;  %v2983_v42 = vpop.f32.mrf.mxu0 }
 0x15c   : > { %v2984_v44 = vadd.f32 %v2983_v42, %v2982_v38  ;;  %v3095_v46 = vpop.f32.mrf.mxu1 }
 0x15d   : > { %v3096_v47 = vadd.f32 %v3095_v46, %v3094_v39  ;;  %v2985_v48 = vpop.f32.mrf.mxu0 }
 0x15e   : > { %v3097_v49 = vpop.f32.mrf.mxu1 }
 0x15f   : > { %v3830_v50 = vadd.f32 %v3096_v47, %v2984_v44  ;;  %v2986_v54 = vpop.f32.mrf.mxu0 }
 0x160   : > { %v2987_v55 = vadd.f32 %v2986_v54, %v2985_v48  ;;  %v3098_v57 = vpop.f32.mrf.mxu1 }
 0x161   : > { %v3099_v58 = vadd.f32 %v3098_v57, %v3097_v49  ;;  %v2988_v60 = vpop.f32.mrf.mxu0  ;;  %v3844_v49 = vld [vmem:[%s3973_s2] ss:$0 sm:$0xff] }
 0x162   : > { %v3100_v61 = vpop.f32.mrf.mxu1 }
 0x163   : > { %v3832_v0 = vadd.f32 %v3099_v58, %v2987_v55  ;;  %v2989_v2 = vpop.f32.mrf.mxu0 }
 0x164   : > { %v2990_v3 = vadd.f32 %v2989_v2, %v2988_v60  ;;  %v3101_v4 = vpop.f32.mrf.mxu1  ;;  %v3849_v60 = vld [vmem:[%s3974_s3] ss:$0 sm:$0xff] }
 0x165   : > { %v3102_v5 = vadd.f32 %v3101_v4, %v3100_v61  ;;  %v2991_v7 = vpop.f32.mrf.mxu0 }
 0x166   : > { %v3103_v10 = vpop.f32.mrf.mxu1 }
 0x167   : > { %v3834_v11 = vadd.f32 %v3102_v5, %v2990_v3  ;;  %v2992_v12 = vpop.f32.mrf.mxu0 }
 0x168   : > { %v2993_v13 = vadd.f32 %v2992_v12, %v2991_v7  ;;  %v3104_v15 = vpop.f32.mrf.mxu1 }
 0x169   : > { %v3105_v18 = vadd.f32 %v3104_v15, %v3103_v10  ;;  %v2994_v20 = vpop.f32.mrf.mxu0 }
 0x16a   : > { %v3106_v21 = vpop.f32.mrf.mxu1 }
 0x16b   : > { %v3836_v22 = vadd.f32 %v3105_v18, %v2993_v13  ;;  %v2995_v24 = vpop.f32.mrf.mxu0 }
 0x16c   : > { %v2996_v26 = vadd.f32 %v2995_v24, %v2994_v20  ;;  %v3107_v27 = vpop.f32.mrf.mxu1 }
 0x16d   : > { %v3108_v30 = vadd.f32 %v3107_v27, %v3106_v21  ;;  %v3125_v31 = vpop.f32.mrf.mxu0 }
 0x16e   : > { %v3237_v34 = vpop.f32.mrf.mxu1 }
 0x16f   : > { %v3838_v35 = vadd.f32 %v3108_v30, %v2996_v26  ;;  %v3126_v38 = vpop.f32.mrf.mxu0 }
 0x170   : > { %v3127_v39 = vadd.f32 %v3126_v38, %v3125_v31  ;;  %v3238_v42 = vpop.f32.mrf.mxu1 }
 0x171   : > { %v3128_v44 = vpop.f32.mrf.mxu0  ;;  %v3239_v47 = vadd.f32 %v3238_v42, %v3237_v34 }
 0x172   : > { %v1842_v46 = vadd.f32 %v3127_v39, %v3756_v29  ;;  %v3240_v48 = vpop.f32.mrf.mxu1 }
 0x173   : > { %v3129_v54 = vpop.f32.mrf.mxu0 }
 0x174   : > { %v2003_v55 = vadd.f32 %v3239_v47, %v1842_v46  ;;  %v3130_v57 = vadd.f32 %v3129_v54, %v3128_v44  ;;  %v3241_v58 = vpop.f32.mrf.mxu1 }
 0x175   : > { %v3131_v61 = vpop.f32.mrf.mxu0  ;;  %v3242_v3 = vadd.f32 %v3241_v58, %v3240_v48 }
 0x176   : > { %v2136_v2 = vmul.f32 %v3844_v49, %v2003_v55  ;;  %v1845_v29 = vadd.f32 %v3130_v57, %v3758_v37  ;;  %v3243_v4 = vpop.f32.mrf.mxu1 }
 0x177   : > { %v3132_v5 = vpop.f32.mrf.mxu0 }
 0x178   : > { %v2175_v7 = vadd.f32 %v3849_v60, %v2136_v2  ;;  %v2006_v10 = vadd.f32 %v3242_v3, %v1845_v29  ;;  %v3133_v12 = vadd.f32 %v3132_v5, %v3131_v61  ;;  %v3244_v13 = vpop.f32.mrf.mxu1 }
 0x179   : > { %v3134_v15 = vpop.f32.mrf.mxu0  ;;  %v3245_v21 = vadd.f32 %v3244_v13, %v3243_v4 }
 0x17a   : > { %v2137_v18 = vmul.f32 %v3844_v49, %v2006_v10  ;;  %v1850_v20 = vadd.f32 %v3133_v12, %v3764_v51  ;;  %v3246_v24 = vpop.f32.mrf.mxu1  ;;  %v2239_v26 = vmul.f32 0.2, %v2175_v7  ;;  %vm2207_vm0 = vcmp.gt.f32.partialorder %v2175_v7, 0.0 }
 0x17b   : > { %v3135_v27 = vpop.f32.mrf.mxu0 }
 0x17c   : > { %v2176_v37 = vadd.f32 %v3849_v60, %v2137_v18  ;;  %v2011_v30 = vadd.f32 %v3245_v21, %v1850_v20  ;;  %v3136_v31 = vadd.f32 %v3135_v27, %v3134_v15  ;;  %v3247_v34 = vpop.f32.mrf.mxu1  ;;  %v2271_v47 = vsel %vm2207_vm0, %v2175_v7, %v2239_v26 }
 0x17d   : > { %v3248_v38 = vadd.f32 %v3247_v34, %v3246_v24  ;;  %v3137_v39 = vpop.f32.mrf.mxu0 }
 0x17e   : > { %vm2208_vm1 = vcmp.gt.f32.partialorder %v2176_v37, 0.0  ;;  %v2240_v42 = vmul.f32 0.2, %v2176_v37  ;;  %v2138_v44 = vmul.f32 %v3844_v49, %v2011_v30  ;;  %v1853_v46 = vadd.f32 %v3136_v31, %v3766_v59  ;;  %v3249_v51 = vpop.f32.mrf.mxu1 }
 0x17f   : > { %v3138_v48 = vpop.f32.mrf.mxu0 }
 0x180   : > { %v2272_v54 = vsel %vm2208_vm1, %v2176_v37, %v2240_v42  ;;  %v2177_v55 = vadd.f32 %v3849_v60, %v2138_v44  ;;  %v2014_v57 = vadd.f32 %v3248_v38, %v1853_v46  ;;  %v3139_v58 = vadd.f32 %v3138_v48, %v3137_v39  ;;  %v3250_v61 = vpop.f32.mrf.mxu1 }
 0x181   : > { %v2793_v2 = vpack.c.bf16 %v2272_v54, %v2271_v47  ;;  %v3140_v29 = vpop.f32.mrf.mxu0  ;;  %v3251_v4 = vadd.f32 %v3250_v61, %v3249_v51 }
 0x182   : > { %v2139_v3 = vmul.f32 %v3844_v49, %v2014_v57  ;;  %v1858_v59 = vadd.f32 %v3139_v58, %v3772_v9  ;;  %v3252_v5 = vpop.f32.mrf.mxu1  ;;  %v2241_v7 = vmul.f32 0.2, %v2177_v55  ;;  %vm2209_vm2 = vcmp.gt.f32.partialorder %v2177_v55, 0.0 }
 0x183   : > { %2794 = vst [vmem:[%s3863_s12] sm:$0xff] %v2793_v2   ;;  %v3141_v10 = vpop.f32.mrf.mxu0 }
 0x184   : > { %v2178_v12 = vadd.f32 %v3849_v60, %v2139_v3  ;;  %v2019_v13 = vadd.f32 %v3251_v4, %v1858_v59  ;;  %v3142_v15 = vadd.f32 %v3141_v10, %v3140_v29  ;;  %v3253_v18 = vpop.f32.mrf.mxu1  ;;  %v2273_v37 = vsel %vm2209_vm2, %v2177_v55, %v2241_v7 }
 0x185   : > { %v3254_v20 = vadd.f32 %v3253_v18, %v3252_v5  ;;  %v3143_v21 = vpop.f32.mrf.mxu0 }
 0x186   : > { %vm2210_vm3 = vcmp.gt.f32.partialorder %v2178_v12, 0.0  ;;  %v2242_v24 = vmul.f32 0.2, %v2178_v12  ;;  %v2140_v26 = vmul.f32 %v3844_v49, %v2019_v13  ;;  %v1861_v9 = vadd.f32 %v3142_v15, %v3774_v17  ;;  %v3255_v27 = vpop.f32.mrf.mxu1 }
 0x187   : > { %v3144_v30 = vpop.f32.mrf.mxu0 }
 0x188   : > { %v2274_v31 = vsel %vm2210_vm3, %v2178_v12, %v2242_v24  ;;  %v2179_v34 = vadd.f32 %v3849_v60, %v2140_v26  ;;  %v2022_v38 = vadd.f32 %v3254_v20, %v1861_v9  ;;  %v3145_v39 = vadd.f32 %v3144_v30, %v3143_v21  ;;  %v3256_v42 = vpop.f32.mrf.mxu1 }
 0x189   : > { %v2798_v44 = vpack.c.bf16 %v2274_v31, %v2273_v37  ;;  %v3146_v46 = vpop.f32.mrf.mxu0  ;;  %v3257_v48 = vadd.f32 %v3256_v42, %v3255_v27 }
 0x18a   : > { %v2141_v51 = vmul.f32 %v3844_v49, %v2022_v38  ;;  %v1866_v47 = vadd.f32 %v3145_v39, %v3780_v32  ;;  %v3258_v54 = vpop.f32.mrf.mxu1  ;;  %v2243_v57 = vmul.f32 0.2, %v2179_v34  ;;  %vm2211_vm4 = vcmp.gt.f32.partialorder %v2179_v34, 0.0 }
 0x18b   : > { %2870 = vst [vmem:[%s3863_s12 + $0x8] sm:$0xff] %v2798_v44   ;;  %v3147_v17 = vpop.f32.mrf.mxu0 }
 0x18c   : > { %v2180_v55 = vadd.f32 %v3849_v60, %v2141_v51  ;;  %v2027_v58 = vadd.f32 %v3257_v48, %v1866_v47  ;;  %v3148_v61 = vadd.f32 %v3147_v17, %v3146_v46  ;;  %v3259_v2 = vpop.f32.mrf.mxu1  ;;  %v2275_v7 = vsel %vm2211_vm4, %v2179_v34, %v2243_v57 }
 0x18d   : > { %v3260_v29 = vadd.f32 %v3259_v2, %v3258_v54  ;;  %v3149_v3 = vpop.f32.mrf.mxu0 }
 0x18e   : > { %vm2212_vm5 = vcmp.gt.f32.partialorder %v2180_v55, 0.0  ;;  %v2244_v59 = vmul.f32 0.2, %v2180_v55  ;;  %v2142_v4 = vmul.f32 %v3844_v49, %v2027_v58  ;;  %v1869_v32 = vadd.f32 %v3148_v61, %v3782_v41  ;;  %v3261_v5 = vpop.f32.mrf.mxu1 }
 0x18f   : > { %v3150_v10 = vpop.f32.mrf.mxu0 }
 0x190   : > { %v2276_v12 = vsel %vm2212_vm5, %v2180_v55, %v2244_v59  ;;  %v2181_v13 = vadd.f32 %v3849_v60, %v2142_v4  ;;  %v2030_v15 = vadd.f32 %v3260_v29, %v1869_v32  ;;  %v3151_v18 = vadd.f32 %v3150_v10, %v3149_v3  ;;  %v3262_v20 = vpop.f32.mrf.mxu1 }
 0x191   : > { %v2803_v21 = vpack.c.bf16 %v2276_v12, %v2275_v7  ;;  %v3152_v24 = vpop.f32.mrf.mxu0  ;;  %v3263_v27 = vadd.f32 %v3262_v20, %v3261_v5 }
 0x192   : > { %v2143_v26 = vmul.f32 %v3844_v49, %v2030_v15  ;;  %v1874_v9 = vadd.f32 %v3151_v18, %v3788_v56  ;;  %v3264_v37 = vpop.f32.mrf.mxu1  ;;  %v2245_v30 = vmul.f32 0.2, %v2181_v13  ;;  %vm2213_vm6 = vcmp.gt.f32.partialorder %v2181_v13, 0.0 }
 0x193   : > { %2871 = vst [vmem:[%s3863_s12 + $0x10] sm:$0xff] %v2803_v21   ;;  %v3153_v41 = vpop.f32.mrf.mxu0 }
 0x194   : > { %v2182_v31 = vadd.f32 %v3849_v60, %v2143_v26  ;;  %v2035_v34 = vadd.f32 %v3263_v27, %v1874_v9  ;;  %v3154_v38 = vadd.f32 %v3153_v41, %v3152_v24  ;;  %v3265_v39 = vpop.f32.mrf.mxu1  ;;  %v2277_v48 = vsel %vm2213_vm6, %v2181_v13, %v2245_v30 }
 0x195   : > { %v3266_v42 = vadd.f32 %v3265_v39, %v3264_v37  ;;  %v3155_v44 = vpop.f32.mrf.mxu0 }
 0x196   : > { %vm2214_vm7 = vcmp.gt.f32.partialorder %v2182_v31, 0.0  ;;  %v2246_v46 = vmul.f32 0.2, %v2182_v31  ;;  %v2144_v51 = vmul.f32 %v3844_v49, %v2035_v34  ;;  %v1877_v56 = vadd.f32 %v3154_v38, %v3790_v1  ;;  %v3267_v47 = vpop.f32.mrf.mxu1 }
 0x197   : > { %v3156_v54 = vpop.f32.mrf.mxu0 }
 0x198   : > { %v2278_v57 = vsel %vm2214_vm7, %v2182_v31, %v2246_v46  ;;  %v2183_v17 = vadd.f32 %v3849_v60, %v2144_v51  ;;  %v2038_v55 = vadd.f32 %v3266_v42, %v1877_v56  ;;  %v3157_v58 = vadd.f32 %v3156_v54, %v3155_v44  ;;  %v3268_v61 = vpop.f32.mrf.mxu1 }
 0x199   : > { %v2808_v2 = vpack.c.bf16 %v2278_v57, %v2277_v48  ;;  %v3158_v29 = vpop.f32.mrf.mxu0  ;;  %v3269_v4 = vadd.f32 %v3268_v61, %v3267_v47 }
 0x19a   : > { %v2145_v3 = vmul.f32 %v3844_v49, %v2038_v55  ;;  %v1882_v59 = vadd.f32 %v3157_v58, %v3796_v16  ;;  %v3270_v32 = vpop.f32.mrf.mxu1  ;;  %v2247_v5 = vmul.f32 0.2, %v2183_v17  ;;  %vm2215_vm8 = vcmp.gt.f32.partialorder %v2183_v17, 0.0 }
 0x19b   : > { %2872 = vst [vmem:[%s3863_s12 + $0x18] sm:$0xff] %v2808_v2   ;;  %v3159_v1 = vpop.f32.mrf.mxu0 }
 0x19c   : > { %v2184_v7 = vadd.f32 %v3849_v60, %v2145_v3  ;;  %v2043_v10 = vadd.f32 %v3269_v4, %v1882_v59  ;;  %v3160_v12 = vadd.f32 %v3159_v1, %v3158_v29  ;;  %v3271_v13 = vpop.f32.mrf.mxu1  ;;  %v2279_v26 = vsel %vm2215_vm8, %v2183_v17, %v2247_v5 }
 0x19d   : > { %v3272_v15 = vadd.f32 %v3271_v13, %v3270_v32  ;;  %v3161_v18 = vpop.f32.mrf.mxu0 }
 0x19e   : > { %vm2216_vm9 = vcmp.gt.f32.partialorder %v2184_v7, 0.0  ;;  %v2248_v20 = vmul.f32 0.2, %v2184_v7  ;;  %v2146_v21 = vmul.f32 %v3844_v49, %v2043_v10  ;;  %v1885_v16 = vadd.f32 %v3160_v12, %v3798_v25  ;;  %v3273_v24 = vpop.f32.mrf.mxu1 }
 0x19f   : > { %v3162_v9 = vpop.f32.mrf.mxu0 }
 0x1a0   : > { %v2280_v27 = vsel %vm2216_vm9, %v2184_v7, %v2248_v20  ;;  %v2185_v37 = vadd.f32 %v3849_v60, %v2146_v21  ;;  %v2046_v30 = vadd.f32 %v3272_v15, %v1885_v16  ;;  %v3163_v41 = vadd.f32 %v3162_v9, %v3161_v18  ;;  %v3274_v31 = vpop.f32.mrf.mxu1 }
 0x1a1   : > { %v2813_v34 = vpack.c.bf16 %v2280_v27, %v2279_v26  ;;  %v3164_v38 = vpop.f32.mrf.mxu0  ;;  %v3275_v44 = vadd.f32 %v3274_v31, %v3273_v24 }
 0x1a2   : > { %v2147_v39 = vmul.f32 %v3844_v49, %v2046_v30  ;;  %v1890_v42 = vadd.f32 %v3163_v41, %v3800_v36  ;;  %v3276_v46 = vpop.f32.mrf.mxu1  ;;  %v2249_v51 = vmul.f32 0.2, %v2185_v37  ;;  %vm2217_vm10 = vcmp.gt.f32.partialorder %v2185_v37, 0.0 }
 0x1a3   : > { %2873 = vst [vmem:[%s3863_s12 + $0x20] sm:$0xff] %v2813_v34   ;;  %v3165_v25 = vpop.f32.mrf.mxu0 }
 0x1a4   : > { %v2186_v56 = vadd.f32 %v3849_v60, %v2147_v39  ;;  %v2051_v47 = vadd.f32 %v3275_v44, %v1890_v42  ;;  %v3166_v48 = vadd.f32 %v3165_v25, %v3164_v38  ;;  %v3277_v54 = vpop.f32.mrf.mxu1  ;;  %v2281_v2 = vsel %vm2217_vm10, %v2185_v37, %v2249_v51 }
 0x1a5   : > { %v3278_v57 = vadd.f32 %v3277_v54, %v3276_v46  ;;  %v3167_v17 = vpop.f32.mrf.mxu0 }
 0x1a6   : > { %vm2218_vm11 = vcmp.gt.f32.partialorder %v2186_v56, 0.0  ;;  %v2250_v55 = vmul.f32 0.2, %v2186_v56  ;;  %v2148_v58 = vmul.f32 %v3844_v49, %v2051_v47  ;;  %v1893_v36 = vadd.f32 %v3166_v48, %v3802_v45  ;;  %v3279_v61 = vpop.f32.mrf.mxu1 }
 0x1a7   : > { %v3168_v29 = vpop.f32.mrf.mxu0 }
 0x1a8   : > { %v2282_v3 = vsel %vm2218_vm11, %v2186_v56, %v2250_v55  ;;  %v2187_v59 = vadd.f32 %v3849_v60, %v2148_v58  ;;  %v2054_v4 = vadd.f32 %v3278_v57, %v1893_v36  ;;  %v3169_v32 = vadd.f32 %v3168_v29, %v3167_v17  ;;  %v3280_v5 = vpop.f32.mrf.mxu1 }
 0x1a9   : > { %v2818_v1 = vpack.c.bf16 %v2282_v3, %v2281_v2  ;;  %v3170_v7 = vpop.f32.mrf.mxu0  ;;  %v3281_v13 = vadd.f32 %v3280_v5, %v3279_v61 }
 0x1aa   : > { %v2149_v10 = vmul.f32 %v3844_v49, %v2054_v4  ;;  %v1898_v12 = vadd.f32 %v3169_v32, %v3804_v53  ;;  %v3282_v15 = vpop.f32.mrf.mxu1  ;;  %v2251_v18 = vmul.f32 0.2, %v2187_v59  ;;  %vm2219_vm12 = vcmp.gt.f32.partialorder %v2187_v59, 0.0 }
 0x1ab   : > { %2874 = vst [vmem:[%s3863_s12 + $0x28] sm:$0xff] %v2818_v1   ;;  %v3171_v45 = vpop.f32.mrf.mxu0 }
 0x1ac   : > { %v2188_v20 = vadd.f32 %v3849_v60, %v2149_v10  ;;  %v2059_v21 = vadd.f32 %v3281_v13, %v1898_v12  ;;  %v3172_v16 = vadd.f32 %v3171_v45, %v3170_v7  ;;  %v3283_v24 = vpop.f32.mrf.mxu1  ;;  %v2283_v41 = vsel %vm2219_vm12, %v2187_v59, %v2251_v18 }
 0x1ad   : > { %v3284_v26 = vadd.f32 %v3283_v24, %v3282_v15  ;;  %v3173_v9 = vpop.f32.mrf.mxu0 }
 0x1ae   : > { %vm2220_vm13 = vcmp.gt.f32.partialorder %v2188_v20, 0.0  ;;  %v2252_v27 = vmul.f32 0.2, %v2188_v20  ;;  %v2150_v37 = vmul.f32 %v3844_v49, %v2059_v21  ;;  %v1901_v53 = vadd.f32 %v3172_v16, %v3806_v62  ;;  %v3285_v30 = vpop.f32.mrf.mxu1 }
 0x1af   : > { %v3174_v31 = vpop.f32.mrf.mxu0 }
 0x1b0   : > { %v2284_v34 = vsel %vm2220_vm13, %v2188_v20, %v2252_v27  ;;  %v2189_v38 = vadd.f32 %v3849_v60, %v2150_v37  ;;  %v2062_v39 = vadd.f32 %v3284_v26, %v1901_v53  ;;  %v3175_v42 = vadd.f32 %v3174_v31, %v3173_v9  ;;  %v3286_v44 = vpop.f32.mrf.mxu1 }
 0x1b1   : > { %v2823_v46 = vpack.c.bf16 %v2284_v34, %v2283_v41  ;;  %v3176_v51 = vpop.f32.mrf.mxu0  ;;  %v3287_v47 = vadd.f32 %v3286_v44, %v3285_v30 }
 0x1b2   : > { %v2151_v25 = vmul.f32 %v3844_v49, %v2062_v39  ;;  %v1906_v56 = vadd.f32 %v3175_v42, %v3808_v6  ;;  %v3288_v48 = vpop.f32.mrf.mxu1  ;;  %v2253_v54 = vmul.f32 0.2, %v2189_v38  ;;  %vm2221_vm14 = vcmp.gt.f32.partialorder %v2189_v38, 0.0 }
 0x1b3   : > { %2875 = vst [vmem:[%s3863_s12 + $0x30] sm:$0xff] %v2823_v46   ;;  %v3177_v62 = vpop.f32.mrf.mxu0 }
 0x1b4   : > { %v2190_v57 = vadd.f32 %v3849_v60, %v2151_v25  ;;  %v2067_v17 = vadd.f32 %v3287_v47, %v1906_v56  ;;  %v3178_v55 = vadd.f32 %v3177_v62, %v3176_v51  ;;  %v3289_v58 = vpop.f32.mrf.mxu1  ;;  %v2285_v59 = vsel %vm2221_vm14, %v2189_v38, %v2253_v54 }
 0x1b5   : > { %v3290_v36 = vadd.f32 %v3289_v58, %v3288_v48  ;;  %v3179_v61 = vpop.f32.mrf.mxu0 }
 0x1b6   : > { %vm2222_vm15 = vcmp.gt.f32.partialorder %v2190_v57, 0.0  ;;  %v2254_v2 = vmul.f32 0.2, %v2190_v57  ;;  %v2152_v29 = vmul.f32 %v3844_v49, %v2067_v17  ;;  %v1909_v6 = vadd.f32 %v3178_v55, %v3810_v14  ;;  %v3291_v3 = vpop.f32.mrf.mxu1 }
 0x1b7   : > { %v3180_v4 = vpop.f32.mrf.mxu0 }
 0x1b8   : > { %v2286_v32 = vsel %vm2222_vm15, %v2190_v57, %v2254_v2  ;;  %v2191_v5 = vadd.f32 %v3849_v60, %v2152_v29  ;;  %v2070_v1 = vadd.f32 %v3290_v36, %v1909_v6  ;;  %v3181_v7 = vadd.f32 %v3180_v4, %v3179_v61  ;;  %v3292_v10 = vpop.f32.mrf.mxu1 }
 0x1b9   : > { %v2828_v12 = vpack.c.bf16 %v2286_v32, %v2285_v59  ;;  %v3182_v13 = vpop.f32.mrf.mxu0  ;;  %v3293_v45 = vadd.f32 %v3292_v10, %v3291_v3 }
 0x1ba   : > { %v2153_v15 = vmul.f32 %v3844_v49, %v2070_v1  ;;  %v1914_v18 = vadd.f32 %v3181_v7, %v3812_v23  ;;  %v3294_v20 = vpop.f32.mrf.mxu1  ;;  %v2255_v21 = vmul.f32 0.2, %v2191_v5  ;;  %vm2223_vm0 = vcmp.gt.f32.partialorder %v2191_v5, 0.0 }
 0x1bb   : > { %2876 = vst [vmem:[%s3863_s12 + $0x38] sm:$0xff] %v2828_v12   ;;  %v3183_v14 = vpop.f32.mrf.mxu0 }
 0x1bc   : > { %v2192_v16 = vadd.f32 %v3849_v60, %v2153_v15  ;;  %v2075_v24 = vadd.f32 %v3293_v45, %v1914_v18  ;;  %v3184_v26 = vadd.f32 %v3183_v14, %v3182_v13  ;;  %v3295_v9 = vpop.f32.mrf.mxu1  ;;  %v2287_v31 = vsel %vm2223_vm0, %v2191_v5, %v2255_v21 }
 0x1bd   : > { %v3296_v27 = vadd.f32 %v3295_v9, %v3294_v20  ;;  %v3185_v37 = vpop.f32.mrf.mxu0 }
 0x1be   : > { %vm2224_vm1 = vcmp.gt.f32.partialorder %v2192_v16, 0.0  ;;  %v2256_v53 = vmul.f32 0.2, %v2192_v16  ;;  %v2154_v30 = vmul.f32 %v3844_v49, %v2075_v24  ;;  %v1917_v23 = vadd.f32 %v3184_v26, %v3814_v33  ;;  %v3297_v41 = vpop.f32.mrf.mxu1 }
 0x1bf   : > { %v3186_v34 = vpop.f32.mrf.mxu0 }
 0x1c0   : > { %v2288_v38 = vsel %vm2224_vm1, %v2192_v16, %v2256_v53  ;;  %v2193_v39 = vadd.f32 %v3849_v60, %v2154_v30  ;;  %v2078_v42 = vadd.f32 %v3296_v27, %v1917_v23  ;;  %v3187_v44 = vadd.f32 %v3186_v34, %v3185_v37  ;;  %v3298_v46 = vpop.f32.mrf.mxu1 }
 0x1c1   : > { %v2833_v51 = vpack.c.bf16 %v2288_v38, %v2287_v31  ;;  %v3188_v25 = vpop.f32.mrf.mxu0  ;;  %v3299_v48 = vadd.f32 %v3298_v46, %v3297_v41 }
 0x1c2   : > { %v2155_v56 = vmul.f32 %v3844_v49, %v2078_v42  ;;  %v1922_v47 = vadd.f32 %v3187_v44, %v3816_v43  ;;  %v3300_v54 = vpop.f32.mrf.mxu1  ;;  %v2257_v62 = vmul.f32 0.2, %v2193_v39  ;;  %vm2225_vm2 = vcmp.gt.f32.partialorder %v2193_v39, 0.0 }
 0x1c3   : > { %2877 = vst [vmem:[%s3863_s12 + $0x40] sm:$0xff] %v2833_v51   ;;  %v3189_v33 = vpop.f32.mrf.mxu0 }
 0x1c4   : > { %v2194_v57 = vadd.f32 %v3849_v60, %v2155_v56  ;;  %v2083_v17 = vadd.f32 %v3299_v48, %v1922_v47  ;;  %v3190_v55 = vadd.f32 %v3189_v33, %v3188_v25  ;;  %v3301_v58 = vpop.f32.mrf.mxu1  ;;  %v2289_v3 = vsel %vm2225_vm2, %v2193_v39, %v2257_v62 }
 0x1c5   : > { %v3302_v36 = vadd.f32 %v3301_v58, %v3300_v54  ;;  %v3191_v61 = vpop.f32.mrf.mxu0 }
 0x1c6   : > { %vm2226_vm3 = vcmp.gt.f32.partialorder %v2194_v57, 0.0  ;;  %v2258_v2 = vmul.f32 0.2, %v2194_v57  ;;  %v2156_v29 = vmul.f32 %v3844_v49, %v2083_v17  ;;  %v1925_v43 = vadd.f32 %v3190_v55, %v3818_v52  ;;  %v3303_v6 = vpop.f32.mrf.mxu1 }
 0x1c7   : > { %v3192_v59 = vpop.f32.mrf.mxu0 }
 0x1c8   : > { %v2290_v4 = vsel %vm2226_vm3, %v2194_v57, %v2258_v2  ;;  %v2195_v32 = vadd.f32 %v3849_v60, %v2156_v29  ;;  %v2086_v5 = vadd.f32 %v3302_v36, %v1925_v43  ;;  %v3193_v1 = vadd.f32 %v3192_v59, %v3191_v61  ;;  %v3304_v7 = vpop.f32.mrf.mxu1 }
 0x1c9   : > { %v2838_v10 = vpack.c.bf16 %v2290_v4, %v2289_v3  ;;  %v3194_v12 = vpop.f32.mrf.mxu0  ;;  %v3305_v18 = vadd.f32 %v3304_v7, %v3303_v6 }
 0x1ca   : > { %v2157_v13 = vmul.f32 %v3844_v49, %v2086_v5  ;;  %v1930_v15 = vadd.f32 %v3193_v1, %v3820_v63  ;;  %v3306_v45 = vpop.f32.mrf.mxu1  ;;  %v2259_v20 = vmul.f32 0.2, %v2195_v32  ;;  %vm2227_vm4 = vcmp.gt.f32.partialorder %v2195_v32, 0.0 }
 0x1cb   : > { %2878 = vst [vmem:[%s3863_s12 + $0x48] sm:$0xff] %v2838_v10   ;;  %v3195_v52 = vpop.f32.mrf.mxu0 }
 0x1cc   : > { %v2196_v21 = vadd.f32 %v3849_v60, %v2157_v13  ;;  %v2091_v14 = vadd.f32 %v3305_v18, %v1930_v15  ;;  %v3196_v16 = vadd.f32 %v3195_v52, %v3194_v12  ;;  %v3307_v24 = vpop.f32.mrf.mxu1  ;;  %v2291_v30 = vsel %vm2227_vm4, %v2195_v32, %v2259_v20 }
 0x1cd   : > { %v3308_v26 = vadd.f32 %v3307_v24, %v3306_v45  ;;  %v3197_v9 = vpop.f32.mrf.mxu0 }
 0x1ce   : > { %vm2228_vm5 = vcmp.gt.f32.partialorder %v2196_v21, 0.0  ;;  %v2260_v27 = vmul.f32 0.2, %v2196_v21  ;;  %v2158_v37 = vmul.f32 %v3844_v49, %v2091_v14  ;;  %v1933_v63 = vadd.f32 %v3196_v16, %v3822_v8  ;;  %v3309_v53 = vpop.f32.mrf.mxu1 }
 0x1cf   : > { %v3198_v23 = vpop.f32.mrf.mxu0 }
 0x1d0   : > { %v2292_v41 = vsel %vm2228_vm5, %v2196_v21, %v2260_v27  ;;  %v2197_v31 = vadd.f32 %v3849_v60, %v2158_v37  ;;  %v2094_v34 = vadd.f32 %v3308_v26, %v1933_v63  ;;  %v3199_v38 = vadd.f32 %v3198_v23, %v3197_v9  ;;  %v3310_v39 = vpop.f32.mrf.mxu1 }
 0x1d1   : > { %v2843_v42 = vpack.c.bf16 %v2292_v41, %v2291_v30  ;;  %v3200_v44 = vpop.f32.mrf.mxu0  ;;  %v3311_v25 = vadd.f32 %v3310_v39, %v3309_v53 }
 0x1d2   : > { %v2159_v46 = vmul.f32 %v3844_v49, %v2094_v34  ;;  %v1938_v51 = vadd.f32 %v3199_v38, %v3824_v19  ;;  %v3312_v56 = vpop.f32.mrf.mxu1  ;;  %v2261_v47 = vmul.f32 0.2, %v2197_v31  ;;  %vm2229_vm6 = vcmp.gt.f32.partialorder %v2197_v31, 0.0 }
 0x1d3   : > { %2879 = vst [vmem:[%s3863_s12 + $0x50] sm:$0xff] %v2843_v42   ;;  %v3201_v8 = vpop.f32.mrf.mxu0 }
 0x1d4   : > { %v2198_v48 = vadd.f32 %v3849_v60, %v2159_v46  ;;  %v2099_v54 = vadd.f32 %v3311_v25, %v1938_v51  ;;  %v3202_v62 = vadd.f32 %v3201_v8, %v3200_v44  ;;  %v3313_v33 = vpop.f32.mrf.mxu1  ;;  %v2293_v61 = vsel %vm2229_vm6, %v2197_v31, %v2261_v47 }
 0x1d5   : > { %v3314_v57 = vadd.f32 %v3313_v33, %v3312_v56  ;;  %v3203_v17 = vpop.f32.mrf.mxu0 }
 0x1d6   : > { %vm2230_vm7 = vcmp.gt.f32.partialorder %v2198_v48, 0.0  ;;  %v2262_v55 = vmul.f32 0.2, %v2198_v48  ;;  %v2160_v58 = vmul.f32 %v3844_v49, %v2099_v54  ;;  %v1941_v19 = vadd.f32 %v3202_v62, %v3826_v28  ;;  %v3315_v36 = vpop.f32.mrf.mxu1 }
 0x1d7   : > { %v3204_v2 = vpop.f32.mrf.mxu0 }
 0x1d8   : > { %v2294_v29 = vsel %vm2230_vm7, %v2198_v48, %v2262_v55  ;;  %v2199_v43 = vadd.f32 %v3849_v60, %v2160_v58  ;;  %v2102_v6 = vadd.f32 %v3314_v57, %v1941_v19  ;;  %v3205_v3 = vadd.f32 %v3204_v2, %v3203_v17  ;;  %v3316_v59 = vpop.f32.mrf.mxu1 }
 0x1d9   : > { %v2848_v4 = vpack.c.bf16 %v2294_v29, %v2293_v61  ;;  %v3206_v32 = vpop.f32.mrf.mxu0  ;;  %v3317_v7 = vadd.f32 %v3316_v59, %v3315_v36 }
 0x1da   : > { %v2161_v5 = vmul.f32 %v3844_v49, %v2102_v6  ;;  %v1946_v1 = vadd.f32 %v3205_v3, %v3828_v40  ;;  %v3318_v10 = vpop.f32.mrf.mxu1  ;;  %v2263_v12 = vmul.f32 0.2, %v2199_v43  ;;  %vm2231_vm8 = vcmp.gt.f32.partialorder %v2199_v43, 0.0 }
 0x1db   : > { %2880 = vst [vmem:[%s3863_s12 + $0x58] sm:$0xff] %v2848_v4   ;;  %v3207_v28 = vpop.f32.mrf.mxu0 }
 0x1dc   : > { %v2200_v13 = vadd.f32 %v3849_v60, %v2161_v5  ;;  %v2107_v15 = vadd.f32 %v3317_v7, %v1946_v1  ;;  %v3208_v18 = vadd.f32 %v3207_v28, %v3206_v32  ;;  %v3319_v45 = vpop.f32.mrf.mxu1  ;;  %v2295_v24 = vsel %vm2231_vm8, %v2199_v43, %v2263_v12 }
 0x1dd   : > { %v3320_v20 = vadd.f32 %v3319_v45, %v3318_v10  ;;  %v3209_v52 = vpop.f32.mrf.mxu0 }
 0x1de   : > { %vm2232_vm9 = vcmp.gt.f32.partialorder %v2200_v13, 0.0  ;;  %v2264_v21 = vmul.f32 0.2, %v2200_v13  ;;  %v2162_v14 = vmul.f32 %v3844_v49, %v2107_v15  ;;  %v1949_v40 = vadd.f32 %v3208_v18, %v3830_v50  ;;  %v3321_v16 = vpop.f32.mrf.mxu1 }
 0x1df   : > { %v3210_v26 = vpop.f32.mrf.mxu0 }
 0x1e0   : > { %v2296_v9 = vsel %vm2232_vm9, %v2200_v13, %v2264_v21  ;;  %v2201_v27 = vadd.f32 %v3849_v60, %v2162_v14  ;;  %v2110_v37 = vadd.f32 %v3320_v20, %v1949_v40  ;;  %v3211_v63 = vadd.f32 %v3210_v26, %v3209_v52  ;;  %v3322_v53 = vpop.f32.mrf.mxu1 }
 0x1e1   : > { %v2853_v30 = vpack.c.bf16 %v2296_v9, %v2295_v24  ;;  %v3212_v23 = vpop.f32.mrf.mxu0  ;;  %v3323_v34 = vadd.f32 %v3322_v53, %v3321_v16 }
 0x1e2   : > { %v2163_v41 = vmul.f32 %v3844_v49, %v2110_v37  ;;  %v1954_v31 = vadd.f32 %v3211_v63, %v3832_v0  ;;  %v3324_v38 = vpop.f32.mrf.mxu1  ;;  %v2265_v39 = vmul.f32 0.2, %v2201_v27  ;;  %vm2233_vm10 = vcmp.gt.f32.partialorder %v2201_v27, 0.0 }
 0x1e3   : > { %2881 = vst [vmem:[%s3863_s12 + $0x60] sm:$0xff] %v2853_v30   ;;  %v3213_v50 = vpop.f32.mrf.mxu0 }
 0x1e4   : > { %v2202_v42 = vadd.f32 %v3849_v60, %v2163_v41  ;;  %v2115_v44 = vadd.f32 %v3323_v34, %v1954_v31  ;;  %v3214_v46 = vadd.f32 %v3213_v50, %v3212_v23  ;;  %v3325_v51 = vpop.f32.mrf.mxu1  ;;  %v2297_v54 = vsel %vm2233_vm10, %v2201_v27, %v2265_v39 }
 0x1e5   : > { %v3326_v25 = vadd.f32 %v3325_v51, %v3324_v38  ;;  %v3215_v56 = vpop.f32.mrf.mxu0 }
 0x1e6   : > { %vm2234_vm11 = vcmp.gt.f32.partialorder %v2202_v42, 0.0  ;;  %v2266_v47 = vmul.f32 0.2, %v2202_v42  ;;  %v2164_v8 = vmul.f32 %v3844_v49, %v2115_v44  ;;  %v1957_v0 = vadd.f32 %v3214_v46, %v3834_v11  ;;  %v3327_v48 = vpop.f32.mrf.mxu1 }
 0x1e7   : > { %v3216_v62 = vpop.f32.mrf.mxu0 }
 0x1e8   : > { %v2298_v33 = vsel %vm2234_vm11, %v2202_v42, %v2266_v47  ;;  %v2203_v57 = vadd.f32 %v3849_v60, %v2164_v8  ;;  %v2118_v17 = vadd.f32 %v3326_v25, %v1957_v0  ;;  %v3217_v55 = vadd.f32 %v3216_v62, %v3215_v56  ;;  %v3328_v58 = vpop.f32.mrf.mxu1 }
 0x1e9   : > { %v2858_v19 = vpack.c.bf16 %v2298_v33, %v2297_v54  ;;  %v3218_v36 = vpop.f32.mrf.mxu0  ;;  %v3329_v29 = vadd.f32 %v3328_v58, %v3327_v48 }
 0x1ea   : > { %v2165_v61 = vmul.f32 %v3844_v49, %v2118_v17  ;;  %v1962_v2 = vadd.f32 %v3217_v55, %v3836_v22  ;;  %v3330_v43 = vpop.f32.mrf.mxu1  ;;  %v2267_v11 = vmul.f32 0.2, %v2203_v57  ;;  %vm2235_vm12 = vcmp.gt.f32.partialorder %v2203_v57, 0.0 }
 0x1eb   : > { %2882 = vst [vmem:[%s3863_s12 + $0x68] sm:$0xff] %v2858_v19   ;;  %v3219_v6 = vpop.f32.mrf.mxu0 }
 0x1ec   : > { %v2204_v3 = vadd.f32 %v3849_v60, %v2165_v61  ;;  %v2123_v59 = vadd.f32 %v3329_v29, %v1962_v2  ;;  %v3220_v4 = vadd.f32 %v3219_v6, %v3218_v36  ;;  %v3331_v32 = vpop.f32.mrf.mxu1  ;;  %v2299_v22 = vsel %vm2235_vm12, %v2203_v57, %v2267_v11 }
 0x1ed   : > { %v3332_v5 = vadd.f32 %v3331_v32, %v3330_v43 }
 0x1ee   : > { %vm2236_vm13 = vcmp.gt.f32.partialorder %v2204_v3, 0.0  ;;  %v2268_v1 = vmul.f32 0.2, %v2204_v3  ;;  %v2166_v7 = vmul.f32 %v3844_v49, %v2123_v59  ;;  %v1965_v10 = vadd.f32 %v3220_v4, %v3838_v35 }
 0x1f0   : > { %v2300_v12 = vsel %vm2236_vm13, %v2204_v3, %v2268_v1  ;;  %v2205_v28 = vadd.f32 %v3849_v60, %v2166_v7  ;;  %v2126_v13 = vadd.f32 %v3332_v5, %v1965_v10 }
 0x1f1   : > { %v2863_v15 = vpack.c.bf16 %v2300_v12, %v2299_v22 }
 0x1f2   : > { %v2167_v18 = vmul.f32 %v3844_v49, %v2126_v13  ;;  %v2269_v45 = vmul.f32 0.2, %v2205_v28  ;;  %vm2237_vm14 = vcmp.gt.f32.partialorder %v2205_v28, 0.0 }
 0x1f3   : > { %2883 = vst [vmem:[%s3863_s12 + $0x70] sm:$0xff] %v2863_v15  }
 0x1f4   : > { %v2206_v20 = vadd.f32 %v3849_v60, %v2167_v18  ;;  %v2301_v21 = vsel %vm2237_vm14, %v2205_v28, %v2269_v45 }
 0x1f6   : > { %vm2238_vm15 = vcmp.gt.f32.partialorder %v2206_v20, 0.0  ;;  %v2270_v52 = vmul.f32 0.2, %v2206_v20 }
 0x1f8   : > { %v2302_v14 = vsel %vm2238_vm15, %v2206_v20, %v2270_v52 }
 0x1f9   : > { %v2868_v40 = vpack.c.bf16 %v2302_v14, %v2301_v21 }
 0x1fb   : > { %2884 = vst [vmem:[%s3863_s12 + $0x78] sm:$0xff] %v2868_v40  }
 0x1fc PF: > { %s14_s15 = sadd.s32 1, %s3411_s15  }
 0x1fd   : > { %p11_p4 = scmp.ge.s32.totalorder %s14_s15, 4  }
 0x1ff   :  { %13 = sbr.rel (!%p11_p4) target bundleno = 1 (0x1), region = 66 }

// kernel: discriminator_forward.5
= control target key start
LH: loop header
LB: loop body
LE: loop exit
PB: predicated region body
PF: predicated region fallthrough
CT: control target
= control target key end

     0   :  { %s11619_s1 = inlined_call_operand.vmem [shape: bf16[2048,64], index: 1, kind: input, shape index: {}]   ;;  %s11620_s0 = inlined_call_operand.vmem [shape: bf16[128,2048], index: 0, kind: input, shape index: {}]   ;;  %s11621_s4 = inlined_call_operand.vmem [shape: bf16[16,32,128], index: 4, kind: input, shape index: {}]   ;;  %s11622_s5 = inlined_call_operand.vmem [shape: bf16[16,64,32], index: 5, kind: input, shape index: {}]   ;;  %s11623_s2 = inlined_call_operand.vmem [shape: f32[1,64], index: 2, kind: input, shape index: {}]   ;;  %s11624_s3 = inlined_call_operand.vmem [shape: f32[1,64], index: 3, kind: input, shape index: {}]   ;;  %s11625_s9 = inlined_call_operand.vmem [shape: bf16[16,32,1], index: 9, kind: input, shape index: {}]   ;;  %s11626_s6 = inlined_call_operand.vmem [shape: f32[1,32], index: 6, kind: input, shape index: {}]   ;;  %s11627_s7 = inlined_call_operand.vmem [shape: f32[1,32], index: 7, kind: input, shape index: {}]   ;;  %s11628_s8 = inlined_call_operand.vmem [shape: bf16[16,2,32], index: 8, kind: input, shape index: {}]   ;;  %s11629_s10 = inlined_call_operand.<no memory space> [shape: f32[1,1], index: 10, kind: input, shape index: {}]   ;;  %s11630_s11 = inlined_call_operand.vmem [shape: f32[2,1], index: 11, kind: output, shape index: {}]  }
   0x1   :  { %v9370_v0 = vld [vmem:[%s11619_s1 + $0x78] sm:$0xff]   ;;  %v9374_v4 = vld [vmem:[%s11619_s1 + $0x70] sm:$0xff]   ;;  %v9378_v8 = vld [vmem:[%s11619_s1 + $0x68] sm:$0xff]  }
   0x2   :  { %v9371_v1 = vld [vmem:[%s11619_s1 + $0xf8] sm:$0xff]   ;;  %7736 = vmatprep.subr.bf16.mxu0 %v9370_v0  ;;  %v9375_v5 = vld [vmem:[%s11619_s1 + $0xf0] sm:$0xff]   ;;  %v9379_v9 = vld [vmem:[%s11619_s1 + $0xe8] sm:$0xff]  }
   0x3   :  { %v9372_v2 = vld [vmem:[%s11619_s1 + $0x38] sm:$0xff]   ;;  %7800 = vmatprep.subr.bf16.mxu1 %v9371_v1  ;;  %v9376_v6 = vld [vmem:[%s11619_s1 + $0x30] sm:$0xff]   ;;  %v9380_v10 = vld [vmem:[%s11619_s1 + $0x28] sm:$0xff]  }
   0x4   :  { %v9373_v3 = vld [vmem:[%s11619_s1 + $0xb8] sm:$0xff]   ;;  %7737 = vmatpush3.bf16.msra.mxu0 %v9372_v2  ;;  %v9377_v7 = vld [vmem:[%s11619_s1 + $0xb0] sm:$0xff]   ;;  %v9381_v11 = vld [vmem:[%s11619_s1 + $0xa8] sm:$0xff]  }
   0x5   :  { %7801 = vmatpush3.bf16.msra.mxu1 %v9373_v3  ;;  %7738 = vmatprep.subr.bf16.mxu0 %v9374_v4  ;;  %v9382_v12 = vld [vmem:[%s11619_s1 + $0x60] sm:$0xff]   ;;  %v9386_v16 = vld [vmem:[%s11619_s1 + $0x58] sm:$0xff]   ;;  %v9390_v20 = vld [vmem:[%s11619_s1 + $0x50] sm:$0xff]  }
   0x6   :  { %7802 = vmatprep.subr.bf16.mxu1 %v9375_v5  ;;  %v9383_v13 = vld [vmem:[%s11619_s1 + $0xe0] sm:$0xff]   ;;  %v9387_v17 = vld [vmem:[%s11619_s1 + $0xd8] sm:$0xff]   ;;  %v9391_v21 = vld [vmem:[%s11619_s1 + $0xd0] sm:$0xff]  }
   0x7   :  { %v9384_v14 = vld [vmem:[%s11619_s1 + $0x20] sm:$0xff]   ;;  %v9388_v18 = vld [vmem:[%s11619_s1 + $0x18] sm:$0xff]   ;;  %v9392_v22 = vld [vmem:[%s11619_s1 + $0x10] sm:$0xff]  }
   0x8   :  { %7739 = vmatpush3.bf16.msra.mxu0 %v9376_v6  ;;  %v9385_v15 = vld [vmem:[%s11619_s1 + $0xa0] sm:$0xff]   ;;  %v9389_v19 = vld [vmem:[%s11619_s1 + $0x98] sm:$0xff]   ;;  %v9393_v23 = vld [vmem:[%s11619_s1 + $0x90] sm:$0xff]  }
   0x9   :  { %7803 = vmatpush3.bf16.msra.mxu1 %v9377_v7  ;;  %7740 = vmatprep.subr.bf16.mxu0 %v9378_v8  ;;  %v9394_v24 = vld [vmem:[%s11619_s1 + $0x48] sm:$0xff]   ;;  %v9398_v28 = vld [vmem:[%s11619_s1 + $0x40] sm:$0xff]   ;;  %v9402_v50 = vld [vmem:[%s11619_s1 + $0x178] sm:$0xff]  }
   0xa   :  { %7804 = vmatprep.subr.bf16.mxu1 %v9379_v9  ;;  %v9395_v25 = vld [vmem:[%s11619_s1 + $0xc8] sm:$0xff]   ;;  %v9399_v29 = vld [vmem:[%s11619_s1 + $0xc0] sm:$0xff]   ;;  %v9403_v52 = vld [vmem:[%s11619_s1 + $0x1f8] sm:$0xff]  }
   0xb   :  { %v9396_v26 = vld [vmem:[%s11619_s1 + $0x8] sm:$0xff]   ;;  %v9400_v30 = vld [vmem:[%s11619_s1] sm:$0xff]   ;;  %v9404_v55 = vld [vmem:[%s11619_s1 + $0x138] sm:$0xff]  }
   0xc   :  { %7741 = vmatpush3.bf16.msra.mxu0 %v9380_v10  ;;  %v9397_v27 = vld [vmem:[%s11619_s1 + $0x88] sm:$0xff]   ;;  %v9401_v31 = vld [vmem:[%s11619_s1 + $0x80] sm:$0xff]   ;;  %v9405_v57 = vld [vmem:[%s11619_s1 + $0x1b8] sm:$0xff]  }
   0xd   :  { %7805 = vmatpush3.bf16.msra.mxu1 %v9381_v11  ;;  %7742 = vmatprep.subr.bf16.mxu0 %v9382_v12  ;;  %v41_v32 = vld [vmem:[%s11620_s0] sm:$0xff]  ;;  %v42_v34 = vld [vmem:[%s11620_s0 + $0x8] sm:$0xff]  ;;  %v9406_v58 = vld [vmem:[%s11619_s1 + $0x170] sm:$0xff]  }
   0xe   :  { %7806 = vmatprep.subr.bf16.mxu1 %v9383_v13  ;;  %v49_v33 = vld [vmem:[%s11620_s0 + $0x40] sm:$0xff]  ;;  %v50_v37 = vld [vmem:[%s11620_s0 + $0x48] sm:$0xff]  ;;  %v9407_v60 = vld [vmem:[%s11619_s1 + $0x1f0] sm:$0xff]  }
   0xf   :  { %v7027_v35 = vcombine.low %v41_v32, %v49_v33  ;;  %v7028_v36 = vcombine.high %v41_v32, %v49_v33  ;;  %v57_v38 = vld [vmem:[%s11620_s0 + $0x80] sm:$0xff]  ;;  %v7029_v40 = vcombine.low %v42_v34, %v50_v37  ;;  %v7030_v41 = vcombine.high %v42_v34, %v50_v37  ;;  %v58_v43 = vld [vmem:[%s11620_s0 + $0x88] sm:$0xff]  ;;  %v9408_v61 = vld [vmem:[%s11619_s1 + $0x130] sm:$0xff]  }
  0x10   :  { %7743 = vmatpush3.bf16.msra.mxu0 %v9384_v14  ;;  %v65_v39 = vld [vmem:[%s11620_s0 + $0xc0] sm:$0xff]  ;;  %v66_v44 = vld [vmem:[%s11620_s0 + $0xc8] sm:$0xff]  ;;  %v9409_v63 = vld [vmem:[%s11619_s1 + $0x1b0] sm:$0xff]  }
  0x11   :  { %7807 = vmatpush3.bf16.msra.mxu1 %v9385_v15  ;;  %7744 = vmatprep.subr.bf16.mxu0 %v9386_v16  ;;  %v7044_v42 = vcombine.high %v57_v38, %v65_v39  ;;  %v7046_v45 = vcombine.high %v58_v43, %v66_v44  ;;  %v73_v46 = vld [vmem:[%s11620_s0 + $0x100] sm:$0xff]  ;;  %v74_v48 = vld [vmem:[%s11620_s0 + $0x108] sm:$0xff]  ;;  %v7043_v51 = vcombine.low %v57_v38, %v65_v39  ;;  %v9424_v33 = vld [vmem:[%s11619_s1 + $0x110] sm:$0xff]  }
  0x12   :  { %7808 = vmatprep.subr.bf16.mxu1 %v9387_v17  ;;  %1865 = vmatprep.mubr.bf16.mxu0 %v7028_v36  ;;  %v81_v47 = vld [vmem:[%s11620_s0 + $0x140] sm:$0xff]  ;;  %v82_v49 = vld [vmem:[%s11620_s0 + $0x148] sm:$0xff]  ;;  %v7045_v53 = vcombine.low %v58_v43, %v66_v44  ;;  %v9425_v36 = vld [vmem:[%s11619_s1 + $0x190] sm:$0xff]  }
  0x13   :  { %1962 = vmatprep.mubr.bf16.mxu1 %v7030_v41  ;;  %v7060_v54 = vcombine.high %v73_v46, %v81_v47  ;;  %v7062_v56 = vcombine.high %v74_v48, %v82_v49  ;;  %v89_v59 = vld [vmem:[%s11620_s0 + $0x180] sm:$0xff]  ;;  %v90_v0 = vld [vmem:[%s11620_s0 + $0x188] sm:$0xff]  ;;  %v7059_v2 = vcombine.low %v73_v46, %v81_v47  ;;  %v7061_v4 = vcombine.low %v74_v48, %v82_v49 }
  0x14   :  { %7745 = vmatpush3.bf16.msra.mxu0 %v9388_v18  ;;  %v97_v62 = vld [vmem:[%s11620_s0 + $0x1c0] sm:$0xff]  ;;  %v98_v1 = vld [vmem:[%s11620_s0 + $0x1c8] sm:$0xff] }
  0x15   :  { %7809 = vmatpush3.bf16.msra.mxu1 %v9389_v19  ;;  %7746 = vmatprep.subr.bf16.mxu0 %v9390_v20  ;;  %v9410_v3 = vld [vmem:[%s11619_s1 + $0x168] sm:$0xff]   ;;  %v7076_v5 = vcombine.high %v89_v59, %v97_v62  ;;  %v7078_v7 = vcombine.high %v90_v0, %v98_v1  ;;  %v105_v10 = vld [vmem:[%s11620_s0 + $0x200] sm:$0xff]  ;;  %v7075_v18 = vcombine.low %v89_v59, %v97_v62  ;;  %v9434_v62 = vld [vmem:[%s11619_s1 + $0x278] sm:$0xff]  }
  0x16   :  { %7810 = vmatprep.subr.bf16.mxu1 %v9391_v21  ;;  %v9411_v6 = vld [vmem:[%s11619_s1 + $0x1e8] sm:$0xff]   ;;  %v113_v11 = vld [vmem:[%s11620_s0 + $0x240] sm:$0xff]  ;;  %v7077_v19 = vcombine.low %v90_v0, %v98_v1  ;;  %v43_v0 = vld [vmem:[%s11620_s0 + $0x10] sm:$0xff] }
  0x17   :  { %v9412_v8 = vld [vmem:[%s11619_s1 + $0x128] sm:$0xff]   ;;  %v9414_v12 = vld [vmem:[%s11619_s1 + $0x160] sm:$0xff]   ;;  %v7092_v20 = vcombine.high %v105_v10, %v113_v11  ;;  %v7091_v32 = vcombine.low %v105_v10, %v113_v11  ;;  %v51_v1 = vld [vmem:[%s11620_s0 + $0x50] sm:$0xff] }
  0x18   :  { %7747 = vmatpush3.bf16.msra.mxu0 %v9392_v22  ;;  %v9413_v9 = vld [vmem:[%s11619_s1 + $0x1a8] sm:$0xff]   ;;  %v9415_v15 = vld [vmem:[%s11619_s1 + $0x1e0] sm:$0xff]   ;;  %v9418_v22 = vld [vmem:[%s11619_s1 + $0x158] sm:$0xff]  }
  0x19   :  { %7811 = vmatpush3.bf16.msra.mxu1 %v9393_v23  ;;  %7748 = vmatprep.subr.bf16.mxu0 %v9394_v24  ;;  %v106_v13 = vld [vmem:[%s11620_s0 + $0x208] sm:$0xff]  ;;  %v9416_v16 = vld [vmem:[%s11619_s1 + $0x120] sm:$0xff]   ;;  %v9419_v23 = vld [vmem:[%s11619_s1 + $0x1d8] sm:$0xff]  }
  0x1a   :  { %7812 = vmatprep.subr.bf16.mxu1 %v9395_v25  ;;  %v114_v14 = vld [vmem:[%s11620_s0 + $0x248] sm:$0xff]  ;;  %v9417_v17 = vld [vmem:[%s11619_s1 + $0x1a0] sm:$0xff]   ;;  %v60_v10 = vld [vmem:[%s11620_s0 + $0x98] sm:$0xff] }
  0x1b   :  { %v7094_v21 = vcombine.high %v106_v13, %v114_v14  ;;  %v121_v24 = vld [vmem:[%s11620_s0 + $0x280] sm:$0xff]  ;;  %v7093_v34 = vcombine.low %v106_v13, %v114_v14  ;;  %v9426_v38 = vld [vmem:[%s11619_s1 + $0x148] sm:$0xff]   ;;  %v68_v11 = vld [vmem:[%s11620_s0 + $0xd8] sm:$0xff] }
  0x1c   :  { %7749 = vmatpush3.bf16.msra.mxu0 %v9396_v26  ;;  %v129_v25 = vld [vmem:[%s11620_s0 + $0x2c0] sm:$0xff]  ;;  %v9420_v26 = vld [vmem:[%s11619_s1 + $0x118] sm:$0xff]   ;;  %v9427_v41 = vld [vmem:[%s11619_s1 + $0x1c8] sm:$0xff]  }
  0x1d   :  { %7813 = vmatpush3.bf16.msra.mxu1 %v9397_v27  ;;  %7750 = vmatprep.subr.bf16.mxu0 %v9398_v28  ;;  %v122_v27 = vld [vmem:[%s11620_s0 + $0x288] sm:$0xff]  ;;  %v137_v39 = vld [vmem:[%s11620_s0 + $0x300] sm:$0xff]  ;;  %v7107_v47 = vcombine.low %v121_v24, %v129_v25 }
  0x1e   :  { %7814 = vmatprep.subr.bf16.mxu1 %v9399_v29  ;;  %v130_v28 = vld [vmem:[%s11620_s0 + $0x2c8] sm:$0xff]  ;;  %v9421_v29 = vld [vmem:[%s11619_s1 + $0x198] sm:$0xff]   ;;  %v9430_v46 = vld [vmem:[%s11619_s1 + $0x140] sm:$0xff]  }
  0x1f   :  { %v7110_v37 = vcombine.high %v122_v27, %v130_v28  ;;  %v146_v43 = vld [vmem:[%s11620_s0 + $0x348] sm:$0xff]  ;;  %v9431_v48 = vld [vmem:[%s11619_s1 + $0x1c0] sm:$0xff]   ;;  %v7109_v49 = vcombine.low %v122_v27, %v130_v28 }
  0x20   :  { %7751 = vmatpush3.bf16.msra.mxu0 %v9400_v30  ;;  %v9422_v30 = vld [vmem:[%s11619_s1 + $0x150] sm:$0xff]   ;;  %v9428_v44 = vld [vmem:[%s11619_s1 + $0x108] sm:$0xff]  }
  0x21   :  { %7815 = vmatpush3.bf16.msra.mxu1 %v9401_v31  ;;  %7864 = vmatprep.subr.bf16.mxu0 %v9402_v50  ;;  %v9423_v31 = vld [vmem:[%s11619_s1 + $0x1d0] sm:$0xff]   ;;  %v9443_v28 = vld [vmem:[%s11619_s1 + $0x2e8] sm:$0xff]  }
  0x22   :  { %7928 = vmatprep.subr.bf16.mxu1 %v9403_v52 }
  0x23   :  { %1866 = vmatmul.mubr.bf16.vlgmr.msra.gmra.mxu0 %v7027_v35  ;;  %v7108_v35 = vcombine.high %v121_v24, %v129_v25  ;;  %v9440_v24 = vld [vmem:[%s11619_s1 + $0x230] sm:$0xff]  }
  0x24   :  { %1963 = vmatmul.mubr.bf16.vlgmr.msra.gmra.mxu1 %v7029_v40  ;;  %1873 = vmatprep.mubr.bf16.mxu0 %v7044_v42  ;;  %v145_v40 = vld [vmem:[%s11620_s0 + $0x340] sm:$0xff]  ;;  %v138_v42 = vld [vmem:[%s11620_s0 + $0x308] sm:$0xff]  ;;  %v9441_v25 = vld [vmem:[%s11619_s1 + $0x2b0] sm:$0xff]  }
  0x25   :  { %1970 = vmatprep.mubr.bf16.mxu1 %v7046_v45  ;;  %7865 = vmatpush3.bf16.msra.mxu0 %v9404_v55  ;;  %v9429_v45 = vld [vmem:[%s11619_s1 + $0x188] sm:$0xff]   ;;  %v7124_v50 = vcombine.high %v137_v39, %v145_v40  ;;  %v7126_v52 = vcombine.high %v138_v42, %v146_v43  ;;  %v161_v55 = vld [vmem:[%s11620_s0 + $0x3c0] sm:$0xff]  ;;  %v7125_v59 = vcombine.low %v138_v42, %v146_v43  ;;  %v9450_v42 = vld [vmem:[%s11619_s1 + $0x258] sm:$0xff]  }
  0x26   :  { %7929 = vmatpush3.bf16.msra.mxu1 %v9405_v57  ;;  %7866 = vmatprep.subr.bf16.mxu0 %v9406_v58  ;;  %v162_v57 = vld [vmem:[%s11620_s0 + $0x3c8] sm:$0xff]  ;;  %v7123_v58 = vcombine.low %v137_v39, %v145_v40  ;;  %v100_v39 = vld [vmem:[%s11620_s0 + $0x1d8] sm:$0xff]  ;;  %v9448_v40 = vld [vmem:[%s11619_s1 + $0x220] sm:$0xff]  }
  0x27   :  { %7930 = vmatprep.subr.bf16.mxu1 %v9407_v60 }
  0x29   :  { %7867 = vmatpush3.bf16.msra.mxu0 %v9408_v61 }
  0x2a   :  { %7931 = vmatpush3.bf16.msra.mxu1 %v9409_v63  ;;  %7868 = vmatprep.subr.bf16.mxu0 %v9410_v3  ;;  %v9435_v63 = vld [vmem:[%s11619_s1 + $0x2f8] sm:$0xff]  }
  0x2b   :  { %1874 = vmatmul.mubr.bf16.gmra.mxu0 %v7043_v51  ;;  %7932 = vmatprep.subr.bf16.mxu1 %v9411_v6  ;;  %v9432_v51 = vld [vmem:[%s11619_s1 + $0x100] sm:$0xff]   ;;  %v52_v3 = vld [vmem:[%s11620_s0 + $0x58] sm:$0xff]  ;;  %v7032_v6 = vcombine.high %v43_v0, %v51_v1 }
  0x2c   :  { %1971 = vmatmul.mubr.bf16.gmra.mxu1 %v7045_v53  ;;  %1881 = vmatprep.mubr.bf16.mxu0 %v7060_v54  ;;  %v9433_v53 = vld [vmem:[%s11619_s1 + $0x180] sm:$0xff]  }
  0x2d   :  { %1978 = vmatprep.mubr.bf16.mxu1 %v7062_v56  ;;  %7869 = vmatpush3.bf16.msra.mxu0 %v9412_v8  ;;  %v153_v54 = vld [vmem:[%s11620_s0 + $0x380] sm:$0xff]  ;;  %v154_v56 = vld [vmem:[%s11620_s0 + $0x388] sm:$0xff]  ;;  %v59_v8 = vld [vmem:[%s11620_s0 + $0x90] sm:$0xff] }
  0x2e   :  { %7933 = vmatpush3.bf16.msra.mxu1 %v9413_v9  ;;  %7870 = vmatprep.subr.bf16.mxu0 %v9414_v12  ;;  %v7140_v60 = vcombine.high %v153_v54, %v161_v55  ;;  %v7142_v61 = vcombine.high %v154_v56, %v162_v57  ;;  %v67_v9 = vld [vmem:[%s11620_s0 + $0xd0] sm:$0xff]  ;;  %v7031_v12 = vcombine.low %v43_v0, %v51_v1  ;;  %v9460_v0 = vld [vmem:[%s11619_s1 + $0x208] sm:$0xff]  }
  0x2f   :  { %7934 = vmatprep.subr.bf16.mxu1 %v9415_v15  ;;  %v7048_v14 = vcombine.high %v59_v8, %v67_v9  ;;  %v7050_v15 = vcombine.high %v60_v10, %v68_v11  ;;  %v7047_v27 = vcombine.low %v59_v8, %v67_v9  ;;  %v9461_v1 = vld [vmem:[%s11619_s1 + $0x288] sm:$0xff]   ;;  %v9464_v8 = vld [vmem:[%s11619_s1 + $0x200] sm:$0xff]  }
  0x30   :  { %v9465_v9 = vld [vmem:[%s11619_s1 + $0x280] sm:$0xff]  }
  0x31   :  { %7871 = vmatpush3.bf16.msra.mxu0 %v9416_v16  ;;  %v9436_v16 = vld [vmem:[%s11619_s1 + $0x238] sm:$0xff]  }
  0x32   :  { %7935 = vmatpush3.bf16.msra.mxu1 %v9417_v17  ;;  %7872 = vmatprep.subr.bf16.mxu0 %v9418_v22  ;;  %v9437_v17 = vld [vmem:[%s11619_s1 + $0x2b8] sm:$0xff]  }
  0x33   :  { %1882 = vmatmul.mubr.bf16.gmra.mxu0 %v7059_v2  ;;  %7936 = vmatprep.subr.bf16.mxu1 %v9419_v23  ;;  %v44_v2 = vld [vmem:[%s11620_s0 + $0x18] sm:$0xff] }
  0x34   :  { %1979 = vmatmul.mubr.bf16.gmra.mxu1 %v7061_v4  ;;  %1889 = vmatprep.mubr.bf16.mxu0 %v7076_v5  ;;  %v7139_v4 = vcombine.low %v153_v54, %v161_v55  ;;  %v7141_v5 = vcombine.low %v154_v56, %v162_v57  ;;  %v7033_v13 = vcombine.low %v44_v2, %v52_v3  ;;  %v76_v22 = vld [vmem:[%s11620_s0 + $0x118] sm:$0xff]  ;;  %v9456_v55 = vld [vmem:[%s11619_s1 + $0x210] sm:$0xff]  }
  0x35   :  { %1986 = vmatprep.mubr.bf16.mxu1 %v7078_v7  ;;  %7873 = vmatpush3.bf16.msra.mxu0 %v9420_v26  ;;  %v7034_v7 = vcombine.high %v44_v2, %v52_v3  ;;  %v84_v23 = vld [vmem:[%s11620_s0 + $0x158] sm:$0xff]  ;;  %v9442_v26 = vld [vmem:[%s11619_s1 + $0x268] sm:$0xff]   ;;  %v9457_v57 = vld [vmem:[%s11619_s1 + $0x290] sm:$0xff]  }
  0x36   :  { %7937 = vmatpush3.bf16.msra.mxu1 %v9421_v29  ;;  %7874 = vmatprep.subr.bf16.mxu0 %v9422_v30  ;;  %v7049_v29 = vcombine.low %v60_v10, %v68_v11  ;;  %v108_v54 = vld [vmem:[%s11620_s0 + $0x218] sm:$0xff]  ;;  %v9462_v2 = vld [vmem:[%s11619_s1 + $0x240] sm:$0xff]   ;;  %v123_v3 = vld [vmem:[%s11620_s0 + $0x290] sm:$0xff] }
  0x37   :  { %7938 = vmatprep.subr.bf16.mxu1 %v9423_v31  ;;  %v9444_v31 = vld [vmem:[%s11619_s1 + $0x228] sm:$0xff]   ;;  %v116_v56 = vld [vmem:[%s11620_s0 + $0x258] sm:$0xff] }
  0x38   :  { %v9466_v10 = vld [vmem:[%s11619_s1 + $0x378] sm:$0xff]  }
  0x39   :  { %7875 = vmatpush3.bf16.msra.mxu0 %v9424_v33  ;;  %v9445_v33 = vld [vmem:[%s11619_s1 + $0x2a8] sm:$0xff]  }
  0x3a   :  { %7939 = vmatpush3.bf16.msra.mxu1 %v9425_v36  ;;  %7876 = vmatprep.subr.bf16.mxu0 %v9426_v38  ;;  %v99_v36 = vld [vmem:[%s11620_s0 + $0x1d0] sm:$0xff]  ;;  %v92_v38 = vld [vmem:[%s11620_s0 + $0x198] sm:$0xff] }
  0x3b   :  { %1890 = vmatmul.mubr.bf16.gmra.mxu0 %v7075_v18  ;;  %7940 = vmatprep.subr.bf16.mxu1 %v9427_v41  ;;  %v9438_v18 = vld [vmem:[%s11619_s1 + $0x270] sm:$0xff]   ;;  %v9449_v41 = vld [vmem:[%s11619_s1 + $0x2a0] sm:$0xff]  }
  0x3c   :  { %1987 = vmatmul.mubr.bf16.gmra.mxu1 %v7077_v19  ;;  %1897 = vmatprep.mubr.bf16.mxu0 %v7092_v20  ;;  %v75_v19 = vld [vmem:[%s11620_s0 + $0x110] sm:$0xff] }
  0x3d   :  { %1994 = vmatprep.mubr.bf16.mxu1 %v7094_v21  ;;  %7877 = vmatpush3.bf16.msra.mxu0 %v9428_v44  ;;  %v83_v20 = vld [vmem:[%s11620_s0 + $0x150] sm:$0xff]  ;;  %v9451_v44 = vld [vmem:[%s11619_s1 + $0x2d8] sm:$0xff]  }
  0x3e   :  { %7941 = vmatpush3.bf16.msra.mxu1 %v9429_v45  ;;  %7878 = vmatprep.subr.bf16.mxu0 %v9430_v46  ;;  %v9439_v21 = vld [vmem:[%s11619_s1 + $0x2f0] sm:$0xff]   ;;  %v7064_v30 = vcombine.high %v75_v19, %v83_v20  ;;  %v7063_v43 = vcombine.low %v75_v19, %v83_v20  ;;  %v7065_v45 = vcombine.low %v76_v22, %v84_v23  ;;  %v148_v19 = vld [vmem:[%s11620_s0 + $0x358] sm:$0xff] }
  0x3f   :  { %7942 = vmatprep.subr.bf16.mxu1 %v9431_v48  ;;  %v7082_v48 = vcombine.high %v92_v38, %v100_v39 }
  0x41   :  { %7879 = vmatpush3.bf16.msra.mxu0 %v9432_v51  ;;  %v9455_v51 = vld [vmem:[%s11619_s1 + $0x2d0] sm:$0xff]  }
  0x42   :  { %7943 = vmatpush3.bf16.msra.mxu1 %v9433_v53  ;;  %7992 = vmatprep.subr.bf16.mxu0 %v9434_v62  ;;  %v115_v53 = vld [vmem:[%s11620_s0 + $0x250] sm:$0xff] }
  0x43   :  { %1898 = vmatmul.mubr.bf16.gmra.mxu0 %v7091_v32  ;;  %8056 = vmatprep.subr.bf16.mxu1 %v9435_v63  ;;  %v7066_v32 = vcombine.high %v76_v22, %v84_v23  ;;  %v7098_v63 = vcombine.high %v108_v54, %v116_v56 }
  0x44   :  { %1995 = vmatmul.mubr.bf16.gmra.mxu1 %v7093_v34  ;;  %1905 = vmatprep.mubr.bf16.mxu0 %v7108_v35  ;;  %v9446_v34 = vld [vmem:[%s11619_s1 + $0x260] sm:$0xff]   ;;  %v91_v35 = vld [vmem:[%s11620_s0 + $0x190] sm:$0xff] }
  0x45   :  { %2002 = vmatprep.mubr.bf16.mxu1 %v7110_v37  ;;  %v9447_v37 = vld [vmem:[%s11619_s1 + $0x2e0] sm:$0xff]   ;;  %v7080_v46 = vcombine.high %v91_v35, %v99_v36 }
  0x4b   :  { %1906 = vmatmul.mubr.bf16.gmra.mxu0 %v7107_v47  ;;  %v9452_v47 = vld [vmem:[%s11619_s1 + $0x218] sm:$0xff]  }
  0x4c   :  { %2003 = vmatmul.mubr.bf16.gmra.mxu1 %v7109_v49  ;;  %1913 = vmatprep.mubr.bf16.mxu0 %v7124_v50  ;;  %v9453_v49 = vld [vmem:[%s11619_s1 + $0x298] sm:$0xff]   ;;  %v9454_v50 = vld [vmem:[%s11619_s1 + $0x250] sm:$0xff]  }
  0x4d   :  { %2010 = vmatprep.mubr.bf16.mxu1 %v7126_v52  ;;  %v107_v52 = vld [vmem:[%s11620_s0 + $0x210] sm:$0xff] }
  0x4e   :  { %v7096_v62 = vcombine.high %v107_v52, %v115_v53  ;;  %v7095_v11 = vcombine.low %v107_v52, %v115_v53  ;;  %v77_v52 = vld [vmem:[%s11620_s0 + $0x120] sm:$0xff] }
  0x4f   :  { %v85_v53 = vld [vmem:[%s11620_s0 + $0x160] sm:$0xff] }
  0x53   :  { %1914 = vmatmul.mubr.bf16.gmra.mxu0 %v7123_v58  ;;  %v9458_v58 = vld [vmem:[%s11619_s1 + $0x248] sm:$0xff]  }
  0x54   :  { %2011 = vmatmul.mubr.bf16.gmra.mxu1 %v7125_v59  ;;  %1921 = vmatprep.mubr.bf16.mxu0 %v7140_v60  ;;  %v7079_v59 = vcombine.low %v91_v35, %v99_v36  ;;  %v9459_v60 = vld [vmem:[%s11619_s1 + $0x2c8] sm:$0xff]  }
  0x55   :  { %2018 = vmatprep.mubr.bf16.mxu1 %v7142_v61  ;;  %v7081_v61 = vcombine.low %v92_v38, %v100_v39  ;;  %v54_v35 = vld [vmem:[%s11620_s0 + $0x68] sm:$0xff] }
  0x5b   :  { %1922 = vmatmul.mubr.bf16.gmra.mxu0 %v7139_v4  ;;  %v131_v4 = vld [vmem:[%s11620_s0 + $0x2d0] sm:$0xff] }
  0x5c   :  { %2019 = vmatmul.mubr.bf16.gmra.mxu1 %v7141_v5  ;;  %2059 = vmatprep.mubr.bf16.mxu0 %v7032_v6  ;;  %v9463_v5 = vld [vmem:[%s11619_s1 + $0x2c0] sm:$0xff]   ;;  %v124_v6 = vld [vmem:[%s11620_s0 + $0x298] sm:$0xff]  ;;  %v7111_v20 = vcombine.low %v123_v3, %v131_v4 }
  0x5d   :  { %2156 = vmatprep.mubr.bf16.mxu1 %v7034_v7  ;;  %v132_v7 = vld [vmem:[%s11620_s0 + $0x2d8] sm:$0xff] }
  0x63   :  { %2060 = vmatmul.mubr.bf16.vlgmr.msra.gmra.mxu0 %v7031_v12  ;;  %v9467_v12 = vld [vmem:[%s11619_s1 + $0x3f8] sm:$0xff]  }
  0x64   :  { %2157 = vmatmul.mubr.bf16.vlgmr.msra.gmra.mxu1 %v7033_v13  ;;  %2067 = vmatprep.mubr.bf16.mxu0 %v7048_v14  ;;  %v7097_v13 = vcombine.low %v108_v54, %v116_v56  ;;  %v7112_v14 = vcombine.high %v123_v3, %v131_v4  ;;  %v78_v54 = vld [vmem:[%s11620_s0 + $0x128] sm:$0xff]  ;;  %v9479_v3 = vld [vmem:[%s11619_s1 + $0x3e0] sm:$0xff]  }
  0x65   :  { %2164 = vmatprep.mubr.bf16.mxu1 %v7050_v15  ;;  %7993 = vmatpush3.bf16.msra.mxu0 %v9436_v16  ;;  %v7114_v15 = vcombine.high %v124_v6, %v132_v7  ;;  %v139_v16 = vld [vmem:[%s11620_s0 + $0x310] sm:$0xff]  ;;  %v86_v56 = vld [vmem:[%s11620_s0 + $0x168] sm:$0xff]  ;;  %v93_v4 = vld [vmem:[%s11620_s0 + $0x1a0] sm:$0xff] }
  0x66   :  { %8057 = vmatpush3.bf16.msra.mxu1 %v9437_v17  ;;  %7994 = vmatprep.subr.bf16.mxu0 %v9438_v18  ;;  %v147_v17 = vld [vmem:[%s11620_s0 + $0x350] sm:$0xff]  ;;  %v140_v18 = vld [vmem:[%s11620_s0 + $0x318] sm:$0xff] }
  0x67   :  { %8058 = vmatprep.subr.bf16.mxu1 %v9439_v21  ;;  %v7113_v21 = vcombine.low %v124_v6, %v132_v7  ;;  %v7128_v22 = vcombine.high %v139_v16, %v147_v17  ;;  %v7130_v23 = vcombine.high %v140_v18, %v148_v19  ;;  %v94_v6 = vld [vmem:[%s11620_s0 + $0x1a8] sm:$0xff]  ;;  %v9480_v7 = vld [vmem:[%s11619_s1 + $0x320] sm:$0xff]  }
  0x69   :  { %7995 = vmatpush3.bf16.msra.mxu0 %v9440_v24  ;;  %v155_v24 = vld [vmem:[%s11620_s0 + $0x390] sm:$0xff] }
  0x6a   :  { %8059 = vmatpush3.bf16.msra.mxu1 %v9441_v25  ;;  %7996 = vmatprep.subr.bf16.mxu0 %v9442_v26  ;;  %v163_v25 = vld [vmem:[%s11620_s0 + $0x3d0] sm:$0xff]  ;;  %v156_v26 = vld [vmem:[%s11620_s0 + $0x398] sm:$0xff] }
  0x6b   :  { %2068 = vmatmul.mubr.bf16.gmra.mxu0 %v7047_v27  ;;  %8060 = vmatprep.subr.bf16.mxu1 %v9443_v28  ;;  %v164_v27 = vld [vmem:[%s11620_s0 + $0x3d8] sm:$0xff]  ;;  %v7127_v28 = vcombine.low %v139_v16, %v147_v17  ;;  %v7143_v36 = vcombine.low %v155_v24, %v163_v25 }
  0x6c   :  { %2165 = vmatmul.mubr.bf16.gmra.mxu1 %v7049_v29  ;;  %2075 = vmatprep.mubr.bf16.mxu0 %v7064_v30  ;;  %v7129_v29 = vcombine.low %v140_v18, %v148_v19  ;;  %v7144_v30 = vcombine.high %v155_v24, %v163_v25  ;;  %v9484_v16 = vld [vmem:[%s11619_s1 + $0x318] sm:$0xff]   ;;  %v9486_v18 = vld [vmem:[%s11619_s1 + $0x350] sm:$0xff]   ;;  %v118_v24 = vld [vmem:[%s11620_s0 + $0x268] sm:$0xff] }
  0x6d   :  { %2172 = vmatprep.mubr.bf16.mxu1 %v7066_v32  ;;  %7997 = vmatpush3.bf16.msra.mxu0 %v9444_v31  ;;  %v7146_v31 = vcombine.high %v156_v26, %v164_v27  ;;  %v45_v32 = vld [vmem:[%s11620_s0 + $0x20] sm:$0xff]  ;;  %v9485_v17 = vld [vmem:[%s11619_s1 + $0x398] sm:$0xff]   ;;  %v9487_v19 = vld [vmem:[%s11619_s1 + $0x3d0] sm:$0xff]  }
  0x6e   :  { %8061 = vmatpush3.bf16.msra.mxu1 %v9445_v33  ;;  %7998 = vmatprep.subr.bf16.mxu0 %v9446_v34  ;;  %v53_v33 = vld [vmem:[%s11620_s0 + $0x60] sm:$0xff]  ;;  %v46_v34 = vld [vmem:[%s11620_s0 + $0x28] sm:$0xff]  ;;  %v9489_v25 = vld [vmem:[%s11619_s1 + $0x390] sm:$0xff]  }
  0x6f   :  { %8062 = vmatprep.subr.bf16.mxu1 %v9447_v37  ;;  %v7145_v37 = vcombine.low %v156_v26, %v164_v27  ;;  %v7036_v38 = vcombine.high %v45_v32, %v53_v33  ;;  %v7038_v39 = vcombine.high %v46_v34, %v54_v35  ;;  %v9490_v26 = vld [vmem:[%s11619_s1 + $0x348] sm:$0xff]  }
  0x71   :  { %7999 = vmatpush3.bf16.msra.mxu0 %v9448_v40  ;;  %v61_v40 = vld [vmem:[%s11620_s0 + $0xa0] sm:$0xff] }
  0x72   :  { %8063 = vmatpush3.bf16.msra.mxu1 %v9449_v41  ;;  %8000 = vmatprep.subr.bf16.mxu0 %v9450_v42  ;;  %v69_v41 = vld [vmem:[%s11620_s0 + $0xe0] sm:$0xff]  ;;  %v62_v42 = vld [vmem:[%s11620_s0 + $0xa8] sm:$0xff] }
  0x73   :  { %2076 = vmatmul.mubr.bf16.gmra.mxu0 %v7063_v43  ;;  %8064 = vmatprep.subr.bf16.mxu1 %v9451_v44  ;;  %v70_v43 = vld [vmem:[%s11620_s0 + $0xe8] sm:$0xff]  ;;  %v7035_v44 = vcombine.low %v45_v32, %v53_v33 }
  0x74   :  { %2173 = vmatmul.mubr.bf16.gmra.mxu1 %v7065_v45  ;;  %2083 = vmatprep.mubr.bf16.mxu0 %v7080_v46  ;;  %v7037_v45 = vcombine.low %v46_v34, %v54_v35  ;;  %v7052_v46 = vcombine.high %v61_v40, %v69_v41  ;;  %v9492_v32 = vld [vmem:[%s11619_s1 + $0x308] sm:$0xff]   ;;  %v9494_v34 = vld [vmem:[%s11619_s1 + $0x340] sm:$0xff]  }
  0x75   :  { %2180 = vmatprep.mubr.bf16.mxu1 %v7082_v48  ;;  %8001 = vmatpush3.bf16.msra.mxu0 %v9452_v47  ;;  %v7054_v47 = vcombine.high %v62_v42, %v70_v43  ;;  %v9468_v48 = vld [vmem:[%s11619_s1 + $0x338] sm:$0xff]   ;;  %v9493_v33 = vld [vmem:[%s11619_s1 + $0x388] sm:$0xff]   ;;  %v9495_v35 = vld [vmem:[%s11619_s1 + $0x3c0] sm:$0xff]  }
  0x76   :  { %8065 = vmatpush3.bf16.msra.mxu1 %v9453_v49  ;;  %8002 = vmatprep.subr.bf16.mxu0 %v9454_v50  ;;  %v9469_v49 = vld [vmem:[%s11619_s1 + $0x3b8] sm:$0xff]   ;;  %v9470_v50 = vld [vmem:[%s11619_s1 + $0x370] sm:$0xff]  }
  0x77   :  { %8066 = vmatprep.subr.bf16.mxu1 %v9455_v51  ;;  %v9471_v51 = vld [vmem:[%s11619_s1 + $0x3f0] sm:$0xff]  }
  0x79   :  { %8003 = vmatpush3.bf16.msra.mxu0 %v9456_v55  ;;  %v9472_v55 = vld [vmem:[%s11619_s1 + $0x330] sm:$0xff]  }
  0x7a   :  { %8067 = vmatpush3.bf16.msra.mxu1 %v9457_v57  ;;  %8004 = vmatprep.subr.bf16.mxu0 %v9458_v58  ;;  %v9473_v57 = vld [vmem:[%s11619_s1 + $0x3b0] sm:$0xff]   ;;  %v9474_v58 = vld [vmem:[%s11619_s1 + $0x368] sm:$0xff]  }
  0x7b   :  { %2084 = vmatmul.mubr.bf16.gmra.mxu0 %v7079_v59  ;;  %8068 = vmatprep.subr.bf16.mxu1 %v9459_v60  ;;  %v7051_v59 = vcombine.low %v61_v40, %v69_v41  ;;  %v9475_v60 = vld [vmem:[%s11619_s1 + $0x3e8] sm:$0xff]   ;;  %v9497_v41 = vld [vmem:[%s11619_s1 + $0x380] sm:$0xff]  }
  0x7c   :  { %2181 = vmatmul.mubr.bf16.gmra.mxu1 %v7081_v61  ;;  %2091 = vmatprep.mubr.bf16.mxu0 %v7096_v62  ;;  %v7053_v61 = vcombine.low %v62_v42, %v70_v43  ;;  %v7068_v62 = vcombine.high %v77_v52, %v85_v53  ;;  %v134_v40 = vld [vmem:[%s11620_s0 + $0x2e8] sm:$0xff] }
  0x7d   :  { %2188 = vmatprep.mubr.bf16.mxu1 %v7098_v63  ;;  %8005 = vmatpush3.bf16.msra.mxu0 %v9460_v0  ;;  %v7070_v63 = vcombine.high %v78_v54, %v86_v56  ;;  %v9476_v0 = vld [vmem:[%s11619_s1 + $0x328] sm:$0xff]  }
  0x7e   :  { %8069 = vmatpush3.bf16.msra.mxu1 %v9461_v1  ;;  %8006 = vmatprep.subr.bf16.mxu0 %v9462_v2  ;;  %v9477_v1 = vld [vmem:[%s11619_s1 + $0x3a8] sm:$0xff]   ;;  %v9478_v2 = vld [vmem:[%s11619_s1 + $0x360] sm:$0xff]  }
  0x7f   :  { %8070 = vmatprep.subr.bf16.mxu1 %v9463_v5  ;;  %v101_v5 = vld [vmem:[%s11620_s0 + $0x1e0] sm:$0xff] }
  0x80   :  { %v7083_v27 = vcombine.low %v93_v4, %v101_v5 }
  0x81   :  { %8007 = vmatpush3.bf16.msra.mxu0 %v9464_v8  ;;  %v102_v8 = vld [vmem:[%s11620_s0 + $0x1e8] sm:$0xff] }
  0x82   :  { %8071 = vmatpush3.bf16.msra.mxu1 %v9465_v9  ;;  %8120 = vmatprep.subr.bf16.mxu0 %v9466_v10  ;;  %v9481_v9 = vld [vmem:[%s11619_s1 + $0x3a0] sm:$0xff]   ;;  %v9482_v10 = vld [vmem:[%s11619_s1 + $0x358] sm:$0xff]  }
  0x83   :  { %2092 = vmatmul.mubr.bf16.gmra.mxu0 %v7095_v11  ;;  %8184 = vmatprep.subr.bf16.mxu1 %v9467_v12  ;;  %v7067_v11 = vcombine.low %v77_v52, %v85_v53  ;;  %v9483_v12 = vld [vmem:[%s11619_s1 + $0x3d8] sm:$0xff]  }
  0x84   :  { %2189 = vmatmul.mubr.bf16.gmra.mxu1 %v7097_v13  ;;  %2099 = vmatprep.mubr.bf16.mxu0 %v7112_v14  ;;  %v7069_v13 = vcombine.low %v78_v54, %v86_v56  ;;  %v7084_v14 = vcombine.high %v93_v4, %v101_v5  ;;  %v157_v54 = vld [vmem:[%s11620_s0 + $0x3a0] sm:$0xff]  ;;  %v158_v56 = vld [vmem:[%s11620_s0 + $0x3a8] sm:$0xff] }
  0x85   :  { %2196 = vmatprep.mubr.bf16.mxu1 %v7114_v15  ;;  %v7086_v15 = vcombine.high %v94_v6, %v102_v8 }
  0x8b   :  { %2100 = vmatmul.mubr.bf16.gmra.mxu0 %v7111_v20  ;;  %v109_v20 = vld [vmem:[%s11620_s0 + $0x220] sm:$0xff] }
  0x8c   :  { %2197 = vmatmul.mubr.bf16.gmra.mxu1 %v7113_v21  ;;  %2107 = vmatprep.mubr.bf16.mxu0 %v7128_v22  ;;  %v117_v21 = vld [vmem:[%s11620_s0 + $0x260] sm:$0xff]  ;;  %v110_v22 = vld [vmem:[%s11620_s0 + $0x228] sm:$0xff] }
  0x8d   :  { %2204 = vmatprep.mubr.bf16.mxu1 %v7130_v23  ;;  %v9488_v23 = vld [vmem:[%s11619_s1 + $0x310] sm:$0xff]   ;;  %v7099_v42 = vcombine.low %v109_v20, %v117_v21  ;;  %v7101_v43 = vcombine.low %v110_v22, %v118_v24 }
  0x93   :  { %2108 = vmatmul.mubr.bf16.gmra.mxu0 %v7127_v28  ;;  %v9491_v28 = vld [vmem:[%s11619_s1 + $0x3c8] sm:$0xff]  }
  0x94   :  { %2205 = vmatmul.mubr.bf16.gmra.mxu1 %v7129_v29  ;;  %2115 = vmatprep.mubr.bf16.mxu0 %v7144_v30  ;;  %v7085_v29 = vcombine.low %v94_v6, %v102_v8  ;;  %v7100_v30 = vcombine.high %v109_v20, %v117_v21  ;;  %v63_v6 = vld [vmem:[%s11620_s0 + $0xb0] sm:$0xff]  ;;  %v64_v8 = vld [vmem:[%s11620_s0 + $0xb8] sm:$0xff] }
  0x95   :  { %2212 = vmatprep.mubr.bf16.mxu1 %v7146_v31  ;;  %v7102_v31 = vcombine.high %v110_v22, %v118_v24  ;;  %v80_v21 = vld [vmem:[%s11620_s0 + $0x138] sm:$0xff] }
  0x96   :  { %v88_v22 = vld [vmem:[%s11620_s0 + $0x178] sm:$0xff] }
  0x9b   :  { %2116 = vmatmul.mubr.bf16.gmra.mxu0 %v7143_v36  ;;  %v125_v36 = vld [vmem:[%s11620_s0 + $0x2a0] sm:$0xff] }
  0x9c   :  { %2213 = vmatmul.mubr.bf16.gmra.mxu1 %v7145_v37  ;;  %2253 = vmatprep.mubr.bf16.mxu0 %v7036_v38  ;;  %v133_v37 = vld [vmem:[%s11620_s0 + $0x2e0] sm:$0xff] }
  0x9d   :  { %2350 = vmatprep.mubr.bf16.mxu1 %v7038_v39  ;;  %v9496_v38 = vld [vmem:[%s11619_s1 + $0x300] sm:$0xff]   ;;  %v126_v39 = vld [vmem:[%s11620_s0 + $0x2a8] sm:$0xff] }
  0xa3   :  { %2254 = vmatmul.mubr.bf16.vlgmr.msra.gmra.mxu0 %v7035_v44  ;;  %v7116_v44 = vcombine.high %v125_v36, %v133_v37 }
  0xa4   :  { %2351 = vmatmul.mubr.bf16.vlgmr.msra.gmra.mxu1 %v7037_v45  ;;  %2261 = vmatprep.mubr.bf16.mxu0 %v7052_v46  ;;  %v7118_v45 = vcombine.high %v126_v39, %v134_v40  ;;  %v141_v46 = vld [vmem:[%s11620_s0 + $0x320] sm:$0xff] }
  0xa5   :  { %2358 = vmatprep.mubr.bf16.mxu1 %v7054_v47  ;;  %8121 = vmatpush3.bf16.msra.mxu0 %v9468_v48  ;;  %v149_v47 = vld [vmem:[%s11620_s0 + $0x360] sm:$0xff]  ;;  %v142_v48 = vld [vmem:[%s11620_s0 + $0x328] sm:$0xff] }
  0xa6   :  { %8185 = vmatpush3.bf16.msra.mxu1 %v9469_v49  ;;  %8122 = vmatprep.subr.bf16.mxu0 %v9470_v50  ;;  %v150_v49 = vld [vmem:[%s11620_s0 + $0x368] sm:$0xff]  ;;  %v7115_v50 = vcombine.low %v125_v36, %v133_v37  ;;  %v7132_v52 = vcombine.high %v141_v46, %v149_v47 }
  0xa7   :  { %8186 = vmatprep.subr.bf16.mxu1 %v9471_v51  ;;  %v7117_v51 = vcombine.low %v126_v39, %v134_v40  ;;  %v7134_v53 = vcombine.high %v142_v48, %v150_v49  ;;  %v95_v39 = vld [vmem:[%s11620_s0 + $0x1b0] sm:$0xff] }
  0xa8   :  { %v103_v40 = vld [vmem:[%s11620_s0 + $0x1f0] sm:$0xff] }
  0xa9   :  { %8123 = vmatpush3.bf16.msra.mxu0 %v9472_v55  ;;  %v165_v55 = vld [vmem:[%s11620_s0 + $0x3e0] sm:$0xff] }
  0xaa   :  { %8187 = vmatpush3.bf16.msra.mxu1 %v9473_v57  ;;  %8124 = vmatprep.subr.bf16.mxu0 %v9474_v58  ;;  %v166_v57 = vld [vmem:[%s11620_s0 + $0x3e8] sm:$0xff]  ;;  %v7131_v58 = vcombine.low %v141_v46, %v149_v47 }
  0xab   :  { %2262 = vmatmul.mubr.bf16.gmra.mxu0 %v7051_v59  ;;  %8188 = vmatprep.subr.bf16.mxu1 %v9475_v60  ;;  %v7133_v59 = vcombine.low %v142_v48, %v150_v49  ;;  %v7148_v60 = vcombine.high %v157_v54, %v165_v55  ;;  %v7073_v49 = vcombine.low %v80_v21, %v88_v22 }
  0xac   :  { %2359 = vmatmul.mubr.bf16.gmra.mxu1 %v7053_v61  ;;  %2269 = vmatprep.mubr.bf16.mxu0 %v7068_v62  ;;  %v7150_v61 = vcombine.high %v158_v56, %v166_v57  ;;  %v47_v62 = vld [vmem:[%s11620_s0 + $0x30] sm:$0xff] }
  0xad   :  { %2366 = vmatprep.mubr.bf16.mxu1 %v7070_v63  ;;  %8125 = vmatpush3.bf16.msra.mxu0 %v9476_v0  ;;  %v55_v63 = vld [vmem:[%s11620_s0 + $0x70] sm:$0xff]  ;;  %v48_v0 = vld [vmem:[%s11620_s0 + $0x38] sm:$0xff] }
  0xae   :  { %8189 = vmatpush3.bf16.msra.mxu1 %v9477_v1  ;;  %8126 = vmatprep.subr.bf16.mxu0 %v9478_v2  ;;  %v56_v1 = vld [vmem:[%s11620_s0 + $0x78] sm:$0xff]  ;;  %v7147_v2 = vcombine.low %v157_v54, %v165_v55  ;;  %v7040_v4 = vcombine.high %v47_v62, %v55_v63 }
  0xaf   :  { %8190 = vmatprep.subr.bf16.mxu1 %v9479_v3  ;;  %v7149_v3 = vcombine.low %v158_v56, %v166_v57  ;;  %v7042_v5 = vcombine.high %v48_v0, %v56_v1 }
  0xb1   :  { %8127 = vmatpush3.bf16.msra.mxu0 %v9480_v7  ;;  %v71_v7 = vld [vmem:[%s11620_s0 + $0xf0] sm:$0xff] }
  0xb2   :  { %8191 = vmatpush3.bf16.msra.mxu1 %v9481_v9  ;;  %8128 = vmatprep.subr.bf16.mxu0 %v9482_v10  ;;  %v72_v9 = vld [vmem:[%s11620_s0 + $0xf8] sm:$0xff]  ;;  %v7039_v10 = vcombine.low %v47_v62, %v55_v63  ;;  %v119_v62 = vld [vmem:[%s11620_s0 + $0x270] sm:$0xff] }
  0xb3   :  { %2270 = vmatmul.mubr.bf16.gmra.mxu0 %v7067_v11  ;;  %8192 = vmatprep.subr.bf16.mxu1 %v9483_v12  ;;  %v7041_v11 = vcombine.low %v48_v0, %v56_v1  ;;  %v7056_v12 = vcombine.high %v63_v6, %v71_v7  ;;  %v112_v1 = vld [vmem:[%s11620_s0 + $0x238] sm:$0xff] }
  0xb4   :  { %2367 = vmatmul.mubr.bf16.gmra.mxu1 %v7069_v13  ;;  %2277 = vmatprep.mubr.bf16.mxu0 %v7084_v14  ;;  %v7058_v13 = vcombine.high %v64_v8, %v72_v9 }
  0xb5   :  { %2374 = vmatprep.mubr.bf16.mxu1 %v7086_v15  ;;  %8129 = vmatpush3.bf16.msra.mxu0 %v9484_v16 }
  0xb6   :  { %8193 = vmatpush3.bf16.msra.mxu1 %v9485_v17  ;;  %8130 = vmatprep.subr.bf16.mxu0 %v9486_v18  ;;  %v79_v17 = vld [vmem:[%s11620_s0 + $0x130] sm:$0xff] }
  0xb7   :  { %8194 = vmatprep.subr.bf16.mxu1 %v9487_v19  ;;  %v87_v18 = vld [vmem:[%s11620_s0 + $0x170] sm:$0xff] }
  0xb8   :  { %v7071_v47 = vcombine.low %v79_v17, %v87_v18 }
  0xb9   :  { %8131 = vmatpush3.bf16.msra.mxu0 %v9488_v23 }
  0xba   :  { %8195 = vmatpush3.bf16.msra.mxu1 %v9489_v25  ;;  %8132 = vmatprep.subr.bf16.mxu0 %v9490_v26  ;;  %v7055_v25 = vcombine.low %v63_v6, %v71_v7 }
  0xbb   :  { %2278 = vmatmul.mubr.bf16.gmra.mxu0 %v7083_v27  ;;  %8196 = vmatprep.subr.bf16.mxu1 %v9491_v28  ;;  %v7057_v27 = vcombine.low %v64_v8, %v72_v9  ;;  %v7072_v28 = vcombine.high %v79_v17, %v87_v18 }
  0xbc   :  { %2375 = vmatmul.mubr.bf16.gmra.mxu1 %v7085_v29  ;;  %2285 = vmatprep.mubr.bf16.mxu0 %v7100_v30 }
  0xbd   :  { %2382 = vmatprep.mubr.bf16.mxu1 %v7102_v31  ;;  %8133 = vmatpush3.bf16.msra.mxu0 %v9492_v32  ;;  %v7074_v31 = vcombine.high %v80_v21, %v88_v22 }
  0xbe   :  { %8197 = vmatpush3.bf16.msra.mxu1 %v9493_v33  ;;  %8134 = vmatprep.subr.bf16.mxu0 %v9494_v34 }
  0xbf   :  { %8198 = vmatprep.subr.bf16.mxu1 %v9495_v35 }
  0xc1   :  { %8135 = vmatpush3.bf16.msra.mxu0 %v9496_v38 }
  0xc2   :  { %8199 = vmatpush3.bf16.msra.mxu1 %v9497_v41 }
  0xc3   :  { %2286 = vmatmul.mubr.bf16.gmra.mxu0 %v7099_v42 }
  0xc4   :  { %2383 = vmatmul.mubr.bf16.gmra.mxu1 %v7101_v43  ;;  %2293 = vmatprep.mubr.bf16.mxu0 %v7116_v44  ;;  %v96_v43 = vld [vmem:[%s11620_s0 + $0x1b8] sm:$0xff] }
  0xc5   :  { %2390 = vmatprep.mubr.bf16.mxu1 %v7118_v45  ;;  %v104_v44 = vld [vmem:[%s11620_s0 + $0x1f8] sm:$0xff] }
  0xc6   :  { %v7089_v7 = vcombine.low %v96_v43, %v104_v44 }
  0xcb   :  { %2294 = vmatmul.mubr.bf16.gmra.mxu0 %v7115_v50  ;;  %v7088_v50 = vcombine.high %v95_v39, %v103_v40 }
  0xcc   :  { %2391 = vmatmul.mubr.bf16.gmra.mxu1 %v7117_v51  ;;  %2301 = vmatprep.mubr.bf16.mxu0 %v7132_v52 }
  0xcd   :  { %2398 = vmatprep.mubr.bf16.mxu1 %v7134_v53  ;;  %v7090_v53 = vcombine.high %v96_v43, %v104_v44  ;;  %v143_v43 = vld [vmem:[%s11620_s0 + $0x330] sm:$0xff] }
  0xce   :  { %v151_v44 = vld [vmem:[%s11620_s0 + $0x370] sm:$0xff] }
  0xd3   :  { %2302 = vmatmul.mubr.bf16.gmra.mxu0 %v7131_v58 }
  0xd4   :  { %2399 = vmatmul.mubr.bf16.gmra.mxu1 %v7133_v59  ;;  %2309 = vmatprep.mubr.bf16.mxu0 %v7148_v60 }
  0xd5   :  { %2406 = vmatprep.mubr.bf16.mxu1 %v7150_v61  ;;  %v111_v61 = vld [vmem:[%s11620_s0 + $0x230] sm:$0xff] }
  0xd6   :  { %v7104_v8 = vcombine.high %v111_v61, %v119_v62 }
  0xdb   :  { %2310 = vmatmul.mubr.bf16.gmra.mxu0 %v7147_v2  ;;  %v120_v2 = vld [vmem:[%s11620_s0 + $0x278] sm:$0xff] }
  0xdc   :  { %2407 = vmatmul.mubr.bf16.gmra.mxu1 %v7149_v3  ;;  %2447 = vmatprep.mubr.bf16.mxu0 %v7040_v4 }
  0xdd   :  { %2544 = vmatprep.mubr.bf16.mxu1 %v7042_v5  ;;  %v7087_v5 = vcombine.low %v95_v39, %v103_v40 }
  0xe3   :  { %v7752_v14 = vpop.f32.mrf.mxu0  ;;  %2448 = vmatmul.mubr.bf16.vlgmr.msra.gmra.mxu0 %v7039_v10 }
  0xe4   :  { %v7816_v15 = vpop.f32.mrf.mxu1  ;;  %2545 = vmatmul.mubr.bf16.vlgmr.msra.gmra.mxu1 %v7041_v11  ;;  %2455 = vmatprep.mubr.bf16.mxu0 %v7056_v12  ;;  %v7106_v11 = vcombine.high %v112_v1, %v120_v2 }
  0xe5   :  { %v7753_v16 = vpop.f32.mrf.mxu0  ;;  %2552 = vmatprep.mubr.bf16.mxu1 %v7058_v13 }
  0xe6   :  { %v7754_v19 = vadd.f32 %v7753_v16, %v7752_v14  ;;  %v7817_v20 = vpop.f32.mrf.mxu1 }
  0xe7   :  { %v7818_v23 = vadd.f32 %v7817_v20, %v7816_v15  ;;  %v7755_v24 = vpop.f32.mrf.mxu0  ;;  %v135_v20 = vld [vmem:[%s11620_s0 + $0x2f0] sm:$0xff] }
  0xe8   :  { %v7819_v26 = vpop.f32.mrf.mxu1 }
  0xe9   :  { %v10400_v29 = vadd.f32 %v7818_v23, %v7754_v19  ;;  %v7756_v30 = vpop.f32.mrf.mxu0  ;;  %v127_v19 = vld [vmem:[%s11620_s0 + $0x2b0] sm:$0xff]  ;;  %v128_v23 = vld [vmem:[%s11620_s0 + $0x2b8] sm:$0xff] }
  0xea   :  { %v7757_v32 = vadd.f32 %v7756_v30, %v7755_v24  ;;  %v7820_v33 = vpop.f32.mrf.mxu1  ;;  %v136_v24 = vld [vmem:[%s11620_s0 + $0x2f8] sm:$0xff]  ;;  %v7105_v30 = vcombine.low %v112_v1, %v120_v2 }
  0xeb   :  { %v7821_v34 = vadd.f32 %v7820_v33, %v7819_v26  ;;  %v7758_v35 = vpop.f32.mrf.mxu0  ;;  %2456 = vmatmul.mubr.bf16.gmra.mxu0 %v7055_v25 }
  0xec   :  { %v7822_v36 = vpop.f32.mrf.mxu1  ;;  %2553 = vmatmul.mubr.bf16.gmra.mxu1 %v7057_v27  ;;  %2463 = vmatprep.mubr.bf16.mxu0 %v7072_v28  ;;  %v7103_v27 = vcombine.low %v111_v61, %v119_v62 }
  0xed   :  { %v10402_v37 = vadd.f32 %v7821_v34, %v7757_v32  ;;  %v7759_v38 = vpop.f32.mrf.mxu0  ;;  %2560 = vmatprep.mubr.bf16.mxu1 %v7074_v31  ;;  %v7120_v31 = vcombine.high %v127_v19, %v135_v20  ;;  %v7122_v34 = vcombine.high %v128_v23, %v136_v24 }
  0xee   :  { %v7760_v41 = vadd.f32 %v7759_v38, %v7758_v35  ;;  %v7823_v42 = vpop.f32.mrf.mxu1 }
  0xef   :  { %v7824_v45 = vadd.f32 %v7823_v42, %v7822_v36  ;;  %v7761_v46 = vpop.f32.mrf.mxu0 }
  0xf0   :  { %v7825_v48 = vpop.f32.mrf.mxu1 }
  0xf1   :  { %v10416_v51 = vadd.f32 %v7824_v45, %v7760_v41  ;;  %v7762_v52 = vpop.f32.mrf.mxu0 }
  0xf2   :  { %v7763_v54 = vadd.f32 %v7762_v52, %v7761_v46  ;;  %v7826_v55 = vpop.f32.mrf.mxu1  ;;  %v7119_v52 = vcombine.low %v127_v19, %v135_v20 }
  0xf3   :  { %v7827_v56 = vadd.f32 %v7826_v55, %v7825_v48  ;;  %v7764_v57 = vpop.f32.mrf.mxu0  ;;  %2464 = vmatmul.mubr.bf16.gmra.mxu0 %v7071_v47  ;;  %v144_v47 = vld [vmem:[%s11620_s0 + $0x338] sm:$0xff]  ;;  %v7136_v55 = vcombine.high %v143_v43, %v151_v44 }
  0xf4   :  { %v7828_v58 = vpop.f32.mrf.mxu1  ;;  %2561 = vmatmul.mubr.bf16.gmra.mxu1 %v7073_v49  ;;  %2471 = vmatprep.mubr.bf16.mxu0 %v7088_v50  ;;  %v152_v48 = vld [vmem:[%s11620_s0 + $0x378] sm:$0xff] }
  0xf5   :  { %v10418_v59 = vadd.f32 %v7827_v56, %v7763_v54  ;;  %v7765_v60 = vpop.f32.mrf.mxu0  ;;  %2568 = vmatprep.mubr.bf16.mxu1 %v7090_v53  ;;  %v7121_v54 = vcombine.low %v128_v23, %v136_v24 }
  0xf6   :  { %v7766_v63 = vadd.f32 %v7765_v60, %v7764_v57  ;;  %v7829_v0 = vpop.f32.mrf.mxu1 }
  0xf7   :  { %v7830_v3 = vadd.f32 %v7829_v0, %v7828_v58  ;;  %v7767_v4 = vpop.f32.mrf.mxu0  ;;  %v7138_v58 = vcombine.high %v144_v47, %v152_v48 }
  0xf8   :  { %v7831_v6 = vpop.f32.mrf.mxu1 }
  0xf9   :  { %v10432_v9 = vadd.f32 %v7830_v3, %v7766_v63  ;;  %v7768_v10 = vpop.f32.mrf.mxu0  ;;  %v159_v3 = vld [vmem:[%s11620_s0 + $0x3b0] sm:$0xff] }
  0xfa   :  { %v7769_v12 = vadd.f32 %v7768_v10, %v7767_v4  ;;  %v7832_v13 = vpop.f32.mrf.mxu1  ;;  %v167_v4 = vld [vmem:[%s11620_s0 + $0x3f0] sm:$0xff] }
  0xfb   :  { %v7833_v14 = vadd.f32 %v7832_v13, %v7831_v6  ;;  %v7770_v15 = vpop.f32.mrf.mxu0  ;;  %2472 = vmatmul.mubr.bf16.gmra.mxu0 %v7087_v5 }
  0xfc   :  { %v7834_v16 = vpop.f32.mrf.mxu1  ;;  %2569 = vmatmul.mubr.bf16.gmra.mxu1 %v7089_v7  ;;  %2479 = vmatprep.mubr.bf16.mxu0 %v7104_v8  ;;  %v160_v7 = vld [vmem:[%s11620_s0 + $0x3b8] sm:$0xff] }
  0xfd   :  { %v10434_v17 = vadd.f32 %v7833_v14, %v7769_v12  ;;  %v7771_v18 = vpop.f32.mrf.mxu0  ;;  %2576 = vmatprep.mubr.bf16.mxu1 %v7106_v11  ;;  %v168_v8 = vld [vmem:[%s11620_s0 + $0x3f8] sm:$0xff]  ;;  %v7135_v12 = vcombine.low %v143_v43, %v151_v44  ;;  %v7137_v14 = vcombine.low %v144_v47, %v152_v48 }
  0xfe   :  { %v7772_v21 = vadd.f32 %v7771_v18, %v7770_v15  ;;  %v7835_v22 = vpop.f32.mrf.mxu1  ;;  %v7152_v15 = vcombine.high %v159_v3, %v167_v4  ;;  %v7154_v19 = vcombine.high %v160_v7, %v168_v8 }
  0xff   :  { %v7836_v25 = vadd.f32 %v7835_v22, %v7834_v16  ;;  %v7773_v26 = vpop.f32.mrf.mxu0 }
 0x100   :  { %v7837_v28 = vpop.f32.mrf.mxu1 }
 0x101   :  { %v10448_v32 = vadd.f32 %v7836_v25, %v7772_v21  ;;  %v7774_v33 = vpop.f32.mrf.mxu0 }
 0x102   :  { %v7775_v35 = vadd.f32 %v7774_v33, %v7773_v26  ;;  %v7838_v36 = vpop.f32.mrf.mxu1  ;;  %v7151_v33 = vcombine.low %v159_v3, %v167_v4 }
 0x103   :  { %v7839_v38 = vadd.f32 %v7838_v36, %v7837_v28  ;;  %v7776_v39 = vpop.f32.mrf.mxu0  ;;  %2480 = vmatmul.mubr.bf16.gmra.mxu0 %v7103_v27 }
 0x104   :  { %v7840_v40 = vpop.f32.mrf.mxu1  ;;  %2577 = vmatmul.mubr.bf16.gmra.mxu1 %v7105_v30  ;;  %2487 = vmatprep.mubr.bf16.mxu0 %v7120_v31 }
 0x105   :  { %v10450_v41 = vadd.f32 %v7839_v38, %v7775_v35  ;;  %v7777_v42 = vpop.f32.mrf.mxu0  ;;  %2584 = vmatprep.mubr.bf16.mxu1 %v7122_v34  ;;  %v7153_v35 = vcombine.low %v160_v7, %v168_v8 }
 0x106   :  { %v7778_v45 = vadd.f32 %v7777_v42, %v7776_v39  ;;  %v7841_v46 = vpop.f32.mrf.mxu1 }
 0x107   :  { %v7842_v49 = vadd.f32 %v7841_v46, %v7840_v40  ;;  %v7779_v50 = vpop.f32.mrf.mxu0 }
 0x108   :  { %v7843_v53 = vpop.f32.mrf.mxu1 }
 0x109   :  { %v10464_v56 = vadd.f32 %v7842_v49, %v7778_v45  ;;  %v7780_v57 = vpop.f32.mrf.mxu0 }
 0x10a   :  { %v7781_v60 = vadd.f32 %v7780_v57, %v7779_v50  ;;  %v7844_v61 = vpop.f32.mrf.mxu1 }
 0x10b   :  { %v7845_v62 = vadd.f32 %v7844_v61, %v7843_v53  ;;  %v7782_v63 = vpop.f32.mrf.mxu0  ;;  %2488 = vmatmul.mubr.bf16.gmra.mxu0 %v7119_v52 }
 0x10c   :  { %v7846_v0 = vpop.f32.mrf.mxu1  ;;  %2585 = vmatmul.mubr.bf16.gmra.mxu1 %v7121_v54  ;;  %2495 = vmatprep.mubr.bf16.mxu0 %v7136_v55 }
 0x10d   :  { %v10466_v1 = vadd.f32 %v7845_v62, %v7781_v60  ;;  %v7783_v2 = vpop.f32.mrf.mxu0  ;;  %2592 = vmatprep.mubr.bf16.mxu1 %v7138_v58 }
 0x10e   :  { %v7784_v5 = vadd.f32 %v7783_v2, %v7782_v63  ;;  %v7847_v6 = vpop.f32.mrf.mxu1 }
 0x10f   :  { %v7848_v10 = vadd.f32 %v7847_v6, %v7846_v0  ;;  %v7785_v11 = vpop.f32.mrf.mxu0 }
 0x110   :  { %v7849_v13 = vpop.f32.mrf.mxu1 }
 0x111   :  { %v10480_v16 = vadd.f32 %v7848_v10, %v7784_v5  ;;  %v7786_v18 = vpop.f32.mrf.mxu0 }
 0x112   :  { %v7787_v20 = vadd.f32 %v7786_v18, %v7785_v11  ;;  %v7850_v21 = vpop.f32.mrf.mxu1 }
 0x113   :  { %v7851_v22 = vadd.f32 %v7850_v21, %v7849_v13  ;;  %v7788_v23 = vpop.f32.mrf.mxu0  ;;  %2496 = vmatmul.mubr.bf16.gmra.mxu0 %v7135_v12 }
 0x114   :  { %v7852_v24 = vpop.f32.mrf.mxu1  ;;  %2593 = vmatmul.mubr.bf16.gmra.mxu1 %v7137_v14  ;;  %2503 = vmatprep.mubr.bf16.mxu0 %v7152_v15 }
 0x115   :  { %v10482_v25 = vadd.f32 %v7851_v22, %v7787_v20  ;;  %v7789_v26 = vpop.f32.mrf.mxu0  ;;  %2600 = vmatprep.mubr.bf16.mxu1 %v7154_v19 }
 0x116   :  { %v7790_v27 = vadd.f32 %v7789_v26, %v7788_v23  ;;  %v7853_v28 = vpop.f32.mrf.mxu1 }
 0x117   :  { %v7854_v30 = vadd.f32 %v7853_v28, %v7852_v24  ;;  %v7791_v31 = vpop.f32.mrf.mxu0 }
 0x118   :  { %v7855_v34 = vpop.f32.mrf.mxu1 }
 0x119   :  { %v10484_v36 = vadd.f32 %v7854_v30, %v7790_v27  ;;  %v7792_v38 = vpop.f32.mrf.mxu0 }
 0x11a   :  { %v7793_v39 = vadd.f32 %v7792_v38, %v7791_v31  ;;  %v7856_v40 = vpop.f32.mrf.mxu1 }
 0x11b   :  { %v7857_v42 = vadd.f32 %v7856_v40, %v7855_v34  ;;  %v7794_v43 = vpop.f32.mrf.mxu0  ;;  %2504 = vmatmul.mubr.bf16.gmra.mxu0 %v7151_v33 }
 0x11c   :  { %v7858_v44 = vpop.f32.mrf.mxu1  ;;  %2601 = vmatmul.mubr.bf16.gmra.mxu1 %v7153_v35 }
 0x11d   :  { %v10486_v45 = vadd.f32 %v7857_v42, %v7793_v39  ;;  %v7795_v46 = vpop.f32.mrf.mxu0 }
 0x11e   :  { %v7796_v47 = vadd.f32 %v7795_v46, %v7794_v43  ;;  %v7859_v48 = vpop.f32.mrf.mxu1 }
 0x11f   :  { %v7860_v49 = vadd.f32 %v7859_v48, %v7858_v44  ;;  %v7797_v50 = vpop.f32.mrf.mxu0 }
 0x120   :  { %v7861_v52 = vpop.f32.mrf.mxu1 }
 0x121   :  { %v10488_v53 = vadd.f32 %v7860_v49, %v7796_v47  ;;  %v7798_v54 = vpop.f32.mrf.mxu0 }
 0x122   :  { %v7799_v55 = vadd.f32 %v7798_v54, %v7797_v50  ;;  %v7862_v57 = vpop.f32.mrf.mxu1 }
 0x123   :  { %v7863_v58 = vadd.f32 %v7862_v57, %v7861_v52  ;;  %v7880_v60 = vpop.f32.mrf.mxu0 }
 0x124   :  { %v7944_v61 = vpop.f32.mrf.mxu1 }
 0x125   :  { %v10490_v62 = vadd.f32 %v7863_v58, %v7799_v55  ;;  %v7881_v63 = vpop.f32.mrf.mxu0 }
 0x126   :  { %v7882_v0 = vadd.f32 %v7881_v63, %v7880_v60  ;;  %v7945_v2 = vpop.f32.mrf.mxu1 }
 0x127   :  { %v7946_v3 = vadd.f32 %v7945_v2, %v7944_v61  ;;  %v7883_v4 = vpop.f32.mrf.mxu0 }
 0x128   :  { %v2062_v5 = vadd.f32 %v7882_v0, %v10400_v29  ;;  %v7947_v6 = vpop.f32.mrf.mxu1 }
 0x129   :  { %v7884_v7 = vpop.f32.mrf.mxu0 }
 0x12a   :  { %v10493_v8 = vadd.f32 %v7946_v3, %v2062_v5  ;;  %v7885_v10 = vadd.f32 %v7884_v7, %v7883_v4  ;;  %v7948_v11 = vpop.f32.mrf.mxu1 }
 0x12b   :  { %v7886_v12 = vpop.f32.mrf.mxu0  ;;  %v7949_v14 = vadd.f32 %v7948_v11, %v7947_v6 }
 0x12c   :  { %v2065_v13 = vadd.f32 %v7885_v10, %v10402_v37  ;;  %v7950_v15 = vpop.f32.mrf.mxu1 }
 0x12d   :  { %v7887_v18 = vpop.f32.mrf.mxu0 }
 0x12e   :  { %v10496_v19 = vadd.f32 %v7949_v14, %v2065_v13  ;;  %v7888_v20 = vadd.f32 %v7887_v18, %v7886_v12  ;;  %v7951_v21 = vpop.f32.mrf.mxu1 }
 0x12f   :  { %v7952_v22 = vadd.f32 %v7951_v21, %v7950_v15  ;;  %v7889_v23 = vpop.f32.mrf.mxu0 }
 0x130   :  { %v2070_v29 = vadd.f32 %v7888_v20, %v10416_v51  ;;  %v7953_v24 = vpop.f32.mrf.mxu1 }
 0x131   :  { %v7890_v26 = vpop.f32.mrf.mxu0 }
 0x132   :  { %v10499_v27 = vadd.f32 %v7952_v22, %v2070_v29  ;;  %v7891_v28 = vadd.f32 %v7890_v26, %v7889_v23  ;;  %v7954_v30 = vpop.f32.mrf.mxu1 }
 0x133   :  { %v7892_v31 = vpop.f32.mrf.mxu0  ;;  %v7955_v33 = vadd.f32 %v7954_v30, %v7953_v24 }
 0x134   :  { %v2073_v37 = vadd.f32 %v7891_v28, %v10418_v59  ;;  %v7956_v34 = vpop.f32.mrf.mxu1 }
 0x135   :  { %v7893_v35 = vpop.f32.mrf.mxu0 }
 0x136   :  { %v10502_v38 = vadd.f32 %v7955_v33, %v2073_v37  ;;  %v7894_v39 = vadd.f32 %v7893_v35, %v7892_v31  ;;  %v7957_v40 = vpop.f32.mrf.mxu1 }
 0x137   :  { %v7958_v42 = vadd.f32 %v7957_v40, %v7956_v34  ;;  %v7895_v43 = vpop.f32.mrf.mxu0 }
 0x138   :  { %v2078_v51 = vadd.f32 %v7894_v39, %v10432_v9  ;;  %v7959_v44 = vpop.f32.mrf.mxu1 }
 0x139   :  { %v7896_v46 = vpop.f32.mrf.mxu0 }
 0x13a   :  { %v10505_v47 = vadd.f32 %v7958_v42, %v2078_v51  ;;  %v7897_v48 = vadd.f32 %v7896_v46, %v7895_v43  ;;  %v7960_v49 = vpop.f32.mrf.mxu1 }
 0x13b   :  { %v7898_v50 = vpop.f32.mrf.mxu0  ;;  %v7961_v52 = vadd.f32 %v7960_v49, %v7959_v44 }
 0x13c   :  { %v2081_v59 = vadd.f32 %v7897_v48, %v10434_v17  ;;  %v7962_v54 = vpop.f32.mrf.mxu1 }
 0x13d   :  { %v7899_v55 = vpop.f32.mrf.mxu0 }
 0x13e   :  { %v10508_v57 = vadd.f32 %v7961_v52, %v2081_v59  ;;  %v7900_v58 = vadd.f32 %v7899_v55, %v7898_v50  ;;  %v7963_v60 = vpop.f32.mrf.mxu1 }
 0x13f   :  { %v7964_v61 = vadd.f32 %v7963_v60, %v7962_v54  ;;  %v7901_v63 = vpop.f32.mrf.mxu0 }
 0x140   :  { %v2086_v9 = vadd.f32 %v7900_v58, %v10448_v32  ;;  %v7965_v0 = vpop.f32.mrf.mxu1 }
 0x141   :  { %v7902_v2 = vpop.f32.mrf.mxu0 }
 0x142   :  { %v10511_v3 = vadd.f32 %v7964_v61, %v2086_v9  ;;  %v7903_v4 = vadd.f32 %v7902_v2, %v7901_v63  ;;  %v7966_v5 = vpop.f32.mrf.mxu1 }
 0x143   :  { %v7904_v6 = vpop.f32.mrf.mxu0  ;;  %v7967_v7 = vadd.f32 %v7966_v5, %v7965_v0 }
 0x144   :  { %v2089_v17 = vadd.f32 %v7903_v4, %v10450_v41  ;;  %v7968_v10 = vpop.f32.mrf.mxu1 }
 0x145   :  { %v7905_v11 = vpop.f32.mrf.mxu0 }
 0x146   :  { %v10514_v12 = vadd.f32 %v7967_v7, %v2089_v17  ;;  %v7906_v13 = vadd.f32 %v7905_v11, %v7904_v6  ;;  %v7969_v14 = vpop.f32.mrf.mxu1 }
 0x147   :  { %v7970_v15 = vadd.f32 %v7969_v14, %v7968_v10  ;;  %v7907_v18 = vpop.f32.mrf.mxu0 }
 0x148   :  { %v2094_v32 = vadd.f32 %v7906_v13, %v10464_v56  ;;  %v7971_v20 = vpop.f32.mrf.mxu1 }
 0x149   :  { %v7908_v21 = vpop.f32.mrf.mxu0 }
 0x14a   :  { %v10517_v22 = vadd.f32 %v7970_v15, %v2094_v32  ;;  %v7909_v23 = vadd.f32 %v7908_v21, %v7907_v18  ;;  %v7972_v29 = vpop.f32.mrf.mxu1 }
 0x14b   :  { %v7910_v24 = vpop.f32.mrf.mxu0  ;;  %v7973_v26 = vadd.f32 %v7972_v29, %v7971_v20 }
 0x14c   :  { %v2097_v41 = vadd.f32 %v7909_v23, %v10466_v1  ;;  %v7974_v28 = vpop.f32.mrf.mxu1 }
 0x14d   :  { %v7911_v30 = vpop.f32.mrf.mxu0 }
 0x14e   :  { %v10520_v31 = vadd.f32 %v7973_v26, %v2097_v41  ;;  %v7912_v37 = vadd.f32 %v7911_v30, %v7910_v24  ;;  %v7975_v33 = vpop.f32.mrf.mxu1 }
 0x14f   :  { %v7976_v34 = vadd.f32 %v7975_v33, %v7974_v28  ;;  %v7913_v35 = vpop.f32.mrf.mxu0 }
 0x150   :  { %v2102_v56 = vadd.f32 %v7912_v37, %v10480_v16  ;;  %v7977_v39 = vpop.f32.mrf.mxu1 }
 0x151   :  { %v7914_v40 = vpop.f32.mrf.mxu0 }
 0x152   :  { %v10523_v42 = vadd.f32 %v7976_v34, %v2102_v56  ;;  %v7915_v43 = vadd.f32 %v7914_v40, %v7913_v35  ;;  %v7978_v51 = vpop.f32.mrf.mxu1 }
 0x153   :  { %v7916_v44 = vpop.f32.mrf.mxu0  ;;  %v7979_v46 = vadd.f32 %v7978_v51, %v7977_v39 }
 0x154   :  { %v2105_v1 = vadd.f32 %v7915_v43, %v10482_v25  ;;  %v7980_v48 = vpop.f32.mrf.mxu1 }
 0x155   :  { %v7917_v49 = vpop.f32.mrf.mxu0 }
 0x156   :  { %v10526_v50 = vadd.f32 %v7979_v46, %v2105_v1  ;;  %v7918_v59 = vadd.f32 %v7917_v49, %v7916_v44  ;;  %v7981_v52 = vpop.f32.mrf.mxu1 }
 0x157   :  { %v7982_v54 = vadd.f32 %v7981_v52, %v7980_v48  ;;  %v7919_v55 = vpop.f32.mrf.mxu0 }
 0x158   :  { %v2110_v16 = vadd.f32 %v7918_v59, %v10484_v36  ;;  %v7983_v58 = vpop.f32.mrf.mxu1 }
 0x159   :  { %v7920_v60 = vpop.f32.mrf.mxu0 }
 0x15a   :  { %v10529_v61 = vadd.f32 %v7982_v54, %v2110_v16  ;;  %v7921_v63 = vadd.f32 %v7920_v60, %v7919_v55  ;;  %v7984_v9 = vpop.f32.mrf.mxu1 }
 0x15b   :  { %v7922_v0 = vpop.f32.mrf.mxu0  ;;  %v7985_v2 = vadd.f32 %v7984_v9, %v7983_v58 }
 0x15c   :  { %v2113_v25 = vadd.f32 %v7921_v63, %v10486_v45  ;;  %v7986_v4 = vpop.f32.mrf.mxu1 }
 0x15d   :  { %v7923_v5 = vpop.f32.mrf.mxu0 }
 0x15e   :  { %v10532_v6 = vadd.f32 %v7985_v2, %v2113_v25  ;;  %v7924_v17 = vadd.f32 %v7923_v5, %v7922_v0  ;;  %v7987_v7 = vpop.f32.mrf.mxu1 }
 0x15f   :  { %v7988_v10 = vadd.f32 %v7987_v7, %v7986_v4  ;;  %v7925_v11 = vpop.f32.mrf.mxu0 }
 0x160   :  { %v2118_v36 = vadd.f32 %v7924_v17, %v10488_v53  ;;  %v7989_v13 = vpop.f32.mrf.mxu1 }
 0x161   :  { %v7926_v14 = vpop.f32.mrf.mxu0 }
 0x162   :  { %v10535_v15 = vadd.f32 %v7988_v10, %v2118_v36  ;;  %v7927_v18 = vadd.f32 %v7926_v14, %v7925_v11  ;;  %v7990_v32 = vpop.f32.mrf.mxu1 }
 0x163   :  { %v8008_v20 = vpop.f32.mrf.mxu0  ;;  %v7991_v21 = vadd.f32 %v7990_v32, %v7989_v13 }
 0x164   :  { %v2121_v45 = vadd.f32 %v7927_v18, %v10490_v62  ;;  %v8072_v23 = vpop.f32.mrf.mxu1 }
 0x165   :  { %v8009_v29 = vpop.f32.mrf.mxu0 }
 0x166   :  { %v10538_v24 = vadd.f32 %v7991_v21, %v2121_v45  ;;  %v8010_v41 = vadd.f32 %v8009_v29, %v8008_v20  ;;  %v8073_v26 = vpop.f32.mrf.mxu1 }
 0x167   :  { %v8074_v28 = vadd.f32 %v8073_v26, %v8072_v23  ;;  %v8011_v30 = vpop.f32.mrf.mxu0 }
 0x168   :  { %v2256_v53 = vadd.f32 %v8010_v41, %v10493_v8  ;;  %v8075_v37 = vpop.f32.mrf.mxu1 }
 0x169   :  { %v8012_v33 = vpop.f32.mrf.mxu0 }
 0x16a   :  { %v10541_v34 = vadd.f32 %v8074_v28, %v2256_v53  ;;  %v8013_v35 = vadd.f32 %v8012_v33, %v8011_v30  ;;  %v8076_v56 = vpop.f32.mrf.mxu1 }
 0x16b   :  { %v8014_v39 = vpop.f32.mrf.mxu0  ;;  %v8077_v40 = vadd.f32 %v8076_v56, %v8075_v37 }
 0x16c   :  { %v2259_v62 = vadd.f32 %v8013_v35, %v10496_v19  ;;  %v8078_v43 = vpop.f32.mrf.mxu1 }
 0x16d   :  { %v8015_v51 = vpop.f32.mrf.mxu0 }
 0x16e   :  { %v10544_v44 = vadd.f32 %v8077_v40, %v2259_v62  ;;  %v8016_v1 = vadd.f32 %v8015_v51, %v8014_v39  ;;  %v8079_v46 = vpop.f32.mrf.mxu1 }
 0x16f   :  { %v8080_v48 = vadd.f32 %v8079_v46, %v8078_v43  ;;  %v8017_v49 = vpop.f32.mrf.mxu0 }
 0x170   :  { %v2264_v8 = vadd.f32 %v8016_v1, %v10499_v27  ;;  %v8081_v59 = vpop.f32.mrf.mxu1 }
 0x171   :  { %v8018_v52 = vpop.f32.mrf.mxu0 }
 0x172   :  { %v10547_v54 = vadd.f32 %v8080_v48, %v2264_v8  ;;  %v8019_v55 = vadd.f32 %v8018_v52, %v8017_v49  ;;  %v8082_v16 = vpop.f32.mrf.mxu1 }
 0x173   :  { %v8020_v58 = vpop.f32.mrf.mxu0  ;;  %v8083_v60 = vadd.f32 %v8082_v16, %v8081_v59 }
 0x174   :  { %v2267_v19 = vadd.f32 %v8019_v55, %v10502_v38  ;;  %v8084_v63 = vpop.f32.mrf.mxu1 }
 0x175   :  { %v8021_v9 = vpop.f32.mrf.mxu0 }
 0x176   :  { %v10550_v0 = vadd.f32 %v8083_v60, %v2267_v19  ;;  %v8022_v25 = vadd.f32 %v8021_v9, %v8020_v58  ;;  %v8085_v2 = vpop.f32.mrf.mxu1 }
 0x177   :  { %v8086_v4 = vadd.f32 %v8085_v2, %v8084_v63  ;;  %v8023_v5 = vpop.f32.mrf.mxu0 }
 0x178   :  { %v2272_v27 = vadd.f32 %v8022_v25, %v10505_v47  ;;  %v8087_v17 = vpop.f32.mrf.mxu1 }
 0x179   :  { %v8024_v7 = vpop.f32.mrf.mxu0 }
 0x17a   :  { %v10553_v10 = vadd.f32 %v8086_v4, %v2272_v27  ;;  %v8025_v11 = vadd.f32 %v8024_v7, %v8023_v5  ;;  %v8088_v36 = vpop.f32.mrf.mxu1 }
 0x17b   :  { %v8026_v13 = vpop.f32.mrf.mxu0  ;;  %v8089_v14 = vadd.f32 %v8088_v36, %v8087_v17 }
 0x17c   :  { %v2275_v38 = vadd.f32 %v8025_v11, %v10508_v57  ;;  %v8090_v18 = vpop.f32.mrf.mxu1 }
 0x17d   :  { %v8027_v32 = vpop.f32.mrf.mxu0 }
 0x17e   :  { %v10556_v20 = vadd.f32 %v8089_v14, %v2275_v38  ;;  %v8028_v45 = vadd.f32 %v8027_v32, %v8026_v13  ;;  %v8091_v21 = vpop.f32.mrf.mxu1 }
 0x17f   :  { %v8092_v23 = vadd.f32 %v8091_v21, %v8090_v18  ;;  %v8029_v29 = vpop.f32.mrf.mxu0 }
 0x180   :  { %v2280_v47 = vadd.f32 %v8028_v45, %v10511_v3  ;;  %v8093_v41 = vpop.f32.mrf.mxu1 }
 0x181   :  { %v8030_v26 = vpop.f32.mrf.mxu0 }
 0x182   :  { %v10559_v28 = vadd.f32 %v8092_v23, %v2280_v47  ;;  %v8031_v30 = vadd.f32 %v8030_v26, %v8029_v29  ;;  %v8094_v53 = vpop.f32.mrf.mxu1 }
 0x183   :  { %v8032_v37 = vpop.f32.mrf.mxu0  ;;  %v8095_v33 = vadd.f32 %v8094_v53, %v8093_v41 }
 0x184   :  { %v2283_v57 = vadd.f32 %v8031_v30, %v10514_v12  ;;  %v8096_v35 = vpop.f32.mrf.mxu1 }
 0x185   :  { %v8033_v56 = vpop.f32.mrf.mxu0 }
 0x186   :  { %v10562_v39 = vadd.f32 %v8095_v33, %v2283_v57  ;;  %v8034_v62 = vadd.f32 %v8033_v56, %v8032_v37  ;;  %v8097_v40 = vpop.f32.mrf.mxu1 }
 0x187   :  { %v8098_v43 = vadd.f32 %v8097_v40, %v8096_v35  ;;  %v8035_v51 = vpop.f32.mrf.mxu0 }
 0x188   :  { %v2288_v3 = vadd.f32 %v8034_v62, %v10517_v22  ;;  %v8099_v1 = vpop.f32.mrf.mxu1  ;;  %v9498_v22 = vld [vmem:[%s11621_s4] sm:$0xff]  }
 0x189   :  { %v8036_v46 = vpop.f32.mrf.mxu0  ;;  %8616 = vmatprep.mubr.bf16.mxu0 %v9498_v22 }
 0x18a   :  { %v10565_v48 = vadd.f32 %v8098_v43, %v2288_v3  ;;  %v8037_v49 = vadd.f32 %v8036_v46, %v8035_v51  ;;  %v8100_v8 = vpop.f32.mrf.mxu1 }
 0x18b   :  { %v8038_v59 = vpop.f32.mrf.mxu0  ;;  %v8101_v52 = vadd.f32 %v8100_v8, %v8099_v1 }
 0x18c   :  { %v2291_v12 = vadd.f32 %v8037_v49, %v10520_v31  ;;  %v8102_v55 = vpop.f32.mrf.mxu1  ;;  %v9499_v31 = vld [vmem:[%s11621_s4 + $0x10] sm:$0xff]  }
 0x18d   :  { %v8039_v16 = vpop.f32.mrf.mxu0  ;;  %8636 = vmatprep.mubr.bf16.mxu1 %v9499_v31 }
 0x18e   :  { %v10568_v58 = vadd.f32 %v8101_v52, %v2291_v12  ;;  %v8040_v19 = vadd.f32 %v8039_v16, %v8038_v59  ;;  %v8103_v60 = vpop.f32.mrf.mxu1  ;;  %v10602_v52 = vld [vmem:[%s11623_s2] ss:$0 sm:$0xff] }
 0x18f   :  { %v8104_v63 = vadd.f32 %v8103_v60, %v8102_v55  ;;  %v8041_v9 = vpop.f32.mrf.mxu0 }
 0x190   :  { %v2296_v25 = vadd.f32 %v8040_v19, %v10523_v42  ;;  %v8105_v2 = vpop.f32.mrf.mxu1  ;;  %v10608_v19 = vld [vmem:[%s11624_s3] ss:$0 sm:$0xff] }
 0x191   :  { %v8042_v4 = vpop.f32.mrf.mxu0 }
 0x192   :  { %v10577_v5 = vadd.f32 %v8104_v63, %v2296_v25  ;;  %v8043_v27 = vadd.f32 %v8042_v4, %v8041_v9  ;;  %v8106_v17 = vpop.f32.mrf.mxu1 }
 0x193   :  { %v8044_v7 = vpop.f32.mrf.mxu0  ;;  %v8107_v36 = vadd.f32 %v8106_v17, %v8105_v2 }
 0x194   :  { %v2299_v11 = vadd.f32 %v8043_v27, %v10526_v50  ;;  %v8108_v13 = vpop.f32.mrf.mxu1 }
 0x195   :  { %v8045_v38 = vpop.f32.mrf.mxu0 }
 0x196   :  { %v10580_v14 = vadd.f32 %v8107_v36, %v2299_v11  ;;  %v8046_v42 = vadd.f32 %v8045_v38, %v8044_v7  ;;  %v8109_v18 = vpop.f32.mrf.mxu1 }
 0x197   :  { %v8110_v32 = vadd.f32 %v8109_v18, %v8108_v13  ;;  %v8047_v45 = vpop.f32.mrf.mxu0 }
 0x198   :  { %v2304_v21 = vadd.f32 %v8046_v42, %v10529_v61  ;;  %v8111_v23 = vpop.f32.mrf.mxu1 }
 0x199   :  { %v8048_v29 = vpop.f32.mrf.mxu0 }
 0x19a   :  { %v10583_v47 = vadd.f32 %v8110_v32, %v2304_v21  ;;  %v8049_v41 = vadd.f32 %v8048_v29, %v8047_v45  ;;  %v8112_v26 = vpop.f32.mrf.mxu1 }
 0x19b   :  { %v8050_v30 = vpop.f32.mrf.mxu0  ;;  %v8113_v53 = vadd.f32 %v8112_v26, %v8111_v23 }
 0x19c   :  { %v2307_v50 = vadd.f32 %v8049_v41, %v10532_v6  ;;  %v8114_v37 = vpop.f32.mrf.mxu1 }
 0x19d   :  { %v8051_v57 = vpop.f32.mrf.mxu0 }
 0x19e   :  { %v10586_v33 = vadd.f32 %v8113_v53, %v2307_v50  ;;  %v8052_v35 = vadd.f32 %v8051_v57, %v8050_v30  ;;  %v8115_v56 = vpop.f32.mrf.mxu1 }
 0x19f   :  { %v8116_v62 = vadd.f32 %v8115_v56, %v8114_v37  ;;  %v10588_v40 = vpop.f32.mrf.mxu0 }
 0x1a0   :  { %v2312_v61 = vadd.f32 %v8052_v35, %v10535_v15  ;;  %v10591_v43 = vpop.f32.mrf.mxu1 }
 0x1a1   :  { %v10593_v51 = vpop.f32.mrf.mxu0 }
 0x1a2   :  { %v10595_v3 = vadd.f32 %v8116_v62, %v2312_v61  ;;  %v10597_v1 = vpop.f32.mrf.mxu1 }
 0x1a3   :  { %v8136_v6 = vpop.f32.mrf.mxu0 }
 0x1a4   :  { %v8200_v46 = vpop.f32.mrf.mxu1 }
 0x1a5   :  { %v8137_v49 = vpop.f32.mrf.mxu0 }
 0x1a6   :  { %v8138_v8 = vadd.f32 %v8137_v49, %v8136_v6  ;;  %v8201_v59 = vpop.f32.mrf.mxu1 }
 0x1a7   :  { %v8202_v12 = vadd.f32 %v8201_v59, %v8200_v46  ;;  %v8139_v15 = vpop.f32.mrf.mxu0 }
 0x1a8   :  { %v2450_v55 = vadd.f32 %v8138_v8, %v10541_v34  ;;  %v8203_v16 = vpop.f32.mrf.mxu1 }
 0x1a9   :  { %v8140_v60 = vpop.f32.mrf.mxu0 }
 0x1aa   :  { %v2547_v63 = vadd.f32 %v8202_v12, %v2450_v55  ;;  %v8141_v9 = vadd.f32 %v8140_v60, %v8139_v15  ;;  %v8204_v22 = vpop.f32.mrf.mxu1 }
 0x1ab   :  { %v8142_v25 = vpop.f32.mrf.mxu0  ;;  %v8205_v4 = vadd.f32 %v8204_v22, %v8203_v16 }
 0x1ac   :  { %v2616_v2 = vmul.f32 %v10602_v52, %v2547_v63  ;;  %v2453_v31 = vadd.f32 %v8141_v9, %v10544_v44  ;;  %v8206_v27 = vpop.f32.mrf.mxu1 }
 0x1ad   :  { %v8143_v17 = vpop.f32.mrf.mxu0 }
 0x1ae   :  { %v2639_v34 = vadd.f32 %v10608_v19, %v2616_v2  ;;  %v2550_v7 = vadd.f32 %v8205_v4, %v2453_v31  ;;  %v8144_v11 = vadd.f32 %v8143_v17, %v8142_v25  ;;  %v8207_v36 = vpop.f32.mrf.mxu1 }
 0x1af   :  { %v8208_v13 = vadd.f32 %v8207_v36, %v8206_v27  ;;  %v8145_v38 = vpop.f32.mrf.mxu0 }
 0x1b0   :  { %vm2655_vm0 = vcmp.gt.f32.partialorder %v2639_v34, 0.0  ;;  %v2671_v42 = vmul.f32 0.2, %v2639_v34  ;;  %v2617_v18 = vmul.f32 %v10602_v52, %v2550_v7  ;;  %v2458_v32 = vadd.f32 %v8144_v11, %v10547_v54  ;;  %v8209_v45 = vpop.f32.mrf.mxu1 }
 0x1b1   :  { %v8146_v21 = vpop.f32.mrf.mxu0 }
 0x1b2   :  { %v2640_v44 = vadd.f32 %v10608_v19, %v2617_v18  ;;  %v2555_v23 = vadd.f32 %v8208_v13, %v2458_v32  ;;  %v8147_v29 = vadd.f32 %v8146_v21, %v8145_v38  ;;  %v8210_v41 = vpop.f32.mrf.mxu1  ;;  %v2687_v35 = vsel %vm2655_vm0, %v2639_v34, %v2671_v42 }
 0x1b3   :  { %v8211_v26 = vadd.f32 %v8210_v41, %v8209_v45  ;;  %v8148_v30 = vpop.f32.mrf.mxu0  ;;  %vm2887_vm0 = vcmask 523264  }
 0x1b4   :  { %vm2656_vm1 = vcmp.gt.f32.partialorder %v2640_v44, 0.0  ;;  %v2672_v50 = vmul.f32 0.2, %v2640_v44  ;;  %v2618_v53 = vmul.f32 %v10602_v52, %v2555_v23  ;;  %v2461_v37 = vadd.f32 %v8147_v29, %v10550_v0  ;;  %v8212_v57 = vpop.f32.mrf.mxu1 }
 0x1b5   :  { %v8149_v56 = vpop.f32.mrf.mxu0 }
 0x1b6   :  { %v2688_v54 = vsel %vm2656_vm1, %v2640_v44, %v2672_v50  ;;  %v2641_v62 = vadd.f32 %v10608_v19, %v2618_v53  ;;  %v2558_v61 = vadd.f32 %v8211_v26, %v2461_v37  ;;  %v8150_v6 = vadd.f32 %v8149_v56, %v8148_v30  ;;  %v8213_v46 = vpop.f32.mrf.mxu1 }
 0x1b7   :  { %v10620_v49 = vpack.c.bf16 %v2688_v54, %v2687_v35  ;;  %v8214_v8 = vadd.f32 %v8213_v46, %v8212_v57  ;;  %v8151_v59 = vpop.f32.mrf.mxu0  ;;  %vm9631_vm1 = vmmov 0  }
 0x1b8   :  { %vm2657_vm2 = vcmp.gt.f32.partialorder %v2641_v62, 0.0  ;;  %v2673_v12 = vmul.f32 0.2, %v2641_v62  ;;  %v2619_v15 = vmul.f32 %v10602_v52, %v2558_v61  ;;  %v2466_v0 = vadd.f32 %v8150_v6, %v10553_v10  ;;  %v8215_v55 = vpop.f32.mrf.mxu1 }
 0x1b9   :  { %v8152_v16 = vpop.f32.mrf.mxu0 }
 0x1ba   :  { %v2642_v60 = vadd.f32 %v10608_v19, %v2619_v15  ;;  %v2563_v63 = vadd.f32 %v8214_v8, %v2466_v0  ;;  %v8153_v9 = vadd.f32 %v8152_v16, %v8151_v59  ;;  %v8216_v22 = vpop.f32.mrf.mxu1  ;;  %v2689_v34 = vsel %vm2657_vm2, %v2641_v62, %v2673_v12 }
 0x1bb   :  { %v8217_v25 = vadd.f32 %v8216_v22, %v8215_v55  ;;  %v8154_v2 = vpop.f32.mrf.mxu0 }
 0x1bc   :  { %vm2658_vm3 = vcmp.gt.f32.partialorder %v2642_v60, 0.0  ;;  %v2674_v31 = vmul.f32 0.2, %v2642_v60  ;;  %v2620_v4 = vmul.f32 %v10602_v52, %v2563_v63  ;;  %v2469_v27 = vadd.f32 %v8153_v9, %v10556_v20  ;;  %v8218_v17 = vpop.f32.mrf.mxu1 }
 0x1bd   :  { %v8155_v7 = vpop.f32.mrf.mxu0 }
 0x1be   :  { %v2690_v10 = vsel %vm2658_vm3, %v2642_v60, %v2674_v31  ;;  %v2643_v11 = vadd.f32 %v10608_v19, %v2620_v4  ;;  %v2566_v36 = vadd.f32 %v8217_v25, %v2469_v27  ;;  %v8156_v13 = vadd.f32 %v8155_v7, %v8154_v2  ;;  %v8219_v38 = vpop.f32.mrf.mxu1 }
 0x1bf   :  { %v10629_v42 = vpack.c.bf16 %v2690_v10, %v2689_v34  ;;  %v8220_v18 = vadd.f32 %v8219_v38, %v8218_v17  ;;  %v8157_v32 = vpop.f32.mrf.mxu0 }
 0x1c0   :  { %vm2659_vm4 = vcmp.gt.f32.partialorder %v2643_v11, 0.0  ;;  %v2675_v45 = vmul.f32 0.2, %v2643_v11  ;;  %v2621_v21 = vmul.f32 %v10602_v52, %v2566_v36  ;;  %v2474_v20 = vadd.f32 %v8156_v13, %v10559_v28  ;;  %v8221_v44 = vpop.f32.mrf.mxu1 }
 0x1c1   :  { %v8158_v23 = vpop.f32.mrf.mxu0 }
 0x1c2   :  { %v2644_v29 = vadd.f32 %v10608_v19, %v2621_v21  ;;  %v2571_v41 = vadd.f32 %v8220_v18, %v2474_v20  ;;  %v8159_v26 = vadd.f32 %v8158_v23, %v8157_v32  ;;  %v8222_v30 = vpop.f32.mrf.mxu1  ;;  %v2691_v54 = vsel %vm2659_vm4, %v2643_v11, %v2675_v45 }
 0x1c3   :  { %v8223_v50 = vadd.f32 %v8222_v30, %v8221_v44  ;;  %v8160_v53 = vpop.f32.mrf.mxu0 }
 0x1c4   :  { %vm2660_vm5 = vcmp.gt.f32.partialorder %v2644_v29, 0.0  ;;  %v2676_v37 = vmul.f32 0.2, %v2644_v29  ;;  %v2622_v57 = vmul.f32 %v10602_v52, %v2571_v41  ;;  %v2477_v35 = vadd.f32 %v8159_v26, %v10562_v39  ;;  %v8224_v56 = vpop.f32.mrf.mxu1 }
 0x1c5   :  { %v8161_v62 = vpop.f32.mrf.mxu0 }
 0x1c6   :  { %v2692_v28 = vsel %vm2660_vm5, %v2644_v29, %v2676_v37  ;;  %v2645_v61 = vadd.f32 %v10608_v19, %v2622_v57  ;;  %v2574_v6 = vadd.f32 %v8223_v50, %v2477_v35  ;;  %v8162_v46 = vadd.f32 %v8161_v62, %v8160_v53  ;;  %v8225_v8 = vpop.f32.mrf.mxu1 }
 0x1c7   :  { %v10638_v59 = vpack.c.bf16 %v2692_v28, %v2691_v54  ;;  %v8226_v12 = vadd.f32 %v8225_v8, %v8224_v56  ;;  %v8163_v15 = vpop.f32.mrf.mxu0 }
 0x1c8   :  { %vm2661_vm6 = vcmp.gt.f32.partialorder %v2645_v61, 0.0  ;;  %v2677_v0 = vmul.f32 0.2, %v2645_v61  ;;  %v2623_v55 = vmul.f32 %v10602_v52, %v2574_v6  ;;  %v2482_v39 = vadd.f32 %v8162_v46, %v10565_v48  ;;  %v8227_v16 = vpop.f32.mrf.mxu1 }
 0x1c9   :  { %v8164_v60 = vpop.f32.mrf.mxu0 }
 0x1ca   :  { %v2646_v63 = vadd.f32 %v10608_v19, %v2623_v55  ;;  %v2579_v9 = vadd.f32 %v8226_v12, %v2482_v39  ;;  %v8165_v22 = vadd.f32 %v8164_v60, %v8163_v15  ;;  %v8228_v25 = vpop.f32.mrf.mxu1  ;;  %v2693_v7 = vsel %vm2661_vm6, %v2645_v61, %v2677_v0 }
 0x1cb   :  { %v8229_v2 = vadd.f32 %v8228_v25, %v8227_v16  ;;  %v8166_v31 = vpop.f32.mrf.mxu0  ;;  %vm5299_vm6 = vcmask 261120  }
 0x1cc   :  { %vm2662_vm7 = vcmp.gt.f32.partialorder %v2646_v63, 0.0  ;;  %v2678_v4 = vmul.f32 0.2, %v2646_v63  ;;  %v2624_v27 = vmul.f32 %v10602_v52, %v2579_v9  ;;  %v2485_v17 = vadd.f32 %v8165_v22, %v10568_v58  ;;  %v8230_v34 = vpop.f32.mrf.mxu1 }
 0x1cd   :  { %v8167_v10 = vpop.f32.mrf.mxu0 }
 0x1ce   :  { %v2694_v48 = vsel %vm2662_vm7, %v2646_v63, %v2678_v4  ;;  %v2647_v11 = vadd.f32 %v10608_v19, %v2624_v27  ;;  %v2582_v36 = vadd.f32 %v8229_v2, %v2485_v17  ;;  %v8168_v13 = vadd.f32 %v8167_v10, %v8166_v31  ;;  %v8231_v38 = vpop.f32.mrf.mxu1 }
 0x1cf   :  { %v10647_v18 = vpack.c.bf16 %v2694_v48, %v2693_v7  ;;  %v8232_v32 = vadd.f32 %v8231_v38, %v8230_v34  ;;  %v8169_v45 = vpop.f32.mrf.mxu0  ;;  %vm7021_vm7 = vcmask 1024  }
 0x1d0   :  { %vm2663_vm8 = vcmp.gt.f32.partialorder %v2647_v11, 0.0  ;;  %v2679_v21 = vmul.f32 0.2, %v2647_v11  ;;  %v2625_v20 = vmul.f32 %v10602_v52, %v2582_v36  ;;  %v2490_v58 = vadd.f32 %v8168_v13, %v10577_v5  ;;  %v8233_v44 = vpop.f32.mrf.mxu1 }
 0x1d1   :  { %v8170_v23 = vpop.f32.mrf.mxu0  ;;  %v8119_v13 = vadd.f32 %v10597_v1, %v10591_v43 }
 0x1d2   :  { %v2648_v29 = vadd.f32 %v10608_v19, %v2625_v20  ;;  %v2587_v41 = vadd.f32 %v8232_v32, %v2490_v58  ;;  %v8171_v26 = vadd.f32 %v8170_v23, %v8169_v45  ;;  %v8234_v30 = vpop.f32.mrf.mxu1  ;;  %v2695_v54 = vsel %vm2663_vm8, %v2647_v11, %v2679_v21 }
 0x1d3   :  { %v8235_v50 = vadd.f32 %v8234_v30, %v8233_v44  ;;  %v8172_v53 = vpop.f32.mrf.mxu0 }
 0x1d4   :  { %vm2664_vm9 = vcmp.gt.f32.partialorder %v2648_v29, 0.0  ;;  %v2680_v37 = vmul.f32 0.2, %v2648_v29  ;;  %v2626_v57 = vmul.f32 %v10602_v52, %v2587_v41  ;;  %v2493_v35 = vadd.f32 %v8171_v26, %v10580_v14  ;;  %v8236_v56 = vpop.f32.mrf.mxu1 }
 0x1d5   :  { %v8173_v62 = vpop.f32.mrf.mxu0  ;;  %v8055_v14 = vadd.f32 %v10593_v51, %v10588_v40 }
 0x1d6   :  { %v2696_v5 = vsel %vm2664_vm9, %v2648_v29, %v2680_v37  ;;  %v2649_v28 = vadd.f32 %v10608_v19, %v2626_v57  ;;  %v2590_v61 = vadd.f32 %v8235_v50, %v2493_v35  ;;  %v8174_v6 = vadd.f32 %v8173_v62, %v8172_v53  ;;  %v8237_v46 = vpop.f32.mrf.mxu1 }
 0x1d7   :  { %v10656_v8 = vpack.c.bf16 %v2696_v5, %v2695_v54  ;;  %v8175_v12 = vpop.f32.mrf.mxu0  ;;  %v8238_v55 = vadd.f32 %v8237_v46, %v8236_v56  ;;  %v2315_v34 = vadd.f32 %v8055_v14, %v10538_v24  ;;  %v9500_v46 = vld [vmem:[%s11621_s4 + $0x8] sm:$0xff]  }
 0x1d8   :  { %v2627_v15 = vmul.f32 %v10602_v52, %v2590_v61  ;;  %v2498_v0 = vadd.f32 %v8174_v6, %v10583_v47  ;;  %v8239_v39 = vpop.f32.mrf.mxu1  ;;  %v2681_v16 = vmul.f32 0.2, %v2649_v28  ;;  %vm2665_vm10 = vcmp.gt.f32.partialorder %v2649_v28, 0.0  ;;  %v9508_v14 = vld [vmem:[%s11622_s5 + $0x8] sm:$0xff]  }
 0x1d9   :  { %v8176_v60 = vpop.f32.mrf.mxu0  ;;  %v2412_v20 = vadd.f32 %v8119_v13, %v2315_v34  ;;  %v9517_v13 = vld [vmem:[%s11622_s5 + $0x70] sm:$0xff]  }
 0x1da   :  { %v2650_v63 = vadd.f32 %v10608_v19, %v2627_v15  ;;  %v2595_v9 = vadd.f32 %v8238_v55, %v2498_v0  ;;  %v8177_v22 = vadd.f32 %v8176_v60, %v8175_v12  ;;  %v8240_v25 = vpop.f32.mrf.mxu1  ;;  %v2697_v40 = vsel %vm2665_vm10, %v2649_v28, %v2681_v16  ;;  %v9501_v12 = vld [vmem:[%s11621_s4 + $0x18] sm:$0xff]   ;;  %v9503_v15 = vld [vmem:[%s11622_s5 + $0x30] sm:$0xff]   ;;  %v9504_v55 = vld [vmem:[%s11622_s5 + $0x28] sm:$0xff]  }
 0x1db   :  { %v8241_v2 = vadd.f32 %v8240_v25, %v8239_v39  ;;  %v8178_v31 = vpop.f32.mrf.mxu0  ;;  %v9507_v0 = vld [vmem:[%s11622_s5 + $0x10] sm:$0xff]   ;;  %v9505_v39 = vld [vmem:[%s11622_s5 + $0x20] sm:$0xff]   ;;  %v9510_v60 = vld [vmem:[%s11622_s5 + $0x58] sm:$0xff]  }
 0x1dc   :  { %vm2666_vm11 = vcmp.gt.f32.partialorder %v2650_v63, 0.0  ;;  %v2682_v4 = vmul.f32 0.2, %v2650_v63  ;;  %v2628_v27 = vmul.f32 %v10602_v52, %v2595_v9  ;;  %v2501_v47 = vadd.f32 %v8177_v22, %v10586_v33  ;;  %v8242_v17 = vpop.f32.mrf.mxu1  ;;  %v9509_v16 = vld [vmem:[%s11622_s5] sm:$0xff]  }
 0x1dd   :  { %v8179_v51 = vpop.f32.mrf.mxu0 }
 0x1de   :  { %v2698_v7 = vsel %vm2666_vm11, %v2650_v63, %v2682_v4  ;;  %v2651_v10 = vadd.f32 %v10608_v19, %v2628_v27  ;;  %v2598_v48 = vadd.f32 %v8241_v2, %v2501_v47  ;;  %v8180_v11 = vadd.f32 %v8179_v51, %v8178_v31  ;;  %v8243_v36 = vpop.f32.mrf.mxu1  ;;  %v9511_v51 = vld [vmem:[%s11622_s5 + $0x50] sm:$0xff]  }
 0x1df   :  { %v10669_v38 = vpack.c.bf16 %v2698_v7, %v2697_v40  ;;  %v8181_v32 = vpop.f32.mrf.mxu0  ;;  %v8244_v21 = vadd.f32 %v8243_v36, %v8242_v17  ;;  %v9514_v7 = vld [vmem:[%s11621_s4 + $0x20] sm:$0xff]   ;;  %v9515_v36 = vld [vmem:[%s11621_s4 + $0x28] sm:$0xff]  }
 0x1e0   :  { %v2629_v45 = vmul.f32 %v10602_v52, %v2598_v48  ;;  %v2506_v33 = vadd.f32 %v8180_v11, %v10595_v3  ;;  %v8245_v24 = vpop.f32.mrf.mxu1  ;;  %v2683_v44 = vmul.f32 0.2, %v2651_v10  ;;  %vm2667_vm12 = vcmp.gt.f32.partialorder %v2651_v10, 0.0  ;;  %v9513_v48 = vld [vmem:[%s11622_s5 + $0x40] sm:$0xff]   ;;  %v9516_v11 = vld [vmem:[%s11622_s5 + $0x78] sm:$0xff]  }
 0x1e1   :  { %v8182_v58 = vpop.f32.mrf.mxu0 }
 0x1e2   :  { %v2652_v23 = vadd.f32 %v10608_v19, %v2629_v45  ;;  %v2603_v29 = vadd.f32 %v8244_v21, %v2506_v33  ;;  %v8183_v41 = vadd.f32 %v8182_v58, %v8181_v32  ;;  %v8246_v26 = vpop.f32.mrf.mxu1  ;;  %v2699_v53 = vsel %vm2667_vm12, %v2651_v10, %v2683_v44  ;;  %v9512_v10 = vld [vmem:[%s11622_s5 + $0x48] sm:$0xff]   ;;  %v9519_v45 = vld [vmem:[%s11622_s5 + $0x60] sm:$0xff]  }
 0x1e3   :  { %v8247_v30 = vadd.f32 %v8246_v26, %v8245_v24  ;;  %v9518_v32 = vld [vmem:[%s11622_s5 + $0x68] sm:$0xff]  }
 0x1e4   :  { %vm2668_vm13 = vcmp.gt.f32.partialorder %v2652_v23, 0.0  ;;  %v2684_v43 = vmul.f32 0.2, %v2652_v23  ;;  %v2630_v1 = vmul.f32 %v10602_v52, %v2603_v29  ;;  %v2509_v50 = vadd.f32 %v8183_v41, %v2412_v20 }
 0x1e6   :  { %v2700_v37 = vsel %vm2668_vm13, %v2652_v23, %v2684_v43  ;;  %v2653_v3 = vadd.f32 %v10608_v19, %v2630_v1  ;;  %v2606_v57 = vadd.f32 %v8247_v30, %v2509_v50 }
 0x1e7   :  { %v10676_v35 = vpack.c.bf16 %v2700_v37, %v2699_v53  ;;  %v9520_v37 = vld [vmem:[%s11621_s4 + $0x30] sm:$0xff]  }
 0x1e8   :  { %v2631_v56 = vmul.f32 %v10602_v52, %v2606_v57  ;;  %v2685_v54 = vmul.f32 0.2, %v2653_v3  ;;  %vm2669_vm14 = vcmp.gt.f32.partialorder %v2653_v3, 0.0  ;;  %v9502_v52 = vld [vmem:[%s11622_s5 + $0x38] sm:$0xff]  }
 0x1e9   :  { %v9522_v57 = vld [vmem:[%s11622_s5 + $0x98] sm:$0xff]  }
 0x1ea   :  { %v2654_v62 = vadd.f32 %v10608_v19, %v2631_v56  ;;  %v2701_v28 = vsel %vm2669_vm14, %v2653_v3, %v2685_v54  ;;  %v9506_v19 = vld [vmem:[%s11622_s5 + $0x18] sm:$0xff]   ;;  %v9523_v54 = vld [vmem:[%s11622_s5 + $0x90] sm:$0xff]  }
 0x1eb   :  { %v9521_v56 = vld [vmem:[%s11621_s4 + $0x38] sm:$0xff]  }
 0x1ec   :  { %vm2670_vm15 = vcmp.gt.f32.partialorder %v2654_v62, 0.0  ;;  %v2686_v5 = vmul.f32 0.2, %v2654_v62 }
 0x1ee   :  { %v2702_v61 = vsel %vm2670_vm15, %v2654_v62, %v2686_v5  ;;  %v9524_v62 = vld [vmem:[%s11622_s5 + $0x88] sm:$0xff]   ;;  %v9525_v5 = vld [vmem:[%s11622_s5 + $0x80] sm:$0xff]  }
 0x1ef   :  { %v10680_v6 = vpack.c.bf16 %v2702_v61, %v2701_v28 }
 0x1f1   :  { %8600 = vmatprep.subr.bf16.mxu0 %v10680_v6  ;;  %8620 = vmatprep.subr.bf16.mxu1 %v10680_v6 }
 0x1f2   :  { %8601 = vmatpush3.bf16.msra.mxu0 %v10680_v6  ;;  %8621 = vmatpush3.bf16.msra.mxu1 %v10680_v6 }
 0x1f3   :  { %8602 = vmatprep.subr.bf16.mxu0 %v10676_v35  ;;  %8622 = vmatprep.subr.bf16.mxu1 %v10676_v35 }
 0x1f6   :  { %8603 = vmatpush3.bf16.msra.mxu0 %v10676_v35  ;;  %8623 = vmatpush3.bf16.msra.mxu1 %v10676_v35 }
 0x1f7   :  { %8604 = vmatprep.subr.bf16.mxu0 %v10669_v38  ;;  %8624 = vmatprep.subr.bf16.mxu1 %v10669_v38 }
 0x1fa   :  { %8605 = vmatpush3.bf16.msra.mxu0 %v10669_v38  ;;  %8625 = vmatpush3.bf16.msra.mxu1 %v10669_v38 }
 0x1fb   :  { %8606 = vmatprep.subr.bf16.mxu0 %v10656_v8  ;;  %8626 = vmatprep.subr.bf16.mxu1 %v10656_v8 }
 0x1fe   :  { %8607 = vmatpush3.bf16.msra.mxu0 %v10656_v8  ;;  %8627 = vmatpush3.bf16.msra.mxu1 %v10656_v8 }
 0x1ff   :  { %8608 = vmatprep.subr.bf16.mxu0 %v10647_v18  ;;  %8628 = vmatprep.subr.bf16.mxu1 %v10647_v18 }
 0x202   :  { %8609 = vmatpush3.bf16.msra.mxu0 %v10647_v18  ;;  %8629 = vmatpush3.bf16.msra.mxu1 %v10647_v18 }
 0x203   :  { %8610 = vmatprep.subr.bf16.mxu0 %v10638_v59  ;;  %8630 = vmatprep.subr.bf16.mxu1 %v10638_v59 }
 0x206   :  { %8611 = vmatpush3.bf16.msra.mxu0 %v10638_v59  ;;  %8631 = vmatpush3.bf16.msra.mxu1 %v10638_v59 }
 0x207   :  { %8612 = vmatprep.subr.bf16.mxu0 %v10629_v42  ;;  %8632 = vmatprep.subr.bf16.mxu1 %v10629_v42 }
 0x20a   :  { %8613 = vmatpush3.bf16.msra.mxu0 %v10629_v42  ;;  %8633 = vmatpush3.bf16.msra.mxu1 %v10629_v42 }
 0x20b   :  { %8614 = vmatprep.subr.bf16.mxu0 %v10620_v49  ;;  %8634 = vmatprep.subr.bf16.mxu1 %v10620_v49 }
 0x20e   :  { %8615 = vmatpush3.bf16.msra.mxu0 %v10620_v49  ;;  %8635 = vmatpush3.bf16.msra.mxu1 %v10620_v49 }
 0x20f   :  { %8640 = vmatprep.subr.bf16.mxu0 %v9502_v52  ;;  %8652 = vmatprep.subr.bf16.mxu1 %v9506_v19 }
 0x211   :  { %8617 = vmatmul.mubr.bf16.vlgmr.msra.gmra.mxu0 %v9500_v46  ;;  %8637 = vmatmul.mubr.bf16.vlgmr.msra.gmra.mxu1 %v9501_v12 }
 0x212   :  { %8641 = vmatpush3.bf16.msra.mxu0 %v9502_v52  ;;  %8653 = vmatpush3.bf16.msra.mxu1 %v9506_v19 }
 0x213   :  { %8642 = vmatprep.subr.bf16.mxu0 %v9503_v15  ;;  %8654 = vmatprep.subr.bf16.mxu1 %v9507_v0 }
 0x216   :  { %8643 = vmatpush3.bf16.msra.mxu0 %v9503_v15  ;;  %8655 = vmatpush3.bf16.msra.mxu1 %v9507_v0 }
 0x217   :  { %8644 = vmatprep.subr.bf16.mxu0 %v9504_v55  ;;  %8656 = vmatprep.subr.bf16.mxu1 %v9508_v14 }
 0x21a   :  { %8645 = vmatpush3.bf16.msra.mxu0 %v9504_v55  ;;  %8657 = vmatpush3.bf16.msra.mxu1 %v9508_v14 }
 0x21b   :  { %8646 = vmatprep.subr.bf16.mxu0 %v9505_v39  ;;  %8658 = vmatprep.subr.bf16.mxu1 %v9509_v16 }
 0x21e   :  { %8647 = vmatpush3.bf16.msra.mxu0 %v9505_v39  ;;  %8659 = vmatpush3.bf16.msra.mxu1 %v9509_v16 }
 0x21f   :  { %8664 = vmatprep.subr.bf16.mxu0 %v10680_v6  ;;  %8684 = vmatprep.subr.bf16.mxu1 %v9510_v60 }
 0x2d1   :  { %v8618_v63 = vpop.f32.mrf.mxu0  ;;  %v8638_v9 = vpop.f32.mrf.mxu1 }
 0x2d3   :  { %v2761_v22 = vpop.f32.mrf.mxu0  ;;  %v2837_v25 = vpop.f32.mrf.mxu1 }
 0x2d5   :  { %v8619_v2 = vpop.f32.mrf.mxu0  ;;  %v8639_v31 = vpop.f32.mrf.mxu1 }
 0x2d6   :  { %v2777_v4 = vpack.c.bf16 %v8619_v2, %v8618_v63  ;;  %v2853_v40 = vpack.c.bf16 %v8639_v31, %v8638_v9  ;;  %v9526_v63 = vld [vmem:[%s11621_s4 + $0x40] sm:$0xff]   ;;  %v9529_v2 = vld [vmem:[%s11622_s5 + $0xb0] sm:$0xff]   ;;  %v9530_v31 = vld [vmem:[%s11622_s5 + $0xa8] sm:$0xff]  }
 0x2d7   :  { %v2764_v27 = vpop.f32.mrf.mxu0  ;;  %v2840_v47 = vpop.f32.mrf.mxu1 }
 0x2d8   :  { %v2776_v17 = vpack.c.bf16 %v2764_v27, %v2761_v22  ;;  %v2852_v34 = vpack.c.bf16 %v2840_v47, %v2837_v25  ;;  %v9528_v22 = vld [vmem:[%s11622_s5 + $0xb8] sm:$0xff]   ;;  %v9527_v25 = vld [vmem:[%s11621_s4 + $0x48] sm:$0xff]  }
 0x2da   :  { %8648 = vmatprep.mubr.msk.bf16.mxu0 %vm2887_vm0, %v2852_v34  ;;  %8660 = vmatprep.mubr.msk.bf16.mxu1 %vm2887_vm0, %v2776_v17 }
 0x2db   :  { %8649 = vmatmul.mubr.msk.bf16.vlgmr.msra.gmra.mxu0 %vm2887_vm0, %v2853_v40  ;;  %8661 = vmatmul.mubr.msk.bf16.vlgmr.msra.gmra.mxu1 %vm2887_vm0, %v2777_v4  ;;  %v9531_v4 = vld [vmem:[%s11622_s5 + $0xa0] sm:$0xff]  }
 0x2dc   :  { %8665 = vmatpush3.bf16.msra.mxu0 %v10680_v6  ;;  %8685 = vmatpush3.bf16.msra.mxu1 %v9510_v60 }
 0x2dd   :  { %8666 = vmatprep.subr.bf16.mxu0 %v10676_v35  ;;  %8686 = vmatprep.subr.bf16.mxu1 %v9511_v51 }
 0x2de   :  { %8680 = vmatprep.mubr.bf16.mxu0 %v9514_v7 }
 0x2e0   :  { %8667 = vmatpush3.bf16.msra.mxu0 %v10676_v35  ;;  %8687 = vmatpush3.bf16.msra.mxu1 %v9511_v51 }
 0x2e1   :  { %8668 = vmatprep.subr.bf16.mxu0 %v10669_v38  ;;  %8688 = vmatprep.subr.bf16.mxu1 %v9512_v10 }
 0x2e4   :  { %8669 = vmatpush3.bf16.msra.mxu0 %v10669_v38  ;;  %8689 = vmatpush3.bf16.msra.mxu1 %v9512_v10 }
 0x2e5   :  { %8670 = vmatprep.subr.bf16.mxu0 %v10656_v8  ;;  %8690 = vmatprep.subr.bf16.mxu1 %v9513_v48 }
 0x2e8   :  { %8671 = vmatpush3.bf16.msra.mxu0 %v10656_v8  ;;  %8691 = vmatpush3.bf16.msra.mxu1 %v9513_v48 }
 0x2e9   :  { %8672 = vmatprep.subr.bf16.mxu0 %v10647_v18  ;;  %8696 = vmatprep.subr.bf16.mxu1 %v10680_v6 }
 0x2ec   :  { %8673 = vmatpush3.bf16.msra.mxu0 %v10647_v18 }
 0x2ed   :  { %8674 = vmatprep.subr.bf16.mxu0 %v10638_v59 }
 0x2f0   :  { %8675 = vmatpush3.bf16.msra.mxu0 %v10638_v59 }
 0x2f1   :  { %8676 = vmatprep.subr.bf16.mxu0 %v10629_v42 }
 0x2f4   :  { %8677 = vmatpush3.bf16.msra.mxu0 %v10629_v42 }
 0x2f5   :  { %8678 = vmatprep.subr.bf16.mxu0 %v10620_v49 }
 0x2f8   :  { %8679 = vmatpush3.bf16.msra.mxu0 %v10620_v49 }
 0x2f9   :  { %8716 = vmatprep.subr.bf16.mxu0 %v9516_v11 }
 0x2fb   :  { %8681 = vmatmul.mubr.bf16.vlgmr.msra.gmra.mxu0 %v9515_v36 }
 0x2fc   :  { %8717 = vmatpush3.bf16.msra.mxu0 %v9516_v11 }
 0x2fd   :  { %8718 = vmatprep.subr.bf16.mxu0 %v9517_v13 }
 0x300   :  { %8719 = vmatpush3.bf16.msra.mxu0 %v9517_v13 }
 0x301   :  { %8720 = vmatprep.subr.bf16.mxu0 %v9518_v32 }
 0x304   :  { %8721 = vmatpush3.bf16.msra.mxu0 %v9518_v32  ;;  %v9532_v32 = vld [vmem:[%s11621_s4 + $0x50] sm:$0xff]  }
 0x305   :  { %8722 = vmatprep.subr.bf16.mxu0 %v9519_v45 }
 0x308   :  { %8723 = vmatpush3.bf16.msra.mxu0 %v9519_v45 }
 0x309   :  { %8728 = vmatprep.subr.bf16.mxu0 %v10680_v6 }
 0x39b   :  { %v8650_v33 = vpop.f32.mrf.mxu0  ;;  %v8662_v21 = vpop.f32.mrf.mxu1 }
 0x39c   :  { %v3016_v24 = vadd.f32 %v8662_v21, %v8650_v33  ;;  %v9534_v33 = vld [vmem:[%s11622_s5 + $0xd8] sm:$0xff]  }
 0x39d   :  { %v2928_v20 = vpop.f32.mrf.mxu0  ;;  %v3007_v58 = vpop.f32.mrf.mxu1  ;;  %v9533_v21 = vld [vmem:[%s11621_s4 + $0x58] sm:$0xff]  }
 0x39e   :  { %v3008_v44 = vadd.f32 %v3007_v58, %v2928_v20  ;;  %v9536_v20 = vld [vmem:[%s11622_s5 + $0xc8] sm:$0xff]   ;;  %v9537_v58 = vld [vmem:[%s11622_s5 + $0xc0] sm:$0xff]  }
 0x39f   :  { %v8651_v23 = vpop.f32.mrf.mxu0  ;;  %v8663_v29 = vpop.f32.mrf.mxu1 }
 0x3a0   :  { %v3019_v41 = vadd.f32 %v8663_v29, %v8651_v23 }
 0x3a1   :  { %v10796_v26 = vpop.f32.mrf.mxu0  ;;  %v10834_v28 = vpop.f32.mrf.mxu1 }
 0x3bb   :  { %v8682_v30 = vpop.f32.mrf.mxu0 }
 0x3bd   :  { %v3073_v43 = vpop.f32.mrf.mxu0 }
 0x3bf   :  { %v8683_v1 = vpop.f32.mrf.mxu0 }
 0x3c0   :  { %v3089_v3 = vpack.c.bf16 %v8683_v1, %v8682_v30 }
 0x3c1   :  { %v3076_v50 = vpop.f32.mrf.mxu0 }
 0x3c2   :  { %v3088_v53 = vpack.c.bf16 %v3076_v50, %v3073_v43 }
 0x3c4   :  { %8692 = vmatprep.mubr.msk.bf16.mxu1 %vm2887_vm0, %v3088_v53 }
 0x3c5   :  { %8693 = vmatmul.mubr.msk.bf16.vlgmr.msra.gmra.mxu1 %vm2887_vm0, %v3089_v3 }
 0x3c6   :  { %8697 = vmatpush3.bf16.msra.mxu1 %v10680_v6  ;;  %8712 = vmatprep.mubr.bf16.mxu1 %v9520_v37 }
 0x3c7   :  { %8698 = vmatprep.subr.bf16.mxu1 %v10676_v35 }
 0x3ca   :  { %8699 = vmatpush3.bf16.msra.mxu1 %v10676_v35 }
 0x3cb   :  { %8700 = vmatprep.subr.bf16.mxu1 %v10669_v38 }
 0x3ce   :  { %8701 = vmatpush3.bf16.msra.mxu1 %v10669_v38 }
 0x3cf   :  { %8702 = vmatprep.subr.bf16.mxu1 %v10656_v8 }
 0x3d2   :  { %8703 = vmatpush3.bf16.msra.mxu1 %v10656_v8 }
 0x3d3   :  { %8704 = vmatprep.subr.bf16.mxu1 %v10647_v18 }
 0x3d6   :  { %8705 = vmatpush3.bf16.msra.mxu1 %v10647_v18 }
 0x3d7   :  { %8706 = vmatprep.subr.bf16.mxu1 %v10638_v59 }
 0x3da   :  { %8707 = vmatpush3.bf16.msra.mxu1 %v10638_v59 }
 0x3db   :  { %8708 = vmatprep.subr.bf16.mxu1 %v10629_v42 }
 0x3de   :  { %8709 = vmatpush3.bf16.msra.mxu1 %v10629_v42 }
 0x3df   :  { %8710 = vmatprep.subr.bf16.mxu1 %v10620_v49 }
 0x3e2   :  { %8711 = vmatpush3.bf16.msra.mxu1 %v10620_v49 }
 0x3e3   :  { %8748 = vmatprep.subr.bf16.mxu1 %v9522_v57 }
 0x3e5   :  { %8713 = vmatmul.mubr.bf16.vlgmr.msra.gmra.mxu1 %v9521_v56  ;;  %v9538_v56 = vld [vmem:[%s11621_s4 + $0x60] sm:$0xff]  }
 0x3e6   :  { %8749 = vmatpush3.bf16.msra.mxu1 %v9522_v57 }
 0x3e7   :  { %8750 = vmatprep.subr.bf16.mxu1 %v9523_v54 }
 0x3ea   :  { %8751 = vmatpush3.bf16.msra.mxu1 %v9523_v54 }
 0x3eb   :  { %8752 = vmatprep.subr.bf16.mxu1 %v9524_v62 }
 0x3ee   :  { %8753 = vmatpush3.bf16.msra.mxu1 %v9524_v62  ;;  %v9540_v62 = vld [vmem:[%s11622_s5 + $0xf8] sm:$0xff]  }
 0x3ef   :  { %8754 = vmatprep.subr.bf16.mxu1 %v9525_v5 }
 0x3f2   :  { %8755 = vmatpush3.bf16.msra.mxu1 %v9525_v5  ;;  %v9539_v5 = vld [vmem:[%s11621_s4 + $0x68] sm:$0xff]  }
 0x3f3   :  { %8760 = vmatprep.subr.bf16.mxu1 %v10680_v6 }
 0x485   :  { %v8694_v61 = vpop.f32.mrf.mxu1 }
 0x486   :  { %v3180_v52 = vadd.f32 %v8694_v61, %v3016_v24  ;;  %v9535_v24 = vld [vmem:[%s11622_s5 + $0xd0] sm:$0xff]  }
 0x487   :  { %v3163_v19 = vpop.f32.mrf.mxu1  ;;  %v9541_v61 = vld [vmem:[%s11622_s5 + $0xf0] sm:$0xff]  }
 0x488   :  { %v3178_v46 = vadd.f32 %v3163_v19, %v3008_v44  ;;  %v9543_v19 = vld [vmem:[%s11622_s5 + $0xe0] sm:$0xff]  }
 0x489   :  { %v8695_v12 = vpop.f32.mrf.mxu1 }
 0x48a   :  { %v3181_v15 = vadd.f32 %v8695_v12, %v3019_v41 }
 0x48b   :  { %v10836_v0 = vpop.f32.mrf.mxu1 }
 0x4a5   :  { %v8714_v55 = vpop.f32.mrf.mxu1 }
 0x4a7   :  { %v3233_v39 = vpop.f32.mrf.mxu1 }
 0x4a9   :  { %v8715_v14 = vpop.f32.mrf.mxu1 }
 0x4aa   :  { %v3249_v9 = vpack.c.bf16 %v8715_v14, %v8714_v55 }
 0x4ab   :  { %v3236_v16 = vpop.f32.mrf.mxu1 }
 0x4ac   :  { %v3248_v60 = vpack.c.bf16 %v3236_v16, %v3233_v39 }
 0x4ae   :  { %8724 = vmatprep.mubr.msk.bf16.mxu0 %vm2887_vm0, %v3248_v60 }
 0x4af   :  { %8725 = vmatmul.mubr.msk.bf16.vlgmr.msra.gmra.mxu0 %vm2887_vm0, %v3249_v9 }
 0x4b0   :  { %8729 = vmatpush3.bf16.msra.mxu0 %v10680_v6  ;;  %8744 = vmatprep.mubr.bf16.mxu0 %v9526_v63 }
 0x4b1   :  { %8730 = vmatprep.subr.bf16.mxu0 %v10676_v35 }
 0x4b4   :  { %8731 = vmatpush3.bf16.msra.mxu0 %v10676_v35 }
 0x4b5   :  { %8732 = vmatprep.subr.bf16.mxu0 %v10669_v38 }
 0x4b8   :  { %8733 = vmatpush3.bf16.msra.mxu0 %v10669_v38 }
 0x4b9   :  { %8734 = vmatprep.subr.bf16.mxu0 %v10656_v8 }
 0x4bc   :  { %8735 = vmatpush3.bf16.msra.mxu0 %v10656_v8 }
 0x4bd   :  { %8736 = vmatprep.subr.bf16.mxu0 %v10647_v18 }
 0x4c0   :  { %8737 = vmatpush3.bf16.msra.mxu0 %v10647_v18 }
 0x4c1   :  { %8738 = vmatprep.subr.bf16.mxu0 %v10638_v59 }
 0x4c4   :  { %8739 = vmatpush3.bf16.msra.mxu0 %v10638_v59 }
 0x4c5   :  { %8740 = vmatprep.subr.bf16.mxu0 %v10629_v42 }
 0x4c8   :  { %8741 = vmatpush3.bf16.msra.mxu0 %v10629_v42 }
 0x4c9   :  { %8742 = vmatprep.subr.bf16.mxu0 %v10620_v49 }
 0x4cc   :  { %8743 = vmatpush3.bf16.msra.mxu0 %v10620_v49 }
 0x4cd   :  { %8780 = vmatprep.subr.bf16.mxu0 %v9528_v22 }
 0x4cf   :  { %8745 = vmatmul.mubr.bf16.vlgmr.msra.gmra.mxu0 %v9527_v25 }
 0x4d0   :  { %8781 = vmatpush3.bf16.msra.mxu0 %v9528_v22 }
 0x4d1   :  { %8782 = vmatprep.subr.bf16.mxu0 %v9529_v2 }
 0x4d4   :  { %8783 = vmatpush3.bf16.msra.mxu0 %v9529_v2 }
 0x4d5   :  { %8784 = vmatprep.subr.bf16.mxu0 %v9530_v31 }
 0x4d8   :  { %8785 = vmatpush3.bf16.msra.mxu0 %v9530_v31 }
 0x4d9   :  { %8786 = vmatprep.subr.bf16.mxu0 %v9531_v4 }
 0x4dc   :  { %8787 = vmatpush3.bf16.msra.mxu0 %v9531_v4 }
 0x4dd   :  { %8792 = vmatprep.subr.bf16.mxu0 %v10680_v6 }
 0x56f   :  { %v8726_v27 = vpop.f32.mrf.mxu0 }
 0x570   :  { %v3340_v47 = vadd.f32 %v8726_v27, %v3180_v52  ;;  %v9542_v52 = vld [vmem:[%s11622_s5 + $0xe8] sm:$0xff]  }
 0x571   :  { %v3323_v17 = vpop.f32.mrf.mxu0 }
 0x572   :  { %v3338_v34 = vadd.f32 %v3323_v17, %v3178_v46  ;;  %v3011_v46 = vadd.f32 %v10834_v28, %v10796_v26  ;;  %v9544_v26 = vld [vmem:[%s11621_s4 + $0x70] sm:$0xff]   ;;  %v9545_v17 = vld [vmem:[%s11621_s4 + $0x78] sm:$0xff]  }
 0x573   :  { %v8727_v40 = vpop.f32.mrf.mxu0 }
 0x574   :  { %v3341_v51 = vadd.f32 %v8727_v40, %v3181_v15  ;;  %v3179_v15 = vadd.f32 %v10836_v0, %v3011_v46  ;;  %v9546_v0 = vld [vmem:[%s11622_s5 + $0x118] sm:$0xff]   ;;  %v9548_v40 = vld [vmem:[%s11622_s5 + $0x108] sm:$0xff]  }
 0x575   :  { %v10874_v7 = vpop.f32.mrf.mxu0 }
 0x576   :  { %v3339_v14 = vadd.f32 %v10874_v7, %v3179_v15 }
 0x58f   :  { %v8746_v10 = vpop.f32.mrf.mxu0 }
 0x591   :  { %v3393_v48 = vpop.f32.mrf.mxu0 }
 0x593   :  { %v8747_v11 = vpop.f32.mrf.mxu0 }
 0x594   :  { %v3409_v45 = vpack.c.bf16 %v8747_v11, %v8746_v10 }
 0x595   :  { %v3396_v36 = vpop.f32.mrf.mxu0 }
 0x596   :  { %v3408_v13 = vpack.c.bf16 %v3396_v36, %v3393_v48 }
 0x598   :  { %8756 = vmatprep.mubr.msk.bf16.mxu1 %vm2887_vm0, %v3408_v13 }
 0x599   :  { %8757 = vmatmul.mubr.msk.bf16.vlgmr.msra.gmra.mxu1 %vm2887_vm0, %v3409_v45 }
 0x59a   :  { %8761 = vmatpush3.bf16.msra.mxu1 %v10680_v6  ;;  %8776 = vmatprep.mubr.bf16.mxu1 %v9532_v32 }
 0x59b   :  { %8762 = vmatprep.subr.bf16.mxu1 %v10676_v35 }
 0x59e   :  { %8763 = vmatpush3.bf16.msra.mxu1 %v10676_v35 }
 0x59f   :  { %8764 = vmatprep.subr.bf16.mxu1 %v10669_v38 }
 0x5a2   :  { %8765 = vmatpush3.bf16.msra.mxu1 %v10669_v38 }
 0x5a3   :  { %8766 = vmatprep.subr.bf16.mxu1 %v10656_v8 }
 0x5a6   :  { %8767 = vmatpush3.bf16.msra.mxu1 %v10656_v8 }
 0x5a7   :  { %8768 = vmatprep.subr.bf16.mxu1 %v10647_v18 }
 0x5aa   :  { %8769 = vmatpush3.bf16.msra.mxu1 %v10647_v18 }
 0x5ab   :  { %8770 = vmatprep.subr.bf16.mxu1 %v10638_v59 }
 0x5ae   :  { %8771 = vmatpush3.bf16.msra.mxu1 %v10638_v59 }
 0x5af   :  { %8772 = vmatprep.subr.bf16.mxu1 %v10629_v42 }
 0x5b2   :  { %8773 = vmatpush3.bf16.msra.mxu1 %v10629_v42 }
 0x5b3   :  { %8774 = vmatprep.subr.bf16.mxu1 %v10620_v49 }
 0x5b6   :  { %8775 = vmatpush3.bf16.msra.mxu1 %v10620_v49 }
 0x5b7   :  { %8812 = vmatprep.subr.bf16.mxu1 %v9534_v33 }
 0x5b9   :  { %8777 = vmatmul.mubr.bf16.vlgmr.msra.gmra.mxu1 %v9533_v21 }
 0x5ba   :  { %8813 = vmatpush3.bf16.msra.mxu1 %v9534_v33 }
 0x5bb   :  { %8814 = vmatprep.subr.bf16.mxu1 %v9535_v24 }
 0x5be   :  { %8815 = vmatpush3.bf16.msra.mxu1 %v9535_v24 }
 0x5bf   :  { %8816 = vmatprep.subr.bf16.mxu1 %v9536_v20 }
 0x5c2   :  { %8817 = vmatpush3.bf16.msra.mxu1 %v9536_v20 }
 0x5c3   :  { %8818 = vmatprep.subr.bf16.mxu1 %v9537_v58 }
 0x5c6   :  { %8819 = vmatpush3.bf16.msra.mxu1 %v9537_v58 }
 0x5c7   :  { %8824 = vmatprep.subr.bf16.mxu1 %v10680_v6 }
 0x659   :  { %v8758_v44 = vpop.f32.mrf.mxu1 }
 0x65a   :  { %v3500_v23 = vadd.f32 %v8758_v44, %v3340_v47  ;;  %v9550_v44 = vld [vmem:[%s11621_s4 + $0x80] sm:$0xff]  }
 0x65b   :  { %v3483_v29 = vpop.f32.mrf.mxu1 }
 0x65c   :  { %v3498_v41 = vadd.f32 %v3483_v29, %v3338_v34  ;;  %v9547_v34 = vld [vmem:[%s11622_s5 + $0x110] sm:$0xff]   ;;  %v9552_v29 = vld [vmem:[%s11622_s5 + $0x138] sm:$0xff]  }
 0x65d   :  { %v8759_v30 = vpop.f32.mrf.mxu1 }
 0x65e   :  { %v3501_v43 = vadd.f32 %v8759_v30, %v3341_v51  ;;  %v9549_v51 = vld [vmem:[%s11622_s5 + $0x100] sm:$0xff]   ;;  %v9553_v30 = vld [vmem:[%s11622_s5 + $0x130] sm:$0xff]  }
 0x65f   :  { %v3486_v1 = vpop.f32.mrf.mxu1 }
 0x660   :  { %v3499_v63 = vadd.f32 %v3486_v1, %v3339_v14  ;;  %v9555_v1 = vld [vmem:[%s11622_s5 + $0x120] sm:$0xff]   ;;  %v9559_v14 = vld [vmem:[%s11622_s5 + $0x150] sm:$0xff]  }
 0x679   :  { %v8778_v50 = vpop.f32.mrf.mxu1 }
 0x67b   :  { %v3553_v53 = vpop.f32.mrf.mxu1 }
 0x67d   :  { %v8779_v37 = vpop.f32.mrf.mxu1 }
 0x67e   :  { %v3569_v54 = vpack.c.bf16 %v8779_v37, %v8778_v50 }
 0x67f   :  { %v3556_v3 = vpop.f32.mrf.mxu1 }
 0x680   :  { %v3568_v57 = vpack.c.bf16 %v3556_v3, %v3553_v53 }
 0x682   :  { %8788 = vmatprep.mubr.msk.bf16.mxu0 %vm2887_vm0, %v3568_v57 }
 0x683   :  { %8789 = vmatmul.mubr.msk.bf16.vlgmr.msra.gmra.mxu0 %vm2887_vm0, %v3569_v54 }
 0x684   :  { %8793 = vmatpush3.bf16.msra.mxu0 %v10680_v6  ;;  %8808 = vmatprep.mubr.bf16.mxu0 %v9538_v56 }
 0x685   :  { %8794 = vmatprep.subr.bf16.mxu0 %v10676_v35 }
 0x688   :  { %8795 = vmatpush3.bf16.msra.mxu0 %v10676_v35 }
 0x689   :  { %8796 = vmatprep.subr.bf16.mxu0 %v10669_v38 }
 0x68c   :  { %8797 = vmatpush3.bf16.msra.mxu0 %v10669_v38 }
 0x68d   :  { %8798 = vmatprep.subr.bf16.mxu0 %v10656_v8 }
 0x690   :  { %8799 = vmatpush3.bf16.msra.mxu0 %v10656_v8 }
 0x691   :  { %8800 = vmatprep.subr.bf16.mxu0 %v10647_v18 }
 0x694   :  { %8801 = vmatpush3.bf16.msra.mxu0 %v10647_v18 }
 0x695   :  { %8802 = vmatprep.subr.bf16.mxu0 %v10638_v59 }
 0x698   :  { %8803 = vmatpush3.bf16.msra.mxu0 %v10638_v59 }
 0x699   :  { %8804 = vmatprep.subr.bf16.mxu0 %v10629_v42 }
 0x69c   :  { %8805 = vmatpush3.bf16.msra.mxu0 %v10629_v42 }
 0x69d   :  { %8806 = vmatprep.subr.bf16.mxu0 %v10620_v49 }
 0x6a0   :  { %8807 = vmatpush3.bf16.msra.mxu0 %v10620_v49 }
 0x6a1   :  { %8844 = vmatprep.subr.bf16.mxu0 %v9540_v62 }
 0x6a3   :  { %8809 = vmatmul.mubr.bf16.vlgmr.msra.gmra.mxu0 %v9539_v5 }
 0x6a4   :  { %8845 = vmatpush3.bf16.msra.mxu0 %v9540_v62 }
 0x6a5   :  { %8846 = vmatprep.subr.bf16.mxu0 %v9541_v61 }
 0x6a8   :  { %8847 = vmatpush3.bf16.msra.mxu0 %v9541_v61 }
 0x6a9   :  { %8848 = vmatprep.subr.bf16.mxu0 %v9542_v52 }
 0x6ac   :  { %8849 = vmatpush3.bf16.msra.mxu0 %v9542_v52 }
 0x6ad   :  { %8850 = vmatprep.subr.bf16.mxu0 %v9543_v19 }
 0x6b0   :  { %8851 = vmatpush3.bf16.msra.mxu0 %v9543_v19 }
 0x6b1   :  { %8856 = vmatprep.subr.bf16.mxu0 %v10680_v6 }
 0x743   :  { %v8790_v12 = vpop.f32.mrf.mxu0 }
 0x744   :  { %v3660_v55 = vadd.f32 %v8790_v12, %v3500_v23  ;;  %v9556_v12 = vld [vmem:[%s11621_s4 + $0x90] sm:$0xff]  }
 0x745   :  { %v3643_v39 = vpop.f32.mrf.mxu0 }
 0x746   :  { %v3658_v16 = vadd.f32 %v3643_v39, %v3498_v41  ;;  %v9551_v41 = vld [vmem:[%s11621_s4 + $0x88] sm:$0xff]   ;;  %v9557_v39 = vld [vmem:[%s11621_s4 + $0x98] sm:$0xff]  }
 0x747   :  { %v8791_v60 = vpop.f32.mrf.mxu0 }
 0x748   :  { %v3661_v9 = vadd.f32 %v8791_v60, %v3501_v43  ;;  %v9554_v43 = vld [vmem:[%s11622_s5 + $0x128] sm:$0xff]   ;;  %v9561_v60 = vld [vmem:[%s11622_s5 + $0x140] sm:$0xff]  }
 0x749   :  { %v3646_v22 = vpop.f32.mrf.mxu0 }
 0x74a   :  { %v3659_v25 = vadd.f32 %v3646_v22, %v3499_v63 }
 0x763   :  { %v8810_v2 = vpop.f32.mrf.mxu0 }
 0x765   :  { %v3713_v31 = vpop.f32.mrf.mxu0 }
 0x767   :  { %v8811_v4 = vpop.f32.mrf.mxu0 }
 0x768   :  { %v3729_v28 = vpack.c.bf16 %v8811_v4, %v8810_v2 }
 0x769   :  { %v3716_v27 = vpop.f32.mrf.mxu0 }
 0x76a   :  { %v3728_v47 = vpack.c.bf16 %v3716_v27, %v3713_v31 }
 0x76c   :  { %8820 = vmatprep.mubr.msk.bf16.mxu1 %vm2887_vm0, %v3728_v47 }
 0x76d   :  { %8821 = vmatmul.mubr.msk.bf16.vlgmr.msra.gmra.mxu1 %vm2887_vm0, %v3729_v28 }
 0x76e   :  { %8825 = vmatpush3.bf16.msra.mxu1 %v10680_v6  ;;  %8840 = vmatprep.mubr.bf16.mxu1 %v9544_v26 }
 0x76f   :  { %8826 = vmatprep.subr.bf16.mxu1 %v10676_v35 }
 0x772   :  { %8827 = vmatpush3.bf16.msra.mxu1 %v10676_v35 }
 0x773   :  { %8828 = vmatprep.subr.bf16.mxu1 %v10669_v38 }
 0x776   :  { %8829 = vmatpush3.bf16.msra.mxu1 %v10669_v38 }
 0x777   :  { %8830 = vmatprep.subr.bf16.mxu1 %v10656_v8 }
 0x77a   :  { %8831 = vmatpush3.bf16.msra.mxu1 %v10656_v8 }
 0x77b   :  { %8832 = vmatprep.subr.bf16.mxu1 %v10647_v18 }
 0x77e   :  { %8833 = vmatpush3.bf16.msra.mxu1 %v10647_v18 }
 0x77f   :  { %8834 = vmatprep.subr.bf16.mxu1 %v10638_v59 }
 0x782   :  { %8835 = vmatpush3.bf16.msra.mxu1 %v10638_v59 }
 0x783   :  { %8836 = vmatprep.subr.bf16.mxu1 %v10629_v42 }
 0x786   :  { %8837 = vmatpush3.bf16.msra.mxu1 %v10629_v42 }
 0x787   :  { %8838 = vmatprep.subr.bf16.mxu1 %v10620_v49 }
 0x78a   :  { %8839 = vmatpush3.bf16.msra.mxu1 %v10620_v49 }
 0x78b   :  { %8876 = vmatprep.subr.bf16.mxu1 %v9546_v0 }
 0x78d   :  { %8841 = vmatmul.mubr.bf16.vlgmr.msra.gmra.mxu1 %v9545_v17 }
 0x78e   :  { %8877 = vmatpush3.bf16.msra.mxu1 %v9546_v0 }
 0x78f   :  { %8878 = vmatprep.subr.bf16.mxu1 %v9547_v34 }
 0x792   :  { %8879 = vmatpush3.bf16.msra.mxu1 %v9547_v34  ;;  %v9562_v34 = vld [vmem:[%s11621_s4 + $0xa0] sm:$0xff]  }
 0x793   :  { %8880 = vmatprep.subr.bf16.mxu1 %v9548_v40 }
 0x796   :  { %8881 = vmatpush3.bf16.msra.mxu1 %v9548_v40 }
 0x797   :  { %8882 = vmatprep.subr.bf16.mxu1 %v9549_v51 }
 0x79a   :  { %8883 = vmatpush3.bf16.msra.mxu1 %v9549_v51  ;;  %v9564_v51 = vld [vmem:[%s11622_s5 + $0x178] sm:$0xff]  }
 0x79b   :  { %8888 = vmatprep.subr.bf16.mxu1 %v10680_v6 }
 0x82d   :  { %v8822_v7 = vpop.f32.mrf.mxu1 }
 0x82e   :  { %v3820_v10 = vadd.f32 %v8822_v7, %v3660_v55  ;;  %v9558_v55 = vld [vmem:[%s11622_s5 + $0x158] sm:$0xff]   ;;  %v9563_v7 = vld [vmem:[%s11621_s4 + $0xa8] sm:$0xff]  }
 0x82f   :  { %v3803_v48 = vpop.f32.mrf.mxu1 }
 0x830   :  { %v3818_v11 = vadd.f32 %v3803_v48, %v3658_v16  ;;  %v9560_v16 = vld [vmem:[%s11622_s5 + $0x148] sm:$0xff]  }
 0x831   :  { %v8823_v36 = vpop.f32.mrf.mxu1  ;;  %v9566_v48 = vld [vmem:[%s11622_s5 + $0x168] sm:$0xff]  }
 0x832   :  { %v3821_v13 = vadd.f32 %v8823_v36, %v3661_v9 }
 0x833   :  { %v3806_v32 = vpop.f32.mrf.mxu1 }
 0x834   :  { %v3819_v45 = vadd.f32 %v3806_v32, %v3659_v25 }
 0x84d   :  { %v8842_v33 = vpop.f32.mrf.mxu1 }
 0x84f   :  { %v3873_v21 = vpop.f32.mrf.mxu1 }
 0x851   :  { %v8843_v24 = vpop.f32.mrf.mxu1 }
 0x852   :  { %v3889_v23 = vpack.c.bf16 %v8843_v24, %v8842_v33 }
 0x853   :  { %v3876_v20 = vpop.f32.mrf.mxu1 }
 0x854   :  { %v3888_v58 = vpack.c.bf16 %v3876_v20, %v3873_v21 }
 0x856   :  { %8852 = vmatprep.mubr.msk.bf16.mxu0 %vm2887_vm0, %v3888_v58 }
 0x857   :  { %8853 = vmatmul.mubr.msk.bf16.vlgmr.msra.gmra.mxu0 %vm2887_vm0, %v3889_v23 }
 0x858   :  { %8857 = vmatpush3.bf16.msra.mxu0 %v10680_v6  ;;  %8872 = vmatprep.mubr.bf16.mxu0 %v9550_v44 }
 0x859   :  { %8858 = vmatprep.subr.bf16.mxu0 %v10676_v35 }
 0x85c   :  { %8859 = vmatpush3.bf16.msra.mxu0 %v10676_v35 }
 0x85d   :  { %8860 = vmatprep.subr.bf16.mxu0 %v10669_v38 }
 0x860   :  { %8861 = vmatpush3.bf16.msra.mxu0 %v10669_v38 }
 0x861   :  { %8862 = vmatprep.subr.bf16.mxu0 %v10656_v8 }
 0x864   :  { %8863 = vmatpush3.bf16.msra.mxu0 %v10656_v8 }
 0x865   :  { %8864 = vmatprep.subr.bf16.mxu0 %v10647_v18 }
 0x868   :  { %8865 = vmatpush3.bf16.msra.mxu0 %v10647_v18 }
 0x869   :  { %8866 = vmatprep.subr.bf16.mxu0 %v10638_v59 }
 0x86c   :  { %8867 = vmatpush3.bf16.msra.mxu0 %v10638_v59 }
 0x86d   :  { %8868 = vmatprep.subr.bf16.mxu0 %v10629_v42 }
 0x870   :  { %8869 = vmatpush3.bf16.msra.mxu0 %v10629_v42 }
 0x871   :  { %8870 = vmatprep.subr.bf16.mxu0 %v10620_v49 }
 0x874   :  { %8871 = vmatpush3.bf16.msra.mxu0 %v10620_v49 }
 0x875   :  { %8908 = vmatprep.subr.bf16.mxu0 %v9552_v29 }
 0x877   :  { %8873 = vmatmul.mubr.bf16.vlgmr.msra.gmra.mxu0 %v9551_v41 }
 0x878   :  { %8909 = vmatpush3.bf16.msra.mxu0 %v9552_v29 }
 0x879   :  { %8910 = vmatprep.subr.bf16.mxu0 %v9553_v30 }
 0x87c   :  { %8911 = vmatpush3.bf16.msra.mxu0 %v9553_v30  ;;  %v9568_v30 = vld [vmem:[%s11621_s4 + $0xb0] sm:$0xff]  }
 0x87d   :  { %8912 = vmatprep.subr.bf16.mxu0 %v9554_v43 }
 0x880   :  { %8913 = vmatpush3.bf16.msra.mxu0 %v9554_v43 }
 0x881   :  { %8914 = vmatprep.subr.bf16.mxu0 %v9555_v1 }
 0x884   :  { %8915 = vmatpush3.bf16.msra.mxu0 %v9555_v1  ;;  %v9570_v1 = vld [vmem:[%s11622_s5 + $0x198] sm:$0xff]  }
 0x885   :  { %8920 = vmatprep.subr.bf16.mxu0 %v10680_v6 }
 0x917   :  { %v8854_v50 = vpop.f32.mrf.mxu0 }
 0x918   :  { %v3980_v53 = vadd.f32 %v8854_v50, %v3820_v10  ;;  %v9565_v10 = vld [vmem:[%s11622_s5 + $0x170] sm:$0xff]   ;;  %v9569_v50 = vld [vmem:[%s11621_s4 + $0xb8] sm:$0xff]  }
 0x919   :  { %v3963_v37 = vpop.f32.mrf.mxu0 }
 0x91a   :  { %v3978_v3 = vadd.f32 %v3963_v37, %v3818_v11  ;;  %v9567_v11 = vld [vmem:[%s11622_s5 + $0x160] sm:$0xff]   ;;  %v9572_v37 = vld [vmem:[%s11622_s5 + $0x188] sm:$0xff]  }
 0x91b   :  { %v8855_v57 = vpop.f32.mrf.mxu0 }
 0x91c   :  { %v3981_v56 = vadd.f32 %v8855_v57, %v3821_v13 }
 0x91d   :  { %v3966_v54 = vpop.f32.mrf.mxu0 }
 0x91e   :  { %v3979_v62 = vadd.f32 %v3966_v54, %v3819_v45 }
 0x937   :  { %v8874_v5 = vpop.f32.mrf.mxu0 }
 0x939   :  { %v4033_v61 = vpop.f32.mrf.mxu0 }
 0x93b   :  { %v8875_v52 = vpop.f32.mrf.mxu0 }
 0x93c   :  { %v4049_v15 = vpack.c.bf16 %v8875_v52, %v8874_v5 }
 0x93d   :  { %v4036_v19 = vpop.f32.mrf.mxu0 }
 0x93e   :  { %v4048_v46 = vpack.c.bf16 %v4036_v19, %v4033_v61 }
 0x940   :  { %8884 = vmatprep.mubr.msk.bf16.mxu1 %vm2887_vm0, %v4048_v46 }
 0x941   :  { %8885 = vmatmul.mubr.msk.bf16.vlgmr.msra.gmra.mxu1 %vm2887_vm0, %v4049_v15 }
 0x942   :  { %8889 = vmatpush3.bf16.msra.mxu1 %v10680_v6  ;;  %8904 = vmatprep.mubr.bf16.mxu1 %v9556_v12 }
 0x943   :  { %8890 = vmatprep.subr.bf16.mxu1 %v10676_v35 }
 0x946   :  { %8891 = vmatpush3.bf16.msra.mxu1 %v10676_v35 }
 0x947   :  { %8892 = vmatprep.subr.bf16.mxu1 %v10669_v38 }
 0x94a   :  { %8893 = vmatpush3.bf16.msra.mxu1 %v10669_v38 }
 0x94b   :  { %8894 = vmatprep.subr.bf16.mxu1 %v10656_v8 }
 0x94e   :  { %8895 = vmatpush3.bf16.msra.mxu1 %v10656_v8 }
 0x94f   :  { %8896 = vmatprep.subr.bf16.mxu1 %v10647_v18 }
 0x952   :  { %8897 = vmatpush3.bf16.msra.mxu1 %v10647_v18 }
 0x953   :  { %8898 = vmatprep.subr.bf16.mxu1 %v10638_v59 }
 0x956   :  { %8899 = vmatpush3.bf16.msra.mxu1 %v10638_v59 }
 0x957   :  { %8900 = vmatprep.subr.bf16.mxu1 %v10629_v42 }
 0x95a   :  { %8901 = vmatpush3.bf16.msra.mxu1 %v10629_v42 }
 0x95b   :  { %8902 = vmatprep.subr.bf16.mxu1 %v10620_v49 }
 0x95e   :  { %8903 = vmatpush3.bf16.msra.mxu1 %v10620_v49 }
 0x95f   :  { %8940 = vmatprep.subr.bf16.mxu1 %v9558_v55 }
 0x961   :  { %8905 = vmatmul.mubr.bf16.vlgmr.msra.gmra.mxu1 %v9557_v39 }
 0x962   :  { %8941 = vmatpush3.bf16.msra.mxu1 %v9558_v55 }
 0x963   :  { %8942 = vmatprep.subr.bf16.mxu1 %v9559_v14 }
 0x966   :  { %8943 = vmatpush3.bf16.msra.mxu1 %v9559_v14  ;;  %v9574_v14 = vld [vmem:[%s11621_s4 + $0xc0] sm:$0xff]  }
 0x967   :  { %8944 = vmatprep.subr.bf16.mxu1 %v9560_v16 }
 0x96a   :  { %8945 = vmatpush3.bf16.msra.mxu1 %v9560_v16 }
 0x96b   :  { %8946 = vmatprep.subr.bf16.mxu1 %v9561_v60 }
 0x96e   :  { %8947 = vmatpush3.bf16.msra.mxu1 %v9561_v60  ;;  %v9576_v60 = vld [vmem:[%s11622_s5 + $0x1b8] sm:$0xff]  }
 0x96f   :  { %8952 = vmatprep.subr.bf16.mxu1 %v10680_v6 }
 0xa01   :  { %v8886_v63 = vpop.f32.mrf.mxu1 }
 0xa02   :  { %v4140_v9 = vadd.f32 %v8886_v63, %v3980_v53  ;;  %v9571_v53 = vld [vmem:[%s11622_s5 + $0x190] sm:$0xff]   ;;  %v9575_v63 = vld [vmem:[%s11621_s4 + $0xc8] sm:$0xff]  }
 0xa03   :  { %v4123_v22 = vpop.f32.mrf.mxu1 }
 0xa04   :  { %v4138_v25 = vadd.f32 %v4123_v22, %v3978_v3  ;;  %v9573_v3 = vld [vmem:[%s11622_s5 + $0x180] sm:$0xff]   ;;  %v9578_v22 = vld [vmem:[%s11622_s5 + $0x1a8] sm:$0xff]  }
 0xa05   :  { %v8887_v2 = vpop.f32.mrf.mxu1 }
 0xa06   :  { %v4141_v31 = vadd.f32 %v8887_v2, %v3981_v56 }
 0xa07   :  { %v4126_v4 = vpop.f32.mrf.mxu1 }
 0xa08   :  { %v4139_v27 = vadd.f32 %v4126_v4, %v3979_v62 }
 0xa21   :  { %v8906_v47 = vpop.f32.mrf.mxu1 }
 0xa23   :  { %v4193_v26 = vpop.f32.mrf.mxu1 }
 0xa25   :  { %v8907_v28 = vpop.f32.mrf.mxu1 }
 0xa26   :  { %v4209_v40 = vpack.c.bf16 %v8907_v28, %v8906_v47 }
 0xa27   :  { %v4196_v0 = vpop.f32.mrf.mxu1 }
 0xa28   :  { %v4208_v17 = vpack.c.bf16 %v4196_v0, %v4193_v26 }
 0xa2a   :  { %8916 = vmatprep.mubr.msk.bf16.mxu0 %vm2887_vm0, %v4208_v17 }
 0xa2b   :  { %8917 = vmatmul.mubr.msk.bf16.vlgmr.msra.gmra.mxu0 %vm2887_vm0, %v4209_v40 }
 0xa2c   :  { %8921 = vmatpush3.bf16.msra.mxu0 %v10680_v6  ;;  %8936 = vmatprep.mubr.bf16.mxu0 %v9562_v34 }
 0xa2d   :  { %8922 = vmatprep.subr.bf16.mxu0 %v10676_v35 }
 0xa30   :  { %8923 = vmatpush3.bf16.msra.mxu0 %v10676_v35 }
 0xa31   :  { %8924 = vmatprep.subr.bf16.mxu0 %v10669_v38 }
 0xa34   :  { %8925 = vmatpush3.bf16.msra.mxu0 %v10669_v38 }
 0xa35   :  { %8926 = vmatprep.subr.bf16.mxu0 %v10656_v8 }
 0xa38   :  { %8927 = vmatpush3.bf16.msra.mxu0 %v10656_v8 }
 0xa39   :  { %8928 = vmatprep.subr.bf16.mxu0 %v10647_v18 }
 0xa3c   :  { %8929 = vmatpush3.bf16.msra.mxu0 %v10647_v18 }
 0xa3d   :  { %8930 = vmatprep.subr.bf16.mxu0 %v10638_v59 }
 0xa40   :  { %8931 = vmatpush3.bf16.msra.mxu0 %v10638_v59 }
 0xa41   :  { %8932 = vmatprep.subr.bf16.mxu0 %v10629_v42 }
 0xa44   :  { %8933 = vmatpush3.bf16.msra.mxu0 %v10629_v42 }
 0xa45   :  { %8934 = vmatprep.subr.bf16.mxu0 %v10620_v49 }
 0xa48   :  { %8935 = vmatpush3.bf16.msra.mxu0 %v10620_v49 }
 0xa49   :  { %8972 = vmatprep.subr.bf16.mxu0 %v9564_v51 }
 0xa4b   :  { %8937 = vmatmul.mubr.bf16.vlgmr.msra.gmra.mxu0 %v9563_v7 }
 0xa4c   :  { %8973 = vmatpush3.bf16.msra.mxu0 %v9564_v51 }
 0xa4d   :  { %8974 = vmatprep.subr.bf16.mxu0 %v9565_v10 }
 0xa50   :  { %8975 = vmatpush3.bf16.msra.mxu0 %v9565_v10  ;;  %v9580_v10 = vld [vmem:[%s11621_s4 + $0xd0] sm:$0xff]  }
 0xa51   :  { %8976 = vmatprep.subr.bf16.mxu0 %v9566_v48 }
 0xa54   :  { %8977 = vmatpush3.bf16.msra.mxu0 %v9566_v48 }
 0xa55   :  { %8978 = vmatprep.subr.bf16.mxu0 %v9567_v11 }
 0xa58   :  { %8979 = vmatpush3.bf16.msra.mxu0 %v9567_v11  ;;  %v9582_v11 = vld [vmem:[%s11622_s5 + $0x1d8] sm:$0xff]  }
 0xa59   :  { %8984 = vmatprep.subr.bf16.mxu0 %v10680_v6 }
 0xaeb   :  { %v8918_v36 = vpop.f32.mrf.mxu0 }
 0xaec   :  { %v4300_v13 = vadd.f32 %v8918_v36, %v4140_v9  ;;  %v9577_v9 = vld [vmem:[%s11622_s5 + $0x1b0] sm:$0xff]   ;;  %v9581_v36 = vld [vmem:[%s11621_s4 + $0xd8] sm:$0xff]  }
 0xaed   :  { %v4283_v32 = vpop.f32.mrf.mxu0 }
 0xaee   :  { %v4298_v45 = vadd.f32 %v4283_v32, %v4138_v25  ;;  %v9579_v25 = vld [vmem:[%s11622_s5 + $0x1a0] sm:$0xff]   ;;  %v9584_v32 = vld [vmem:[%s11622_s5 + $0x1c8] sm:$0xff]  }
 0xaef   :  { %v8919_v33 = vpop.f32.mrf.mxu0 }
 0xaf0   :  { %v4301_v21 = vadd.f32 %v8919_v33, %v4141_v31 }
 0xaf1   :  { %v4286_v24 = vpop.f32.mrf.mxu0 }
 0xaf2   :  { %v4299_v20 = vadd.f32 %v4286_v24, %v4139_v27 }
 0xb0b   :  { %v8938_v58 = vpop.f32.mrf.mxu0 }
 0xb0d   :  { %v4353_v44 = vpop.f32.mrf.mxu0 }
 0xb0f   :  { %v8939_v23 = vpop.f32.mrf.mxu0 }
 0xb10   :  { %v4369_v43 = vpack.c.bf16 %v8939_v23, %v8938_v58 }
 0xb11   :  { %v4356_v29 = vpop.f32.mrf.mxu0 }
 0xb12   :  { %v4368_v41 = vpack.c.bf16 %v4356_v29, %v4353_v44 }
 0xb14   :  { %8948 = vmatprep.mubr.msk.bf16.mxu1 %vm2887_vm0, %v4368_v41 }
 0xb15   :  { %8949 = vmatmul.mubr.msk.bf16.vlgmr.msra.gmra.mxu1 %vm2887_vm0, %v4369_v43 }
 0xb16   :  { %8953 = vmatpush3.bf16.msra.mxu1 %v10680_v6  ;;  %8968 = vmatprep.mubr.bf16.mxu1 %v9568_v30 }
 0xb17   :  { %8954 = vmatprep.subr.bf16.mxu1 %v10676_v35 }
 0xb1a   :  { %8955 = vmatpush3.bf16.msra.mxu1 %v10676_v35 }
 0xb1b   :  { %8956 = vmatprep.subr.bf16.mxu1 %v10669_v38 }
 0xb1e   :  { %8957 = vmatpush3.bf16.msra.mxu1 %v10669_v38 }
 0xb1f   :  { %8958 = vmatprep.subr.bf16.mxu1 %v10656_v8 }
 0xb22   :  { %8959 = vmatpush3.bf16.msra.mxu1 %v10656_v8 }
 0xb23   :  { %8960 = vmatprep.subr.bf16.mxu1 %v10647_v18 }
 0xb26   :  { %8961 = vmatpush3.bf16.msra.mxu1 %v10647_v18 }
 0xb27   :  { %8962 = vmatprep.subr.bf16.mxu1 %v10638_v59 }
 0xb2a   :  { %8963 = vmatpush3.bf16.msra.mxu1 %v10638_v59 }
 0xb2b   :  { %8964 = vmatprep.subr.bf16.mxu1 %v10629_v42 }
 0xb2e   :  { %8965 = vmatpush3.bf16.msra.mxu1 %v10629_v42 }
 0xb2f   :  { %8966 = vmatprep.subr.bf16.mxu1 %v10620_v49 }
 0xb32   :  { %8967 = vmatpush3.bf16.msra.mxu1 %v10620_v49 }
 0xb33   :  { %9004 = vmatprep.subr.bf16.mxu1 %v9570_v1 }
 0xb35   :  { %8969 = vmatmul.mubr.bf16.vlgmr.msra.gmra.mxu1 %v9569_v50 }
 0xb36   :  { %9005 = vmatpush3.bf16.msra.mxu1 %v9570_v1 }
 0xb37   :  { %9006 = vmatprep.subr.bf16.mxu1 %v9571_v53 }
 0xb3a   :  { %9007 = vmatpush3.bf16.msra.mxu1 %v9571_v53  ;;  %v9586_v53 = vld [vmem:[%s11621_s4 + $0xe0] sm:$0xff]  }
 0xb3b   :  { %9008 = vmatprep.subr.bf16.mxu1 %v9572_v37 }
 0xb3e   :  { %9009 = vmatpush3.bf16.msra.mxu1 %v9572_v37 }
 0xb3f   :  { %9010 = vmatprep.subr.bf16.mxu1 %v9573_v3 }
 0xb42   :  { %9011 = vmatpush3.bf16.msra.mxu1 %v9573_v3  ;;  %v9587_v3 = vld [vmem:[%s11621_s4 + $0xe8] sm:$0xff]  }
 0xb43   :  { %9016 = vmatprep.subr.bf16.mxu1 %v10680_v6 }
 0xbd5   :  { %v8950_v57 = vpop.f32.mrf.mxu1 }
 0xbd6   :  { %v4460_v56 = vadd.f32 %v8950_v57, %v4300_v13  ;;  %v9583_v13 = vld [vmem:[%s11622_s5 + $0x1d0] sm:$0xff]  }
 0xbd7   :  { %v4443_v54 = vpop.f32.mrf.mxu1 }
 0xbd8   :  { %v4458_v62 = vadd.f32 %v4443_v54, %v4298_v45  ;;  %v9585_v45 = vld [vmem:[%s11622_s5 + $0x1c0] sm:$0xff]  }
 0xbd9   :  { %v8951_v5 = vpop.f32.mrf.mxu1 }
 0xbda   :  { %v4461_v61 = vadd.f32 %v8951_v5, %v4301_v21 }
 0xbdb   :  { %v4446_v52 = vpop.f32.mrf.mxu1 }
 0xbdc   :  { %v4459_v19 = vadd.f32 %v4446_v52, %v4299_v20 }
 0xbf5   :  { %v8970_v46 = vpop.f32.mrf.mxu1 }
 0xbf7   :  { %v4513_v12 = vpop.f32.mrf.mxu1 }
 0xbf9   :  { %v8971_v15 = vpop.f32.mrf.mxu1 }
 0xbfa   :  { %v4529_v16 = vpack.c.bf16 %v8971_v15, %v8970_v46 }
 0xbfb   :  { %v4516_v55 = vpop.f32.mrf.mxu1 }
 0xbfc   :  { %v4528_v39 = vpack.c.bf16 %v4516_v55, %v4513_v12 }
 0xbfe   :  { %8980 = vmatprep.mubr.msk.bf16.mxu0 %vm2887_vm0, %v4528_v39 }
 0xbff   :  { %8981 = vmatmul.mubr.msk.bf16.vlgmr.msra.gmra.mxu0 %vm2887_vm0, %v4529_v16 }
 0xc00   :  { %8985 = vmatpush3.bf16.msra.mxu0 %v10680_v6  ;;  %9000 = vmatprep.mubr.bf16.mxu0 %v9574_v14  ;;  %v9588_v14 = vld [vmem:[%s11621_s4 + $0xf0] sm:$0xff]  }
 0xc01   :  { %8986 = vmatprep.subr.bf16.mxu0 %v10676_v35 }
 0xc04   :  { %8987 = vmatpush3.bf16.msra.mxu0 %v10676_v35 }
 0xc05   :  { %8988 = vmatprep.subr.bf16.mxu0 %v10669_v38 }
 0xc08   :  { %8989 = vmatpush3.bf16.msra.mxu0 %v10669_v38 }
 0xc09   :  { %8990 = vmatprep.subr.bf16.mxu0 %v10656_v8 }
 0xc0c   :  { %8991 = vmatpush3.bf16.msra.mxu0 %v10656_v8 }
 0xc0d   :  { %8992 = vmatprep.subr.bf16.mxu0 %v10647_v18 }
 0xc10   :  { %8993 = vmatpush3.bf16.msra.mxu0 %v10647_v18 }
 0xc11   :  { %8994 = vmatprep.subr.bf16.mxu0 %v10638_v59 }
 0xc14   :  { %8995 = vmatpush3.bf16.msra.mxu0 %v10638_v59 }
 0xc15   :  { %8996 = vmatprep.subr.bf16.mxu0 %v10629_v42 }
 0xc18   :  { %8997 = vmatpush3.bf16.msra.mxu0 %v10629_v42 }
 0xc19   :  { %8998 = vmatprep.subr.bf16.mxu0 %v10620_v49 }
 0xc1c   :  { %8999 = vmatpush3.bf16.msra.mxu0 %v10620_v49 }
 0xc1d   :  { %9036 = vmatprep.subr.bf16.mxu0 %v9576_v60 }
 0xc1f   :  { %9001 = vmatmul.mubr.bf16.vlgmr.msra.gmra.mxu0 %v9575_v63 }
 0xc20   :  { %9037 = vmatpush3.bf16.msra.mxu0 %v9576_v60 }
 0xc21   :  { %9038 = vmatprep.subr.bf16.mxu0 %v9577_v9 }
 0xc24   :  { %9039 = vmatpush3.bf16.msra.mxu0 %v9577_v9 }
 0xc25   :  { %9040 = vmatprep.subr.bf16.mxu0 %v9578_v22 }
 0xc28   :  { %9041 = vmatpush3.bf16.msra.mxu0 %v9578_v22 }
 0xc29   :  { %9042 = vmatprep.subr.bf16.mxu0 %v9579_v25 }
 0xc2c   :  { %9043 = vmatpush3.bf16.msra.mxu0 %v9579_v25 }
 0xc2d   :  { %9048 = vmatprep.subr.bf16.mxu0 %v10680_v6 }
 0xcbf   :  { %v8982_v2 = vpop.f32.mrf.mxu0 }
 0xcc0   :  { %v4620_v31 = vadd.f32 %v8982_v2, %v4460_v56 }
 0xcc1   :  { %v4603_v4 = vpop.f32.mrf.mxu0 }
 0xcc2   :  { %v4618_v27 = vadd.f32 %v4603_v4, %v4458_v62 }
 0xcc3   :  { %v8983_v47 = vpop.f32.mrf.mxu0 }
 0xcc4   :  { %v4621_v26 = vadd.f32 %v8983_v47, %v4461_v61 }
 0xcc5   :  { %v4606_v28 = vpop.f32.mrf.mxu0 }
 0xcc6   :  { %v4619_v0 = vadd.f32 %v4606_v28, %v4459_v19  ;;  %v9630_v28 = vmov 0.0  }
 0xcdf   :  { %v9002_v17 = vpop.f32.mrf.mxu0 }
 0xce1   :  { %v4673_v34 = vpop.f32.mrf.mxu0 }
 0xce3   :  { %v9003_v40 = vpop.f32.mrf.mxu0 }
 0xce4   :  { %v4689_v48 = vpack.c.bf16 %v9003_v40, %v9002_v17  ;;  %v7593_v17 = vld [vmem:[%s11626_s6] ss:$0 sm:$0xff] }
 0xce5   :  { %v4676_v51 = vpop.f32.mrf.mxu0  ;;  %v7594_v40 = vld [vmem:[%s11627_s7] ss:$0 sm:$0xff] }
 0xce6   :  { %v4688_v7 = vpack.c.bf16 %v4676_v51, %v4673_v34 }
 0xce8   :  { %9012 = vmatprep.mubr.msk.bf16.mxu1 %vm2887_vm0, %v4688_v7 }
 0xce9   :  { %9013 = vmatmul.mubr.msk.bf16.vlgmr.msra.gmra.mxu1 %vm2887_vm0, %v4689_v48 }
 0xcea   :  { %9017 = vmatpush3.bf16.msra.mxu1 %v10680_v6  ;;  %9032 = vmatprep.mubr.bf16.mxu1 %v9580_v10 }
 0xceb   :  { %9018 = vmatprep.subr.bf16.mxu1 %v10676_v35 }
 0xcee   :  { %9019 = vmatpush3.bf16.msra.mxu1 %v10676_v35 }
 0xcef   :  { %9020 = vmatprep.subr.bf16.mxu1 %v10669_v38 }
 0xcf2   :  { %9021 = vmatpush3.bf16.msra.mxu1 %v10669_v38 }
 0xcf3   :  { %9022 = vmatprep.subr.bf16.mxu1 %v10656_v8 }
 0xcf6   :  { %9023 = vmatpush3.bf16.msra.mxu1 %v10656_v8 }
 0xcf7   :  { %9024 = vmatprep.subr.bf16.mxu1 %v10647_v18 }
 0xcfa   :  { %9025 = vmatpush3.bf16.msra.mxu1 %v10647_v18 }
 0xcfb   :  { %9026 = vmatprep.subr.bf16.mxu1 %v10638_v59 }
 0xcfe   :  { %9027 = vmatpush3.bf16.msra.mxu1 %v10638_v59 }
 0xcff   :  { %9028 = vmatprep.subr.bf16.mxu1 %v10629_v42 }
 0xd02   :  { %9029 = vmatpush3.bf16.msra.mxu1 %v10629_v42 }
 0xd03   :  { %9030 = vmatprep.subr.bf16.mxu1 %v10620_v49 }
 0xd06   :  { %9031 = vmatpush3.bf16.msra.mxu1 %v10620_v49 }
 0xd07   :  { %9068 = vmatprep.subr.bf16.mxu1 %v9582_v11 }
 0xd09   :  { %9033 = vmatmul.mubr.bf16.vlgmr.msra.gmra.mxu1 %v9581_v36 }
 0xd0a   :  { %9069 = vmatpush3.bf16.msra.mxu1 %v9582_v11 }
 0xd0b   :  { %9070 = vmatprep.subr.bf16.mxu1 %v9583_v13 }
 0xd0e   :  { %9071 = vmatpush3.bf16.msra.mxu1 %v9583_v13 }
 0xd0f   :  { %9072 = vmatprep.subr.bf16.mxu1 %v9584_v32 }
 0xd12   :  { %9073 = vmatpush3.bf16.msra.mxu1 %v9584_v32 }
 0xd13   :  { %9074 = vmatprep.subr.bf16.mxu1 %v9585_v45 }
 0xd16   :  { %9075 = vmatpush3.bf16.msra.mxu1 %v9585_v45 }
 0xd17   :  { %9080 = vmatprep.subr.bf16.mxu1 %v10680_v6 }
 0xda9   :  { %v9014_v33 = vpop.f32.mrf.mxu1 }
 0xdaa   :  { %v4780_v21 = vadd.f32 %v9014_v33, %v4620_v31 }
 0xdab   :  { %v4763_v24 = vpop.f32.mrf.mxu1 }
 0xdac   :  { %v4778_v20 = vadd.f32 %v4763_v24, %v4618_v27 }
 0xdad   :  { %v9015_v58 = vpop.f32.mrf.mxu1 }
 0xdae   :  { %v4781_v44 = vadd.f32 %v9015_v58, %v4621_v26 }
 0xdaf   :  { %v4766_v23 = vpop.f32.mrf.mxu1 }
 0xdb0   :  { %v4779_v29 = vadd.f32 %v4766_v23, %v4619_v0 }
 0xdc9   :  { %v9034_v41 = vpop.f32.mrf.mxu1 }
 0xdcb   :  { %v4833_v30 = vpop.f32.mrf.mxu1 }
 0xdcd   :  { %v9035_v43 = vpop.f32.mrf.mxu1 }
 0xdce   :  { %v4849_v37 = vpack.c.bf16 %v9035_v43, %v9034_v41 }
 0xdcf   :  { %v4836_v1 = vpop.f32.mrf.mxu1 }
 0xdd0   :  { %v4848_v50 = vpack.c.bf16 %v4836_v1, %v4833_v30 }
 0xdd2   :  { %9044 = vmatprep.mubr.msk.bf16.mxu0 %vm2887_vm0, %v4848_v50 }
 0xdd3   :  { %9045 = vmatmul.mubr.msk.bf16.vlgmr.msra.gmra.mxu0 %vm2887_vm0, %v4849_v37 }
 0xdd4   :  { %9049 = vmatpush3.bf16.msra.mxu0 %v10680_v6  ;;  %9064 = vmatprep.mubr.bf16.mxu0 %v9586_v53 }
 0xdd5   :  { %9050 = vmatprep.subr.bf16.mxu0 %v10676_v35 }
 0xdd8   :  { %9051 = vmatpush3.bf16.msra.mxu0 %v10676_v35 }
 0xdd9   :  { %9052 = vmatprep.subr.bf16.mxu0 %v10669_v38 }
 0xddc   :  { %9053 = vmatpush3.bf16.msra.mxu0 %v10669_v38 }
 0xddd   :  { %9054 = vmatprep.subr.bf16.mxu0 %v10656_v8 }
 0xde0   :  { %9055 = vmatpush3.bf16.msra.mxu0 %v10656_v8 }
 0xde1   :  { %9056 = vmatprep.subr.bf16.mxu0 %v10647_v18 }
 0xde4   :  { %9057 = vmatpush3.bf16.msra.mxu0 %v10647_v18 }
 0xde5   :  { %9058 = vmatprep.subr.bf16.mxu0 %v10638_v59 }
 0xde8   :  { %9059 = vmatpush3.bf16.msra.mxu0 %v10638_v59 }
 0xde9   :  { %9060 = vmatprep.subr.bf16.mxu0 %v10629_v42 }
 0xdec   :  { %9061 = vmatpush3.bf16.msra.mxu0 %v10629_v42 }
 0xded   :  { %9062 = vmatprep.subr.bf16.mxu0 %v10620_v49 }
 0xdf0   :  { %9063 = vmatpush3.bf16.msra.mxu0 %v10620_v49 }
 0xdf3   :  { %9065 = vmatmul.mubr.bf16.vlgmr.msra.gmra.mxu0 %v9587_v3  ;;  %v7596_v3 = vld [vmem:[%s11628_s8 + $0x1] sm:$0x1] }
 0xe93   :  { %v9046_v57 = vpop.f32.mrf.mxu0 }
 0xe94   :  { %v4940_v56 = vadd.f32 %v9046_v57, %v4780_v21  ;;  %v5298_v57 = vld [vmem:[%s11628_s8] sm:$0x1] }
 0xe95   :  { %v4923_v54 = vpop.f32.mrf.mxu0 }
 0xe96   :  { %v4938_v62 = vadd.f32 %v4923_v54, %v4778_v20  ;;  %v9595_v54 = vld [vmem:[%s11625_s9 + $0x10] sm:$0xff]  }
 0xe97   :  { %v9047_v5 = vpop.f32.mrf.mxu0 }
 0xe98   :  { %v4941_v61 = vadd.f32 %v9047_v5, %v4781_v44  ;;  %v9597_v5 = vld [vmem:[%s11625_s9] sm:$0xff]  }
 0xe99   :  { %v4926_v52 = vpop.f32.mrf.mxu0 }
 0xe9a   :  { %v4939_v19 = vadd.f32 %v4926_v52, %v4779_v29 }
 0xeb3   :  { %v9066_v46 = vpop.f32.mrf.mxu0 }
 0xeb5   :  { %v4993_v12 = vpop.f32.mrf.mxu0 }
 0xeb7   :  { %v9067_v15 = vpop.f32.mrf.mxu0 }
 0xeb8   :  { %v5009_v16 = vpack.c.bf16 %v9067_v15, %v9066_v46 }
 0xeb9   :  { %v4996_v55 = vpop.f32.mrf.mxu0 }
 0xeba   :  { %v5008_v39 = vpack.c.bf16 %v4996_v55, %v4993_v12 }
 0xebc   :  { %9076 = vmatprep.mubr.msk.bf16.mxu1 %vm2887_vm0, %v5008_v39 }
 0xebd   :  { %9077 = vmatmul.mubr.msk.bf16.vlgmr.msra.gmra.mxu1 %vm2887_vm0, %v5009_v16 }
 0xebe   :  { %9081 = vmatpush3.bf16.msra.mxu1 %v10680_v6  ;;  %9096 = vmatprep.mubr.bf16.mxu1 %v9588_v14 }
 0xebf   :  { %9082 = vmatprep.subr.bf16.mxu1 %v10676_v35 }
 0xec2   :  { %9083 = vmatpush3.bf16.msra.mxu1 %v10676_v35 }
 0xec3   :  { %9084 = vmatprep.subr.bf16.mxu1 %v10669_v38 }
 0xec6   :  { %9085 = vmatpush3.bf16.msra.mxu1 %v10669_v38  ;;  %v9589_v38 = vld [vmem:[%s11621_s4 + $0xf8] sm:$0xff]  }
 0xec7   :  { %9086 = vmatprep.subr.bf16.mxu1 %v10656_v8 }
 0xeca   :  { %9087 = vmatpush3.bf16.msra.mxu1 %v10656_v8 }
 0xecb   :  { %9088 = vmatprep.subr.bf16.mxu1 %v10647_v18 }
 0xece   :  { %9089 = vmatpush3.bf16.msra.mxu1 %v10647_v18  ;;  %v9590_v18 = vld [vmem:[%s11622_s5 + $0x1f8] sm:$0xff]  }
 0xecf   :  { %9090 = vmatprep.subr.bf16.mxu1 %v10638_v59  ;;  %9100 = vmatprep.subr.bf16.mxu0 %v9590_v18 }
 0xed0   :  { %9101 = vmatpush3.bf16.msra.mxu0 %v9590_v18  ;;  %v7617_v18 = vld [vmem:[%s11628_s8 + $0x3] sm:$0x1] }
 0xed2   :  { %9091 = vmatpush3.bf16.msra.mxu1 %v10638_v59  ;;  %v9591_v59 = vld [vmem:[%s11622_s5 + $0x1f0] sm:$0xff]  }
 0xed3   :  { %9092 = vmatprep.subr.bf16.mxu1 %v10629_v42  ;;  %9102 = vmatprep.subr.bf16.mxu0 %v9591_v59 }
 0xed4   :  { %9103 = vmatpush3.bf16.msra.mxu0 %v9591_v59  ;;  %v7626_v59 = vld [vmem:[%s11628_s8 + $0x4] sm:$0x1] }
 0xed6   :  { %9093 = vmatpush3.bf16.msra.mxu1 %v10629_v42  ;;  %v9592_v42 = vld [vmem:[%s11622_s5 + $0x1e8] sm:$0xff]  }
 0xed7   :  { %9094 = vmatprep.subr.bf16.mxu1 %v10620_v49  ;;  %9104 = vmatprep.subr.bf16.mxu0 %v9592_v42 }
 0xed8   :  { %9105 = vmatpush3.bf16.msra.mxu0 %v9592_v42  ;;  %v7635_v42 = vld [vmem:[%s11628_s8 + $0x5] sm:$0x1] }
 0xeda   :  { %9095 = vmatpush3.bf16.msra.mxu1 %v10620_v49  ;;  %v9593_v49 = vld [vmem:[%s11622_s5 + $0x1e0] sm:$0xff]  }
 0xedb   :  { %9106 = vmatprep.subr.bf16.mxu0 %v9593_v49  ;;  %9120 = vmatprep.subr.bf16.mxu1 %v9630_v28 }
 0xedc   :  { %9107 = vmatpush3.bf16.msra.mxu0 %v9593_v49  ;;  %v7644_v49 = vld [vmem:[%s11628_s8 + $0x6] sm:$0x1] }
 0xedd   :  { %9097 = vmatmul.mubr.bf16.vlgmr.msra.gmra.mxu1 %v9589_v38  ;;  %9112 = vmatprep.subr.bf16.mxu0 %v9630_v28  ;;  %v7608_v38 = vld [vmem:[%s11628_s8 + $0x2] sm:$0x1] }
 0xede   :  { %9124 = vmatprep.mubr.msk.bf16.mxu1 %vm9631_vm1, %v9630_v28 }
 0xf7d   :  { %v9078_v8 = vpop.f32.mrf.mxu1 }
 0xf7e   :  { %v5100_v35 = vadd.f32 %v9078_v8, %v4940_v56  ;;  %v9594_v56 = vld [vmem:[%s11625_s9 + $0x18] sm:$0xff]   ;;  %v7653_v8 = vld [vmem:[%s11628_s8 + $0x7] sm:$0x1] }
 0xf7f   :  { %v5083_v6 = vpop.f32.mrf.mxu1 }
 0xf80   :  { %v5098_v60 = vadd.f32 %v5083_v6, %v4938_v62  ;;  %v9596_v62 = vld [vmem:[%s11625_s9 + $0x8] sm:$0xff]  }
 0xf81   :  { %v9079_v63 = vpop.f32.mrf.mxu1  ;;  %v7671_v6 = vld [vmem:[%s11628_s8 + $0x9] sm:$0x1] }
 0xf82   :  { %v5101_v9 = vadd.f32 %v9079_v63, %v4941_v61  ;;  %v7680_v63 = vld [vmem:[%s11628_s8 + $0xa] sm:$0x1] }
 0xf83   :  { %v5086_v22 = vpop.f32.mrf.mxu1 }
 0xf84   :  { %v5099_v25 = vadd.f32 %v5086_v22, %v4939_v19  ;;  %v7689_v22 = vld [vmem:[%s11628_s8 + $0xb] sm:$0x1] }
 0xf9d   :  { %v9098_v2 = vpop.f32.mrf.mxu1 }
 0xf9f   :  { %v5153_v31 = vpop.f32.mrf.mxu1 }
 0xfa1   :  { %v9099_v4 = vpop.f32.mrf.mxu1 }
 0xfa2   :  { %v5169_v26 = vpack.c.bf16 %v9099_v4, %v9098_v2  ;;  %v7707_v2 = vld [vmem:[%s11628_s8 + $0xd] sm:$0x1]  ;;  %v7725_v4 = vld [vmem:[%s11628_s8 + $0xf] sm:$0x1] }
 0xfa3   :  { %v5156_v27 = vpop.f32.mrf.mxu1 }
 0xfa4   :  { %v5168_v47 = vpack.c.bf16 %v5156_v27, %v5153_v31  ;;  %v7716_v31 = vld [vmem:[%s11628_s8 + $0xe] sm:$0x1] }
 0xfa6   :  { %9108 = vmatprep.mubr.msk.bf16.mxu0 %vm2887_vm0, %v5168_v47 }
 0xfa7   :  { %9109 = vmatmul.mubr.msk.bf16.vlgmr.msra.gmra.mxu0 %vm2887_vm0, %v5169_v26 }
 0xfa8   :  { %9116 = vmatprep.mubr.msk.bf16.mxu0 %vm9631_vm1, %v9630_v28 }
0x1067   :  { %v9110_v0 = vpop.f32.mrf.mxu0 }
0x1068   :  { %v5260_v34 = vadd.f32 %v9110_v0, %v5100_v35  ;;  %v7662_v35 = vld [vmem:[%s11628_s8 + $0x8] sm:$0x1] }
0x1069   :  { %v5243_v51 = vpop.f32.mrf.mxu0 }
0x106a   :  { %v5271_v7 = vmul.f32 %v7593_v17, %v5260_v34  ;;  %v5258_v10 = vadd.f32 %v5243_v51, %v5098_v60  ;;  %v9598_v60 = vld [vmem:[%s11625_s9 + $0x28] sm:$0xff]  }
0x106b   :  { %v9111_v48 = vpop.f32.mrf.mxu0 }
0x106c   :  { %v5282_v11 = vadd.f32 %v7594_v40, %v5271_v7  ;;  %v5269_v36 = vmul.f32 %v7593_v17, %v5258_v10  ;;  %v5261_v13 = vadd.f32 %v9111_v48, %v5101_v9  ;;  %v9599_v9 = vld [vmem:[%s11625_s9 + $0x20] sm:$0xff]   ;;  %v9600_v48 = vld [vmem:[%s11625_s9 + $0x38] sm:$0xff]  }
0x106d   :  { %v5246_v32 = vpop.f32.mrf.mxu0 }
0x106e   :  { %v5272_v45 = vmul.f32 %v7593_v17, %v5261_v13  ;;  %v5280_v33 = vadd.f32 %v7594_v40, %v5269_v36  ;;  %v5259_v21 = vadd.f32 %v5246_v32, %v5099_v25  ;;  %v5290_v24 = vmul.f32 0.2, %v5282_v11  ;;  %v7698_v25 = vld [vmem:[%s11628_s8 + $0xc] sm:$0x1]  ;;  %v9601_v32 = vld [vmem:[%s11625_s9 + $0x30] sm:$0xff]  }
0x106f   :  { %vm5286_vm2 = vcmp.gt.f32.partialorder %v5282_v11, 0.0 }
0x1070   :  { %v5283_v20 = vadd.f32 %v7594_v40, %v5272_v45  ;;  %v5270_v58 = vmul.f32 %v7593_v17, %v5259_v21  ;;  %v5288_v23 = vmul.f32 0.2, %v5280_v33  ;;  %v5294_v41 = vsel %vm5286_vm2, %v5282_v11, %v5290_v24  ;;  %v9602_v21 = vld [vmem:[%s11625_s9 + $0x48] sm:$0xff]  }
0x1071   :  { %vm5284_vm4 = vcmp.gt.f32.partialorder %v5280_v33, 0.0 }
0x1072   :  { %vm5287_vm3 = vcmp.gt.f32.partialorder %v5283_v20, 0.0  ;;  %v5291_v44 = vmul.f32 0.2, %v5283_v20  ;;  %v5281_v29 = vadd.f32 %v7594_v40, %v5270_v58  ;;  %v5292_v50 = vsel %vm5284_vm4, %v5280_v33, %v5288_v23 }
0x1074   :  { %v5295_v30 = vsel %vm5287_vm3, %v5283_v20, %v5291_v44  ;;  %vm5285_vm5 = vcmp.gt.f32.partialorder %v5281_v29, 0.0  ;;  %v5289_v1 = vmul.f32 0.2, %v5281_v29  ;;  %v9603_v44 = vld [vmem:[%s11625_s9 + $0x40] sm:$0xff]  }
0x1075   :  { %v11276_v43 = vpack.c.bf16 %v5295_v30, %v5294_v41  ;;  %v9604_v41 = vld [vmem:[%s11625_s9 + $0x58] sm:$0xff]  }
0x1076   :  { %v5293_v53 = vsel %vm5285_vm5, %v5281_v29, %v5289_v1 }
0x1077   :  { %9113 = vmatpush3.bf16.msra.mxu0 %v11276_v43  ;;  %9121 = vmatpush3.bf16.msra.mxu1 %v11276_v43  ;;  %v11280_v37 = vpack.c.bf16 %v5293_v53, %v5292_v50  ;;  %v9605_v50 = vld [vmem:[%s11625_s9 + $0x50] sm:$0xff]  }
0x1078   :  { %9114 = vmatprep.subr.bf16.mxu0 %v9630_v28  ;;  %9122 = vmatprep.subr.bf16.mxu1 %v9630_v28 }
0x107b   :  { %9115 = vmatpush3.bf16.msra.mxu0 %v11280_v37  ;;  %9123 = vmatpush3.bf16.msra.mxu1 %v11280_v37 }
0x107c   :  { %9128 = vmatprep.subr.bf16.mxu0 %v9630_v28  ;;  %9136 = vmatprep.subr.bf16.mxu1 %v9630_v28 }
0x107e   :  { %9125 = vmatmul.mubr.msk.bf16.vlgmr.msra.gmra.mxu1 %vm5299_vm6, %v7596_v3  ;;  %9117 = vmatmul.mubr.msk.bf16.vlgmr.msra.gmra.mxu0 %vm5299_vm6, %v5298_v57  ;;  %v9606_v3 = vld [vmem:[%s11625_s9 + $0x68] sm:$0xff]  }
0x107f   :  { %9129 = vmatpush3.bf16.msra.mxu0 %v9594_v56  ;;  %9132 = vmatprep.mubr.msk.bf16.mxu0 %vm9631_vm1, %v9630_v28 }
0x1080   :  { %9130 = vmatprep.subr.bf16.mxu0 %v9630_v28  ;;  %9140 = vmatprep.mubr.msk.bf16.mxu1 %vm9631_vm1, %v9630_v28 }
0x1081   :  { %9137 = vmatpush3.bf16.msra.mxu1 %v9596_v62  ;;  %v9607_v62 = vld [vmem:[%s11625_s9 + $0x60] sm:$0xff]  }
0x1082   :  { %9138 = vmatprep.subr.bf16.mxu1 %v9630_v28 }
0x1083   :  { %9131 = vmatpush3.bf16.msra.mxu0 %v9595_v54 }
0x1084   :  { %9144 = vmatprep.subr.bf16.mxu0 %v9630_v28 }
0x1085   :  { %9139 = vmatpush3.bf16.msra.mxu1 %v9597_v5 }
0x1086   :  { %9152 = vmatprep.subr.bf16.mxu1 %v9630_v28 }
0x113e   :  { %v5387_v61 = vpop.f32.mrf.mxu1  ;;  %v5337_v52 = vpop.f32.mrf.mxu0 }
0x113f   :  { %v5393_v19 = vpack.c.bf16 %v5387_v61, %v5387_v61  ;;  %v5343_v46 = vpack.c.bf16 %v5337_v52, %v5337_v52  ;;  %v9608_v52 = vld [vmem:[%s11625_s9 + $0x78] sm:$0xff]  }
0x1140   :  { %v9126_v12 = vpop.f32.mrf.mxu1  ;;  %v9118_v15 = vpop.f32.mrf.mxu0 }
0x1141   :  { %9133 = vmatmul.mubr.msk.bf16.vlgmr.msra.gmra.mxu0 %vm5299_vm6, %v5393_v19  ;;  %9141 = vmatmul.mubr.msk.bf16.vlgmr.msra.gmra.mxu1 %vm5299_vm6, %v5343_v46  ;;  %v9609_v15 = vld [vmem:[%s11625_s9 + $0x70] sm:$0xff]  }
0x1142   :  { %9145 = vmatpush3.bf16.msra.mxu0 %v11276_v43  ;;  %9148 = vmatprep.mubr.msk.bf16.mxu0 %vm9631_vm1, %v9630_v28  ;;  %v5390_v55 = vpop.f32.mrf.mxu1  ;;  %v5340_v39 = vpop.f32.mrf.mxu0 }
0x1143   :  { %9146 = vmatprep.subr.bf16.mxu0 %v9630_v28  ;;  %9156 = vmatprep.mubr.msk.bf16.mxu1 %vm9631_vm1, %v9630_v28 }
0x1144   :  { %v9127_v14 = vpop.f32.mrf.mxu1  ;;  %v9119_v16 = vpop.f32.mrf.mxu0  ;;  %9153 = vmatpush3.bf16.msra.mxu1 %v9598_v60 }
0x1145   :  { %9154 = vmatprep.subr.bf16.mxu1 %v9630_v28  ;;  %v9610_v14 = vld [vmem:[%s11625_s9 + $0x88] sm:$0xff]  }
0x1146   :  { %9147 = vmatpush3.bf16.msra.mxu0 %v11280_v37 }
0x1147   :  { %9160 = vmatprep.subr.bf16.mxu0 %v9630_v28 }
0x1148   :  { %9155 = vmatpush3.bf16.msra.mxu1 %v9599_v9 }
0x1149   :  { %9149 = vmatmul.mubr.msk.bf16.vlgmr.msra.gmra.mxu0 %vm5299_vm6, %v7608_v38  ;;  %9168 = vmatprep.subr.bf16.mxu1 %v9630_v28 }
0x114a   :  { %9161 = vmatpush3.bf16.msra.mxu0 %v11276_v43  ;;  %9164 = vmatprep.mubr.msk.bf16.mxu0 %vm9631_vm1, %v9630_v28 }
0x114b   :  { %9162 = vmatprep.subr.bf16.mxu0 %v9630_v28 }
0x114e   :  { %9163 = vmatpush3.bf16.msra.mxu0 %v11280_v37 }
0x114f   :  { %9176 = vmatprep.subr.bf16.mxu0 %v9630_v28 }
0x1151   :  { %9165 = vmatmul.mubr.msk.bf16.vlgmr.msra.gmra.mxu0 %vm5299_vm6, %v7617_v18 }
0x1152   :  { %9177 = vmatpush3.bf16.msra.mxu0 %v11276_v43  ;;  %9180 = vmatprep.mubr.msk.bf16.mxu0 %vm9631_vm1, %v9630_v28 }
0x1153   :  { %9178 = vmatprep.subr.bf16.mxu0 %v9630_v28 }
0x1156   :  { %9179 = vmatpush3.bf16.msra.mxu0 %v11280_v37 }
0x1157   :  { %9192 = vmatprep.subr.bf16.mxu0 %v9630_v28 }
0x1159   :  { %9181 = vmatmul.mubr.msk.bf16.vlgmr.msra.gmra.mxu0 %vm5299_vm6, %v7626_v59  ;;  %v9611_v59 = vld [vmem:[%s11625_s9 + $0x80] sm:$0xff]  }
0x115a   :  { %9193 = vmatpush3.bf16.msra.mxu0 %v11276_v43  ;;  %9196 = vmatprep.mubr.msk.bf16.mxu0 %vm9631_vm1, %v9630_v28 }
0x115b   :  { %9194 = vmatprep.subr.bf16.mxu0 %v9630_v28 }
0x115e   :  { %9195 = vmatpush3.bf16.msra.mxu0 %v11280_v37 }
0x115f   :  { %9208 = vmatprep.subr.bf16.mxu0 %v9630_v28 }
0x1161   :  { %9197 = vmatmul.mubr.msk.bf16.vlgmr.msra.gmra.mxu0 %vm5299_vm6, %v7635_v42 }
0x1162   :  { %9209 = vmatpush3.bf16.msra.mxu0 %v11276_v43  ;;  %9212 = vmatprep.mubr.msk.bf16.mxu0 %vm9631_vm1, %v9630_v28 }
0x1163   :  { %9210 = vmatprep.subr.bf16.mxu0 %v9630_v28 }
0x1166   :  { %9211 = vmatpush3.bf16.msra.mxu0 %v11280_v37 }
0x1167   :  { %9224 = vmatprep.subr.bf16.mxu0 %v9630_v28 }
0x1169   :  { %9213 = vmatmul.mubr.msk.bf16.vlgmr.msra.gmra.mxu0 %vm5299_vm6, %v7644_v49 }
0x116a   :  { %9225 = vmatpush3.bf16.msra.mxu0 %v11276_v43  ;;  %9228 = vmatprep.mubr.msk.bf16.mxu0 %vm9631_vm1, %v9630_v28 }
0x116b   :  { %9226 = vmatprep.subr.bf16.mxu0 %v9630_v28 }
0x116e   :  { %9227 = vmatpush3.bf16.msra.mxu0 %v11280_v37 }
0x116f   :  { %9240 = vmatprep.subr.bf16.mxu0 %v9630_v28 }
0x1171   :  { %9229 = vmatmul.mubr.msk.bf16.vlgmr.msra.gmra.mxu0 %vm5299_vm6, %v7653_v8  ;;  %v9612_v8 = vld [vmem:[%s11625_s9 + $0x98] sm:$0xff]  }
0x1172   :  { %9241 = vmatpush3.bf16.msra.mxu0 %v11276_v43  ;;  %9244 = vmatprep.mubr.msk.bf16.mxu0 %vm9631_vm1, %v9630_v28 }
0x1173   :  { %9242 = vmatprep.subr.bf16.mxu0 %v9630_v28 }
0x1176   :  { %9243 = vmatpush3.bf16.msra.mxu0 %v11280_v37 }
0x1177   :  { %9256 = vmatprep.subr.bf16.mxu0 %v9630_v28 }
0x1179   :  { %9245 = vmatmul.mubr.msk.bf16.vlgmr.msra.gmra.mxu0 %vm5299_vm6, %v7662_v35 }
0x117a   :  { %9257 = vmatpush3.bf16.msra.mxu0 %v11276_v43  ;;  %9260 = vmatprep.mubr.msk.bf16.mxu0 %vm9631_vm1, %v9630_v28 }
0x117b   :  { %9258 = vmatprep.subr.bf16.mxu0 %v9630_v28 }
0x117e   :  { %9259 = vmatpush3.bf16.msra.mxu0 %v11280_v37 }
0x117f   :  { %9272 = vmatprep.subr.bf16.mxu0 %v9630_v28 }
0x1181   :  { %9261 = vmatmul.mubr.msk.bf16.vlgmr.msra.gmra.mxu0 %vm5299_vm6, %v7671_v6 }
0x1182   :  { %9273 = vmatpush3.bf16.msra.mxu0 %v11276_v43  ;;  %9276 = vmatprep.mubr.msk.bf16.mxu0 %vm9631_vm1, %v9630_v28 }
0x1183   :  { %9274 = vmatprep.subr.bf16.mxu0 %v9630_v28 }
0x1186   :  { %9275 = vmatpush3.bf16.msra.mxu0 %v11280_v37 }
0x1187   :  { %9288 = vmatprep.subr.bf16.mxu0 %v9630_v28 }
0x1189   :  { %9277 = vmatmul.mubr.msk.bf16.vlgmr.msra.gmra.mxu0 %vm5299_vm6, %v7680_v63  ;;  %v9613_v63 = vld [vmem:[%s11625_s9 + $0x90] sm:$0xff]  }
0x118a   :  { %9289 = vmatpush3.bf16.msra.mxu0 %v11276_v43  ;;  %9292 = vmatprep.mubr.msk.bf16.mxu0 %vm9631_vm1, %v9630_v28 }
0x118b   :  { %9290 = vmatprep.subr.bf16.mxu0 %v9630_v28 }
0x118e   :  { %9291 = vmatpush3.bf16.msra.mxu0 %v11280_v37 }
0x118f   :  { %9304 = vmatprep.subr.bf16.mxu0 %v9630_v28 }
0x1191   :  { %9293 = vmatmul.mubr.msk.bf16.vlgmr.msra.gmra.mxu0 %vm5299_vm6, %v7689_v22 }
0x1192   :  { %9305 = vmatpush3.bf16.msra.mxu0 %v11276_v43  ;;  %9308 = vmatprep.mubr.msk.bf16.mxu0 %vm9631_vm1, %v9630_v28 }
0x1193   :  { %9306 = vmatprep.subr.bf16.mxu0 %v9630_v28 }
0x1196   :  { %9307 = vmatpush3.bf16.msra.mxu0 %v11280_v37 }
0x1197   :  { %9320 = vmatprep.subr.bf16.mxu0 %v9630_v28 }
0x1199   :  { %9309 = vmatmul.mubr.msk.bf16.vlgmr.msra.gmra.mxu0 %vm5299_vm6, %v7698_v25  ;;  %v9614_v25 = vld [vmem:[%s11625_s9 + $0xa8] sm:$0xff]  }
0x119a   :  { %9321 = vmatpush3.bf16.msra.mxu0 %v11276_v43  ;;  %9324 = vmatprep.mubr.msk.bf16.mxu0 %vm9631_vm1, %v9630_v28 }
0x119b   :  { %9322 = vmatprep.subr.bf16.mxu0 %v9630_v28 }
0x119e   :  { %9323 = vmatpush3.bf16.msra.mxu0 %v11280_v37 }
0x119f   :  { %9336 = vmatprep.subr.bf16.mxu0 %v9630_v28 }
0x11a1   :  { %9325 = vmatmul.mubr.msk.bf16.vlgmr.msra.gmra.mxu0 %vm5299_vm6, %v7707_v2 }
0x11a2   :  { %9337 = vmatpush3.bf16.msra.mxu0 %v11276_v43  ;;  %9340 = vmatprep.mubr.msk.bf16.mxu0 %vm9631_vm1, %v9630_v28 }
0x11a3   :  { %9338 = vmatprep.subr.bf16.mxu0 %v9630_v28 }
0x11a6   :  { %9339 = vmatpush3.bf16.msra.mxu0 %v11280_v37 }
0x11a7   :  { %9352 = vmatprep.subr.bf16.mxu0 %v9630_v28 }
0x11a9   :  { %9341 = vmatmul.mubr.msk.bf16.vlgmr.msra.gmra.mxu0 %vm5299_vm6, %v7716_v31 }
0x11aa   :  { %9353 = vmatpush3.bf16.msra.mxu0 %v11276_v43  ;;  %9356 = vmatprep.mubr.msk.bf16.mxu0 %vm9631_vm1, %v9630_v28 }
0x11ab   :  { %9354 = vmatprep.subr.bf16.mxu0 %v9630_v28 }
0x11ae   :  { %9355 = vmatpush3.bf16.msra.mxu0 %v11280_v37 }
0x11b1   :  { %9357 = vmatmul.mubr.msk.bf16.vlgmr.msra.gmra.mxu0 %vm5299_vm6, %v7725_v4 }
0x1201   :  { %v5448_v27 = vpop.f32.mrf.mxu0  ;;  %v5503_v47 = vpop.f32.mrf.mxu1 }
0x1202   :  { %v11467_v26 = vadd.f32 %v5503_v47, %v5448_v27  ;;  %v9615_v27 = vld [vmem:[%s11625_s9 + $0xa0] sm:$0xff]  }
0x1203   :  { %v9134_v0 = vpop.f32.mrf.mxu0  ;;  %v9142_v17 = vpop.f32.mrf.mxu1 }
0x1204   :  { %v9616_v17 = vld [vmem:[%s11625_s9 + $0xb8] sm:$0xff]  }
0x1205   :  { %v5451_v34 = vpop.f32.mrf.mxu0  ;;  %v5506_v40 = vpop.f32.mrf.mxu1 }
0x1207   :  { %v9135_v51 = vpop.f32.mrf.mxu0  ;;  %v9143_v7 = vpop.f32.mrf.mxu1 }
0x1208   :  { %v9617_v7 = vld [vmem:[%s11625_s9 + $0xb0] sm:$0xff]  }
0x1209   :  { %v5548_v10 = vpop.f32.mrf.mxu0 }
0x120a   :  { %v5554_v11 = vpack.c.bf16 %v5548_v10, %v5548_v10 }
0x120b   :  { %v9150_v36 = vpop.f32.mrf.mxu0 }
0x120c   :  { %9157 = vmatmul.mubr.msk.bf16.vlgmr.msra.gmra.mxu1 %vm5299_vm6, %v5554_v11  ;;  %v9618_v11 = vld [vmem:[%s11625_s9 + $0xc8] sm:$0xff]  }
0x120d   :  { %v5551_v13 = vpop.f32.mrf.mxu0  ;;  %9169 = vmatpush3.bf16.msra.mxu1 %v9600_v48  ;;  %9172 = vmatprep.mubr.msk.bf16.mxu1 %vm9631_vm1, %v9630_v28 }
0x120e   :  { %9170 = vmatprep.subr.bf16.mxu1 %v9630_v28 }
0x120f   :  { %v9151_v45 = vpop.f32.mrf.mxu0 }
0x1210   :  { %v9619_v45 = vld [vmem:[%s11625_s9 + $0xc0] sm:$0xff]  }
0x1211   :  { %v5655_v33 = vpop.f32.mrf.mxu0  ;;  %9171 = vmatpush3.bf16.msra.mxu1 %v9601_v32 }
0x1212   :  { %v5661_v24 = vpack.c.bf16 %v5655_v33, %v5655_v33  ;;  %9184 = vmatprep.subr.bf16.mxu1 %v9630_v28 }
0x1213   :  { %v9166_v20 = vpop.f32.mrf.mxu0 }
0x1214   :  { %9173 = vmatmul.mubr.msk.bf16.vlgmr.msra.gmra.mxu1 %vm5299_vm6, %v5661_v24  ;;  %v9620_v24 = vld [vmem:[%s11625_s9 + $0xd8] sm:$0xff]  }
0x1215   :  { %v5658_v58 = vpop.f32.mrf.mxu0  ;;  %9185 = vmatpush3.bf16.msra.mxu1 %v9602_v21  ;;  %9188 = vmatprep.mubr.msk.bf16.mxu1 %vm9631_vm1, %v9630_v28 }
0x1216   :  { %9186 = vmatprep.subr.bf16.mxu1 %v9630_v28 }
0x1217   :  { %v9167_v23 = vpop.f32.mrf.mxu0 }
0x1218   :  { %v9621_v23 = vld [vmem:[%s11625_s9 + $0xd0] sm:$0xff]  }
0x1219   :  { %v5762_v29 = vpop.f32.mrf.mxu0  ;;  %9187 = vmatpush3.bf16.msra.mxu1 %v9603_v44 }
0x121a   :  { %v5768_v30 = vpack.c.bf16 %v5762_v29, %v5762_v29  ;;  %9200 = vmatprep.subr.bf16.mxu1 %v9630_v28 }
0x121b   :  { %v9182_v43 = vpop.f32.mrf.mxu0 }
0x121c   :  { %9189 = vmatmul.mubr.msk.bf16.vlgmr.msra.gmra.mxu1 %vm5299_vm6, %v5768_v30  ;;  %v9622_v30 = vld [vmem:[%s11625_s9 + $0xe8] sm:$0xff]  }
0x121d   :  { %v5765_v1 = vpop.f32.mrf.mxu0  ;;  %9201 = vmatpush3.bf16.msra.mxu1 %v9604_v41  ;;  %9204 = vmatprep.mubr.msk.bf16.mxu1 %vm9631_vm1, %v9630_v28 }
0x121e   :  { %9202 = vmatprep.subr.bf16.mxu1 %v9630_v28 }
0x121f   :  { %v9183_v53 = vpop.f32.mrf.mxu0 }
0x1220   :  { %v9623_v53 = vld [vmem:[%s11625_s9 + $0xe0] sm:$0xff]  }
0x1221   :  { %v5869_v37 = vpop.f32.mrf.mxu0  ;;  %9203 = vmatpush3.bf16.msra.mxu1 %v9605_v50 }
0x1222   :  { %v5875_v57 = vpack.c.bf16 %v5869_v37, %v5869_v37  ;;  %9216 = vmatprep.subr.bf16.mxu1 %v9630_v28 }
0x1223   :  { %v9198_v56 = vpop.f32.mrf.mxu0 }
0x1224   :  { %9205 = vmatmul.mubr.msk.bf16.vlgmr.msra.gmra.mxu1 %vm5299_vm6, %v5875_v57  ;;  %v9624_v57 = vld [vmem:[%s11625_s9 + $0xf8] sm:$0xff]  }
0x1225   :  { %v5872_v54 = vpop.f32.mrf.mxu0  ;;  %9217 = vmatpush3.bf16.msra.mxu1 %v9606_v3  ;;  %9220 = vmatprep.mubr.msk.bf16.mxu1 %vm9631_vm1, %v9630_v28 }
0x1226   :  { %9218 = vmatprep.subr.bf16.mxu1 %v9630_v28 }
0x1227   :  { %v9199_v5 = vpop.f32.mrf.mxu0 }
0x1228   :  { %v9625_v5 = vld [vmem:[%s11625_s9 + $0xf0] sm:$0xff]  }
0x1229   :  { %v5976_v61 = vpop.f32.mrf.mxu0  ;;  %9219 = vmatpush3.bf16.msra.mxu1 %v9607_v62 }
0x122a   :  { %v5982_v19 = vpack.c.bf16 %v5976_v61, %v5976_v61  ;;  %9232 = vmatprep.subr.bf16.mxu1 %v9630_v28 }
0x122b   :  { %v9214_v46 = vpop.f32.mrf.mxu0 }
0x122c   :  { %9221 = vmatmul.mubr.msk.bf16.vlgmr.msra.gmra.mxu1 %vm5299_vm6, %v5982_v19 }
0x122d   :  { %v5979_v12 = vpop.f32.mrf.mxu0  ;;  %9233 = vmatpush3.bf16.msra.mxu1 %v9608_v52  ;;  %9236 = vmatprep.mubr.msk.bf16.mxu1 %vm9631_vm1, %v9630_v28 }
0x122e   :  { %9234 = vmatprep.subr.bf16.mxu1 %v9630_v28 }
0x122f   :  { %v9215_v55 = vpop.f32.mrf.mxu0 }
0x1230   :  { %v16_v55 = vstv %s11629_s10 }
0x1231   :  { %v6083_v39 = vpop.f32.mrf.mxu0  ;;  %9235 = vmatpush3.bf16.msra.mxu1 %v9609_v15  ;;  %17 = vst [vmem:[#allocation2] sm:$0x1] %v16_v55 }
0x1232   :  { %v6089_v16 = vpack.c.bf16 %v6083_v39, %v6083_v39  ;;  %9248 = vmatprep.subr.bf16.mxu1 %v9630_v28 }
0x1233   :  { %v9230_v38 = vpop.f32.mrf.mxu0 }
0x1234   :  { %9237 = vmatmul.mubr.msk.bf16.vlgmr.msra.gmra.mxu1 %vm5299_vm6, %v6089_v16 }
0x1235   :  { %v6086_v18 = vpop.f32.mrf.mxu0  ;;  %9249 = vmatpush3.bf16.msra.mxu1 %v9610_v14  ;;  %9252 = vmatprep.mubr.msk.bf16.mxu1 %vm9631_vm1, %v9630_v28 }
0x1236   :  { %9250 = vmatprep.subr.bf16.mxu1 %v9630_v28 }
0x1237   :  { %v9231_v42 = vpop.f32.mrf.mxu0 }
0x1239   :  { %v6190_v49 = vpop.f32.mrf.mxu0  ;;  %9251 = vmatpush3.bf16.msra.mxu1 %v9611_v59 }
0x123a   :  { %v6196_v35 = vpack.c.bf16 %v6190_v49, %v6190_v49  ;;  %9264 = vmatprep.subr.bf16.mxu1 %v9630_v28 }
0x123b   :  { %v9246_v6 = vpop.f32.mrf.mxu0 }
0x123c   :  { %9253 = vmatmul.mubr.msk.bf16.vlgmr.msra.gmra.mxu1 %vm5299_vm6, %v6196_v35 }
0x123d   :  { %v6193_v60 = vpop.f32.mrf.mxu0  ;;  %9265 = vmatpush3.bf16.msra.mxu1 %v9612_v8  ;;  %9268 = vmatprep.mubr.msk.bf16.mxu1 %vm9631_vm1, %v9630_v28 }
0x123e   :  { %9266 = vmatprep.subr.bf16.mxu1 %v9630_v28 }
0x123f   :  { %v9247_v9 = vpop.f32.mrf.mxu0 }
0x1241   :  { %v6297_v22 = vpop.f32.mrf.mxu0  ;;  %9267 = vmatpush3.bf16.msra.mxu1 %v9613_v63 }
0x1242   :  { %v6303_v2 = vpack.c.bf16 %v6297_v22, %v6297_v22  ;;  %9280 = vmatprep.subr.bf16.mxu1 %v9630_v28 }
0x1243   :  { %v9262_v31 = vpop.f32.mrf.mxu0 }
0x1244   :  { %9269 = vmatmul.mubr.msk.bf16.vlgmr.msra.gmra.mxu1 %vm5299_vm6, %v6303_v2 }
0x1245   :  { %v6300_v4 = vpop.f32.mrf.mxu0  ;;  %9281 = vmatpush3.bf16.msra.mxu1 %v9614_v25  ;;  %9284 = vmatprep.mubr.msk.bf16.mxu1 %vm9631_vm1, %v9630_v28 }
0x1246   :  { %9282 = vmatprep.subr.bf16.mxu1 %v9630_v28 }
0x1247   :  { %v9263_v47 = vpop.f32.mrf.mxu0 }
0x1249   :  { %v6404_v0 = vpop.f32.mrf.mxu0  ;;  %9283 = vmatpush3.bf16.msra.mxu1 %v9615_v27 }
0x124a   :  { %v6410_v34 = vpack.c.bf16 %v6404_v0, %v6404_v0  ;;  %9296 = vmatprep.subr.bf16.mxu1 %v9630_v28 }
0x124b   :  { %v9278_v40 = vpop.f32.mrf.mxu0 }
0x124c   :  { %9285 = vmatmul.mubr.msk.bf16.vlgmr.msra.gmra.mxu1 %vm5299_vm6, %v6410_v34 }
0x124d   :  { %v6407_v51 = vpop.f32.mrf.mxu0  ;;  %9297 = vmatpush3.bf16.msra.mxu1 %v9616_v17  ;;  %9300 = vmatprep.mubr.msk.bf16.mxu1 %vm9631_vm1, %v9630_v28 }
0x124e   :  { %9298 = vmatprep.subr.bf16.mxu1 %v9630_v28 }
0x124f   :  { %v9279_v10 = vpop.f32.mrf.mxu0 }
0x1251   :  { %v6511_v48 = vpop.f32.mrf.mxu0  ;;  %9299 = vmatpush3.bf16.msra.mxu1 %v9617_v7 }
0x1252   :  { %v6517_v36 = vpack.c.bf16 %v6511_v48, %v6511_v48  ;;  %9312 = vmatprep.subr.bf16.mxu1 %v9630_v28 }
0x1253   :  { %v9294_v13 = vpop.f32.mrf.mxu0 }
0x1254   :  { %9301 = vmatmul.mubr.msk.bf16.vlgmr.msra.gmra.mxu1 %vm5299_vm6, %v6517_v36 }
0x1255   :  { %v6514_v32 = vpop.f32.mrf.mxu0  ;;  %9313 = vmatpush3.bf16.msra.mxu1 %v9618_v11  ;;  %9316 = vmatprep.mubr.msk.bf16.mxu1 %vm9631_vm1, %v9630_v28 }
0x1256   :  { %9314 = vmatprep.subr.bf16.mxu1 %v9630_v28 }
0x1257   :  { %v9295_v33 = vpop.f32.mrf.mxu0 }
0x1259   :  { %v6618_v21 = vpop.f32.mrf.mxu0  ;;  %9315 = vmatpush3.bf16.msra.mxu1 %v9619_v45 }
0x125a   :  { %v6624_v20 = vpack.c.bf16 %v6618_v21, %v6618_v21  ;;  %9328 = vmatprep.subr.bf16.mxu1 %v9630_v28 }
0x125b   :  { %v9310_v58 = vpop.f32.mrf.mxu0 }
0x125c   :  { %9317 = vmatmul.mubr.msk.bf16.vlgmr.msra.gmra.mxu1 %vm5299_vm6, %v6624_v20 }
0x125d   :  { %v6621_v44 = vpop.f32.mrf.mxu0  ;;  %9329 = vmatpush3.bf16.msra.mxu1 %v9620_v24  ;;  %9332 = vmatprep.mubr.msk.bf16.mxu1 %vm9631_vm1, %v9630_v28 }
0x125e   :  { %9330 = vmatprep.subr.bf16.mxu1 %v9630_v28 }
0x125f   :  { %v9311_v29 = vpop.f32.mrf.mxu0 }
0x1261   :  { %v6725_v41 = vpop.f32.mrf.mxu0  ;;  %9331 = vmatpush3.bf16.msra.mxu1 %v9621_v23 }
0x1262   :  { %v6731_v43 = vpack.c.bf16 %v6725_v41, %v6725_v41  ;;  %9344 = vmatprep.subr.bf16.mxu1 %v9630_v28 }
0x1263   :  { %v9326_v1 = vpop.f32.mrf.mxu0 }
0x1264   :  { %9333 = vmatmul.mubr.msk.bf16.vlgmr.msra.gmra.mxu1 %vm5299_vm6, %v6731_v43 }
0x1265   :  { %v6728_v50 = vpop.f32.mrf.mxu0  ;;  %9345 = vmatpush3.bf16.msra.mxu1 %v9622_v30  ;;  %9348 = vmatprep.mubr.msk.bf16.mxu1 %vm9631_vm1, %v9630_v28 }
0x1266   :  { %9346 = vmatprep.subr.bf16.mxu1 %v9630_v28 }
0x1267   :  { %v9327_v37 = vpop.f32.mrf.mxu0 }
0x1269   :  { %v6832_v3 = vpop.f32.mrf.mxu0  ;;  %9347 = vmatpush3.bf16.msra.mxu1 %v9623_v53 }
0x126a   :  { %v6838_v56 = vpack.c.bf16 %v6832_v3, %v6832_v3  ;;  %9360 = vmatprep.subr.bf16.mxu1 %v9630_v28 }
0x126b   :  { %v9342_v54 = vpop.f32.mrf.mxu0 }
0x126c   :  { %9349 = vmatmul.mubr.msk.bf16.vlgmr.msra.gmra.mxu1 %vm5299_vm6, %v6838_v56 }
0x126d   :  { %v6835_v62 = vpop.f32.mrf.mxu0  ;;  %9361 = vmatpush3.bf16.msra.mxu1 %v9624_v57  ;;  %9364 = vmatprep.mubr.msk.bf16.mxu1 %vm9631_vm1, %v9630_v28 }
0x126e   :  { %9362 = vmatprep.subr.bf16.mxu1 %v9630_v28 }
0x126f   :  { %v9343_v61 = vpop.f32.mrf.mxu0 }
0x1271   :  { %v6939_v52 = vpop.f32.mrf.mxu0  ;;  %9363 = vmatpush3.bf16.msra.mxu1 %v9625_v5 }
0x1272   :  { %v6945_v19 = vpack.c.bf16 %v6939_v52, %v6939_v52 }
0x1273   :  { %v9358_v46 = vpop.f32.mrf.mxu0 }
0x1274   :  { %9365 = vmatmul.mubr.msk.bf16.vlgmr.msra.gmra.mxu1 %vm5299_vm6, %v6945_v19 }
0x1275   :  { %v6942_v12 = vpop.f32.mrf.mxu0 }
0x1277   :  { %v9359_v15 = vpop.f32.mrf.mxu0 }
0x12cc   :  { %v5609_v39 = vpop.f32.mrf.mxu1 }
0x12cd   :  { %v5615_v14 = vadd.f32 %v5609_v39, %v11467_v26 }
0x12ce   :  { %v9158_v16 = vpop.f32.mrf.mxu1 }
0x12cf   :  { %v7734_v16 = vld [vmem:[#allocation2] ss:$0 sm:$0xff] }
0x12d0   :  { %v5612_v38 = vpop.f32.mrf.mxu1 }
0x12d2   :  { %v9159_v28 = vpop.f32.mrf.mxu1 }
0x12d4   :  { %v5716_v18 = vpop.f32.mrf.mxu1 }
0x12d5   :  { %v5722_v59 = vadd.f32 %v5716_v18, %v5615_v14 }
0x12d6   :  { %v9174_v42 = vpop.f32.mrf.mxu1 }
0x12d8   :  { %v5719_v49 = vpop.f32.mrf.mxu1 }
0x12da   :  { %v9175_v8 = vpop.f32.mrf.mxu1 }
0x12dc   :  { %v5823_v35 = vpop.f32.mrf.mxu1 }
0x12dd   :  { %v5829_v6 = vadd.f32 %v5823_v35, %v5722_v59 }
0x12de   :  { %v9190_v60 = vpop.f32.mrf.mxu1 }
0x12e0   :  { %v5826_v63 = vpop.f32.mrf.mxu1 }
0x12e2   :  { %v9191_v9 = vpop.f32.mrf.mxu1 }
0x12e4   :  { %v5930_v22 = vpop.f32.mrf.mxu1 }
0x12e5   :  { %v5936_v43 = vadd.f32 %v5930_v22, %v5829_v6 }
0x12e6   :  { %v9206_v25 = vpop.f32.mrf.mxu1 }
0x12e8   :  { %v5933_v2 = vpop.f32.mrf.mxu1 }
0x12ea   :  { %v9207_v31 = vpop.f32.mrf.mxu1 }
0x12ec   :  { %v6037_v4 = vpop.f32.mrf.mxu1 }
0x12ed   :  { %v6043_v50 = vadd.f32 %v6037_v4, %v5936_v43 }
0x12ee   :  { %v9222_v27 = vpop.f32.mrf.mxu1 }
0x12f0   :  { %v6040_v26 = vpop.f32.mrf.mxu1 }
0x12f2   :  { %v9223_v47 = vpop.f32.mrf.mxu1 }
0x12f4   :  { %v6144_v0 = vpop.f32.mrf.mxu1 }
0x12f5   :  { %v6150_v37 = vadd.f32 %v6144_v0, %v6043_v50 }
0x12f6   :  { %v9238_v17 = vpop.f32.mrf.mxu1 }
0x12f8   :  { %v6147_v34 = vpop.f32.mrf.mxu1 }
0x12fa   :  { %v9239_v40 = vpop.f32.mrf.mxu1 }
0x12fc   :  { %v6251_v51 = vpop.f32.mrf.mxu1 }
0x12fd   :  { %v6257_v57 = vadd.f32 %v6251_v51, %v6150_v37 }
0x12fe   :  { %v9254_v7 = vpop.f32.mrf.mxu1 }
0x1300   :  { %v6254_v10 = vpop.f32.mrf.mxu1 }
0x1302   :  { %v9255_v48 = vpop.f32.mrf.mxu1 }
0x1304   :  { %v6358_v11 = vpop.f32.mrf.mxu1 }
0x1305   :  { %v6364_v54 = vadd.f32 %v6358_v11, %v6257_v57 }
0x1306   :  { %v9270_v36 = vpop.f32.mrf.mxu1 }
0x1308   :  { %v6361_v13 = vpop.f32.mrf.mxu1 }
0x130a   :  { %v9271_v32 = vpop.f32.mrf.mxu1 }
0x130c   :  { %v6465_v45 = vpop.f32.mrf.mxu1 }
0x130d   :  { %v6471_v5 = vadd.f32 %v6465_v45, %v6364_v54 }
0x130e   :  { %v9286_v33 = vpop.f32.mrf.mxu1 }
0x1310   :  { %v6468_v21 = vpop.f32.mrf.mxu1 }
0x1312   :  { %v9287_v24 = vpop.f32.mrf.mxu1 }
0x1314   :  { %v6572_v20 = vpop.f32.mrf.mxu1 }
0x1315   :  { %v6578_v52 = vadd.f32 %v6572_v20, %v6471_v5 }
0x1316   :  { %v9302_v58 = vpop.f32.mrf.mxu1 }
0x1318   :  { %v6575_v44 = vpop.f32.mrf.mxu1 }
0x131a   :  { %v9303_v23 = vpop.f32.mrf.mxu1 }
0x131c   :  { %v6679_v29 = vpop.f32.mrf.mxu1 }
0x131d   :  { %v6685_v46 = vadd.f32 %v6679_v29, %v6578_v52 }
0x131e   :  { %v9318_v41 = vpop.f32.mrf.mxu1 }
0x1320   :  { %v6682_v30 = vpop.f32.mrf.mxu1 }
0x1322   :  { %v9319_v1 = vpop.f32.mrf.mxu1 }
0x1324   :  { %v6786_v53 = vpop.f32.mrf.mxu1 }
0x1325   :  { %v6792_v15 = vadd.f32 %v6786_v53, %v6685_v46 }
0x1326   :  { %v9334_v3 = vpop.f32.mrf.mxu1 }
0x1328   :  { %v6789_v56 = vpop.f32.mrf.mxu1 }
0x132a   :  { %v9335_v62 = vpop.f32.mrf.mxu1 }
0x132c   :  { %v6893_v61 = vpop.f32.mrf.mxu1 }
0x132d   :  { %v6899_v39 = vadd.f32 %v6893_v61, %v6792_v15 }
0x132e   :  { %v9350_v19 = vpop.f32.mrf.mxu1 }
0x1330   :  { %v6896_v12 = vpop.f32.mrf.mxu1 }
0x1332   :  { %v9351_v55 = vpop.f32.mrf.mxu1 }
0x1334   :  { %v7000_v14 = vpop.f32.mrf.mxu1 }
0x1335   :  { %v7006_v38 = vadd.f32 %v7000_v14, %v6899_v39 }
0x1336   :  { %v9366_v28 = vpop.f32.mrf.mxu1 }
0x1337   :  { %v7014_v18 = vadd.f32 %v7734_v16, %v7006_v38 }
0x1338   :  { %v7003_v59 = vpop.f32.mrf.mxu1 }
0x1339   :  { %v7735_v42 = vmul.f32 -1.442695, %v7014_v18 }
0x133a   :  { %v9367_v49 = vpop.f32.mrf.mxu1 }
0x133b   :  { %9626 = vpow2.f32 %v7735_v42 }
0x1348   :  { %v9627_v8 = vpop.eup %9626 }
0x1349   :  { %v7018_v35 = vadd.f32 1.0, %v9627_v8 }
0x134b   :  { %9628 = vrcp.f32 %v7018_v35 }
0x1358   :  { %v9629_v6 = vpop.eup %9628 }
0x1359   :  { %7022 = vst.msk [vmem:[%s11630_s11] sm:$0x3] %vm7021_vm7, %v9629_v6 }

</bundles_post_ra>
